<compile_context>
chip_gen: v5e
topology: v5e:2x2
jax: 0.10.0
libtpu: 0.0.40
codegen_flags: <defaults>
</compile_context>

<pallas_src>
import jax
import jax.numpy as jnp
from jax.experimental import pallas as pl
from jax.experimental.pallas import tpu as pltpu

_BN_EPS = 1e-5

# Nonzero (input-row-offset a, input-col-offset b) taps per output row parity r.
# r=0 only receives contributions from a=0; r=1 from a in {0,1}.
_TAPS = (((0, 0), (0, 1)),
         ((0, 0), (0, 1), (1, 0), (1, 1)))


# ----------------------------------------------------------------------------
# Fused GatedResidualUp block kernel (one grid step = one image)
# ----------------------------------------------------------------------------

def _up_block_kernel(x_ref, wres_ref, w1_ref, b1_ref, scale2_ref, shift2_ref,
                     o_ref, xpad, ypad, acc):
    """x_ref      : (H, W, Cin)        bf16  input image (batch dim squeezed)
    wres_ref   : (6, Cin, 2*Cout)   bf16  packed nonzero ConvT taps
                                          (order = _TAPS, col parities packed in N)
    w1_ref     : (Cin, Cout)        bf16  1x1 conv weight
    b1_ref     : (1, Cout)          f32   1x1 conv bias
    scale2_ref : (1, 2*Cout)        f32   folded BN scale (tiled over col parities)
    shift2_ref : (1, 2*Cout)        f32   folded BN shift (tiled over col parities)
    o_ref      : (H, 2, W, 2*Cout)  bf16  both row parities of the output
    xpad       : VMEM (H+1, W+1, Cin)  bf16  zero-padded x (ConvT taps)
    ypad       : VMEM (H+2, W+2, Cout) f32   edge-padded y = x @ w1 + b1
    acc        : VMEM (H*W, 2*Cout)    f32   matmul accumulator
    """
    H, W, Cin = x_ref.shape
    Cout = ypad.shape[-1]

    xv = x_ref[...]
    # Zero-padded x for the transposed-conv taps (only offsets +0 / +1 needed).
    xpad[pl.ds(0, H), pl.ds(0, W), :] = xv
    xpad[pl.ds(H, 1), :, :] = jnp.zeros((1, W + 1, Cin), x_ref.dtype)
    xpad[:, pl.ds(W, 1), :] = jnp.zeros((H + 1, 1, Cin), x_ref.dtype)

    # y = conv1x1(x) at LOW resolution (commuted with the bilinear upsample),
    # edge-replicated padding (matches align_corners=False border clamping).
    xb = xv.reshape(H * W, Cin)
    y = (jnp.dot(xb, w1_ref[...], preferred_element_type=jnp.float32)
         + b1_ref[...]).reshape(H, W, Cout)
    ypad[pl.ds(1, H), pl.ds(1, W), :] = y
    ypad[pl.ds(0, 1), pl.ds(1, W), :] = y[0:1]
    ypad[pl.ds(H + 1, 1), pl.ds(1, W), :] = y[H - 1:H]
    ypad[:, pl.ds(0, 1), :] = ypad[:, pl.ds(1, 1), :]
    ypad[:, pl.ds(W + 1, 1), :] = ypad[:, pl.ds(W, 1), :]

    widx = 0
    for r in range(2):                          # static output row parity
        # ---- residual = ReLU(BN(ConvTranspose2d(x))), row parity r ----
        # Only nonzero-tap input offsets are materialized (2 matmuls for r=0,
        # 4 for r=1); each matmul produces BOTH column parities.
        for t, (a, b) in enumerate(_TAPS[r]):
            xs = xpad[pl.ds(a, H), pl.ds(b, W), :].reshape(H * W, Cin)
            prod = jnp.dot(xs, wres_ref[widx], preferred_element_type=jnp.float32)
            if t == 0:
                acc[...] = prod                 # assign-first: no zero-fill pass
            else:
                acc[...] += prod
            widx += 1
        res = jnp.maximum(acc[...] * scale2_ref[...] + shift2_ref[...], 0.0)
        res = res.reshape(H, W, 2 * Cout)

        # ---- up = bilinear_x2(conv1x1(x)), row parity r, both col parities ----
        w_lo = 0.25 if r == 0 else 0.75         # weight of ypad row offset r + 0
        rowi = (w_lo * ypad[pl.ds(r, H), :, :]
                + (1.0 - w_lo) * ypad[pl.ds(r + 1, H), :, :])   # (H, W+2, Cout)
        ups = []
        for s in range(2):                      # static column parity
            c_lo = 0.25 if s == 0 else 0.75
            ups.append(c_lo * rowi[:, s:s + W, :]
                       + (1.0 - c_lo) * rowi[:, s + 1:s + 1 + W, :])
        up = jnp.concatenate(ups, axis=-1)      # (H, W, 2*Cout)

        out_r = jnp.maximum(up + res, 0.0).astype(o_ref.dtype)
        o_ref[:, r:r + 1] = out_r.reshape(H, 1, W, 2 * Cout)


def _fold_up_params(p):
    """Fold BN + pack the nonzero ConvTranspose2d taps into a (6, Cin, 2*Cout) table."""
    wt = p["wt"].astype(jnp.float32)            # (Cin, Cout, 3, 3), PyTorch layout
    Cin, Cout = wt.shape[0], wt.shape[1]
    zero = jnp.zeros((Cin, Cout), jnp.float32)

    def tap(par, off):
        # kernel index along one axis contributing to output parity `par`
        # from input offset `off` (None -> no contribution).
        return None if off > par else 1 + par - 2 * off

    mats = []
    for r in range(2):                          # output row parity
        for (a, b) in _TAPS[r]:                 # nonzero input offsets only
            ky = tap(r, a)                      # never None for listed taps
            blocks = []
            for s in range(2):                  # output col parity (packed in N)
                kx = tap(s, b)
                blocks.append(zero if kx is None else wt[:, :, ky, kx])
            mats.append(jnp.concatenate(blocks, axis=1))        # (Cin, 2*Cout)
    wres = jnp.stack(mats, axis=0).astype(jnp.bfloat16)         # (6, Cin, 2*Cout)

    scale = (p["gamma"] / jnp.sqrt(p["var"] + _BN_EPS)).astype(jnp.float32)
    shift = (p["beta"] - p["mean"] * scale).astype(jnp.float32)
    scale2 = jnp.concatenate([scale, scale]).reshape(1, 2 * Cout)
    shift2 = jnp.concatenate([shift, shift]).reshape(1, 2 * Cout)
    w1 = p["w1"][:, :, 0, 0].T.astype(jnp.bfloat16)             # (Cin, Cout)
    b1 = p["b1"].reshape(1, Cout).astype(jnp.float32)
    return wres, w1, b1, scale2, shift2


def _up_block(x, p):
    """(N, H, W, Cin) bf16 -> (N, 2H, 2W, Cin // 2) bf16, fused GatedResidualUp."""
    N, H, W, Cin = x.shape
    wres, w1, b1, scale2, shift2 = _fold_up_params(p)
    Cout = w1.shape[-1]
    C2 = 2 * Cout
    flops = int(N * H * W * Cin * Cout * 26)     # 6 packed-tap matmuls + 1x1 conv
    bytes_accessed = int(2 * N * H * W * (Cin + 4 * Cout) + 2 * 7 * Cin * Cout)
    # TODO(synk): for very large spatial sizes, add row tiling (with a 1-row halo)
    # so per-step VMEM stays under v7x's 64 MiB budget.
    out = pl.pallas_call(
        _up_block_kernel,
        out_shape=jax.ShapeDtypeStruct((N, H, 2, W, C2), x.dtype),
        grid=(N,),
        in_specs=[
            pl.BlockSpec((None, H, W, Cin), lambda n: (n, 0, 0, 0)),
            pl.BlockSpec((6, Cin, C2), lambda n: (0, 0, 0)),
            pl.BlockSpec((Cin, Cout), lambda n: (0, 0)),
            pl.BlockSpec((1, Cout), lambda n: (0, 0)),
            pl.BlockSpec((1, C2), lambda n: (0, 0)),
            pl.BlockSpec((1, C2), lambda n: (0, 0)),
        ],
        out_specs=pl.BlockSpec((None, H, 2, W, C2), lambda n: (n, 0, 0, 0, 0)),
        scratch_shapes=[
            pltpu.VMEM((H + 1, W + 1, Cin), x.dtype),
            pltpu.VMEM((H + 2, W + 2, Cout), jnp.float32),
            pltpu.VMEM((H * W, C2), jnp.float32),
        ],
        compiler_params=pltpu.CompilerParams(dimension_semantics=("parallel",)),
        cost_estimate=pl.CostEstimate(flops=flops, transcendentals=0,
                                      bytes_accessed=bytes_accessed),
    )(x, wres, w1, b1, scale2, shift2)
    # (N, H, 2, W, 2*Cout) and (N, 2H, 2W, Cout) share the same linear layout:
    # this reshape is a free adjacent-dim merge, not a transpose.
    return out.reshape(N, 2 * H, 2 * W, Cout)


# ----------------------------------------------------------------------------
# Fused smooth (3x3 + ReLU) + final 1x1 kernel, NCHW lane-dense output
# ----------------------------------------------------------------------------

def _smooth_final_kernel(x_ref, ws_ref, bs_ref, wf_ref, bf_ref, o_ref, xpad, acc):
    """x_ref: (Hf, Wf, Cs) bf16; ws_ref: (3,3,Cs,Cs) bf16; bs_ref: (1,Cs) f32;
    wf_ref: (Cs, K) f32; bf_ref: (1, K) f32 in SMEM; o_ref: (K, Hf, Wf) f32."""
    Hf, Wf, Cs = x_ref.shape
    K = o_ref.shape[0]

    # Zero-padded input for the 3x3 "same" conv, built in VMEM (no HBM pad pass).
    xpad[pl.ds(1, Hf), pl.ds(1, Wf), :] = x_ref[...]
    zrow = jnp.zeros((1, Wf + 2, Cs), x_ref.dtype)
    xpad[pl.ds(0, 1), :, :] = zrow
    xpad[pl.ds(Hf + 1, 1), :, :] = zrow
    zcol = jnp.zeros((Hf + 2, 1, Cs), x_ref.dtype)
    xpad[:, pl.ds(0, 1), :] = zcol
    xpad[:, pl.ds(Wf + 1, 1), :] = zcol

    first = True
    for ky in range(3):
        for kx in range(3):
            patch = xpad[pl.ds(ky, Hf), pl.ds(kx, Wf), :].reshape(Hf * Wf, Cs)
            prod = jnp.dot(patch, ws_ref[ky, kx], preferred_element_type=jnp.float32)
            if first:
                acc[...] = prod                  # assign-first: no zero-fill pass
                first = False
            else:
                acc[...] += prod
    s = jnp.maximum(acc[...] + bs_ref[...], 0.0).reshape(Hf, Wf, Cs)
    # TODO(synk): Dropout2d(0.15) is identity in eval mode; training-mode
    # stochastic channel dropout is not implemented.

    # final 1x1 conv as a per-class channel reduction -> NCHW, lane-dense stores.
    wf = wf_ref[...]
    for k in range(K):
        o_ref[k] = jnp.sum(s * wf[:, k], axis=-1) + bf_ref[0, k]


def _smooth_final(x, params):
    N, Hf, Wf, Cs = x.shape
    ws = jnp.transpose(params["w_smooth"], (2, 3, 1, 0)).astype(jnp.bfloat16)  # OIHW->HWIO
    bs = params["b_smooth"].reshape(1, Cs).astype(jnp.float32)
    wf = params["w_final"][:, :, 0, 0].T.astype(jnp.float32)                   # (Cs, K)
    K = wf.shape[-1]
    bf = params["b_final"].reshape(1, K).astype(jnp.float32)
    flops = int(N * Hf * Wf * Cs * (18 * Cs + 2 * K))
    bytes_accessed = int(2 * N * Hf * Wf * Cs + 4 * N * Hf * Wf * K + 2 * 9 * Cs * Cs)
    return pl.pallas_call(
        _smooth_final_kernel,
        out_shape=jax.ShapeDtypeStruct((N, K, Hf, Wf), jnp.float32),
        grid=(N,),
        in_specs=[
            pl.BlockSpec((None, Hf, Wf, Cs), lambda n: (n, 0, 0, 0)),
            pl.BlockSpec((3, 3, Cs, Cs), lambda n: (0, 0, 0, 0)),
            pl.BlockSpec((1, Cs), lambda n: (0, 0)),
            pl.BlockSpec((Cs, K), lambda n: (0, 0)),
            pl.BlockSpec(memory_space=pltpu.MemorySpace.SMEM),
        ],
        out_specs=pl.BlockSpec((None, K, Hf, Wf), lambda n: (n, 0, 0, 0)),
        scratch_shapes=[
            pltpu.VMEM((Hf + 2, Wf + 2, Cs), x.dtype),
            pltpu.VMEM((Hf * Wf, Cs), jnp.float32),
        ],
        compiler_params=pltpu.CompilerParams(dimension_semantics=("parallel",)),
        cost_estimate=pl.CostEstimate(flops=flops, transcendentals=0,
                                      bytes_accessed=bytes_accessed),
    )(x, ws, bs, wf, bf)


# ----------------------------------------------------------------------------
# Module forward
# ----------------------------------------------------------------------------

def gated_residual_up_head(x_nchw, params):
    """GatedResidualUpHead forward. Input NCHW f32, output NCHW (N, num_classes, 4H, 4W)."""
    # NCHW -> NHWC; intermediates carried in bf16 (matmul consumers cast to bf16
    # anyway, so this is numerically identical and halves inter-kernel HBM traffic).
    x = jnp.transpose(x_nchw, (0, 2, 3, 1)).astype(jnp.bfloat16)
    x = _up_block(x, params["up1"])        # C   -> C/2, 2x spatial
    x = _up_block(x, params["up2"])        # C/2 -> C/4, 2x spatial
    return _smooth_final(x, params)        # smooth 3x3 + ReLU, final 1x1 -> NCHW f32


# ----------------------------------------------------------------------------
# Deterministic parameter construction (PyTorch shapes)
# ----------------------------------------------------------------------------

def init_params(key, in_channels=128, num_classes=1):
    ks = jax.random.split(key, 8)

    def w_init(k, shape, fan_in):
        return jax.random.normal(k, shape, jnp.float32) / jnp.sqrt(float(fan_in))

    def b_init(k, shape):
        return 0.05 * jax.random.normal(k, shape, jnp.float32)

    def up_params(kw, kb, cin):
        cout = cin // 2
        return dict(
            wt=w_init(kw, (cin, cout, 3, 3), cin * 9),     # ConvTranspose2d (in, out, kh, kw)
            gamma=jnp.ones((cout,), jnp.float32),          # BatchNorm2d (eval-mode defaults)
            beta=jnp.zeros((cout,), jnp.float32),
            mean=jnp.zeros((cout,), jnp.float32),
            var=jnp.ones((cout,), jnp.float32),
            w1=w_init(kb, (cout, cin, 1, 1), cin),         # Conv2d 1x1 (out, in, 1, 1)
            b1=b_init(jax.random.fold_in(kb, 1), (cout,)),
        )

    c4 = in_channels // 4
    return dict(
        up1=up_params(ks[0], ks[1], in_channels),
        up2=up_params(ks[2], ks[3], in_channels // 2),
        w_smooth=w_init(ks[4], (c4, c4, 3, 3), c4 * 9),    # Conv2d 3x3 (out, in, kh, kw)
        b_smooth=b_init(ks[5], (c4,)),
        w_final=w_init(ks[6], (num_classes, c4, 1, 1), c4),
        b_final=b_init(ks[7], (num_classes,)),
    )


if __name__ == "__main__":
    key = jax.random.PRNGKey(0)
    pkey, xkey = jax.random.split(key)
    params = init_params(pkey, in_channels=128, num_classes=1)

    # Small NCHW input consistent with the module: (N=2, C=128, H=4, W=4).
    x = jax.random.normal(xkey, (2, 128, 4, 4), jnp.float32)

    fwd = jax.jit(gated_residual_up_head)
    out = jax.block_until_ready(fwd(x, params))

    assert out.shape == (2, 1, 16, 16), out.shape
    assert bool(jnp.all(jnp.isfinite(out)))
    print("KERNEL_OK")
</pallas_src>

<mosaic_0001>
module attributes {stable_mosaic.version = 11 : i64} {
  func.func @_up_block_kernel(%arg0: i32, %arg1: memref<1x4x4x128xbf16, #tpu.memory_space<vmem>>, %arg2: memref<6x128x128xbf16, #tpu.memory_space<vmem>>, %arg3: memref<128x64xbf16, #tpu.memory_space<vmem>>, %arg4: memref<1x64xf32, #tpu.memory_space<vmem>>, %arg5: memref<1x128xf32, #tpu.memory_space<vmem>>, %arg6: memref<1x128xf32, #tpu.memory_space<vmem>>, %arg7: memref<1x4x2x4x128xbf16, #tpu.memory_space<vmem>>, %arg8: memref<5x5x128xbf16, #tpu.memory_space<vmem>>, %arg9: memref<6x6x64xf32, #tpu.memory_space<vmem>>, %arg10: memref<16x128xf32, #tpu.memory_space<vmem>>) attributes {dimension_semantics = [#tpu.dimension_semantics<parallel>], iteration_bounds = array<i64: 2>, scalar_prefetch = 0 : i64, scratch_operands = 3 : i64, tpu.core_type = #tpu.core_type<tc>, window_params = [{transform_indices = @transform_0, window_bounds = array<i64: 1, 4, 4, 128>}, {pipeline_mode = #tpu.pipeline_mode<synchronous>, transform_indices = @transform_1, window_bounds = array<i64: 6, 128, 128>}, {pipeline_mode = #tpu.pipeline_mode<synchronous>, transform_indices = @transform_2, window_bounds = array<i64: 128, 64>}, {pipeline_mode = #tpu.pipeline_mode<synchronous>, transform_indices = @transform_3, window_bounds = array<i64: 1, 64>}, {pipeline_mode = #tpu.pipeline_mode<synchronous>, transform_indices = @transform_4, window_bounds = array<i64: 1, 128>}, {pipeline_mode = #tpu.pipeline_mode<synchronous>, transform_indices = @transform_5, window_bounds = array<i64: 1, 128>}, {transform_indices = @transform_6, window_bounds = array<i64: 1, 4, 2, 4, 128>}]} {
    %c0 = arith.constant 0 : index
    %c0_0 = arith.constant 0 : index
    %c0_1 = arith.constant 0 : index
    %c0_2 = arith.constant 0 : index
    %0 = vector.load %arg1[%c0, %c0_0, %c0_1, %c0_2] : memref<1x4x4x128xbf16, #tpu.memory_space<vmem>>, vector<1x4x4x128xbf16>
    %1 = vector.shape_cast %0 : vector<1x4x4x128xbf16> to vector<4x4x128xbf16>
    %c0_3 = arith.constant 0 : index
    %c0_4 = arith.constant 0 : index
    %c0_5 = arith.constant 0 : index
    %2 = vector.load %arg8[%c0_3, %c0_4, %c0_5] : memref<5x5x128xbf16, #tpu.memory_space<vmem>>, vector<4x4x128xbf16>
    tpu.vector_store %arg8[%c0_3, %c0_4, %c0_5], %1 {strides = array<i32>} : memref<5x5x128xbf16, #tpu.memory_space<vmem>>, vector<4x4x128xbf16>,
    %cst = arith.constant 0.000000e+00 : bf16
    %3 = vector.broadcast %cst : bf16 to vector<1x5x128xbf16>
    %c4 = arith.constant 4 : index
    %c0_6 = arith.constant 0 : index
    %c0_7 = arith.constant 0 : index
    %4 = vector.load %arg8[%c4, %c0_6, %c0_7] : memref<5x5x128xbf16, #tpu.memory_space<vmem>>, vector<1x5x128xbf16>
    tpu.vector_store %arg8[%c4, %c0_6, %c0_7], %3 {strides = array<i32>} : memref<5x5x128xbf16, #tpu.memory_space<vmem>>, vector<1x5x128xbf16>,
    %cst_8 = arith.constant 0.000000e+00 : bf16
    %5 = vector.broadcast %cst_8 : bf16 to vector<5x1x128xbf16>
    %c0_9 = arith.constant 0 : index
    %c4_10 = arith.constant 4 : index
    %c0_11 = arith.constant 0 : index
    %6 = vector.load %arg8[%c0_9, %c4_10, %c0_11] : memref<5x5x128xbf16, #tpu.memory_space<vmem>>, vector<5x1x128xbf16>
    tpu.vector_store %arg8[%c0_9, %c4_10, %c0_11], %5 {strides = array<i32>} : memref<5x5x128xbf16, #tpu.memory_space<vmem>>, vector<5x1x128xbf16>,
    %7 = vector.shape_cast %1 : vector<4x4x128xbf16> to vector<16x128xbf16>
    %c0_12 = arith.constant 0 : index
    %c0_13 = arith.constant 0 : index
    %8 = vector.load %arg3[%c0_12, %c0_13] : memref<128x64xbf16, #tpu.memory_space<vmem>>, vector<128x64xbf16>
    %cst_14 = arith.constant dense<0.000000e+00> : vector<16x64xf32>
    %9 = tpu.matmul %7, %8, %cst_14 {dimension_numbers = #tpu.dot_dimension_numbers<[1], [0], [0], [1], [0, 0, 1, 1], [], []>} : vector<16x128xbf16>, vector<128x64xbf16>, vector<16x64xf32> -> vector<16x64xf32>
    %c0_15 = arith.constant 0 : index
    %c0_16 = arith.constant 0 : index
    %10 = vector.load %arg4[%c0_15, %c0_16] : memref<1x64xf32, #tpu.memory_space<vmem>>, vector<1x64xf32>
    %11 = vector.broadcast %10 : vector<1x64xf32> to vector<16x64xf32>
    %12 = arith.addf %9, %11 : vector<16x64xf32>
    %13 = vector.shape_cast %12 : vector<16x64xf32> to vector<4x4x64xf32>
    %c1 = arith.constant 1 : index
    %c1_17 = arith.constant 1 : index
    %c0_18 = arith.constant 0 : index
    %14 = vector.load %arg9[%c1, %c1_17, %c0_18] : memref<6x6x64xf32, #tpu.memory_space<vmem>>, vector<4x4x64xf32>
    tpu.vector_store %arg9[%c1, %c1_17, %c0_18], %13 {strides = array<i32>} : memref<6x6x64xf32, #tpu.memory_space<vmem>>, vector<4x4x64xf32>,
    %15 = vector.extract_strided_slice %13 {offsets = [0, 0, 0], sizes = [1, 4, 64], strides = [1, 1, 1]} : vector<4x4x64xf32> to vector<1x4x64xf32>
    %c0_19 = arith.constant 0 : index
    %c1_20 = arith.constant 1 : index
    %c0_21 = arith.constant 0 : index
    %16 = vector.load %arg9[%c0_19, %c1_20, %c0_21] : memref<6x6x64xf32, #tpu.memory_space<vmem>>, vector<1x4x64xf32>
    tpu.vector_store %arg9[%c0_19, %c1_20, %c0_21], %15 {strides = array<i32>} : memref<6x6x64xf32, #tpu.memory_space<vmem>>, vector<1x4x64xf32>,
    %17 = vector.extract_strided_slice %13 {offsets = [3, 0, 0], sizes = [1, 4, 64], strides = [1, 1, 1]} : vector<4x4x64xf32> to vector<1x4x64xf32>
    %c5 = arith.constant 5 : index
    %c1_22 = arith.constant 1 : index
    %c0_23 = arith.constant 0 : index
    %18 = vector.load %arg9[%c5, %c1_22, %c0_23] : memref<6x6x64xf32, #tpu.memory_space<vmem>>, vector<1x4x64xf32>
    tpu.vector_store %arg9[%c5, %c1_22, %c0_23], %17 {strides = array<i32>} : memref<6x6x64xf32, #tpu.memory_space<vmem>>, vector<1x4x64xf32>,
    %c0_24 = arith.constant 0 : index
    %c1_25 = arith.constant 1 : index
    %c0_26 = arith.constant 0 : index
    %19 = vector.load %arg9[%c0_24, %c1_25, %c0_26] : memref<6x6x64xf32, #tpu.memory_space<vmem>>, vector<6x1x64xf32>
    %c0_27 = arith.constant 0 : index
    %c0_28 = arith.constant 0 : index
    %c0_29 = arith.constant 0 : index
    %20 = vector.load %arg9[%c0_27, %c0_28, %c0_29] : memref<6x6x64xf32, #tpu.memory_space<vmem>>, vector<6x1x64xf32>
    tpu.vector_store %arg9[%c0_27, %c0_28, %c0_29], %19 {strides = array<i32>} : memref<6x6x64xf32, #tpu.memory_space<vmem>>, vector<6x1x64xf32>,
    %c0_30 = arith.constant 0 : index
    %c4_31 = arith.constant 4 : index
    %c0_32 = arith.constant 0 : index
    %21 = vector.load %arg9[%c0_30, %c4_31, %c0_32] : memref<6x6x64xf32, #tpu.memory_space<vmem>>, vector<6x1x64xf32>
    %c0_33 = arith.constant 0 : index
    %c5_34 = arith.constant 5 : index
    %c0_35 = arith.constant 0 : index
    %22 = vector.load %arg9[%c0_33, %c5_34, %c0_35] : memref<6x6x64xf32, #tpu.memory_space<vmem>>, vector<6x1x64xf32>
    tpu.vector_store %arg9[%c0_33, %c5_34, %c0_35], %21 {strides = array<i32>} : memref<6x6x64xf32, #tpu.memory_space<vmem>>, vector<6x1x64xf32>,
    %c0_36 = arith.constant 0 : index
    %c0_37 = arith.constant 0 : index
    %c0_38 = arith.constant 0 : index
    %23 = vector.load %arg8[%c0_36, %c0_37, %c0_38] : memref<5x5x128xbf16, #tpu.memory_space<vmem>>, vector<4x4x128xbf16>
    %24 = vector.shape_cast %23 : vector<4x4x128xbf16> to vector<16x128xbf16>
    %c0_39 = arith.constant 0 : index
    %c0_40 = arith.constant 0 : index
    %c0_41 = arith.constant 0 : index
    %25 = vector.load %arg2[%c0_39, %c0_40, %c0_41] : memref<6x128x128xbf16, #tpu.memory_space<vmem>>, vector<1x128x128xbf16>
    %26 = vector.shape_cast %25 : vector<1x128x128xbf16> to vector<128x128xbf16>
    %cst_42 = arith.constant dense<0.000000e+00> : vector<16x128xf32>
    %27 = tpu.matmul %24, %26, %cst_42 {dimension_numbers = #tpu.dot_dimension_numbers<[1], [0], [0], [1], [0, 0, 1, 1], [], []>} : vector<16x128xbf16>, vector<128x128xbf16>, vector<16x128xf32> -> vector<16x128xf32>
    %c0_43 = arith.constant 0 : index
    %c0_44 = arith.constant 0 : index
    %28 = vector.load %arg10[%c0_43, %c0_44] : memref<16x128xf32, #tpu.memory_space<vmem>>, vector<16x128xf32>
    tpu.vector_store %arg10[%c0_43, %c0_44], %27 {strides = array<i32>} : memref<16x128xf32, #tpu.memory_space<vmem>>, vector<16x128xf32>,
    %c0_45 = arith.constant 0 : index
    %c1_46 = arith.constant 1 : index
    %c0_47 = arith.constant 0 : index
    %29 = vector.load %arg8[%c0_45, %c1_46, %c0_47] : memref<5x5x128xbf16, #tpu.memory_space<vmem>>, vector<4x4x128xbf16>
    %30 = vector.shape_cast %29 : vector<4x4x128xbf16> to vector<16x128xbf16>
    %c1_48 = arith.constant 1 : index
    %c0_49 = arith.constant 0 : index
    %c0_50 = arith.constant 0 : index
    %31 = vector.load %arg2[%c1_48, %c0_49, %c0_50] : memref<6x128x128xbf16, #tpu.memory_space<vmem>>, vector<1x128x128xbf16>
    %32 = vector.shape_cast %31 : vector<1x128x128xbf16> to vector<128x128xbf16>
    %cst_51 = arith.constant dense<0.000000e+00> : vector<16x128xf32>
    %33 = tpu.matmul %30, %32, %cst_51 {dimension_numbers = #tpu.dot_dimension_numbers<[1], [0], [0], [1], [0, 0, 1, 1], [], []>} : vector<16x128xbf16>, vector<128x128xbf16>, vector<16x128xf32> -> vector<16x128xf32>
    %c0_52 = arith.constant 0 : index
    %c0_53 = arith.constant 0 : index
    %34 = vector.load %arg10[%c0_52, %c0_53] : memref<16x128xf32, #tpu.memory_space<vmem>>, vector<16x128xf32>
    %35 = arith.addf %34, %33 : vector<16x128xf32>
    %c0_54 = arith.constant 0 : index
    %c0_55 = arith.constant 0 : index
    %36 = vector.load %arg10[%c0_54, %c0_55] : memref<16x128xf32, #tpu.memory_space<vmem>>, vector<16x128xf32>
    tpu.vector_store %arg10[%c0_54, %c0_55], %35 {strides = array<i32>} : memref<16x128xf32, #tpu.memory_space<vmem>>, vector<16x128xf32>,
    %c0_56 = arith.constant 0 : index
    %c0_57 = arith.constant 0 : index
    %37 = vector.load %arg10[%c0_56, %c0_57] : memref<16x128xf32, #tpu.memory_space<vmem>>, vector<16x128xf32>
    %c0_58 = arith.constant 0 : index
    %c0_59 = arith.constant 0 : index
    %38 = vector.load %arg5[%c0_58, %c0_59] : memref<1x128xf32, #tpu.memory_space<vmem>>, vector<1x128xf32>
    %39 = vector.broadcast %38 : vector<1x128xf32> to vector<16x128xf32>
    %40 = arith.mulf %37, %39 : vector<16x128xf32>
    %c0_60 = arith.constant 0 : index
    %c0_61 = arith.constant 0 : index
    %41 = vector.load %arg6[%c0_60, %c0_61] : memref<1x128xf32, #tpu.memory_space<vmem>>, vector<1x128xf32>
    %42 = vector.broadcast %41 : vector<1x128xf32> to vector<16x128xf32>
    %43 = arith.addf %40, %42 : vector<16x128xf32>
    %cst_62 = arith.constant 0.000000e+00 : f32
    %44 = vector.broadcast %cst_62 : f32 to vector<16x128xf32>
    %45 = arith.maximumf %43, %44 : vector<16x128xf32>
    %46 = vector.shape_cast %45 : vector<16x128xf32> to vector<4x4x128xf32>
    %c0_63 = arith.constant 0 : index
    %c0_64 = arith.constant 0 : index
    %c0_65 = arith.constant 0 : index
    %47 = vector.load %arg9[%c0_63, %c0_64, %c0_65] : memref<6x6x64xf32, #tpu.memory_space<vmem>>, vector<4x6x64xf32>
    %cst_66 = arith.constant 2.500000e-01 : f32
    %48 = vector.broadcast %cst_66 : f32 to vector<4x6x64xf32>
    %49 = arith.mulf %48, %47 : vector<4x6x64xf32>
    %c1_67 = arith.constant 1 : index
    %c0_68 = arith.constant 0 : index
    %c0_69 = arith.constant 0 : index
    %50 = vector.load %arg9[%c1_67, %c0_68, %c0_69] : memref<6x6x64xf32, #tpu.memory_space<vmem>>, vector<4x6x64xf32>
    %cst_70 = arith.constant 7.500000e-01 : f32
    %51 = vector.broadcast %cst_70 : f32 to vector<4x6x64xf32>
    %52 = arith.mulf %51, %50 : vector<4x6x64xf32>
    %53 = arith.addf %49, %52 : vector<4x6x64xf32>
    %54 = vector.extract_strided_slice %53 {offsets = [0, 0, 0], sizes = [4, 4, 64], strides = [1, 1, 1]} : vector<4x6x64xf32> to vector<4x4x64xf32>
    %cst_71 = arith.constant 2.500000e-01 : f32
    %55 = vector.broadcast %cst_71 : f32 to vector<4x4x64xf32>
    %56 = arith.mulf %55, %54 : vector<4x4x64xf32>
    %57 = vector.extract_strided_slice %53 {offsets = [0, 1, 0], sizes = [4, 4, 64], strides = [1, 1, 1]} : vector<4x6x64xf32> to vector<4x4x64xf32>
    %cst_72 = arith.constant 7.500000e-01 : f32
    %58 = vector.broadcast %cst_72 : f32 to vector<4x4x64xf32>
    %59 = arith.mulf %58, %57 : vector<4x4x64xf32>
    %60 = arith.addf %56, %59 : vector<4x4x64xf32>
    %61 = vector.extract_strided_slice %53 {offsets = [0, 1, 0], sizes = [4, 4, 64], strides = [1, 1, 1]} : vector<4x6x64xf32> to vector<4x4x64xf32>
    %cst_73 = arith.constant 7.500000e-01 : f32
    %62 = vector.broadcast %cst_73 : f32 to vector<4x4x64xf32>
    %63 = arith.mulf %62, %61 : vector<4x4x64xf32>
    %64 = vector.extract_strided_slice %53 {offsets = [0, 2, 0], sizes = [4, 4, 64], strides = [1, 1, 1]} : vector<4x6x64xf32> to vector<4x4x64xf32>
    %cst_74 = arith.constant 2.500000e-01 : f32
    %65 = vector.broadcast %cst_74 : f32 to vector<4x4x64xf32>
    %66 = arith.mulf %65, %64 : vector<4x4x64xf32>
    %67 = arith.addf %63, %66 : vector<4x4x64xf32>
    %68 = tpu.concatenate %60, %67 in 2 : vector<4x4x64xf32>, vector<4x4x64xf32> -> vector<4x4x128xf32>
    %69 = arith.addf %68, %46 : vector<4x4x128xf32>
    %cst_75 = arith.constant 0.000000e+00 : f32
    %70 = vector.broadcast %cst_75 : f32 to vector<4x4x128xf32>
    %71 = arith.maximumf %69, %70 : vector<4x4x128xf32>
    %72 = arith.truncf %71 : vector<4x4x128xf32> to vector<4x4x128xbf16>
    %73 = vector.shape_cast %72 : vector<4x4x128xbf16> to vector<4x1x4x128xbf16>
    %c0_76 = arith.constant 0 : index
    %c0_77 = arith.constant 0 : index
    %c0_78 = arith.constant 0 : index
    %c0_79 = arith.constant 0 : index
    %c0_80 = arith.constant 0 : index
    %74 = vector.load %arg7[%c0_76, %c0_77, %c0_78, %c0_79, %c0_80] : memref<1x4x2x4x128xbf16, #tpu.memory_space<vmem>>, vector<1x4x1x4x128xbf16>
    %75 = vector.shape_cast %74 : vector<1x4x1x4x128xbf16> to vector<4x1x4x128xbf16>
    %76 = vector.shape_cast %73 : vector<4x1x4x128xbf16> to vector<1x4x1x4x128xbf16>
    tpu.vector_store %arg7[%c0_76, %c0_77, %c0_78, %c0_79, %c0_80], %76 {strides = array<i32>} : memref<1x4x2x4x128xbf16, #tpu.memory_space<vmem>>, vector<1x4x1x4x128xbf16>,
    %c0_81 = arith.constant 0 : index
    %c0_82 = arith.constant 0 : index
    %c0_83 = arith.constant 0 : index
    %77 = vector.load %arg8[%c0_81, %c0_82, %c0_83] : memref<5x5x128xbf16, #tpu.memory_space<vmem>>, vector<4x4x128xbf16>
    %78 = vector.shape_cast %77 : vector<4x4x128xbf16> to vector<16x128xbf16>
    %c2 = arith.constant 2 : index
    %c0_84 = arith.constant 0 : index
    %c0_85 = arith.constant 0 : index
    %79 = vector.load %arg2[%c2, %c0_84, %c0_85] : memref<6x128x128xbf16, #tpu.memory_space<vmem>>, vector<1x128x128xbf16>
    %80 = vector.shape_cast %79 : vector<1x128x128xbf16> to vector<128x128xbf16>
    %cst_86 = arith.constant dense<0.000000e+00> : vector<16x128xf32>
    %81 = tpu.matmul %78, %80, %cst_86 {dimension_numbers = #tpu.dot_dimension_numbers<[1], [0], [0], [1], [0, 0, 1, 1], [], []>} : vector<16x128xbf16>, vector<128x128xbf16>, vector<16x128xf32> -> vector<16x128xf32>
    %c0_87 = arith.constant 0 : index
    %c0_88 = arith.constant 0 : index
    %82 = vector.load %arg10[%c0_87, %c0_88] : memref<16x128xf32, #tpu.memory_space<vmem>>, vector<16x128xf32>
    tpu.vector_store %arg10[%c0_87, %c0_88], %81 {strides = array<i32>} : memref<16x128xf32, #tpu.memory_space<vmem>>, vector<16x128xf32>,
    %c0_89 = arith.constant 0 : index
    %c1_90 = arith.constant 1 : index
    %c0_91 = arith.constant 0 : index
    %83 = vector.load %arg8[%c0_89, %c1_90, %c0_91] : memref<5x5x128xbf16, #tpu.memory_space<vmem>>, vector<4x4x128xbf16>
    %84 = vector.shape_cast %83 : vector<4x4x128xbf16> to vector<16x128xbf16>
    %c3 = arith.constant 3 : index
    %c0_92 = arith.constant 0 : index
    %c0_93 = arith.constant 0 : index
    %85 = vector.load %arg2[%c3, %c0_92, %c0_93] : memref<6x128x128xbf16, #tpu.memory_space<vmem>>, vector<1x128x128xbf16>
    %86 = vector.shape_cast %85 : vector<1x128x128xbf16> to vector<128x128xbf16>
    %cst_94 = arith.constant dense<0.000000e+00> : vector<16x128xf32>
    %87 = tpu.matmul %84, %86, %cst_94 {dimension_numbers = #tpu.dot_dimension_numbers<[1], [0], [0], [1], [0, 0, 1, 1], [], []>} : vector<16x128xbf16>, vector<128x128xbf16>, vector<16x128xf32> -> vector<16x128xf32>
    %c0_95 = arith.constant 0 : index
    %c0_96 = arith.constant 0 : index
    %88 = vector.load %arg10[%c0_95, %c0_96] : memref<16x128xf32, #tpu.memory_space<vmem>>, vector<16x128xf32>
    %89 = arith.addf %88, %87 : vector<16x128xf32>
    %c0_97 = arith.constant 0 : index
    %c0_98 = arith.constant 0 : index
    %90 = vector.load %arg10[%c0_97, %c0_98] : memref<16x128xf32, #tpu.memory_space<vmem>>, vector<16x128xf32>
    tpu.vector_store %arg10[%c0_97, %c0_98], %89 {strides = array<i32>} : memref<16x128xf32, #tpu.memory_space<vmem>>, vector<16x128xf32>,
    %c1_99 = arith.constant 1 : index
    %c0_100 = arith.constant 0 : index
    %c0_101 = arith.constant 0 : index
    %91 = vector.load %arg8[%c1_99, %c0_100, %c0_101] : memref<5x5x128xbf16, #tpu.memory_space<vmem>>, vector<4x4x128xbf16>
    %92 = vector.shape_cast %91 : vector<4x4x128xbf16> to vector<16x128xbf16>
    %c4_102 = arith.constant 4 : index
    %c0_103 = arith.constant 0 : index
    %c0_104 = arith.constant 0 : index
    %93 = vector.load %arg2[%c4_102, %c0_103, %c0_104] : memref<6x128x128xbf16, #tpu.memory_space<vmem>>, vector<1x128x128xbf16>
    %94 = vector.shape_cast %93 : vector<1x128x128xbf16> to vector<128x128xbf16>
    %cst_105 = arith.constant dense<0.000000e+00> : vector<16x128xf32>
    %95 = tpu.matmul %92, %94, %cst_105 {dimension_numbers = #tpu.dot_dimension_numbers<[1], [0], [0], [1], [0, 0, 1, 1], [], []>} : vector<16x128xbf16>, vector<128x128xbf16>, vector<16x128xf32> -> vector<16x128xf32>
    %c0_106 = arith.constant 0 : index
    %c0_107 = arith.constant 0 : index
    %96 = vector.load %arg10[%c0_106, %c0_107] : memref<16x128xf32, #tpu.memory_space<vmem>>, vector<16x128xf32>
    %97 = arith.addf %96, %95 : vector<16x128xf32>
    %c0_108 = arith.constant 0 : index
    %c0_109 = arith.constant 0 : index
    %98 = vector.load %arg10[%c0_108, %c0_109] : memref<16x128xf32, #tpu.memory_space<vmem>>, vector<16x128xf32>
    tpu.vector_store %arg10[%c0_108, %c0_109], %97 {strides = array<i32>} : memref<16x128xf32, #tpu.memory_space<vmem>>, vector<16x128xf32>,
    %c1_110 = arith.constant 1 : index
    %c1_111 = arith.constant 1 : index
    %c0_112 = arith.constant 0 : index
    %99 = vector.load %arg8[%c1_110, %c1_111, %c0_112] : memref<5x5x128xbf16, #tpu.memory_space<vmem>>, vector<4x4x128xbf16>
    %100 = vector.shape_cast %99 : vector<4x4x128xbf16> to vector<16x128xbf16>
    %c5_113 = arith.constant 5 : index
    %c0_114 = arith.constant 0 : index
    %c0_115 = arith.constant 0 : index
    %101 = vector.load %arg2[%c5_113, %c0_114, %c0_115] : memref<6x128x128xbf16, #tpu.memory_space<vmem>>, vector<1x128x128xbf16>
    %102 = vector.shape_cast %101 : vector<1x128x128xbf16> to vector<128x128xbf16>
    %cst_116 = arith.constant dense<0.000000e+00> : vector<16x128xf32>
    %103 = tpu.matmul %100, %102, %cst_116 {dimension_numbers = #tpu.dot_dimension_numbers<[1], [0], [0], [1], [0, 0, 1, 1], [], []>} : vector<16x128xbf16>, vector<128x128xbf16>, vector<16x128xf32> -> vector<16x128xf32>
    %c0_117 = arith.constant 0 : index
    %c0_118 = arith.constant 0 : index
    %104 = vector.load %arg10[%c0_117, %c0_118] : memref<16x128xf32, #tpu.memory_space<vmem>>, vector<16x128xf32>
    %105 = arith.addf %104, %103 : vector<16x128xf32>
    %c0_119 = arith.constant 0 : index
    %c0_120 = arith.constant 0 : index
    %106 = vector.load %arg10[%c0_119, %c0_120] : memref<16x128xf32, #tpu.memory_space<vmem>>, vector<16x128xf32>
    tpu.vector_store %arg10[%c0_119, %c0_120], %105 {strides = array<i32>} : memref<16x128xf32, #tpu.memory_space<vmem>>, vector<16x128xf32>,
    %c0_121 = arith.constant 0 : index
    %c0_122 = arith.constant 0 : index
    %107 = vector.load %arg10[%c0_121, %c0_122] : memref<16x128xf32, #tpu.memory_space<vmem>>, vector<16x128xf32>
    %c0_123 = arith.constant 0 : index
    %c0_124 = arith.constant 0 : index
    %108 = vector.load %arg5[%c0_123, %c0_124] : memref<1x128xf32, #tpu.memory_space<vmem>>, vector<1x128xf32>
    %109 = vector.broadcast %108 : vector<1x128xf32> to vector<16x128xf32>
    %110 = arith.mulf %107, %109 : vector<16x128xf32>
    %c0_125 = arith.constant 0 : index
    %c0_126 = arith.constant 0 : index
    %111 = vector.load %arg6[%c0_125, %c0_126] : memref<1x128xf32, #tpu.memory_space<vmem>>, vector<1x128xf32>
    %112 = vector.broadcast %111 : vector<1x128xf32> to vector<16x128xf32>
    %113 = arith.addf %110, %112 : vector<16x128xf32>
    %cst_127 = arith.constant 0.000000e+00 : f32
    %114 = vector.broadcast %cst_127 : f32 to vector<16x128xf32>
    %115 = arith.maximumf %113, %114 : vector<16x128xf32>
    %116 = vector.shape_cast %115 : vector<16x128xf32> to vector<4x4x128xf32>
    %c1_128 = arith.constant 1 : index
    %c0_129 = arith.constant 0 : index
    %c0_130 = arith.constant 0 : index
    %117 = vector.load %arg9[%c1_128, %c0_129, %c0_130] : memref<6x6x64xf32, #tpu.memory_space<vmem>>, vector<4x6x64xf32>
    %cst_131 = arith.constant 7.500000e-01 : f32
    %118 = vector.broadcast %cst_131 : f32 to vector<4x6x64xf32>
    %119 = arith.mulf %118, %117 : vector<4x6x64xf32>
    %c2_132 = arith.constant 2 : index
    %c0_133 = arith.constant 0 : index
    %c0_134 = arith.constant 0 : index
    %120 = vector.load %arg9[%c2_132, %c0_133, %c0_134] : memref<6x6x64xf32, #tpu.memory_space<vmem>>, vector<4x6x64xf32>
    %cst_135 = arith.constant 2.500000e-01 : f32
    %121 = vector.broadcast %cst_135 : f32 to vector<4x6x64xf32>
    %122 = arith.mulf %121, %120 : vector<4x6x64xf32>
    %123 = arith.addf %119, %122 : vector<4x6x64xf32>
    %124 = vector.extract_strided_slice %123 {offsets = [0, 0, 0], sizes = [4, 4, 64], strides = [1, 1, 1]} : vector<4x6x64xf32> to vector<4x4x64xf32>
    %cst_136 = arith.constant 2.500000e-01 : f32
    %125 = vector.broadcast %cst_136 : f32 to vector<4x4x64xf32>
    %126 = arith.mulf %125, %124 : vector<4x4x64xf32>
    %127 = vector.extract_strided_slice %123 {offsets = [0, 1, 0], sizes = [4, 4, 64], strides = [1, 1, 1]} : vector<4x6x64xf32> to vector<4x4x64xf32>
    %cst_137 = arith.constant 7.500000e-01 : f32
    %128 = vector.broadcast %cst_137 : f32 to vector<4x4x64xf32>
    %129 = arith.mulf %128, %127 : vector<4x4x64xf32>
    %130 = arith.addf %126, %129 : vector<4x4x64xf32>
    %131 = vector.extract_strided_slice %123 {offsets = [0, 1, 0], sizes = [4, 4, 64], strides = [1, 1, 1]} : vector<4x6x64xf32> to vector<4x4x64xf32>
    %cst_138 = arith.constant 7.500000e-01 : f32
    %132 = vector.broadcast %cst_138 : f32 to vector<4x4x64xf32>
    %133 = arith.mulf %132, %131 : vector<4x4x64xf32>
    %134 = vector.extract_strided_slice %123 {offsets = [0, 2, 0], sizes = [4, 4, 64], strides = [1, 1, 1]} : vector<4x6x64xf32> to vector<4x4x64xf32>
    %cst_139 = arith.constant 2.500000e-01 : f32
    %135 = vector.broadcast %cst_139 : f32 to vector<4x4x64xf32>
    %136 = arith.mulf %135, %134 : vector<4x4x64xf32>
    %137 = arith.addf %133, %136 : vector<4x4x64xf32>
    %138 = tpu.concatenate %130, %137 in 2 : vector<4x4x64xf32>, vector<4x4x64xf32> -> vector<4x4x128xf32>
    %139 = arith.addf %138, %116 : vector<4x4x128xf32>
    %cst_140 = arith.constant 0.000000e+00 : f32
    %140 = vector.broadcast %cst_140 : f32 to vector<4x4x128xf32>
    %141 = arith.maximumf %139, %140 : vector<4x4x128xf32>
    %142 = arith.truncf %141 : vector<4x4x128xf32> to vector<4x4x128xbf16>
    %143 = vector.shape_cast %142 : vector<4x4x128xbf16> to vector<4x1x4x128xbf16>
    %c0_141 = arith.constant 0 : index
    %c0_142 = arith.constant 0 : index
    %c1_143 = arith.constant 1 : index
    %c0_144 = arith.constant 0 : index
    %c0_145 = arith.constant 0 : index
    %144 = vector.load %arg7[%c0_141, %c0_142, %c1_143, %c0_144, %c0_145] : memref<1x4x2x4x128xbf16, #tpu.memory_space<vmem>>, vector<1x4x1x4x128xbf16>
    %145 = vector.shape_cast %144 : vector<1x4x1x4x128xbf16> to vector<4x1x4x128xbf16>
    %146 = vector.shape_cast %143 : vector<4x1x4x128xbf16> to vector<1x4x1x4x128xbf16>
    tpu.vector_store %arg7[%c0_141, %c0_142, %c1_143, %c0_144, %c0_145], %146 {strides = array<i32>} : memref<1x4x2x4x128xbf16, #tpu.memory_space<vmem>>, vector<1x4x1x4x128xbf16>,
    return
  }
  func.func @transform_0(%arg0: i32) -> (i32, i32, i32, i32) {
    %c0_i32 = arith.constant 0 : i32
    %c0_i32_0 = arith.constant 0 : i32
    %c0_i32_1 = arith.constant 0 : i32
    %c0_i32_2 = arith.constant 0 : i32
    return %arg0, %c0_i32, %c0_i32_0, %c0_i32_1 : i32, i32, i32, i32
  }
  func.func @transform_1(%arg0: i32) -> (i32, i32, i32) {
    %c0_i32 = arith.constant 0 : i32
    %c0_i32_0 = arith.constant 0 : i32
    %c0_i32_1 = arith.constant 0 : i32
    %c0_i32_2 = arith.constant 0 : i32
    return %c0_i32, %c0_i32_0, %c0_i32_1 : i32, i32, i32
  }
  func.func @transform_2(%arg0: i32) -> (i32, i32) {
    %c0_i32 = arith.constant 0 : i32
    %c0_i32_0 = arith.constant 0 : i32
    %c0_i32_1 = arith.constant 0 : i32
    return %c0_i32, %c0_i32_0 : i32, i32
  }
  func.func @transform_3(%arg0: i32) -> (i32, i32) {
    %c0_i32 = arith.constant 0 : i32
    %c0_i32_0 = arith.constant 0 : i32
    %c0_i32_1 = arith.constant 0 : i32
    return %c0_i32, %c0_i32_0 : i32, i32
  }
  func.func @transform_4(%arg0: i32) -> (i32, i32) {
    %c0_i32 = arith.constant 0 : i32
    %c0_i32_0 = arith.constant 0 : i32
    %c0_i32_1 = arith.constant 0 : i32
    return %c0_i32, %c0_i32_0 : i32, i32
  }
  func.func @transform_5(%arg0: i32) -> (i32, i32) {
    %c0_i32 = arith.constant 0 : i32
    %c0_i32_0 = arith.constant 0 : i32
    %c0_i32_1 = arith.constant 0 : i32
    return %c0_i32, %c0_i32_0 : i32, i32
  }
  func.func @transform_6(%arg0: i32) -> (i32, i32, i32, i32, i32) {
    %c0_i32 = arith.constant 0 : i32
    %c0_i32_0 = arith.constant 0 : i32
    %c0_i32_1 = arith.constant 0 : i32
    %c0_i32_2 = arith.constant 0 : i32
    %c0_i32_3 = arith.constant 0 : i32
    return %arg0, %c0_i32, %c0_i32_0, %c0_i32_1, %c0_i32_2 : i32, i32, i32, i32, i32
  }
}

module attributes {stable_mosaic.version = 11 : i64} {
  func.func @_up_block_kernel(%arg0: i32, %arg1: memref<1x8x8x64xbf16, #tpu.memory_space<vmem>>, %arg2: memref<6x64x64xbf16, #tpu.memory_space<vmem>>, %arg3: memref<64x32xbf16, #tpu.memory_space<vmem>>, %arg4: memref<1x32xf32, #tpu.memory_space<vmem>>, %arg5: memref<1x64xf32, #tpu.memory_space<vmem>>, %arg6: memref<1x64xf32, #tpu.memory_space<vmem>>, %arg7: memref<1x8x2x8x64xbf16, #tpu.memory_space<vmem>>, %arg8: memref<9x9x64xbf16, #tpu.memory_space<vmem>>, %arg9: memref<10x10x32xf32, #tpu.memory_space<vmem>>, %arg10: memref<64x64xf32, #tpu.memory_space<vmem>>) attributes {dimension_semantics = [#tpu.dimension_semantics<parallel>], iteration_bounds = array<i64: 2>, scalar_prefetch = 0 : i64, scratch_operands = 3 : i64, tpu.core_type = #tpu.core_type<tc>, window_params = [{transform_indices = @transform_0, window_bounds = array<i64: 1, 8, 8, 64>}, {pipeline_mode = #tpu.pipeline_mode<synchronous>, transform_indices = @transform_1, window_bounds = array<i64: 6, 64, 64>}, {pipeline_mode = #tpu.pipeline_mode<synchronous>, transform_indices = @transform_2, window_bounds = array<i64: 64, 32>}, {pipeline_mode = #tpu.pipeline_mode<synchronous>, transform_indices = @transform_3, window_bounds = array<i64: 1, 32>}, {pipeline_mode = #tpu.pipeline_mode<synchronous>, transform_indices = @transform_4, window_bounds = array<i64: 1, 64>}, {pipeline_mode = #tpu.pipeline_mode<synchronous>, transform_indices = @transform_5, window_bounds = array<i64: 1, 64>}, {transform_indices = @transform_6, window_bounds = array<i64: 1, 8, 2, 8, 64>}]} {
    %c0 = arith.constant 0 : index
    %c0_0 = arith.constant 0 : index
    %c0_1 = arith.constant 0 : index
    %c0_2 = arith.constant 0 : index
    %0 = vector.load %arg1[%c0, %c0_0, %c0_1, %c0_2] : memref<1x8x8x64xbf16, #tpu.memory_space<vmem>>, vector<1x8x8x64xbf16>
    %1 = vector.shape_cast %0 : vector<1x8x8x64xbf16> to vector<8x8x64xbf16>
    %c0_3 = arith.constant 0 : index
    %c0_4 = arith.constant 0 : index
    %c0_5 = arith.constant 0 : index
    %2 = vector.load %arg8[%c0_3, %c0_4, %c0_5] : memref<9x9x64xbf16, #tpu.memory_space<vmem>>, vector<8x8x64xbf16>
    tpu.vector_store %arg8[%c0_3, %c0_4, %c0_5], %1 {strides = array<i32>} : memref<9x9x64xbf16, #tpu.memory_space<vmem>>, vector<8x8x64xbf16>,
    %cst = arith.constant 0.000000e+00 : bf16
    %3 = vector.broadcast %cst : bf16 to vector<1x9x64xbf16>
    %c8 = arith.constant 8 : index
    %c0_6 = arith.constant 0 : index
    %c0_7 = arith.constant 0 : index
    %4 = vector.load %arg8[%c8, %c0_6, %c0_7] : memref<9x9x64xbf16, #tpu.memory_space<vmem>>, vector<1x9x64xbf16>
    tpu.vector_store %arg8[%c8, %c0_6, %c0_7], %3 {strides = array<i32>} : memref<9x9x64xbf16, #tpu.memory_space<vmem>>, vector<1x9x64xbf16>,
    %cst_8 = arith.constant 0.000000e+00 : bf16
    %5 = vector.broadcast %cst_8 : bf16 to vector<9x1x64xbf16>
    %c0_9 = arith.constant 0 : index
    %c8_10 = arith.constant 8 : index
    %c0_11 = arith.constant 0 : index
    %6 = vector.load %arg8[%c0_9, %c8_10, %c0_11] : memref<9x9x64xbf16, #tpu.memory_space<vmem>>, vector<9x1x64xbf16>
    tpu.vector_store %arg8[%c0_9, %c8_10, %c0_11], %5 {strides = array<i32>} : memref<9x9x64xbf16, #tpu.memory_space<vmem>>, vector<9x1x64xbf16>,
    %7 = vector.shape_cast %1 : vector<8x8x64xbf16> to vector<64x64xbf16>
    %c0_12 = arith.constant 0 : index
    %c0_13 = arith.constant 0 : index
    %8 = vector.load %arg3[%c0_12, %c0_13] : memref<64x32xbf16, #tpu.memory_space<vmem>>, vector<64x32xbf16>
    %cst_14 = arith.constant dense<0.000000e+00> : vector<64x32xf32>
    %9 = tpu.matmul %7, %8, %cst_14 {dimension_numbers = #tpu.dot_dimension_numbers<[1], [0], [0], [1], [0, 0, 1, 1], [], []>} : vector<64x64xbf16>, vector<64x32xbf16>, vector<64x32xf32> -> vector<64x32xf32>
    %c0_15 = arith.constant 0 : index
    %c0_16 = arith.constant 0 : index
    %10 = vector.load %arg4[%c0_15, %c0_16] : memref<1x32xf32, #tpu.memory_space<vmem>>, vector<1x32xf32>
    %11 = vector.broadcast %10 : vector<1x32xf32> to vector<64x32xf32>
    %12 = arith.addf %9, %11 : vector<64x32xf32>
    %13 = vector.shape_cast %12 : vector<64x32xf32> to vector<8x8x32xf32>
    %c1 = arith.constant 1 : index
    %c1_17 = arith.constant 1 : index
    %c0_18 = arith.constant 0 : index
    %14 = vector.load %arg9[%c1, %c1_17, %c0_18] : memref<10x10x32xf32, #tpu.memory_space<vmem>>, vector<8x8x32xf32>
    tpu.vector_store %arg9[%c1, %c1_17, %c0_18], %13 {strides = array<i32>} : memref<10x10x32xf32, #tpu.memory_space<vmem>>, vector<8x8x32xf32>,
    %15 = vector.extract_strided_slice %13 {offsets = [0, 0, 0], sizes = [1, 8, 32], strides = [1, 1, 1]} : vector<8x8x32xf32> to vector<1x8x32xf32>
    %c0_19 = arith.constant 0 : index
    %c1_20 = arith.constant 1 : index
    %c0_21 = arith.constant 0 : index
    %16 = vector.load %arg9[%c0_19, %c1_20, %c0_21] : memref<10x10x32xf32, #tpu.memory_space<vmem>>, vector<1x8x32xf32>
    tpu.vector_store %arg9[%c0_19, %c1_20, %c0_21], %15 {strides = array<i32>} : memref<10x10x32xf32, #tpu.memory_space<vmem>>, vector<1x8x32xf32>,
    %17 = vector.extract_strided_slice %13 {offsets = [7, 0, 0], sizes = [1, 8, 32], strides = [1, 1, 1]} : vector<8x8x32xf32> to vector<1x8x32xf32>
    %c9 = arith.constant 9 : index
    %c1_22 = arith.constant 1 : index
    %c0_23 = arith.constant 0 : index
    %18 = vector.load %arg9[%c9, %c1_22, %c0_23] : memref<10x10x32xf32, #tpu.memory_space<vmem>>, vector<1x8x32xf32>
    tpu.vector_store %arg9[%c9, %c1_22, %c0_23], %17 {strides = array<i32>} : memref<10x10x32xf32, #tpu.memory_space<vmem>>, vector<1x8x32xf32>,
    %c0_24 = arith.constant 0 : index
    %c1_25 = arith.constant 1 : index
    %c0_26 = arith.constant 0 : index
    %19 = vector.load %arg9[%c0_24, %c1_25, %c0_26] : memref<10x10x32xf32, #tpu.memory_space<vmem>>, vector<10x1x32xf32>
    %c0_27 = arith.constant 0 : index
    %c0_28 = arith.constant 0 : index
    %c0_29 = arith.constant 0 : index
    %20 = vector.load %arg9[%c0_27, %c0_28, %c0_29] : memref<10x10x32xf32, #tpu.memory_space<vmem>>, vector<10x1x32xf32>
    tpu.vector_store %arg9[%c0_27, %c0_28, %c0_29], %19 {strides = array<i32>} : memref<10x10x32xf32, #tpu.memory_space<vmem>>, vector<10x1x32xf32>,
    %c0_30 = arith.constant 0 : index
    %c8_31 = arith.constant 8 : index
    %c0_32 = arith.constant 0 : index
    %21 = vector.load %arg9[%c0_30, %c8_31, %c0_32] : memref<10x10x32xf32, #tpu.memory_space<vmem>>, vector<10x1x32xf32>
    %c0_33 = arith.constant 0 : index
    %c9_34 = arith.constant 9 : index
    %c0_35 = arith.constant 0 : index
    %22 = vector.load %arg9[%c0_33, %c9_34, %c0_35] : memref<10x10x32xf32, #tpu.memory_space<vmem>>, vector<10x1x32xf32>
    tpu.vector_store %arg9[%c0_33, %c9_34, %c0_35], %21 {strides = array<i32>} : memref<10x10x32xf32, #tpu.memory_space<vmem>>, vector<10x1x32xf32>,
    %c0_36 = arith.constant 0 : index
    %c0_37 = arith.constant 0 : index
    %c0_38 = arith.constant 0 : index
    %23 = vector.load %arg8[%c0_36, %c0_37, %c0_38] : memref<9x9x64xbf16, #tpu.memory_space<vmem>>, vector<8x8x64xbf16>
    %24 = vector.shape_cast %23 : vector<8x8x64xbf16> to vector<64x64xbf16>
    %c0_39 = arith.constant 0 : index
    %c0_40 = arith.constant 0 : index
    %c0_41 = arith.constant 0 : index
    %25 = vector.load %arg2[%c0_39, %c0_40, %c0_41] : memref<6x64x64xbf16, #tpu.memory_space<vmem>>, vector<1x64x64xbf16>
    %26 = vector.shape_cast %25 : vector<1x64x64xbf16> to vector<64x64xbf16>
    %cst_42 = arith.constant dense<0.000000e+00> : vector<64x64xf32>
    %27 = tpu.matmul %24, %26, %cst_42 {dimension_numbers = #tpu.dot_dimension_numbers<[1], [0], [0], [1], [0, 0, 1, 1], [], []>} : vector<64x64xbf16>, vector<64x64xbf16>, vector<64x64xf32> -> vector<64x64xf32>
    %c0_43 = arith.constant 0 : index
    %c0_44 = arith.constant 0 : index
    %28 = vector.load %arg10[%c0_43, %c0_44] : memref<64x64xf32, #tpu.memory_space<vmem>>, vector<64x64xf32>
    tpu.vector_store %arg10[%c0_43, %c0_44], %27 {strides = array<i32>} : memref<64x64xf32, #tpu.memory_space<vmem>>, vector<64x64xf32>,
    %c0_45 = arith.constant 0 : index
    %c1_46 = arith.constant 1 : index
    %c0_47 = arith.constant 0 : index
    %29 = vector.load %arg8[%c0_45, %c1_46, %c0_47] : memref<9x9x64xbf16, #tpu.memory_space<vmem>>, vector<8x8x64xbf16>
    %30 = vector.shape_cast %29 : vector<8x8x64xbf16> to vector<64x64xbf16>
    %c1_48 = arith.constant 1 : index
    %c0_49 = arith.constant 0 : index
    %c0_50 = arith.constant 0 : index
    %31 = vector.load %arg2[%c1_48, %c0_49, %c0_50] : memref<6x64x64xbf16, #tpu.memory_space<vmem>>, vector<1x64x64xbf16>
    %32 = vector.shape_cast %31 : vector<1x64x64xbf16> to vector<64x64xbf16>
    %cst_51 = arith.constant dense<0.000000e+00> : vector<64x64xf32>
    %33 = tpu.matmul %30, %32, %cst_51 {dimension_numbers = #tpu.dot_dimension_numbers<[1], [0], [0], [1], [0, 0, 1, 1], [], []>} : vector<64x64xbf16>, vector<64x64xbf16>, vector<64x64xf32> -> vector<64x64xf32>
    %c0_52 = arith.constant 0 : index
    %c0_53 = arith.constant 0 : index
    %34 = vector.load %arg10[%c0_52, %c0_53] : memref<64x64xf32, #tpu.memory_space<vmem>>, vector<64x64xf32>
    %35 = arith.addf %34, %33 : vector<64x64xf32>
    %c0_54 = arith.constant 0 : index
    %c0_55 = arith.constant 0 : index
    %36 = vector.load %arg10[%c0_54, %c0_55] : memref<64x64xf32, #tpu.memory_space<vmem>>, vector<64x64xf32>
    tpu.vector_store %arg10[%c0_54, %c0_55], %35 {strides = array<i32>} : memref<64x64xf32, #tpu.memory_space<vmem>>, vector<64x64xf32>,
    %c0_56 = arith.constant 0 : index
    %c0_57 = arith.constant 0 : index
    %37 = vector.load %arg10[%c0_56, %c0_57] : memref<64x64xf32, #tpu.memory_space<vmem>>, vector<64x64xf32>
    %c0_58 = arith.constant 0 : index
    %c0_59 = arith.constant 0 : index
    %38 = vector.load %arg5[%c0_58, %c0_59] : memref<1x64xf32, #tpu.memory_space<vmem>>, vector<1x64xf32>
    %39 = vector.broadcast %38 : vector<1x64xf32> to vector<64x64xf32>
    %40 = arith.mulf %37, %39 : vector<64x64xf32>
    %c0_60 = arith.constant 0 : index
    %c0_61 = arith.constant 0 : index
    %41 = vector.load %arg6[%c0_60, %c0_61] : memref<1x64xf32, #tpu.memory_space<vmem>>, vector<1x64xf32>
    %42 = vector.broadcast %41 : vector<1x64xf32> to vector<64x64xf32>
    %43 = arith.addf %40, %42 : vector<64x64xf32>
    %cst_62 = arith.constant 0.000000e+00 : f32
    %44 = vector.broadcast %cst_62 : f32 to vector<64x64xf32>
    %45 = arith.maximumf %43, %44 : vector<64x64xf32>
    %46 = vector.shape_cast %45 : vector<64x64xf32> to vector<8x8x64xf32>
    %c0_63 = arith.constant 0 : index
    %c0_64 = arith.constant 0 : index
    %c0_65 = arith.constant 0 : index
    %47 = vector.load %arg9[%c0_63, %c0_64, %c0_65] : memref<10x10x32xf32, #tpu.memory_space<vmem>>, vector<8x10x32xf32>
    %cst_66 = arith.constant 2.500000e-01 : f32
    %48 = vector.broadcast %cst_66 : f32 to vector<8x10x32xf32>
    %49 = arith.mulf %48, %47 : vector<8x10x32xf32>
    %c1_67 = arith.constant 1 : index
    %c0_68 = arith.constant 0 : index
    %c0_69 = arith.constant 0 : index
    %50 = vector.load %arg9[%c1_67, %c0_68, %c0_69] : memref<10x10x32xf32, #tpu.memory_space<vmem>>, vector<8x10x32xf32>
    %cst_70 = arith.constant 7.500000e-01 : f32
    %51 = vector.broadcast %cst_70 : f32 to vector<8x10x32xf32>
    %52 = arith.mulf %51, %50 : vector<8x10x32xf32>
    %53 = arith.addf %49, %52 : vector<8x10x32xf32>
    %54 = vector.extract_strided_slice %53 {offsets = [0, 0, 0], sizes = [8, 8, 32], strides = [1, 1, 1]} : vector<8x10x32xf32> to vector<8x8x32xf32>
    %cst_71 = arith.constant 2.500000e-01 : f32
    %55 = vector.broadcast %cst_71 : f32 to vector<8x8x32xf32>
    %56 = arith.mulf %55, %54 : vector<8x8x32xf32>
    %57 = vector.extract_strided_slice %53 {offsets = [0, 1, 0], sizes = [8, 8, 32], strides = [1, 1, 1]} : vector<8x10x32xf32> to vector<8x8x32xf32>
    %cst_72 = arith.constant 7.500000e-01 : f32
    %58 = vector.broadcast %cst_72 : f32 to vector<8x8x32xf32>
    %59 = arith.mulf %58, %57 : vector<8x8x32xf32>
    %60 = arith.addf %56, %59 : vector<8x8x32xf32>
    %61 = vector.extract_strided_slice %53 {offsets = [0, 1, 0], sizes = [8, 8, 32], strides = [1, 1, 1]} : vector<8x10x32xf32> to vector<8x8x32xf32>
    %cst_73 = arith.constant 7.500000e-01 : f32
    %62 = vector.broadcast %cst_73 : f32 to vector<8x8x32xf32>
    %63 = arith.mulf %62, %61 : vector<8x8x32xf32>
    %64 = vector.extract_strided_slice %53 {offsets = [0, 2, 0], sizes = [8, 8, 32], strides = [1, 1, 1]} : vector<8x10x32xf32> to vector<8x8x32xf32>
    %cst_74 = arith.constant 2.500000e-01 : f32
    %65 = vector.broadcast %cst_74 : f32 to vector<8x8x32xf32>
    %66 = arith.mulf %65, %64 : vector<8x8x32xf32>
    %67 = arith.addf %63, %66 : vector<8x8x32xf32>
    %68 = tpu.concatenate %60, %67 in 2 : vector<8x8x32xf32>, vector<8x8x32xf32> -> vector<8x8x64xf32>
    %69 = arith.addf %68, %46 : vector<8x8x64xf32>
    %cst_75 = arith.constant 0.000000e+00 : f32
    %70 = vector.broadcast %cst_75 : f32 to vector<8x8x64xf32>
    %71 = arith.maximumf %69, %70 : vector<8x8x64xf32>
    %72 = arith.truncf %71 : vector<8x8x64xf32> to vector<8x8x64xbf16>
    %73 = vector.shape_cast %72 : vector<8x8x64xbf16> to vector<8x1x8x64xbf16>
    %c0_76 = arith.constant 0 : index
    %c0_77 = arith.constant 0 : index
    %c0_78 = arith.constant 0 : index
    %c0_79 = arith.constant 0 : index
    %c0_80 = arith.constant 0 : index
    %74 = vector.load %arg7[%c0_76, %c0_77, %c0_78, %c0_79, %c0_80] : memref<1x8x2x8x64xbf16, #tpu.memory_space<vmem>>, vector<1x8x1x8x64xbf16>
    %75 = vector.shape_cast %74 : vector<1x8x1x8x64xbf16> to vector<8x1x8x64xbf16>
    %76 = vector.shape_cast %73 : vector<8x1x8x64xbf16> to vector<1x8x1x8x64xbf16>
    tpu.vector_store %arg7[%c0_76, %c0_77, %c0_78, %c0_79, %c0_80], %76 {strides = array<i32>} : memref<1x8x2x8x64xbf16, #tpu.memory_space<vmem>>, vector<1x8x1x8x64xbf16>,
    %c0_81 = arith.constant 0 : index
    %c0_82 = arith.constant 0 : index
    %c0_83 = arith.constant 0 : index
    %77 = vector.load %arg8[%c0_81, %c0_82, %c0_83] : memref<9x9x64xbf16, #tpu.memory_space<vmem>>, vector<8x8x64xbf16>
    %78 = vector.shape_cast %77 : vector<8x8x64xbf16> to vector<64x64xbf16>
    %c2 = arith.constant 2 : index
    %c0_84 = arith.constant 0 : index
    %c0_85 = arith.constant 0 : index
    %79 = vector.load %arg2[%c2, %c0_84, %c0_85] : memref<6x64x64xbf16, #tpu.memory_space<vmem>>, vector<1x64x64xbf16>
    %80 = vector.shape_cast %79 : vector<1x64x64xbf16> to vector<64x64xbf16>
    %cst_86 = arith.constant dense<0.000000e+00> : vector<64x64xf32>
    %81 = tpu.matmul %78, %80, %cst_86 {dimension_numbers = #tpu.dot_dimension_numbers<[1], [0], [0], [1], [0, 0, 1, 1], [], []>} : vector<64x64xbf16>, vector<64x64xbf16>, vector<64x64xf32> -> vector<64x64xf32>
    %c0_87 = arith.constant 0 : index
    %c0_88 = arith.constant 0 : index
    %82 = vector.load %arg10[%c0_87, %c0_88] : memref<64x64xf32, #tpu.memory_space<vmem>>, vector<64x64xf32>
    tpu.vector_store %arg10[%c0_87, %c0_88], %81 {strides = array<i32>} : memref<64x64xf32, #tpu.memory_space<vmem>>, vector<64x64xf32>,
    %c0_89 = arith.constant 0 : index
    %c1_90 = arith.constant 1 : index
    %c0_91 = arith.constant 0 : index
    %83 = vector.load %arg8[%c0_89, %c1_90, %c0_91] : memref<9x9x64xbf16, #tpu.memory_space<vmem>>, vector<8x8x64xbf16>
    %84 = vector.shape_cast %83 : vector<8x8x64xbf16> to vector<64x64xbf16>
    %c3 = arith.constant 3 : index
    %c0_92 = arith.constant 0 : index
    %c0_93 = arith.constant 0 : index
    %85 = vector.load %arg2[%c3, %c0_92, %c0_93] : memref<6x64x64xbf16, #tpu.memory_space<vmem>>, vector<1x64x64xbf16>
    %86 = vector.shape_cast %85 : vector<1x64x64xbf16> to vector<64x64xbf16>
    %cst_94 = arith.constant dense<0.000000e+00> : vector<64x64xf32>
    %87 = tpu.matmul %84, %86, %cst_94 {dimension_numbers = #tpu.dot_dimension_numbers<[1], [0], [0], [1], [0, 0, 1, 1], [], []>} : vector<64x64xbf16>, vector<64x64xbf16>, vector<64x64xf32> -> vector<64x64xf32>
    %c0_95 = arith.constant 0 : index
    %c0_96 = arith.constant 0 : index
    %88 = vector.load %arg10[%c0_95, %c0_96] : memref<64x64xf32, #tpu.memory_space<vmem>>, vector<64x64xf32>
    %89 = arith.addf %88, %87 : vector<64x64xf32>
    %c0_97 = arith.constant 0 : index
    %c0_98 = arith.constant 0 : index
    %90 = vector.load %arg10[%c0_97, %c0_98] : memref<64x64xf32, #tpu.memory_space<vmem>>, vector<64x64xf32>
    tpu.vector_store %arg10[%c0_97, %c0_98], %89 {strides = array<i32>} : memref<64x64xf32, #tpu.memory_space<vmem>>, vector<64x64xf32>,
    %c1_99 = arith.constant 1 : index
    %c0_100 = arith.constant 0 : index
    %c0_101 = arith.constant 0 : index
    %91 = vector.load %arg8[%c1_99, %c0_100, %c0_101] : memref<9x9x64xbf16, #tpu.memory_space<vmem>>, vector<8x8x64xbf16>
    %92 = vector.shape_cast %91 : vector<8x8x64xbf16> to vector<64x64xbf16>
    %c4 = arith.constant 4 : index
    %c0_102 = arith.constant 0 : index
    %c0_103 = arith.constant 0 : index
    %93 = vector.load %arg2[%c4, %c0_102, %c0_103] : memref<6x64x64xbf16, #tpu.memory_space<vmem>>, vector<1x64x64xbf16>
    %94 = vector.shape_cast %93 : vector<1x64x64xbf16> to vector<64x64xbf16>
    %cst_104 = arith.constant dense<0.000000e+00> : vector<64x64xf32>
    %95 = tpu.matmul %92, %94, %cst_104 {dimension_numbers = #tpu.dot_dimension_numbers<[1], [0], [0], [1], [0, 0, 1, 1], [], []>} : vector<64x64xbf16>, vector<64x64xbf16>, vector<64x64xf32> -> vector<64x64xf32>
    %c0_105 = arith.constant 0 : index
    %c0_106 = arith.constant 0 : index
    %96 = vector.load %arg10[%c0_105, %c0_106] : memref<64x64xf32, #tpu.memory_space<vmem>>, vector<64x64xf32>
    %97 = arith.addf %96, %95 : vector<64x64xf32>
    %c0_107 = arith.constant 0 : index
    %c0_108 = arith.constant 0 : index
    %98 = vector.load %arg10[%c0_107, %c0_108] : memref<64x64xf32, #tpu.memory_space<vmem>>, vector<64x64xf32>
    tpu.vector_store %arg10[%c0_107, %c0_108], %97 {strides = array<i32>} : memref<64x64xf32, #tpu.memory_space<vmem>>, vector<64x64xf32>,
    %c1_109 = arith.constant 1 : index
    %c1_110 = arith.constant 1 : index
    %c0_111 = arith.constant 0 : index
    %99 = vector.load %arg8[%c1_109, %c1_110, %c0_111] : memref<9x9x64xbf16, #tpu.memory_space<vmem>>, vector<8x8x64xbf16>
    %100 = vector.shape_cast %99 : vector<8x8x64xbf16> to vector<64x64xbf16>
    %c5 = arith.constant 5 : index
    %c0_112 = arith.constant 0 : index
    %c0_113 = arith.constant 0 : index
    %101 = vector.load %arg2[%c5, %c0_112, %c0_113] : memref<6x64x64xbf16, #tpu.memory_space<vmem>>, vector<1x64x64xbf16>
    %102 = vector.shape_cast %101 : vector<1x64x64xbf16> to vector<64x64xbf16>
    %cst_114 = arith.constant dense<0.000000e+00> : vector<64x64xf32>
    %103 = tpu.matmul %100, %102, %cst_114 {dimension_numbers = #tpu.dot_dimension_numbers<[1], [0], [0], [1], [0, 0, 1, 1], [], []>} : vector<64x64xbf16>, vector<64x64xbf16>, vector<64x64xf32> -> vector<64x64xf32>
    %c0_115 = arith.constant 0 : index
    %c0_116 = arith.constant 0 : index
    %104 = vector.load %arg10[%c0_115, %c0_116] : memref<64x64xf32, #tpu.memory_space<vmem>>, vector<64x64xf32>
    %105 = arith.addf %104, %103 : vector<64x64xf32>
    %c0_117 = arith.constant 0 : index
    %c0_118 = arith.constant 0 : index
    %106 = vector.load %arg10[%c0_117, %c0_118] : memref<64x64xf32, #tpu.memory_space<vmem>>, vector<64x64xf32>
    tpu.vector_store %arg10[%c0_117, %c0_118], %105 {strides = array<i32>} : memref<64x64xf32, #tpu.memory_space<vmem>>, vector<64x64xf32>,
    %c0_119 = arith.constant 0 : index
    %c0_120 = arith.constant 0 : index
    %107 = vector.load %arg10[%c0_119, %c0_120] : memref<64x64xf32, #tpu.memory_space<vmem>>, vector<64x64xf32>
    %c0_121 = arith.constant 0 : index
    %c0_122 = arith.constant 0 : index
    %108 = vector.load %arg5[%c0_121, %c0_122] : memref<1x64xf32, #tpu.memory_space<vmem>>, vector<1x64xf32>
    %109 = vector.broadcast %108 : vector<1x64xf32> to vector<64x64xf32>
    %110 = arith.mulf %107, %109 : vector<64x64xf32>
    %c0_123 = arith.constant 0 : index
    %c0_124 = arith.constant 0 : index
    %111 = vector.load %arg6[%c0_123, %c0_124] : memref<1x64xf32, #tpu.memory_space<vmem>>, vector<1x64xf32>
    %112 = vector.broadcast %111 : vector<1x64xf32> to vector<64x64xf32>
    %113 = arith.addf %110, %112 : vector<64x64xf32>
    %cst_125 = arith.constant 0.000000e+00 : f32
    %114 = vector.broadcast %cst_125 : f32 to vector<64x64xf32>
    %115 = arith.maximumf %113, %114 : vector<64x64xf32>
    %116 = vector.shape_cast %115 : vector<64x64xf32> to vector<8x8x64xf32>
    %c1_126 = arith.constant 1 : index
    %c0_127 = arith.constant 0 : index
    %c0_128 = arith.constant 0 : index
    %117 = vector.load %arg9[%c1_126, %c0_127, %c0_128] : memref<10x10x32xf32, #tpu.memory_space<vmem>>, vector<8x10x32xf32>
    %cst_129 = arith.constant 7.500000e-01 : f32
    %118 = vector.broadcast %cst_129 : f32 to vector<8x10x32xf32>
    %119 = arith.mulf %118, %117 : vector<8x10x32xf32>
    %c2_130 = arith.constant 2 : index
    %c0_131 = arith.constant 0 : index
    %c0_132 = arith.constant 0 : index
    %120 = vector.load %arg9[%c2_130, %c0_131, %c0_132] : memref<10x10x32xf32, #tpu.memory_space<vmem>>, vector<8x10x32xf32>
    %cst_133 = arith.constant 2.500000e-01 : f32
    %121 = vector.broadcast %cst_133 : f32 to vector<8x10x32xf32>
    %122 = arith.mulf %121, %120 : vector<8x10x32xf32>
    %123 = arith.addf %119, %122 : vector<8x10x32xf32>
    %124 = vector.extract_strided_slice %123 {offsets = [0, 0, 0], sizes = [8, 8, 32], strides = [1, 1, 1]} : vector<8x10x32xf32> to vector<8x8x32xf32>
    %cst_134 = arith.constant 2.500000e-01 : f32
    %125 = vector.broadcast %cst_134 : f32 to vector<8x8x32xf32>
    %126 = arith.mulf %125, %124 : vector<8x8x32xf32>
    %127 = vector.extract_strided_slice %123 {offsets = [0, 1, 0], sizes = [8, 8, 32], strides = [1, 1, 1]} : vector<8x10x32xf32> to vector<8x8x32xf32>
    %cst_135 = arith.constant 7.500000e-01 : f32
    %128 = vector.broadcast %cst_135 : f32 to vector<8x8x32xf32>
    %129 = arith.mulf %128, %127 : vector<8x8x32xf32>
    %130 = arith.addf %126, %129 : vector<8x8x32xf32>
    %131 = vector.extract_strided_slice %123 {offsets = [0, 1, 0], sizes = [8, 8, 32], strides = [1, 1, 1]} : vector<8x10x32xf32> to vector<8x8x32xf32>
    %cst_136 = arith.constant 7.500000e-01 : f32
    %132 = vector.broadcast %cst_136 : f32 to vector<8x8x32xf32>
    %133 = arith.mulf %132, %131 : vector<8x8x32xf32>
    %134 = vector.extract_strided_slice %123 {offsets = [0, 2, 0], sizes = [8, 8, 32], strides = [1, 1, 1]} : vector<8x10x32xf32> to vector<8x8x32xf32>
    %cst_137 = arith.constant 2.500000e-01 : f32
    %135 = vector.broadcast %cst_137 : f32 to vector<8x8x32xf32>
    %136 = arith.mulf %135, %134 : vector<8x8x32xf32>
    %137 = arith.addf %133, %136 : vector<8x8x32xf32>
    %138 = tpu.concatenate %130, %137 in 2 : vector<8x8x32xf32>, vector<8x8x32xf32> -> vector<8x8x64xf32>
    %139 = arith.addf %138, %116 : vector<8x8x64xf32>
    %cst_138 = arith.constant 0.000000e+00 : f32
    %140 = vector.broadcast %cst_138 : f32 to vector<8x8x64xf32>
    %141 = arith.maximumf %139, %140 : vector<8x8x64xf32>
    %142 = arith.truncf %141 : vector<8x8x64xf32> to vector<8x8x64xbf16>
    %143 = vector.shape_cast %142 : vector<8x8x64xbf16> to vector<8x1x8x64xbf16>
    %c0_139 = arith.constant 0 : index
    %c0_140 = arith.constant 0 : index
    %c1_141 = arith.constant 1 : index
    %c0_142 = arith.constant 0 : index
    %c0_143 = arith.constant 0 : index
    %144 = vector.load %arg7[%c0_139, %c0_140, %c1_141, %c0_142, %c0_143] : memref<1x8x2x8x64xbf16, #tpu.memory_space<vmem>>, vector<1x8x1x8x64xbf16>
    %145 = vector.shape_cast %144 : vector<1x8x1x8x64xbf16> to vector<8x1x8x64xbf16>
    %146 = vector.shape_cast %143 : vector<8x1x8x64xbf16> to vector<1x8x1x8x64xbf16>
    tpu.vector_store %arg7[%c0_139, %c0_140, %c1_141, %c0_142, %c0_143], %146 {strides = array<i32>} : memref<1x8x2x8x64xbf16, #tpu.memory_space<vmem>>, vector<1x8x1x8x64xbf16>,
    return
  }
  func.func @transform_0(%arg0: i32) -> (i32, i32, i32, i32) {
    %c0_i32 = arith.constant 0 : i32
    %c0_i32_0 = arith.constant 0 : i32
    %c0_i32_1 = arith.constant 0 : i32
    %c0_i32_2 = arith.constant 0 : i32
    return %arg0, %c0_i32, %c0_i32_0, %c0_i32_1 : i32, i32, i32, i32
  }
  func.func @transform_1(%arg0: i32) -> (i32, i32, i32) {
    %c0_i32 = arith.constant 0 : i32
    %c0_i32_0 = arith.constant 0 : i32
    %c0_i32_1 = arith.constant 0 : i32
    %c0_i32_2 = arith.constant 0 : i32
    return %c0_i32, %c0_i32_0, %c0_i32_1 : i32, i32, i32
  }
  func.func @transform_2(%arg0: i32) -> (i32, i32) {
    %c0_i32 = arith.constant 0 : i32
    %c0_i32_0 = arith.constant 0 : i32
    %c0_i32_1 = arith.constant 0 : i32
    return %c0_i32, %c0_i32_0 : i32, i32
  }
  func.func @transform_3(%arg0: i32) -> (i32, i32) {
    %c0_i32 = arith.constant 0 : i32
    %c0_i32_0 = arith.constant 0 : i32
    %c0_i32_1 = arith.constant 0 : i32
    return %c0_i32, %c0_i32_0 : i32, i32
  }
  func.func @transform_4(%arg0: i32) -> (i32, i32) {
    %c0_i32 = arith.constant 0 : i32
    %c0_i32_0 = arith.constant 0 : i32
    %c0_i32_1 = arith.constant 0 : i32
    return %c0_i32, %c0_i32_0 : i32, i32
  }
  func.func @transform_5(%arg0: i32) -> (i32, i32) {
    %c0_i32 = arith.constant 0 : i32
    %c0_i32_0 = arith.constant 0 : i32
    %c0_i32_1 = arith.constant 0 : i32
    return %c0_i32, %c0_i32_0 : i32, i32
  }
  func.func @transform_6(%arg0: i32) -> (i32, i32, i32, i32, i32) {
    %c0_i32 = arith.constant 0 : i32
    %c0_i32_0 = arith.constant 0 : i32
    %c0_i32_1 = arith.constant 0 : i32
    %c0_i32_2 = arith.constant 0 : i32
    %c0_i32_3 = arith.constant 0 : i32
    return %arg0, %c0_i32, %c0_i32_0, %c0_i32_1, %c0_i32_2 : i32, i32, i32, i32, i32
  }
}

module attributes {stable_mosaic.version = 11 : i64} {
  func.func @_smooth_final_kernel(%arg0: i32, %arg1: memref<1x16x16x32xbf16, #tpu.memory_space<vmem>>, %arg2: memref<3x3x32x32xbf16, #tpu.memory_space<vmem>>, %arg3: memref<1x32xf32, #tpu.memory_space<vmem>>, %arg4: memref<32x1xf32, #tpu.memory_space<vmem>>, %arg5: memref<1x1xf32, #tpu.memory_space<smem>>, %arg6: memref<1x1x16x16xf32, #tpu.memory_space<vmem>>, %arg7: memref<18x18x32xbf16, #tpu.memory_space<vmem>>, %arg8: memref<256x32xf32, #tpu.memory_space<vmem>>) attributes {dimension_semantics = [#tpu.dimension_semantics<parallel>], iteration_bounds = array<i64: 2>, scalar_prefetch = 0 : i64, scratch_operands = 2 : i64, tpu.core_type = #tpu.core_type<tc>, window_params = [{transform_indices = @transform_0, window_bounds = array<i64: 1, 16, 16, 32>}, {pipeline_mode = #tpu.pipeline_mode<synchronous>, transform_indices = @transform_1, window_bounds = array<i64: 3, 3, 32, 32>}, {pipeline_mode = #tpu.pipeline_mode<synchronous>, transform_indices = @transform_2, window_bounds = array<i64: 1, 32>}, {pipeline_mode = #tpu.pipeline_mode<synchronous>, transform_indices = @transform_3, window_bounds = array<i64: 32, 1>}, {transform_indices = @transform_4, window_bounds = array<i64: 1, 1>}, {transform_indices = @transform_5, window_bounds = array<i64: 1, 1, 16, 16>}]} {
    %c0 = arith.constant 0 : index
    %c0_0 = arith.constant 0 : index
    %c0_1 = arith.constant 0 : index
    %c0_2 = arith.constant 0 : index
    %0 = vector.load %arg1[%c0, %c0_0, %c0_1, %c0_2] : memref<1x16x16x32xbf16, #tpu.memory_space<vmem>>, vector<1x16x16x32xbf16>
    %1 = vector.shape_cast %0 : vector<1x16x16x32xbf16> to vector<16x16x32xbf16>
    %c1 = arith.constant 1 : index
    %c1_3 = arith.constant 1 : index
    %c0_4 = arith.constant 0 : index
    %2 = vector.load %arg7[%c1, %c1_3, %c0_4] : memref<18x18x32xbf16, #tpu.memory_space<vmem>>, vector<16x16x32xbf16>
    tpu.vector_store %arg7[%c1, %c1_3, %c0_4], %1 {strides = array<i32>} : memref<18x18x32xbf16, #tpu.memory_space<vmem>>, vector<16x16x32xbf16>,
    %cst = arith.constant 0.000000e+00 : bf16
    %3 = vector.broadcast %cst : bf16 to vector<1x18x32xbf16>
    %c0_5 = arith.constant 0 : index
    %c0_6 = arith.constant 0 : index
    %c0_7 = arith.constant 0 : index
    %4 = vector.load %arg7[%c0_5, %c0_6, %c0_7] : memref<18x18x32xbf16, #tpu.memory_space<vmem>>, vector<1x18x32xbf16>
    tpu.vector_store %arg7[%c0_5, %c0_6, %c0_7], %3 {strides = array<i32>} : memref<18x18x32xbf16, #tpu.memory_space<vmem>>, vector<1x18x32xbf16>,
    %c17 = arith.constant 17 : index
    %c0_8 = arith.constant 0 : index
    %c0_9 = arith.constant 0 : index
    %5 = vector.load %arg7[%c17, %c0_8, %c0_9] : memref<18x18x32xbf16, #tpu.memory_space<vmem>>, vector<1x18x32xbf16>
    tpu.vector_store %arg7[%c17, %c0_8, %c0_9], %3 {strides = array<i32>} : memref<18x18x32xbf16, #tpu.memory_space<vmem>>, vector<1x18x32xbf16>,
    %cst_10 = arith.constant 0.000000e+00 : bf16
    %6 = vector.broadcast %cst_10 : bf16 to vector<18x1x32xbf16>
    %c0_11 = arith.constant 0 : index
    %c0_12 = arith.constant 0 : index
    %c0_13 = arith.constant 0 : index
    %7 = vector.load %arg7[%c0_11, %c0_12, %c0_13] : memref<18x18x32xbf16, #tpu.memory_space<vmem>>, vector<18x1x32xbf16>
    tpu.vector_store %arg7[%c0_11, %c0_12, %c0_13], %6 {strides = array<i32>} : memref<18x18x32xbf16, #tpu.memory_space<vmem>>, vector<18x1x32xbf16>,
    %c0_14 = arith.constant 0 : index
    %c17_15 = arith.constant 17 : index
    %c0_16 = arith.constant 0 : index
    %8 = vector.load %arg7[%c0_14, %c17_15, %c0_16] : memref<18x18x32xbf16, #tpu.memory_space<vmem>>, vector<18x1x32xbf16>
    tpu.vector_store %arg7[%c0_14, %c17_15, %c0_16], %6 {strides = array<i32>} : memref<18x18x32xbf16, #tpu.memory_space<vmem>>, vector<18x1x32xbf16>,
    %c0_17 = arith.constant 0 : index
    %c0_18 = arith.constant 0 : index
    %c0_19 = arith.constant 0 : index
    %9 = vector.load %arg7[%c0_17, %c0_18, %c0_19] : memref<18x18x32xbf16, #tpu.memory_space<vmem>>, vector<16x16x32xbf16>
    %10 = vector.shape_cast %9 : vector<16x16x32xbf16> to vector<256x32xbf16>
    %c0_20 = arith.constant 0 : index
    %c0_21 = arith.constant 0 : index
    %c0_22 = arith.constant 0 : index
    %c0_23 = arith.constant 0 : index
    %11 = vector.load %arg2[%c0_20, %c0_21, %c0_22, %c0_23] : memref<3x3x32x32xbf16, #tpu.memory_space<vmem>>, vector<1x1x32x32xbf16>
    %12 = vector.shape_cast %11 : vector<1x1x32x32xbf16> to vector<32x32xbf16>
    %cst_24 = arith.constant dense<0.000000e+00> : vector<256x32xf32>
    %13 = tpu.matmul %10, %12, %cst_24 {dimension_numbers = #tpu.dot_dimension_numbers<[1], [0], [0], [1], [0, 0, 1, 1], [], []>} : vector<256x32xbf16>, vector<32x32xbf16>, vector<256x32xf32> -> vector<256x32xf32>
    %c0_25 = arith.constant 0 : index
    %c0_26 = arith.constant 0 : index
    %14 = vector.load %arg8[%c0_25, %c0_26] : memref<256x32xf32, #tpu.memory_space<vmem>>, vector<256x32xf32>
    tpu.vector_store %arg8[%c0_25, %c0_26], %13 {strides = array<i32>} : memref<256x32xf32, #tpu.memory_space<vmem>>, vector<256x32xf32>,
    %c0_27 = arith.constant 0 : index
    %c1_28 = arith.constant 1 : index
    %c0_29 = arith.constant 0 : index
    %15 = vector.load %arg7[%c0_27, %c1_28, %c0_29] : memref<18x18x32xbf16, #tpu.memory_space<vmem>>, vector<16x16x32xbf16>
    %16 = vector.shape_cast %15 : vector<16x16x32xbf16> to vector<256x32xbf16>
    %c0_30 = arith.constant 0 : index
    %c1_31 = arith.constant 1 : index
    %c0_32 = arith.constant 0 : index
    %c0_33 = arith.constant 0 : index
    %17 = vector.load %arg2[%c0_30, %c1_31, %c0_32, %c0_33] : memref<3x3x32x32xbf16, #tpu.memory_space<vmem>>, vector<1x1x32x32xbf16>
    %18 = vector.shape_cast %17 : vector<1x1x32x32xbf16> to vector<32x32xbf16>
    %cst_34 = arith.constant dense<0.000000e+00> : vector<256x32xf32>
    %19 = tpu.matmul %16, %18, %cst_34 {dimension_numbers = #tpu.dot_dimension_numbers<[1], [0], [0], [1], [0, 0, 1, 1], [], []>} : vector<256x32xbf16>, vector<32x32xbf16>, vector<256x32xf32> -> vector<256x32xf32>
    %c0_35 = arith.constant 0 : index
    %c0_36 = arith.constant 0 : index
    %20 = vector.load %arg8[%c0_35, %c0_36] : memref<256x32xf32, #tpu.memory_space<vmem>>, vector<256x32xf32>
    %21 = arith.addf %20, %19 : vector<256x32xf32>
    %c0_37 = arith.constant 0 : index
    %c0_38 = arith.constant 0 : index
    %22 = vector.load %arg8[%c0_37, %c0_38] : memref<256x32xf32, #tpu.memory_space<vmem>>, vector<256x32xf32>
    tpu.vector_store %arg8[%c0_37, %c0_38], %21 {strides = array<i32>} : memref<256x32xf32, #tpu.memory_space<vmem>>, vector<256x32xf32>,
    %c0_39 = arith.constant 0 : index
    %c2 = arith.constant 2 : index
    %c0_40 = arith.constant 0 : index
    %23 = vector.load %arg7[%c0_39, %c2, %c0_40] : memref<18x18x32xbf16, #tpu.memory_space<vmem>>, vector<16x16x32xbf16>
    %24 = vector.shape_cast %23 : vector<16x16x32xbf16> to vector<256x32xbf16>
    %c0_41 = arith.constant 0 : index
    %c2_42 = arith.constant 2 : index
    %c0_43 = arith.constant 0 : index
    %c0_44 = arith.constant 0 : index
    %25 = vector.load %arg2[%c0_41, %c2_42, %c0_43, %c0_44] : memref<3x3x32x32xbf16, #tpu.memory_space<vmem>>, vector<1x1x32x32xbf16>
    %26 = vector.shape_cast %25 : vector<1x1x32x32xbf16> to vector<32x32xbf16>
    %cst_45 = arith.constant dense<0.000000e+00> : vector<256x32xf32>
    %27 = tpu.matmul %24, %26, %cst_45 {dimension_numbers = #tpu.dot_dimension_numbers<[1], [0], [0], [1], [0, 0, 1, 1], [], []>} : vector<256x32xbf16>, vector<32x32xbf16>, vector<256x32xf32> -> vector<256x32xf32>
    %c0_46 = arith.constant 0 : index
    %c0_47 = arith.constant 0 : index
    %28 = vector.load %arg8[%c0_46, %c0_47] : memref<256x32xf32, #tpu.memory_space<vmem>>, vector<256x32xf32>
    %29 = arith.addf %28, %27 : vector<256x32xf32>
    %c0_48 = arith.constant 0 : index
    %c0_49 = arith.constant 0 : index
    %30 = vector.load %arg8[%c0_48, %c0_49] : memref<256x32xf32, #tpu.memory_space<vmem>>, vector<256x32xf32>
    tpu.vector_store %arg8[%c0_48, %c0_49], %29 {strides = array<i32>} : memref<256x32xf32, #tpu.memory_space<vmem>>, vector<256x32xf32>,
    %c1_50 = arith.constant 1 : index
    %c0_51 = arith.constant 0 : index
    %c0_52 = arith.constant 0 : index
    %31 = vector.load %arg7[%c1_50, %c0_51, %c0_52] : memref<18x18x32xbf16, #tpu.memory_space<vmem>>, vector<16x16x32xbf16>
    %32 = vector.shape_cast %31 : vector<16x16x32xbf16> to vector<256x32xbf16>
    %c1_53 = arith.constant 1 : index
    %c0_54 = arith.constant 0 : index
    %c0_55 = arith.constant 0 : index
    %c0_56 = arith.constant 0 : index
    %33 = vector.load %arg2[%c1_53, %c0_54, %c0_55, %c0_56] : memref<3x3x32x32xbf16, #tpu.memory_space<vmem>>, vector<1x1x32x32xbf16>
    %34 = vector.shape_cast %33 : vector<1x1x32x32xbf16> to vector<32x32xbf16>
    %cst_57 = arith.constant dense<0.000000e+00> : vector<256x32xf32>
    %35 = tpu.matmul %32, %34, %cst_57 {dimension_numbers = #tpu.dot_dimension_numbers<[1], [0], [0], [1], [0, 0, 1, 1], [], []>} : vector<256x32xbf16>, vector<32x32xbf16>, vector<256x32xf32> -> vector<256x32xf32>
    %c0_58 = arith.constant 0 : index
    %c0_59 = arith.constant 0 : index
    %36 = vector.load %arg8[%c0_58, %c0_59] : memref<256x32xf32, #tpu.memory_space<vmem>>, vector<256x32xf32>
    %37 = arith.addf %36, %35 : vector<256x32xf32>
    %c0_60 = arith.constant 0 : index
    %c0_61 = arith.constant 0 : index
    %38 = vector.load %arg8[%c0_60, %c0_61] : memref<256x32xf32, #tpu.memory_space<vmem>>, vector<256x32xf32>
    tpu.vector_store %arg8[%c0_60, %c0_61], %37 {strides = array<i32>} : memref<256x32xf32, #tpu.memory_space<vmem>>, vector<256x32xf32>,
    %c1_62 = arith.constant 1 : index
    %c1_63 = arith.constant 1 : index
    %c0_64 = arith.constant 0 : index
    %39 = vector.load %arg7[%c1_62, %c1_63, %c0_64] : memref<18x18x32xbf16, #tpu.memory_space<vmem>>, vector<16x16x32xbf16>
    %40 = vector.shape_cast %39 : vector<16x16x32xbf16> to vector<256x32xbf16>
    %c1_65 = arith.constant 1 : index
    %c1_66 = arith.constant 1 : index
    %c0_67 = arith.constant 0 : index
    %c0_68 = arith.constant 0 : index
    %41 = vector.load %arg2[%c1_65, %c1_66, %c0_67, %c0_68] : memref<3x3x32x32xbf16, #tpu.memory_space<vmem>>, vector<1x1x32x32xbf16>
    %42 = vector.shape_cast %41 : vector<1x1x32x32xbf16> to vector<32x32xbf16>
    %cst_69 = arith.constant dense<0.000000e+00> : vector<256x32xf32>
    %43 = tpu.matmul %40, %42, %cst_69 {dimension_numbers = #tpu.dot_dimension_numbers<[1], [0], [0], [1], [0, 0, 1, 1], [], []>} : vector<256x32xbf16>, vector<32x32xbf16>, vector<256x32xf32> -> vector<256x32xf32>
    %c0_70 = arith.constant 0 : index
    %c0_71 = arith.constant 0 : index
    %44 = vector.load %arg8[%c0_70, %c0_71] : memref<256x32xf32, #tpu.memory_space<vmem>>, vector<256x32xf32>
    %45 = arith.addf %44, %43 : vector<256x32xf32>
    %c0_72 = arith.constant 0 : index
    %c0_73 = arith.constant 0 : index
    %46 = vector.load %arg8[%c0_72, %c0_73] : memref<256x32xf32, #tpu.memory_space<vmem>>, vector<256x32xf32>
    tpu.vector_store %arg8[%c0_72, %c0_73], %45 {strides = array<i32>} : memref<256x32xf32, #tpu.memory_space<vmem>>, vector<256x32xf32>,
    %c1_74 = arith.constant 1 : index
    %c2_75 = arith.constant 2 : index
    %c0_76 = arith.constant 0 : index
    %47 = vector.load %arg7[%c1_74, %c2_75, %c0_76] : memref<18x18x32xbf16, #tpu.memory_space<vmem>>, vector<16x16x32xbf16>
    %48 = vector.shape_cast %47 : vector<16x16x32xbf16> to vector<256x32xbf16>
    %c1_77 = arith.constant 1 : index
    %c2_78 = arith.constant 2 : index
    %c0_79 = arith.constant 0 : index
    %c0_80 = arith.constant 0 : index
    %49 = vector.load %arg2[%c1_77, %c2_78, %c0_79, %c0_80] : memref<3x3x32x32xbf16, #tpu.memory_space<vmem>>, vector<1x1x32x32xbf16>
    %50 = vector.shape_cast %49 : vector<1x1x32x32xbf16> to vector<32x32xbf16>
    %cst_81 = arith.constant dense<0.000000e+00> : vector<256x32xf32>
    %51 = tpu.matmul %48, %50, %cst_81 {dimension_numbers = #tpu.dot_dimension_numbers<[1], [0], [0], [1], [0, 0, 1, 1], [], []>} : vector<256x32xbf16>, vector<32x32xbf16>, vector<256x32xf32> -> vector<256x32xf32>
    %c0_82 = arith.constant 0 : index
    %c0_83 = arith.constant 0 : index
    %52 = vector.load %arg8[%c0_82, %c0_83] : memref<256x32xf32, #tpu.memory_space<vmem>>, vector<256x32xf32>
    %53 = arith.addf %52, %51 : vector<256x32xf32>
    %c0_84 = arith.constant 0 : index
    %c0_85 = arith.constant 0 : index
    %54 = vector.load %arg8[%c0_84, %c0_85] : memref<256x32xf32, #tpu.memory_space<vmem>>, vector<256x32xf32>
    tpu.vector_store %arg8[%c0_84, %c0_85], %53 {strides = array<i32>} : memref<256x32xf32, #tpu.memory_space<vmem>>, vector<256x32xf32>,
    %c2_86 = arith.constant 2 : index
    %c0_87 = arith.constant 0 : index
    %c0_88 = arith.constant 0 : index
    %55 = vector.load %arg7[%c2_86, %c0_87, %c0_88] : memref<18x18x32xbf16, #tpu.memory_space<vmem>>, vector<16x16x32xbf16>
    %56 = vector.shape_cast %55 : vector<16x16x32xbf16> to vector<256x32xbf16>
    %c2_89 = arith.constant 2 : index
    %c0_90 = arith.constant 0 : index
    %c0_91 = arith.constant 0 : index
    %c0_92 = arith.constant 0 : index
    %57 = vector.load %arg2[%c2_89, %c0_90, %c0_91, %c0_92] : memref<3x3x32x32xbf16, #tpu.memory_space<vmem>>, vector<1x1x32x32xbf16>
    %58 = vector.shape_cast %57 : vector<1x1x32x32xbf16> to vector<32x32xbf16>
    %cst_93 = arith.constant dense<0.000000e+00> : vector<256x32xf32>
    %59 = tpu.matmul %56, %58, %cst_93 {dimension_numbers = #tpu.dot_dimension_numbers<[1], [0], [0], [1], [0, 0, 1, 1], [], []>} : vector<256x32xbf16>, vector<32x32xbf16>, vector<256x32xf32> -> vector<256x32xf32>
    %c0_94 = arith.constant 0 : index
    %c0_95 = arith.constant 0 : index
    %60 = vector.load %arg8[%c0_94, %c0_95] : memref<256x32xf32, #tpu.memory_space<vmem>>, vector<256x32xf32>
    %61 = arith.addf %60, %59 : vector<256x32xf32>
    %c0_96 = arith.constant 0 : index
    %c0_97 = arith.constant 0 : index
    %62 = vector.load %arg8[%c0_96, %c0_97] : memref<256x32xf32, #tpu.memory_space<vmem>>, vector<256x32xf32>
    tpu.vector_store %arg8[%c0_96, %c0_97], %61 {strides = array<i32>} : memref<256x32xf32, #tpu.memory_space<vmem>>, vector<256x32xf32>,
    %c2_98 = arith.constant 2 : index
    %c1_99 = arith.constant 1 : index
    %c0_100 = arith.constant 0 : index
    %63 = vector.load %arg7[%c2_98, %c1_99, %c0_100] : memref<18x18x32xbf16, #tpu.memory_space<vmem>>, vector<16x16x32xbf16>
    %64 = vector.shape_cast %63 : vector<16x16x32xbf16> to vector<256x32xbf16>
    %c2_101 = arith.constant 2 : index
    %c1_102 = arith.constant 1 : index
    %c0_103 = arith.constant 0 : index
    %c0_104 = arith.constant 0 : index
    %65 = vector.load %arg2[%c2_101, %c1_102, %c0_103, %c0_104] : memref<3x3x32x32xbf16, #tpu.memory_space<vmem>>, vector<1x1x32x32xbf16>
    %66 = vector.shape_cast %65 : vector<1x1x32x32xbf16> to vector<32x32xbf16>
    %cst_105 = arith.constant dense<0.000000e+00> : vector<256x32xf32>
    %67 = tpu.matmul %64, %66, %cst_105 {dimension_numbers = #tpu.dot_dimension_numbers<[1], [0], [0], [1], [0, 0, 1, 1], [], []>} : vector<256x32xbf16>, vector<32x32xbf16>, vector<256x32xf32> -> vector<256x32xf32>
    %c0_106 = arith.constant 0 : index
    %c0_107 = arith.constant 0 : index
    %68 = vector.load %arg8[%c0_106, %c0_107] : memref<256x32xf32, #tpu.memory_space<vmem>>, vector<256x32xf32>
    %69 = arith.addf %68, %67 : vector<256x32xf32>
    %c0_108 = arith.constant 0 : index
    %c0_109 = arith.constant 0 : index
    %70 = vector.load %arg8[%c0_108, %c0_109] : memref<256x32xf32, #tpu.memory_space<vmem>>, vector<256x32xf32>
    tpu.vector_store %arg8[%c0_108, %c0_109], %69 {strides = array<i32>} : memref<256x32xf32, #tpu.memory_space<vmem>>, vector<256x32xf32>,
    %c2_110 = arith.constant 2 : index
    %c2_111 = arith.constant 2 : index
    %c0_112 = arith.constant 0 : index
    %71 = vector.load %arg7[%c2_110, %c2_111, %c0_112] : memref<18x18x32xbf16, #tpu.memory_space<vmem>>, vector<16x16x32xbf16>
    %72 = vector.shape_cast %71 : vector<16x16x32xbf16> to vector<256x32xbf16>
    %c2_113 = arith.constant 2 : index
    %c2_114 = arith.constant 2 : index
    %c0_115 = arith.constant 0 : index
    %c0_116 = arith.constant 0 : index
    %73 = vector.load %arg2[%c2_113, %c2_114, %c0_115, %c0_116] : memref<3x3x32x32xbf16, #tpu.memory_space<vmem>>, vector<1x1x32x32xbf16>
    %74 = vector.shape_cast %73 : vector<1x1x32x32xbf16> to vector<32x32xbf16>
    %cst_117 = arith.constant dense<0.000000e+00> : vector<256x32xf32>
    %75 = tpu.matmul %72, %74, %cst_117 {dimension_numbers = #tpu.dot_dimension_numbers<[1], [0], [0], [1], [0, 0, 1, 1], [], []>} : vector<256x32xbf16>, vector<32x32xbf16>, vector<256x32xf32> -> vector<256x32xf32>
    %c0_118 = arith.constant 0 : index
    %c0_119 = arith.constant 0 : index
    %76 = vector.load %arg8[%c0_118, %c0_119] : memref<256x32xf32, #tpu.memory_space<vmem>>, vector<256x32xf32>
    %77 = arith.addf %76, %75 : vector<256x32xf32>
    %c0_120 = arith.constant 0 : index
    %c0_121 = arith.constant 0 : index
    %78 = vector.load %arg8[%c0_120, %c0_121] : memref<256x32xf32, #tpu.memory_space<vmem>>, vector<256x32xf32>
    tpu.vector_store %arg8[%c0_120, %c0_121], %77 {strides = array<i32>} : memref<256x32xf32, #tpu.memory_space<vmem>>, vector<256x32xf32>,
    %c0_122 = arith.constant 0 : index
    %c0_123 = arith.constant 0 : index
    %79 = vector.load %arg8[%c0_122, %c0_123] : memref<256x32xf32, #tpu.memory_space<vmem>>, vector<256x32xf32>
    %c0_124 = arith.constant 0 : index
    %c0_125 = arith.constant 0 : index
    %80 = vector.load %arg3[%c0_124, %c0_125] : memref<1x32xf32, #tpu.memory_space<vmem>>, vector<1x32xf32>
    %81 = vector.broadcast %80 : vector<1x32xf32> to vector<256x32xf32>
    %82 = arith.addf %79, %81 : vector<256x32xf32>
    %cst_126 = arith.constant 0.000000e+00 : f32
    %83 = vector.broadcast %cst_126 : f32 to vector<256x32xf32>
    %84 = arith.maximumf %82, %83 : vector<256x32xf32>
    %85 = vector.shape_cast %84 : vector<256x32xf32> to vector<16x16x32xf32>
    %c0_127 = arith.constant 0 : index
    %c0_128 = arith.constant 0 : index
    %86 = vector.load %arg4[%c0_127, %c0_128] : memref<32x1xf32, #tpu.memory_space<vmem>>, vector<32x1xf32>
    %87 = vector.shape_cast %86 : vector<32x1xf32> to vector<32xf32>
    %88 = vector.shape_cast %87 : vector<32xf32> to vector<1x1x32xf32>
    %89 = vector.broadcast %88 : vector<1x1x32xf32> to vector<16x16x32xf32>
    %90 = arith.mulf %85, %89 : vector<16x16x32xf32>
    %cst_129 = arith.constant dense<0.000000e+00> : vector<16x16xf32>
    %91 = vector.multi_reduction <add>, %90, %cst_129 [2] : vector<16x16x32xf32> to vector<16x16xf32>
    %c0_130 = arith.constant 0 : index
    %c0_131 = arith.constant 0 : index
    %92 = memref.load %arg5[%c0_130, %c0_131] : memref<1x1xf32, #tpu.memory_space<smem>>
    %93 = vector.broadcast %92 : f32 to vector<16x16xf32>
    %94 = arith.addf %91, %93 : vector<16x16xf32>
    %c0_132 = arith.constant 0 : index
    %c0_133 = arith.constant 0 : index
    %c0_134 = arith.constant 0 : index
    %c0_135 = arith.constant 0 : index
    %95 = vector.load %arg6[%c0_132, %c0_133, %c0_134, %c0_135] : memref<1x1x16x16xf32, #tpu.memory_space<vmem>>, vector<1x1x16x16xf32>
    %96 = vector.shape_cast %95 : vector<1x1x16x16xf32> to vector<16x16xf32>
    %97 = vector.shape_cast %94 : vector<16x16xf32> to vector<1x1x16x16xf32>
    tpu.vector_store %arg6[%c0_132, %c0_133, %c0_134, %c0_135], %97 {strides = array<i32>} : memref<1x1x16x16xf32, #tpu.memory_space<vmem>>, vector<1x1x16x16xf32>,
    return
  }
  func.func @transform_0(%arg0: i32) -> (i32, i32, i32, i32) {
    %c0_i32 = arith.constant 0 : i32
    %c0_i32_0 = arith.constant 0 : i32
    %c0_i32_1 = arith.constant 0 : i32
    %c0_i32_2 = arith.constant 0 : i32
    return %arg0, %c0_i32, %c0_i32_0, %c0_i32_1 : i32, i32, i32, i32
  }
  func.func @transform_1(%arg0: i32) -> (i32, i32, i32, i32) {
    %c0_i32 = arith.constant 0 : i32
    %c0_i32_0 = arith.constant 0 : i32
    %c0_i32_1 = arith.constant 0 : i32
    %c0_i32_2 = arith.constant 0 : i32
    %c0_i32_3 = arith.constant 0 : i32
    return %c0_i32, %c0_i32_0, %c0_i32_1, %c0_i32_2 : i32, i32, i32, i32
  }
  func.func @transform_2(%arg0: i32) -> (i32, i32) {
    %c0_i32 = arith.constant 0 : i32
    %c0_i32_0 = arith.constant 0 : i32
    %c0_i32_1 = arith.constant 0 : i32
    return %c0_i32, %c0_i32_0 : i32, i32
  }
  func.func @transform_3(%arg0: i32) -> (i32, i32) {
    %c0_i32 = arith.constant 0 : i32
    %c0_i32_0 = arith.constant 0 : i32
    %c0_i32_1 = arith.constant 0 : i32
    return %c0_i32, %c0_i32_0 : i32, i32
  }
  func.func @transform_4(%arg0: i32) -> (i32, i32) {
    %c0_i32 = arith.constant 0 : i32
    %c0_i32_0 = arith.constant 0 : i32
    %c0_i32_1 = arith.constant 0 : i32
    return %c0_i32, %c0_i32_0 : i32, i32
  }
  func.func @transform_5(%arg0: i32) -> (i32, i32, i32, i32) {
    %c0_i32 = arith.constant 0 : i32
    %c0_i32_0 = arith.constant 0 : i32
    %c0_i32_1 = arith.constant 0 : i32
    %c0_i32_2 = arith.constant 0 : i32
    return %arg0, %c0_i32, %c0_i32_0, %c0_i32_1 : i32, i32, i32, i32
  }
}

</mosaic_0001>

<bundles_post_ra>
// kernel: gated_residual_up_head.3
= control target key start
LH: loop header
LB: loop body
LE: loop exit
PB: predicated region body
PF: predicated region fallthrough
CT: control target
= control target key end

     0   :  { %s2022_s21 = smov 0   ;;  %s2378_s0 = inlined_call_operand.vmem [shape: bf16[2,4,4,128], index: 0, kind: input, shape index: {}]   ;;  %s2379_s1 = inlined_call_operand.vmem [shape: bf16[6,128,128], index: 1, kind: input, shape index: {}]   ;;  %s2380_s2 = inlined_call_operand.vmem [shape: bf16[128,64], index: 2, kind: input, shape index: {}]   ;;  %s2381_s3 = inlined_call_operand.vmem [shape: f32[1,64], index: 3, kind: input, shape index: {}]   ;;  %s2382_s4 = inlined_call_operand.vmem [shape: f32[1,128], index: 4, kind: input, shape index: {}]   ;;  %s2383_s5 = inlined_call_operand.vmem [shape: f32[1,128], index: 5, kind: input, shape index: {}]   ;;  %s2384_s6 = inlined_call_operand.vmem [shape: bf16[2,4,2,4,128], index: 6, kind: output, shape index: {}]  }
   0x1 LB: > { %s1587_s22 = sadd.s32 4294967295, %s1984_s21   ;;  %p1591_p0 = scmp.ge.s32.totalorder %s1984_s21, 1  ;;  %s1984_s21 = sphi %s2022_s21, %s16_s21  }
   0x2   : > { %p212_p1 = scmp.lt.s32.totalorder %s1984_s21, 3 }
   0x4   : > { %p213_p2 = pnand %p1591_p0, %p212_p1 }
   0x5   : > { %p242_p3 = scmp.lt.s32.totalorder (!%p213_p2), %s1587_s22, 1 }
   0x6   : > { %216 = sbr.rel (%p213_p2) target bundleno = 355 (0x163), region = 44 }
   0xb   : > { %v1915_v0 = vld [vmem:[%s2380_s2 + $0x38] sm:$0xff]  ;;  %v1914_v1 = vld [vmem:[%s2380_s2 + $0x30] sm:$0xff]  ;;  %s2394_s22 = smov (!%p242_p3, %s1587_s22), 1  ;;  %v1913_v5 = vld [vmem:[%s2380_s2 + $0x28] sm:$0xff]  ;;  %vm268_vm0 = vcmask 1042434   ;;  %vm529_vm3 = vcmask 1041408  }
   0xc   : > { %366 = vmatpush.bf16.msra.mxu0 %v1915_v0  ;;  %v1931_v2 = vld [vmem:[%s2379_s1 + $0x78] sm:$0xff]  ;;  %s1906_s7 = sshll.u32 %s2394_s22, 3  ;;  %v1930_v4 = vld [vmem:[%s2379_s1 + $0x70] sm:$0xff]  ;;  %v1929_v11 = vld [vmem:[%s2379_s1 + $0x68] sm:$0xff]  ;;  %vm263_vm1 = vsmask.f32 2304 }
   0xd   : > { %v1923_v3 = vld [vmem:[%s2379_s1 + $0x38] sm:$0xff]  ;;  %692 = vmatpush.bf16.msra.mxu2 %v1931_v2  ;;  %s246_s14 = scalar_lea.vmem %s2378_s0, %s1906_s7  ;;  %v1922_v6 = vld [vmem:[%s2379_s1 + $0x30] sm:$0xff]  ;;  %v1921_v13 = vld [vmem:[%s2379_s1 + $0x28] sm:$0xff]  ;;  %vm533_vm4 = vcmask 1043458   ;;  %vm555_vm5 = vsmask.f32 1280 }
   0xe   : > { %501 = vmatpush.bf16.msra.mxu1 %v1923_v3  ;;  %v253_v7 = vld [vmem:[%s246_s14] sm:$0x3]  ;;  %v254_v8 = vld [vmem:[%s246_s14 + $0x2] sm:$0x3]  ;;  %v255_v9 = vld [vmem:[%s246_s14 + $0x4] sm:$0x3] }
   0xf   : > { %v256_v10 = vld [vmem:[%s246_s14 + $0x6] sm:$0x3]  ;;  %306 = vst [vmem:[#allocation1] ss:$4 sm:$0xff] %v253_v7  ;;  %v1939_v12 = vld [vmem:[%s2379_s1 + $0xb8] sm:$0xff]  ;;  %v1938_v15 = vld [vmem:[%s2379_s1 + $0xb0] sm:$0xff] }
  0x10   : > { %367 = vmatpush.bf16.msra.mxu0 %v1914_v1  ;;  %309 = vst [vmem:[#allocation1 + $0x1] ss:$4 sm:$0xff] %v254_v8  ;;  %v1912_v14 = vld [vmem:[%s2380_s2 + $0x20] sm:$0xff]  ;;  %917 = vmatpush.bf16.msra.mxu3 %v1939_v12  ;;  %v1911_v17 = vld [vmem:[%s2380_s2 + $0x18] sm:$0xff]  ;;  %v1937_v20 = vld [vmem:[%s2379_s1 + $0xa8] sm:$0xff]  ;;  %vm262_vm12 = vcmask 1042432  }
  0x11   : > { %693 = vmatpush.bf16.msra.mxu2 %v1930_v4  ;;  %312 = vst [vmem:[#allocation1 + $0x2] ss:$4 sm:$0xff] %v255_v9  ;;  %v1928_v16 = vld [vmem:[%s2379_s1 + $0x60] sm:$0xff]  ;;  %v1927_v19 = vld [vmem:[%s2379_s1 + $0x58] sm:$0xff]  ;;  %vm2088_vm2 = vmand %vm268_vm0, %vm263_vm1  ;;  %vm556_vm6 = vsmask.f32 3336 }
  0x12   : > { %502 = vmatpush.bf16.msra.mxu1 %v1922_v6  ;;  %315 = vst [vmem:[#allocation1 + $0x3] ss:$4 sm:$0xff] %v256_v10  ;;  %v1920_v18 = vld [vmem:[%s2379_s1 + $0x20] sm:$0xff]  ;;  %v270_v22 = vld [vmem:[#allocation2] sm:$0x4]  ;;  %v1910_v28 = vld [vmem:[%s2380_s2 + $0x10] sm:$0xff] }
  0x13   : > { %257 = vst [vmem:[#allocation2] sm:$0x3] %v253_v7  ;;  %v273_v23 = vld [vmem:[#allocation2 + $0x4] sm:$0x4]  ;;  %v271_v24 = vsel %vm2088_vm2, 0, %v270_v22  ;;  %v1919_v29 = vld [vmem:[%s2379_s1 + $0x18] sm:$0xff]  ;;  %vm2154_vm9 = vmor %vm555_vm5, %vm556_vm6 }
  0x14   : > { %368 = vmatpush.bf16.msra.mxu0 %v1913_v5  ;;  %258 = vst [vmem:[#allocation2 + $0x4] sm:$0x3] %v254_v8  ;;  %918 = vmatpush.bf16.msra.mxu3 %v1938_v15  ;;  %v274_v25 = vsel %vm2088_vm2, 0, %v273_v23  ;;  %v276_v26 = vld [vmem:[#allocation2 + $0x8] sm:$0x4]  ;;  %v1936_v32 = vld [vmem:[%s2379_s1 + $0xa0] sm:$0xff]  ;;  %vm264_vm13 = vmand %vm262_vm12, %vm263_vm1 }
  0x15   : > { %694 = vmatpush.bf16.msra.mxu2 %v1929_v11  ;;  %259 = vst [vmem:[#allocation2 + $0x8] sm:$0x3] %v255_v9  ;;  %v279_v27 = vld [vmem:[#allocation2 + $0xc] sm:$0x4]  ;;  %v277_v30 = vsel %vm2088_vm2, 0, %v276_v26  ;;  %v1909_v40 = vld [vmem:[%s2380_s2 + $0x8] sm:$0xff] }
  0x16   : > { %503 = vmatpush.bf16.msra.mxu1 %v1921_v13  ;;  %260 = vst [vmem:[#allocation2 + $0xc] sm:$0x3] %v256_v10  ;;  %v280_v33 = vsel %vm2088_vm2, 0, %v279_v27  ;;  %v1926_v36 = vld [vmem:[%s2379_s1 + $0x50] sm:$0xff]  ;;  %v1935_v41 = vld [vmem:[%s2379_s1 + $0x98] sm:$0xff]  ;;  %v1925_v42 = vld [vmem:[%s2379_s1 + $0x48] sm:$0xff] }
  0x17   : > { %272 = vst [vmem:[#allocation2] sm:$0x4] %v271_v24  ;;  %v1918_v38 = vld [vmem:[%s2379_s1 + $0x10] sm:$0xff]  ;;  %v1908_v43 = vld [vmem:[%s2380_s2] sm:$0xff]  ;;  %v1917_v45 = vld [vmem:[%s2379_s1 + $0x8] sm:$0xff]  ;;  %vm387_vm14 = vcmask 519168  }
  0x18   : > { %369 = vmatpush.bf16.msra.mxu0 %v1912_v14  ;;  %919 = vmatpush.bf16.msra.mxu3 %v1937_v20  ;;  %275 = vst [vmem:[#allocation2 + $0x4] sm:$0x4] %v274_v25  ;;  %v1934_v50 = vld [vmem:[%s2379_s1 + $0x90] sm:$0xff]  ;;  %v1947_v51 = vld [vmem:[%s2379_s1 + $0xf8] sm:$0xff]  ;;  %vm558_vm7 = vsmask.f32 5392 }
  0x19   : > { %695 = vmatpush.bf16.msra.mxu2 %v1928_v16  ;;  %v2104_v31 = vld.sshfl [vmem:[#allocation1] sm:$0xff pattern:$0x73625140]  ;;  %278 = vst [vmem:[#allocation2 + $0x8] sm:$0x4] %v277_v30  ;;  %v1963_v57 = vld [vmem:[%s2379_s1 + $0x178] sm:$0xff]  ;;  %vm2173_vm10 = vmor %vm2154_vm9, %vm558_vm7 }
  0x1a   : > { %504 = vmatpush.bf16.msra.mxu1 %v1920_v18  ;;  %v420_v34 = vld [vmem:[#allocation2] sm:$0x3]  ;;  %281 = vst [vmem:[#allocation2 + $0xc] sm:$0x4] %v280_v33  ;;  %v1924_v56 = vld [vmem:[%s2379_s1 + $0x40] sm:$0xff]  ;;  %v1955_v8 = vld [vmem:[%s2379_s1 + $0x138] sm:$0xff] }
  0x1b   : > { %v421_v35 = vld [vmem:[#allocation2 + $0x4] sm:$0x3]  ;;  %441 = vst [vmem:[#allocation1] ss:$4 sm:$0xff] %v420_v34  ;;  %vm560_vm8 = vsmask.f32 7448 }
  0x1c   : > { %370 = vmatpush.bf16.msra.mxu0 %v1911_v17  ;;  %v422_v37 = vld [vmem:[#allocation2 + $0x8] sm:$0x3]  ;;  %920 = vmatpush.bf16.msra.mxu3 %v1936_v32  ;;  %444 = vst [vmem:[#allocation1 + $0x1] ss:$4 sm:$0xff] %v421_v35  ;;  %v1916_v61 = vld [vmem:[%s2379_s1] sm:$0xff]  ;;  %v1933_v3 = vld [vmem:[%s2379_s1 + $0x88] sm:$0xff] }
  0x1d   : > { %696 = vmatpush.bf16.msra.mxu2 %v1927_v19  ;;  %v423_v39 = vld [vmem:[#allocation2 + $0xc] sm:$0x3]  ;;  %447 = vst [vmem:[#allocation1 + $0x2] ss:$4 sm:$0xff] %v422_v37  ;;  %v1945_v22 = vld [vmem:[%s2379_s1 + $0xe8] sm:$0xff]  ;;  %vm2193_vm11 = vmor %vm2173_vm10, %vm560_vm8  ;;  %vm401_vm15 = vcmask 516096  }
  0x1e   : > { %505 = vmatpush.bf16.msra.mxu1 %v1919_v29  ;;  %450 = vst [vmem:[#allocation1 + $0x3] ss:$4 sm:$0xff] %v423_v39  ;;  %v517_v44 = vld [vmem:[#allocation2] sm:$0x7]  ;;  %v1946_v9 = vld [vmem:[%s2379_s1 + $0xf0] sm:$0xff]  ;;  %s1986_s7 = smov 64  }
  0x1f   : > { %v518_v46 = vld [vmem:[#allocation2 + $0x4] sm:$0x7]  ;;  %v525_v47 = vrot.slane %v517_v44, 2  ;;  %v1962_v19 = vld [vmem:[%s2379_s1 + $0x170] sm:$0xff]  ;;  %v265_v32 = vld [vmem:[#allocation2 + $0x10] sm:$0x7] }
  0x20   : > { %371 = vmatpush.bf16.msra.mxu0 %v1910_v28  ;;  %921 = vmatpush.bf16.msra.mxu3 %v1935_v41  ;;  %v519_v48 = vld [vmem:[#allocation2 + $0x8] sm:$0x7]  ;;  %v526_v49 = vrot.slane %v518_v46, 2  ;;  %v1961_v39 = vld [vmem:[%s2379_s1 + $0x168] sm:$0xff]  ;;  %vm814_vm0 = vcmask 523264   ;;  %s1907_s12 = sshll.u32 %s2394_s22, 4 }
  0x21   : > { %697 = vmatpush.bf16.msra.mxu2 %v1926_v36  ;;  %v520_v52 = vld [vmem:[#allocation2 + $0xc] sm:$0x7]  ;;  %v527_v53 = vrot.slane %v519_v48, 2  ;;  %v532_v54 = vsel %vm529_vm3, %v517_v44, %v525_v47  ;;  %v534_v55 = vsel %vm533_vm4, %v517_v44, %v525_v47  ;;  %v934_v44 = vld [vmem:[#allocation2 + $0x4] sm:$0x7]  ;;  %s2346_s15 = scalar_lea.vmem %s2384_s6, %s1907_s12 }
  0x22   : > { %506 = vmatpush.bf16.msra.mxu1 %v1918_v38  ;;  %v528_v58 = vrot.slane %v520_v52, 2  ;;  %v536_v59 = vrot.slane %v534_v55, 2  ;;  %v540_v60 = vsel %vm533_vm4, %v518_v46, %v526_v49  ;;  %v539_v62 = vsel %vm529_vm3, %v518_v46, %v526_v49  ;;  %v1954_v20 = vld [vmem:[%s2379_s1 + $0x130] sm:$0xff]  ;;  %v933_v38 = vld [vmem:[#allocation2] sm:$0x7]  ;;  %v1944_v46 = vld [vmem:[%s2379_s1 + $0xe0] sm:$0xff] }
  0x23   : > { %v542_v63 = vrot.slane %v540_v60, 2  ;;  %v546_v0 = vsel %vm533_vm4, %v519_v48, %v527_v53  ;;  %v562_v2 = vshrl.u32 %v532_v54, 16  ;;  %v545_v4 = vsel %vm529_vm3, %v519_v48, %v527_v53 }
  0x24   : > { %372 = vmatpush.bf16.msra.mxu0 %v1909_v40  ;;  %v548_v5 = vrot.slane %v546_v0, 2  ;;  %v552_v6 = vsel %vm533_vm4, %v520_v52, %v528_v58  ;;  %v565_v7 = vshll.u32 %v532_v54, 16  ;;  %922 = vmatpush.bf16.msra.mxu3 %v1934_v50  ;;  %v551_v10 = vsel %vm529_vm3, %v520_v52, %v528_v58  ;;  %v935_v50 = vld [vmem:[#allocation2 + $0x8] sm:$0x7]  ;;  %v936_v54 = vld [vmem:[#allocation2 + $0xc] sm:$0x7] }
  0x25   : > { %698 = vmatpush.bf16.msra.mxu2 %v1925_v42  ;;  %v554_v11 = vrot.slane %v552_v6, 2  ;;  %v564_v12 = vrot.slane %v562_v2, 6  ;;  %v571_v13 = vshll.u32 %v536_v59, 16  ;;  %v575_v16 = vshrl.u32 %v539_v62, 16 }
  0x26   : > { %507 = vmatpush.bf16.msra.mxu1 %v1917_v45  ;;  %v567_v15 = vrot.slane %v565_v7, 7  ;;  %v578_v17 = vshll.u32 %v539_v62, 16  ;;  %v584_v18 = vshll.u32 %v542_v63, 16  ;;  %v588_v23 = vshrl.u32 %v545_v4, 16  ;;  %v1953_v45 = vld [vmem:[%s2379_s1 + $0x128] sm:$0xff]  ;;  %v1960_v63 = vld [vmem:[%s2379_s1 + $0x160] sm:$0xff] }
  0x27   : > { %v591_v24 = vshll.u32 %v545_v4, 16  ;;  %v597_v25 = vshll.u32 %v548_v5, 16  ;;  %v451_v26 = vld.sshfl [vmem:[#allocation1] sm:$0xff pattern:$0x73625140]  ;;  %v573_v28 = vrot.slane %v571_v13, 7 }
  0x28   : > { %373 = vmatpush.bf16.msra.mxu0 %v1908_v43  ;;  %v568_v27 = vor.u32 %v567_v15, %v564_v12  ;;  %v577_v29 = vrot.slane %v575_v16, 6  ;;  %v580_v30 = vrot.slane %v578_v17, 7  ;;  %923 = vmatpush.bf16.msra.mxu3 %v1933_v3  ;;  %v586_v34 = vrot.slane %v584_v18, 7  ;;  %v1952_v4 = vld [vmem:[%s2379_s1 + $0x120] sm:$0xff]  ;;  %v1943_v5 = vld [vmem:[%s2379_s1 + $0xd8] sm:$0xff]  ;;  %v1942_v17 = vld [vmem:[%s2379_s1 + $0xd0] sm:$0xff] }
  0x29   : > { %699 = vmatpush.bf16.msra.mxu2 %v1924_v56  ;;  %v590_v35 = vrot.slane %v588_v23, 6  ;;  %v593_v36 = vrot.slane %v591_v24, 7  ;;  %v601_v37 = vshrl.u32 %v551_v10, 16  ;;  %v604_v42 = vshll.u32 %v551_v10, 16  ;;  %v1951_v16 = vld [vmem:[%s2379_s1 + $0x118] sm:$0xff]  ;;  %v1958_v23 = vld [vmem:[%s2379_s1 + $0x150] sm:$0xff] }
  0x2a   : > { %508 = vmatpush.bf16.msra.mxu1 %v1916_v61  ;;  %v569_v40 = vrot.slane %v568_v27, 2  ;;  %v581_v41 = vor.u32 %v580_v30, %v577_v29  ;;  %v610_v43 = vshll.u32 %v554_v11, 16  ;;  %v599_v48 = vrot.slane %v597_v25, 7  ;;  %v835_v24 = vld [vmem:[#allocation2] sm:$0x3] }
  0x2b   : > { %374 = vmatmul.bf16.vlgmr.msra.gmra.mxu0 %v2104_v31  ;;  %v1932_v31 = vld [vmem:[%s2379_s1 + $0x80] sm:$0xff]  ;;  %v594_v47 = vor.u32 %v593_v36, %v590_v35  ;;  %v603_v49 = vrot.slane %v601_v37, 6  ;;  %v606_v53 = vrot.slane %v604_v42, 7  ;;  %v266_v56 = vsel %vm264_vm13, 0, %v265_v32 }
  0x2c   : > { %1099 = vmatpush.bf16.msrb.mxu0 %v1947_v51  ;;  %v574_v51 = vsel %vm2193_vm11, %v569_v40, %v573_v28  ;;  %v582_v52 = vrot.slane %v581_v41, 2  ;;  %924 = vmatpush.bf16.msra.mxu3 %v1932_v31  ;;  %v942_v58 = vrot.slane %v934_v44, 2  ;;  %v612_v61 = vrot.slane %v610_v43, 7  ;;  %267 = vst [vmem:[#allocation2 + $0x10] sm:$0x7] %v266_v56  ;;  %v1950_v28 = vld [vmem:[%s2379_s1 + $0x110] sm:$0xff] }
  0x2d   : > { %1388 = vmatpush.bf16.msrb.mxu2 %v1963_v57  ;;  %509 = vmatmul.bf16.vlgmr.msra.gmra.mxu1 %v451_v26  ;;  %v595_v55 = vrot.slane %v594_v47, 2  ;;  %632 = vst [vmem:[#allocation1] ss:$4 sm:$0xff] %v574_v51  ;;  %v941_v57 = vrot.slane %v933_v38, 2  ;;  %v607_v60 = vor.u32 %v606_v53, %v603_v49  ;;  %v943_v62 = vrot.slane %v935_v50, 2  ;;  %v1949_v53 = vld [vmem:[%s2379_s1 + $0x108] sm:$0xff] }
  0x2e   : > { %1202 = vmatpush.bf16.msrb.mxu1 %v1955_v8  ;;  %v587_v59 = vsel %vm2193_vm11, %v582_v52, %v586_v34  ;;  %v944_v2 = vrot.slane %v936_v54, 2  ;;  %v953_v6 = vsel %vm529_vm3, %v934_v44, %v942_v58  ;;  %v836_v34 = vld [vmem:[#allocation2 + $0x4] sm:$0x3]  ;;  %v838_v47 = vld [vmem:[#allocation2 + $0xc] sm:$0x3] }
  0x2f   : > { %v600_v0 = vsel %vm2193_vm11, %v595_v55, %v599_v48  ;;  %635 = vst [vmem:[#allocation1 + $0x1] ss:$4 sm:$0xff] %v587_v59  ;;  %v608_v1 = vrot.slane %v607_v60, 2  ;;  %v947_v3 = vsel %vm529_vm3, %v933_v38, %v941_v57  ;;  %v959_v8 = vsel %vm529_vm3, %v935_v50, %v943_v62 }
  0x30   : > { %1100 = vmatpush.bf16.msrb.mxu0 %v1946_v9  ;;  %638 = vst [vmem:[#allocation1 + $0x2] ss:$4 sm:$0xff] %v600_v0  ;;  %v1959_v9 = vld [vmem:[%s2379_s1 + $0x158] sm:$0xff]  ;;  %v948_v10 = vsel %vm533_vm4, %v933_v38, %v941_v57  ;;  %v969_v11 = vshrl.u32 %v947_v3, 16  ;;  %v972_v12 = vshll.u32 %v947_v3, 16  ;;  %v965_v13 = vsel %vm529_vm3, %v936_v54, %v944_v2  ;;  %v1941_v38 = vld [vmem:[%s2379_s1 + $0xc8] sm:$0xff] }
  0x31   : > { %1389 = vmatpush.bf16.msrb.mxu2 %v1962_v19  ;;  %v613_v7 = vsel %vm2193_vm11, %v608_v1, %v612_v61  ;;  %v982_v14 = vshrl.u32 %v953_v6, 16  ;;  %v985_v15 = vshll.u32 %v953_v6, 16  ;;  %v954_v19 = vsel %vm533_vm4, %v934_v44, %v942_v58  ;;  %v1222_v61 = vld [vmem:[#allocation2 + $0x4] sm:$0x7]  ;;  %v1223_v1 = vld [vmem:[#allocation2 + $0x8] sm:$0x7] }
  0x32   : > { %1203 = vmatpush.bf16.msrb.mxu1 %v1954_v20  ;;  %641 = vst [vmem:[#allocation1 + $0x3] ss:$4 sm:$0xff] %v613_v7  ;;  %v995_v20 = vshrl.u32 %v959_v8, 16  ;;  %v950_v26 = vrot.slane %v948_v10, 2  ;;  %v960_v27 = vsel %vm533_vm4, %v935_v50, %v943_v62  ;;  %v966_v29 = vsel %vm533_vm4, %v936_v54, %v944_v2  ;;  %v1957_v50 = vld [vmem:[%s2379_s1 + $0x148] sm:$0xff]  ;;  %v1940_v54 = vld [vmem:[%s2379_s1 + $0xc0] sm:$0xff] }
  0x33   : > { %v282_v18 = vld [vmem:[#allocation2 + $0x10] sm:$0x4]  ;;  %v971_v30 = vrot.slane %v969_v11, 6  ;;  %v974_v31 = vrot.slane %v972_v12, 7  ;;  %v1008_v32 = vshrl.u32 %v965_v13, 16  ;;  %v956_v35 = vrot.slane %v954_v19, 2 }
  0x34   : > { %1101 = vmatpush.bf16.msrb.mxu0 %v1945_v22  ;;  %v998_v22 = vshll.u32 %v959_v8, 16  ;;  %v283_v25 = vsel %vm2088_vm2, 0, %v282_v18  ;;  %v984_v36 = vrot.slane %v982_v14, 6  ;;  %v987_v37 = vrot.slane %v985_v15, 7  ;;  %v1956_v62 = vld [vmem:[%s2379_s1 + $0x140] sm:$0xff] }
  0x35   : > { %1390 = vmatpush.bf16.msrb.mxu2 %v1961_v39  ;;  %284 = vst [vmem:[#allocation2 + $0x10] sm:$0x4] %v283_v25  ;;  %v1011_v21 = vshll.u32 %v965_v13, 16  ;;  %v837_v39 = vld [vmem:[#allocation2 + $0x8] sm:$0x3]  ;;  %v962_v40 = vrot.slane %v960_v27, 2  ;;  %v975_v48 = vor.u32 %v974_v31, %v971_v30 }
  0x36   : > { %1204 = vmatpush.bf16.msrb.mxu1 %v1953_v45  ;;  %v997_v41 = vrot.slane %v995_v20, 6  ;;  %v1000_v42 = vrot.slane %v998_v22, 7  ;;  %v968_v44 = vrot.slane %v966_v29, 2  ;;  %v1010_v45 = vrot.slane %v1008_v32, 6  ;;  %v1948_v19 = vld [vmem:[%s2379_s1 + $0x100] sm:$0xff] }
  0x37   : > { %v978_v49 = vshll.u32 %v950_v26, 16  ;;  %v988_v51 = vor.u32 %v987_v37, %v984_v36  ;;  %v991_v52 = vshll.u32 %v956_v35, 16  ;;  %v1004_v56 = vshll.u32 %v962_v40, 16  ;;  %v1120_v35 = vld [vmem:[#allocation2 + $0x4] sm:$0x3] }
  0x38   : > { %1102 = vmatpush.bf16.msrb.mxu0 %v1944_v46  ;;  %v1013_v46 = vrot.slane %v1011_v21, 7  ;;  %v1001_v55 = vor.u32 %v1000_v42, %v997_v41  ;;  %v1017_v58 = vshll.u32 %v968_v44, 16  ;;  %v976_v59 = vrot.slane %v975_v48, 2 }
  0x39   : > { %1391 = vmatpush.bf16.msrb.mxu2 %v1960_v63  ;;  %v642_v43 = vld.sshfl [vmem:[#allocation1] sm:$0xff pattern:$0x73625140]  ;;  %v980_v60 = vrot.slane %v978_v49, 7  ;;  %v989_v63 = vrot.slane %v988_v51, 2  ;;  %v993_v0 = vrot.slane %v991_v52, 7 }
  0x3a   : > { %1205 = vmatpush.bf16.msrb.mxu1 %v1952_v4  ;;  %700 = vmatmul.bf16.vlgmr.msra.gmra.mxu2 %v642_v43  ;;  %857 = vst [vmem:[#allocation1] ss:$4 sm:$0xff] %v835_v24  ;;  %v1014_v57 = vor.u32 %v1013_v46, %v1010_v45  ;;  %v1002_v2 = vrot.slane %v1001_v55, 2  ;;  %v1006_v3 = vrot.slane %v1004_v56, 7  ;;  %v1224_v4 = vld [vmem:[#allocation2 + $0xc] sm:$0x7] }
  0x3b   : > { %860 = vst [vmem:[#allocation1 + $0x1] ss:$4 sm:$0xff] %v836_v34  ;;  %v1019_v6 = vrot.slane %v1017_v58, 7  ;;  %v1230_v8 = vrot.slane %v1222_v61, 2  ;;  %v1231_v10 = vrot.slane %v1223_v1, 2  ;;  %v994_v11 = vsel %vm2193_vm11, %v989_v63, %v993_v0 }
  0x3c   : > { %1103 = vmatpush.bf16.msrb.mxu0 %v1943_v5  ;;  %863 = vst [vmem:[#allocation1 + $0x2] ss:$4 sm:$0xff] %v837_v39  ;;  %v1015_v5 = vrot.slane %v1014_v57, 2  ;;  %v1225_v7 = vld [vmem:[#allocation2 + $0x10] sm:$0x7]  ;;  %v1232_v12 = vrot.slane %v1224_v4, 2  ;;  %v1007_v14 = vsel %vm2193_vm11, %v1002_v2, %v1006_v3 }
  0x3d   : > { %1392 = vmatpush.bf16.msrb.mxu2 %v1959_v9  ;;  %866 = vst [vmem:[#allocation1 + $0x3] ss:$4 sm:$0xff] %v838_v47  ;;  %v981_v9 = vsel %vm2193_vm11, %v976_v59, %v980_v60  ;;  %v1233_v15 = vrot.slane %v1225_v7, 2  ;;  %v1242_v18 = vsel %vm529_vm3, %v1223_v1, %v1231_v10  ;;  %v1237_v25 = vsel %vm533_vm4, %v1222_v61, %v1230_v8  ;;  %v1121_v39 = vld [vmem:[#allocation2 + $0x8] sm:$0x3] }
  0x3e   : > { %1206 = vmatpush.bf16.msrb.mxu1 %v1951_v16  ;;  %v1020_v16 = vsel %vm2193_vm11, %v1015_v5, %v1019_v6  ;;  %v1248_v20 = vsel %vm529_vm3, %v1224_v4, %v1232_v12  ;;  %v1271_v26 = vshrl.u32 %v1242_v18, 16  ;;  %v1274_v27 = vshll.u32 %v1242_v18, 16  ;;  %v1122_v43 = vld [vmem:[#allocation2 + $0xc] sm:$0x3]  ;;  %v1123_v51 = vld [vmem:[#allocation2 + $0x10] sm:$0x3] }
  0x3f   : > { %v1254_v22 = vsel %vm529_vm3, %v1225_v7, %v1233_v15  ;;  %v1284_v29 = vshrl.u32 %v1248_v20, 16  ;;  %v1287_v30 = vshll.u32 %v1248_v20, 16  ;;  %v1249_v31 = vsel %vm533_vm4, %v1224_v4, %v1232_v12 }
  0x40   : > { %1104 = vmatpush.bf16.msrb.mxu0 %v1942_v17  ;;  %v1236_v17 = vsel %vm529_vm3, %v1222_v61, %v1230_v8  ;;  %v1297_v32 = vshrl.u32 %v1254_v22, 16  ;;  %v1300_v34 = vshll.u32 %v1254_v22, 16  ;;  %v1239_v36 = vrot.slane %v1237_v25, 2 }
  0x41   : > { %1393 = vmatpush.bf16.msrb.mxu2 %v1958_v23  ;;  %v1258_v23 = vshrl.u32 %v1236_v17, 16  ;;  %v1261_v24 = vshll.u32 %v1236_v17, 16  ;;  %v1255_v37 = vsel %vm533_vm4, %v1225_v7, %v1233_v15  ;;  %v1273_v41 = vrot.slane %v1271_v26, 6 }
  0x42   : > { %1207 = vmatpush.bf16.msrb.mxu1 %v1950_v28  ;;  %v1243_v28 = vsel %vm533_vm4, %v1223_v1, %v1231_v10  ;;  %v1276_v42 = vrot.slane %v1274_v27, 7  ;;  %v1251_v44 = vrot.slane %v1249_v31, 2  ;;  %v1286_v45 = vrot.slane %v1284_v29, 6  ;;  %v1973_v10 = vld [vmem:[%s2381_s3] ss:$0 sm:$0xff] }
  0x43   : > { %v1260_v21 = vrot.slane %v1258_v23, 6  ;;  %v1245_v40 = vrot.slane %v1243_v28, 2  ;;  %v1289_v46 = vrot.slane %v1287_v30, 7  ;;  %v1257_v48 = vrot.slane %v1255_v37, 2 }
  0x44   : > { %1105 = vmatpush.bf16.msrb.mxu0 %v1941_v38  ;;  %v867_v13 = vld.sshfl [vmem:[#allocation1] sm:$0xff pattern:$0x73625140]  ;;  %v1263_v38 = vrot.slane %v1261_v24, 7  ;;  %v1299_v49 = vrot.slane %v1297_v32, 6  ;;  %v1293_v57 = vshll.u32 %v1251_v44, 16 }
  0x45   : > { %1394 = vmatpush.bf16.msrb.mxu2 %v1957_v50  ;;  %925 = vmatmul.bf16.vlgmr.msra.gmra.mxu3 %v867_v13  ;;  %1039 = vst [vmem:[#allocation1] ss:$4 sm:$0xff] %v981_v9  ;;  %v1302_v50 = vrot.slane %v1300_v34, 7  ;;  %v1280_v55 = vshll.u32 %v1245_v40, 16  ;;  %v1290_v56 = vor.u32 %v1289_v46, %v1286_v45  ;;  %v1306_v59 = vshll.u32 %v1257_v48, 16 }
  0x46   : > { %1208 = vmatpush.bf16.msrb.mxu1 %v1949_v53  ;;  %1042 = vst [vmem:[#allocation1 + $0x1] ss:$4 sm:$0xff] %v994_v11  ;;  %v1264_v52 = vor.u32 %v1263_v38, %v1260_v21  ;;  %v1267_v53 = vshll.u32 %v1239_v36, 16  ;;  %v1295_v1 = vrot.slane %v1293_v57, 7 }
  0x47   : > { %1045 = vst [vmem:[#allocation1 + $0x2] ss:$4 sm:$0xff] %v1007_v14  ;;  %v1303_v58 = vor.u32 %v1302_v50, %v1299_v49  ;;  %v1282_v63 = vrot.slane %v1280_v55, 7  ;;  %v1291_v0 = vrot.slane %v1290_v56, 2  ;;  %v1308_v3 = vrot.slane %v1306_v59, 7 }
  0x48   : > { %1106 = vmatpush.bf16.msrb.mxu0 %v1940_v54  ;;  %1048 = vst [vmem:[#allocation1 + $0x3] ss:$4 sm:$0xff] %v1020_v16  ;;  %v1277_v54 = vor.u32 %v1276_v42, %v1273_v41  ;;  %v1265_v60 = vrot.slane %v1264_v52, 2  ;;  %v1269_v61 = vrot.slane %v1267_v53, 7 }
  0x49   : > { %1395 = vmatpush.bf16.msrb.mxu2 %v1956_v62  ;;  %v1304_v2 = vrot.slane %v1303_v58, 2  ;;  %v1296_v7 = vsel %vm2193_vm11, %v1291_v0, %v1295_v1 }
  0x4a   : > { %1209 = vmatpush.bf16.msrb.mxu1 %v1948_v19  ;;  %v1278_v62 = vrot.slane %v1277_v54, 2  ;;  %v1270_v4 = vsel %vm2193_vm11, %v1265_v60, %v1269_v61 }
  0x4b   : > { %v1309_v8 = vsel %vm2193_vm11, %v1304_v2, %v1308_v3 }
  0x4c   : > { %v1283_v5 = vsel %vm2193_vm11, %v1278_v62, %v1282_v63 }
  0x4f   : > { %v1049_v47 = vld.sshfl [vmem:[#allocation1] sm:$0xff pattern:$0x73625140] }
  0x50   : > { %1142 = vst [vmem:[#allocation1] ss:$4 sm:$0xff] %v1120_v35  ;;  %1107 = vmatmul.bf16.vlgmr.msrb.gmra.mxu0 %v1049_v47 }
  0x51   : > { %1145 = vst [vmem:[#allocation1 + $0x1] ss:$4 sm:$0xff] %v1121_v39 }
  0x52   : > { %1148 = vst [vmem:[#allocation1 + $0x2] ss:$4 sm:$0xff] %v1122_v43 }
  0x53   : > { %1151 = vst [vmem:[#allocation1 + $0x3] ss:$4 sm:$0xff] %v1123_v51 }
  0x5a   : > { %v1152_v6 = vld.sshfl [vmem:[#allocation1] sm:$0xff pattern:$0x73625140] }
  0x5b   : > { %1328 = vst [vmem:[#allocation1] ss:$4 sm:$0xff] %v1270_v4  ;;  %1210 = vmatmul.bf16.vlgmr.msrb.gmra.mxu1 %v1152_v6 }
  0x5c   : > { %1331 = vst [vmem:[#allocation1 + $0x1] ss:$4 sm:$0xff] %v1283_v5 }
  0x5d   : > { %1334 = vst [vmem:[#allocation1 + $0x2] ss:$4 sm:$0xff] %v1296_v7 }
  0x5e   : > { %1337 = vst [vmem:[#allocation1 + $0x3] ss:$4 sm:$0xff] %v1309_v8 }
  0x65   : > { %v1338_v9 = vld.sshfl [vmem:[#allocation1] sm:$0xff pattern:$0x73625140] }
  0x66   : > { %1396 = vmatmul.bf16.vlgmr.msrb.gmra.mxu2 %v1338_v9 }
  0xa8   : > { %v375_v11 = vpop.f32.mrf.mxu0 }
  0xa9   : > { %v376_v12 = vadd.f32 %v1973_v10, %v375_v11 }
  0xab   : > { %v382_v13 = vrot.slane %v376_v12, 4  ;;  %388 = vst.msk [vmem:[#allocation3 + $0x9] sm:$0xf] %vm387_vm14, %v376_v12 }
  0xac   : > { %392 = vst.msk [vmem:[#allocation3 + $0x1] sm:$0xf] %vm387_vm14, %v376_v12 }
  0xad   : > { %389 = vst.msk [vmem:[#allocation3 + $0x11] sm:$0xf] %vm387_vm14, %v382_v13 }
  0xb0   : > { %v377_v33 = vpop.f32.mrf.mxu0 }
  0xb1   : > { %v378_v15 = vadd.f32 %v1973_v10, %v377_v33 }
  0xb2   : > { %v396_v14 = vld [vmem:[#allocation3 + $0x9] sm:$0x1]  ;;  %v409_v19 = vld [vmem:[#allocation3 + $0xc] sm:$0x1] }
  0xb3   : > { %v395_v16 = vld [vmem:[#allocation3 + $0x1] sm:$0x1]  ;;  %403 = vst.msk [vmem:[#allocation3 + $0x8] sm:$0x1] %vm401_vm15, %v396_v14  ;;  %v408_v17 = vld [vmem:[#allocation3 + $0x4] sm:$0x1] }
  0xb4   : > { %v397_v18 = vld [vmem:[#allocation3 + $0x11] sm:$0x1]  ;;  %402 = vst.msk [vmem:[#allocation3] sm:$0x1] %vm401_vm15, %v395_v16  ;;  %v410_v20 = vld [vmem:[#allocation3 + $0x14] sm:$0x1] }
  0xb5   : > { %404 = vst.msk [vmem:[#allocation3 + $0x10] sm:$0x1] %vm401_vm15, %v397_v18  ;;  %v383_v22 = vrot.slane %v378_v15, 4 }
  0xb6   : > { %414 = vst.msk [vmem:[#allocation3 + $0x5] sm:$0x1] %vm401_vm15, %v408_v17 }
  0xb7   : > { %415 = vst.msk [vmem:[#allocation3 + $0xd] sm:$0x1] %vm401_vm15, %v409_v19 }
  0xb8   : > { %416 = vst.msk [vmem:[#allocation3 + $0x15] sm:$0x1] %vm401_vm15, %v410_v20 }
  0xb9   : > { %390 = vst.msk [vmem:[#allocation3 + $0x19] sm:$0xf] %vm387_vm14, %v378_v15 }
  0xba   : > { %391 = vst.msk [vmem:[#allocation3 + $0x21] sm:$0xf] %vm387_vm14, %v383_v22 }
  0xbb   : > { %394 = vst.msk [vmem:[#allocation3 + $0x29] sm:$0xf] %vm387_vm14, %v383_v22 }
  0xbd   : > { %v734_v23 = vld [vmem:[#allocation3] sm:$0x3f] }
  0xbe   : > { %v738_v24 = vmul.f32 0.25, %v734_v23  ;;  %v742_v25 = vld [vmem:[#allocation3 + $0x8] sm:$0x3f] }
  0xbf   : > { %v1430_v26 = vld [vmem:[#allocation3 + $0x8] sm:$0x3f]  ;;  %v746_v27 = vmul.f32 0.75, %v742_v25  ;;  %v1439_v28 = vld [vmem:[#allocation3 + $0x10] sm:$0x3f] }
  0xc0   : > { %v735_v29 = vld [vmem:[#allocation3 + $0x8] sm:$0x3f]  ;;  %v398_v30 = vld [vmem:[#allocation3 + $0x19] sm:$0x1]  ;;  %v411_v31 = vld [vmem:[#allocation3 + $0x1c] sm:$0x1] }
  0xc1   : > { %v1434_v32 = vmul.f32 0.75, %v1430_v26  ;;  %v1443_v34 = vmul.f32 0.25, %v1439_v28  ;;  %v399_v35 = vld [vmem:[#allocation3 + $0x21] sm:$0x1]  ;;  %405 = vst.msk [vmem:[#allocation3 + $0x18] sm:$0x1] %vm401_vm15, %v398_v30  ;;  %v750_v37 = vadd.f32 %v746_v27, %v738_v24 }
  0xc2   : > { %v412_v36 = vld [vmem:[#allocation3 + $0x24] sm:$0x1]  ;;  %v400_v21 = vld [vmem:[#allocation3 + $0x29] sm:$0x1]  ;;  %406 = vst.msk [vmem:[#allocation3 + $0x20] sm:$0x1] %vm401_vm15, %v399_v35 }
  0xc3   : > { %v413_v38 = vld [vmem:[#allocation3 + $0x2c] sm:$0x1]  ;;  %v1447_v39 = vadd.f32 %v1443_v34, %v1434_v32  ;;  %407 = vst.msk [vmem:[#allocation3 + $0x28] sm:$0x1] %vm401_vm15, %v400_v21  ;;  %v754_v40 = vmul.f32 0.25, %v750_v37  ;;  %v758_v41 = vmul.f32 0.75, %v750_v37 }
  0xc4   : > { %v743_v42 = vld [vmem:[#allocation3 + $0x10] sm:$0x3f]  ;;  %417 = vst.msk [vmem:[#allocation3 + $0x1d] sm:$0x1] %vm401_vm15, %v411_v31  ;;  %v739_v45 = vmul.f32 0.25, %v735_v29 }
  0xc5   : > { %v1451_v43 = vmul.f32 0.25, %v1447_v39  ;;  %v1455_v44 = vmul.f32 0.75, %v1447_v39  ;;  %v747_v46 = vmul.f32 0.75, %v743_v42  ;;  %418 = vst.msk [vmem:[#allocation3 + $0x25] sm:$0x1] %vm401_vm15, %v412_v36  ;;  %v766_v47 = vrot.slane %v758_v41, 1 }
  0xc6   : > { %v782_v48 = vrot.slane %v754_v40, 1  ;;  %419 = vst.msk [vmem:[#allocation3 + $0x2d] sm:$0x1] %vm401_vm15, %v413_v38  ;;  %v736_v58 = vld [vmem:[#allocation3 + $0x10] sm:$0x3f] }
  0xc7   : > { %v1463_v49 = vrot.slane %v1455_v44, 1  ;;  %v1479_v50 = vrot.slane %v1451_v43, 1  ;;  %v751_v51 = vadd.f32 %v747_v46, %v739_v45  ;;  %v2312_v53 = vadd.f32 %v766_v47, %v754_v40  ;;  %v1431_v59 = vld [vmem:[#allocation3 + $0x10] sm:$0x3f] }
  0xc8   : > { %v790_v52 = vadd.f32 %v782_v48, %v758_v41  ;;  %v740_v3 = vmul.f32 0.25, %v736_v58  ;;  %v1435_v5 = vmul.f32 0.75, %v1431_v59 }
  0xc9   : > { %v1487_v54 = vadd.f32 %v1479_v50, %v1455_v44  ;;  %v755_v55 = vmul.f32 0.25, %v751_v51  ;;  %v759_v56 = vmul.f32 0.75, %v751_v51  ;;  %v2314_v60 = vadd.f32 %v1463_v49, %v1451_v43 }
  0xca   : > { %v798_v57 = vrot.slane %v790_v52, 1 }
  0xcb   : > { %v1495_v61 = vrot.slane %v1487_v54, 1  ;;  %v783_v62 = vrot.slane %v755_v55, 1  ;;  %v767_v63 = vrot.slane %v759_v56, 1  ;;  %v744_v0 = vld [vmem:[#allocation3 + $0x18] sm:$0x3f] }
  0xcc   : > { %802 = vrot.lane.b32.xlu0 %v798_v57, %s1986_s7  ;;  %v1440_v1 = vld [vmem:[#allocation3 + $0x18] sm:$0x3f]  ;;  %v748_v4 = vmul.f32 0.75, %v744_v0  ;;  %v1441_v7 = vld [vmem:[#allocation3 + $0x20] sm:$0x3f]  ;;  %v701_v0 = vpop.f32.mrf.mxu2 }
  0xcd   : > { %v1432_v2 = vld [vmem:[#allocation3 + $0x18] sm:$0x3f]  ;;  %1499 = vrot.lane.b32.xlu2 %v1495_v61, %s1986_s7  ;;  %v1444_v6 = vmul.f32 0.25, %v1440_v1  ;;  %v791_v8 = vadd.f32 %v783_v62, %v759_v56  ;;  %v1445_v10 = vmul.f32 0.25, %v1441_v7  ;;  %v745_v12 = vld [vmem:[#allocation3 + $0x20] sm:$0x3f]  ;;  %v2318_v13 = vadd.f32 %v767_v63, %v755_v55  ;;  %v510_v63 = vpop.f32.mrf.mxu1 }
  0xce   : > { %v1436_v9 = vmul.f32 0.75, %v1432_v2  ;;  %v737_v11 = vld [vmem:[#allocation3 + $0x18] sm:$0x3f]  ;;  %v752_v33 = vadd.f32 %v748_v4, %v740_v3  ;;  %v1433_v16 = vld [vmem:[#allocation3 + $0x20] sm:$0x3f]  ;;  %v749_v19 = vmul.f32 0.75, %v745_v12  ;;  %v926_v3 = vpop.f32.mrf.mxu3  ;;  %v1108_v4 = vpop.f32.mrf.mxu0 }
  0xcf   : > { %v1448_v14 = vadd.f32 %v1444_v6, %v1435_v5  ;;  %v741_v15 = vmul.f32 0.25, %v737_v11  ;;  %v1442_v17 = vld [vmem:[#allocation3 + $0x28] sm:$0x3f]  ;;  %v1437_v20 = vmul.f32 0.75, %v1433_v16  ;;  %v799_v26 = vrot.slane %v791_v8, 1 }
  0xd0   : > { %v1449_v18 = vadd.f32 %v1445_v10, %v1436_v9  ;;  %v1446_v22 = vmul.f32 0.25, %v1442_v17  ;;  %v756_v23 = vmul.f32 0.25, %v752_v33  ;;  %v760_v24 = vmul.f32 0.75, %v752_v33  ;;  %v1976_v10 = vld [vmem:[%s2382_s4] ss:$0 sm:$0xff] }
  0xd1   : > { %v1452_v25 = vmul.f32 0.25, %v1448_v14  ;;  %v753_v28 = vadd.f32 %v749_v19, %v741_v15  ;;  %v1456_v31 = vmul.f32 0.75, %v1448_v14  ;;  %v1115_v5 = vadd.f32 %v1108_v4, %v926_v3  ;;  %v1977_v12 = vld [vmem:[%s2383_s5] ss:$0 sm:$0xff] }
  0xd2   : > { %v1453_v27 = vmul.f32 0.25, %v1449_v18  ;;  %v1450_v29 = vadd.f32 %v1446_v22, %v1437_v20  ;;  %v784_v30 = vrot.slane %v756_v23, 1  ;;  %v768_v34 = vrot.slane %v760_v24, 1 }
  0xd3   : > { %v1480_v32 = vrot.slane %v1452_v25, 1  ;;  %v1457_v35 = vmul.f32 0.75, %v1449_v18  ;;  %v757_v37 = vmul.f32 0.25, %v753_v28  ;;  %v761_v39 = vmul.f32 0.75, %v753_v28 }
  0xd4   : > { %804 = vrot.lane.b32.xlu0 %v799_v26, %s1986_s7  ;;  %v1481_v36 = vrot.slane %v1453_v27, 1  ;;  %v792_v21 = vadd.f32 %v784_v30, %v760_v24  ;;  %v1458_v40 = vmul.f32 0.75, %v1450_v29  ;;  %v1454_v45 = vmul.f32 0.25, %v1450_v29  ;;  %v703_v2 = vpop.f32.mrf.mxu2 }
  0xd5   : > { %v1488_v38 = vadd.f32 %v1480_v32, %v1456_v31  ;;  %v785_v44 = vrot.slane %v757_v37, 1  ;;  %v1464_v46 = vrot.slane %v1456_v31, 1  ;;  %v2323_v47 = vadd.f32 %v768_v34, %v756_v23  ;;  %v512_v1 = vpop.f32.mrf.mxu1  ;;  %v1974_v23 = vld [vmem:[%s2382_s4] ss:$0 sm:$0xff] }
  0xd6   : > { %v1489_v41 = vadd.f32 %v1481_v36, %v1457_v35  ;;  %v800_v42 = vrot.slane %v792_v21, 1  ;;  %v1465_v48 = vrot.slane %v1457_v35, 1  ;;  %v769_v49 = vrot.slane %v761_v39, 1  ;;  %v928_v29 = vpop.f32.mrf.mxu3  ;;  %v1110_v30 = vpop.f32.mrf.mxu0 }
  0xd7   : > { %v1496_v43 = vrot.slane %v1488_v38, 1  ;;  %v1466_v50 = vrot.slane %v1458_v40, 1  ;;  %v1472_v52 = vadd.f32 %v1464_v46, %v1452_v25  ;;  %v793_v54 = vadd.f32 %v785_v44, %v761_v39 }
  0xd8   : > { %806 = vrot.lane.b32.xlu1 %v800_v42, %s1986_s7  ;;  %v1497_v51 = vrot.slane %v1489_v41, 1  ;;  %v2325_v55 = vadd.f32 %v1465_v48, %v1453_v27  ;;  %v2327_v56 = vadd.f32 %v769_v49, %v757_v37  ;;  %v1482_v59 = vrot.slane %v1454_v45, 1  ;;  %v1975_v27 = vld [vmem:[%s2383_s5] ss:$0 sm:$0xff] }
  0xd9   : > { %1501 = vrot.lane.b32.xlu2 %v1496_v43, %s1986_s7  ;;  %v2329_v57 = vadd.f32 %v1466_v50, %v1454_v45  ;;  %v801_v58 = vrot.slane %v793_v54, 1  ;;  %v708_v22 = vadd.f32 %v701_v0, %v510_v63  ;;  %v1116_v34 = vadd.f32 %v1110_v30, %v928_v29 }
  0xda   : > { %v1490_v61 = vadd.f32 %v1482_v59, %v1458_v40  ;;  %v709_v38 = vadd.f32 %v703_v2, %v512_v1 }
  0xdb   : > { %v718_v26 = vmul.f32 %v1974_v23, %v708_v22 }
  0xdc   : > { %1503 = vrot.lane.b32.xlu0 %v1497_v51, %s1986_s7  ;;  %v1498_v62 = vrot.slane %v1490_v61, 1  ;;  %v719_v44 = vmul.f32 %v1974_v23, %v709_v38 }
  0xdd   : > { %v1211_v6 = vpop.f32.mrf.mxu1  ;;  %v724_v32 = vadd.f32 %v1975_v27, %v718_v26 }
  0xde   : > { %v1218_v7 = vadd.f32 %v1211_v6, %v1115_v5  ;;  %v725_v50 = vadd.f32 %v1975_v27, %v719_v44 }
  0xdf   : > { %v726_v37 = vmax.f32 %v724_v32, 0.0 }
  0xe0   : > { %808 = vrot.lane.b32.xlu1 %v801_v58, %s1986_s7  ;;  %v727_v59 = vmax.f32 %v725_v50, 0.0 }
  0xe1   : > { %v730_v49 = vrot.slane %v726_v37, 4 }
  0xe5   : > { %v1213_v35 = vpop.f32.mrf.mxu1 }
  0xe6   : > { %v1219_v21 = vadd.f32 %v1213_v35, %v1116_v34 }
  0xe8   : > { %1505 = vrot.lane.b32.xlu1 %v1498_v62, %s1986_s7 }
  0xe9   : > { %v1397_v8 = vpop.f32.mrf.mxu2 }
  0xea   : > { %v1404_v9 = vadd.f32 %v1397_v8, %v1218_v7  ;;  %v731_v7 = vrot.slane %v727_v59, 4 }
  0xec   : > { %v1414_v11 = vmul.f32 %v1976_v10, %v1404_v9 }
  0xee   : > { %v1420_v33 = vadd.f32 %v1977_v12, %v1414_v11 }
  0xf0   : > { %v1422_v14 = vmax.f32 %v1420_v33, 0.0 }
  0xf1   : > { %v1399_v40 = vpop.f32.mrf.mxu2 }
  0xf2   : > { %v1426_v20 = vrot.slane %v1422_v14, 4  ;;  %v1405_v43 = vadd.f32 %v1399_v40, %v1219_v21 }
  0xf4   : > { %v1415_v46 = vmul.f32 %v1976_v10, %v1405_v43 }
  0xf6   : > { %v1421_v54 = vadd.f32 %v1977_v12, %v1415_v46 }
  0xf8   : > { %v1423_v1 = vmax.f32 %v1421_v54, 0.0 }
  0xfa   : > { %v1427_v33 = vrot.slane %v1423_v1, 4 }
 0x127   : > { %v1500_v15 = vpop.permute.xlu2 %1499 }
 0x128   : > { %v1511_v16 = vsel %vm814_vm0, %v2314_v60, %v1500_v15 }
 0x129   : > { %v1515_v17 = vadd.f32 %v1511_v16, %v1422_v14 }
 0x12b   : > { %v1519_v18 = vmax.f32 %v1515_v17, 0.0 }
 0x12d   : > { %v1523_v19 = vpack.c.bf16 %v1519_v18, %v1519_v18 }
 0x12f   : > { %1900 = vst [vmem:[%s2346_s15 + $0x2] sm:$0x3] %v1523_v19 }
 0x133   : > { %v1502_v24 = vpop.permute.xlu2 %1501 }
 0x134   : > { %v1512_v60 = vsel %vm814_vm0, %v1472_v52, %v1502_v24 }
 0x135   : > { %v1516_v25 = vadd.f32 %v1512_v60, %v1426_v20 }
 0x137   : > { %v1520_v28 = vmax.f32 %v1516_v25, 0.0 }
 0x139   : > { %v1524_v31 = vpack.c.bf16 %v1520_v28, %v1520_v28 }
 0x13b   : > { %1901 = vst [vmem:[%s2346_s15 + $0x6] sm:$0x3] %v1524_v31 }
 0x13e   : > { %v803_v36 = vpop.permute.xlu0 %802 }
 0x13f   : > { %v815_v39 = vsel %vm814_vm0, %v2312_v53, %v803_v36 }
 0x140   : > { %v819_v41 = vadd.f32 %v815_v39, %v726_v37 }
 0x142   : > { %v823_v42 = vmax.f32 %v819_v41, 0.0 }
 0x144   : > { %v827_v45 = vpack.c.bf16 %v823_v42, %v823_v42 }
 0x146   : > { %831 = vst [vmem:[%s2346_s15] sm:$0x3] %v827_v45  ;;  %v805_v48 = vpop.permute.xlu0 %804 }
 0x147   : > { %v816_v51 = vsel %vm814_vm0, %v2318_v13, %v805_v48 }
 0x148   : > { %v820_v52 = vadd.f32 %v816_v51, %v730_v49 }
 0x14a   : > { %v824_v58 = vmax.f32 %v820_v52, 0.0  ;;  %v807_v53 = vpop.permute.xlu1 %806 }
 0x14b   : > { %v817_v62 = vsel %vm814_vm0, %v2323_v47, %v807_v53 }
 0x14c   : > { %v828_v61 = vpack.c.bf16 %v824_v58, %v824_v58  ;;  %v821_v63 = vadd.f32 %v817_v62, %v727_v59 }
 0x14e   : > { %832 = vst [vmem:[%s2346_s15 + $0x4] sm:$0x3] %v828_v61  ;;  %v1504_v0 = vpop.permute.xlu0 %1503  ;;  %v825_v2 = vmax.f32 %v821_v63, 0.0 }
 0x14f   : > { %v1513_v13 = vsel %vm814_vm0, %v2325_v55, %v1504_v0 }
 0x150   : > { %v1517_v3 = vadd.f32 %v1513_v13, %v1423_v1  ;;  %v829_v4 = vpack.c.bf16 %v825_v2, %v825_v2 }
 0x152   : > { %v1521_v5 = vmax.f32 %v1517_v3, 0.0  ;;  %833 = vst [vmem:[%s2346_s15 + $0x8] sm:$0x3] %v829_v4  ;;  %v809_v6 = vpop.permute.xlu1 %808 }
 0x153   : > { %v818_v47 = vsel %vm814_vm0, %v2327_v56, %v809_v6 }
 0x154   : > { %v1525_v8 = vpack.c.bf16 %v1521_v5, %v1521_v5  ;;  %v822_v9 = vadd.f32 %v818_v47, %v731_v7 }
 0x156   : > { %1902 = vst [vmem:[%s2346_s15 + $0xa] sm:$0x3] %v1525_v8  ;;  %v826_v10 = vmax.f32 %v822_v9, 0.0 }
 0x158   : > { %v830_v11 = vpack.c.bf16 %v826_v10, %v826_v10 }
 0x15a   : > { %834 = vst [vmem:[%s2346_s15 + $0xc] sm:$0x3] %v830_v11  ;;  %v1506_v12 = vpop.permute.xlu1 %1505 }
 0x15b   : > { %v1514_v55 = vsel %vm814_vm0, %v2329_v57, %v1506_v12 }
 0x15c   : > { %v1518_v14 = vadd.f32 %v1514_v55, %v1427_v33 }
 0x15e   : > { %v1522_v15 = vmax.f32 %v1518_v14, 0.0 }
 0x160   : > { %v1526_v16 = vpack.c.bf16 %v1522_v15, %v1522_v15 }
 0x162   : > { %1903 = vst [vmem:[%s2346_s15 + $0xe] sm:$0x3] %v1526_v16 }
 0x163 PF: > { %s16_s21 = sadd.s32 1, %s1984_s21  }
 0x164   : > { %p13_p4 = scmp.ge.s32.totalorder %s16_s21, 4  }
 0x166   :  { %15 = sbr.rel (!%p13_p4) target bundleno = 1 (0x1), region = 106 }

// kernel: gated_residual_up_head.4
= control target key start
LH: loop header
LB: loop body
LE: loop exit
PB: predicated region body
PF: predicated region fallthrough
CT: control target
= control target key end

     0   :  { %s2727_s21 = smov 0   ;;  %s3629_s0 = inlined_call_operand.vmem [shape: bf16[2,8,8,64], index: 0, kind: input, shape index: {}]   ;;  %s3630_s1 = inlined_call_operand.vmem [shape: bf16[6,64,64], index: 1, kind: input, shape index: {}]   ;;  %s3631_s2 = inlined_call_operand.vmem [shape: bf16[64,32], index: 2, kind: input, shape index: {}]   ;;  %s3632_s3 = inlined_call_operand.vmem [shape: f32[1,32], index: 3, kind: input, shape index: {}]   ;;  %s3633_s4 = inlined_call_operand.vmem [shape: f32[1,64], index: 4, kind: input, shape index: {}]   ;;  %s3634_s5 = inlined_call_operand.vmem [shape: f32[1,64], index: 5, kind: input, shape index: {}]   ;;  %s3635_s6 = inlined_call_operand.vmem [shape: bf16[2,8,2,8,64], index: 6, kind: output, shape index: {}]  }
   0x1 LB: > { %s2346_s22 = sadd.s32 4294967295, %s2688_s21   ;;  %p2350_p0 = scmp.ge.s32.totalorder %s2688_s21, 1  ;;  %s2688_s21 = sphi %s2727_s21, %s16_s21  }
   0x2   : > { %p212_p1 = scmp.lt.s32.totalorder %s2688_s21, 3 }
   0x4   : > { %p213_p2 = pnand %p2350_p0, %p212_p1 }
   0x6   : > { %216 = sbr.rel (%p213_p2) target bundleno = 383 (0x17f), region = 44 }
   0xb   : > { %v2618_v0 = vld [vmem:[%s3631_s2 + $0x18] sm:$0xff]  ;;  %p242_p3 = scmp.lt.s32.totalorder %s2346_s22, 1  ;;  %v2617_v1 = vld [vmem:[%s3631_s2 + $0x10] sm:$0xff]  ;;  %v2616_v2 = vld [vmem:[%s3631_s2 + $0x8] sm:$0xff]  ;;  %vm361_vm0 = vcmask 523264   ;;  %vm261_vm1 = vcmask 519168  }
   0xc   : > { %378 = vmatpush.bf16.msra.mxu0 %v2618_v0  ;;  %2655 = vmatpush.bf16.msra.mxu3 %v2618_v0  ;;  %v2615_v3 = vld [vmem:[%s3631_s2] sm:$0xff]  ;;  %v2626_v8 = vld [vmem:[%s3630_s1 + $0x18] sm:$0xff]  ;;  %vm272_vm2 = vcmask 516096   ;;  %v2625_v10 = vld [vmem:[%s3630_s1 + $0x10] sm:$0xff]  ;;  %vm273_vm3 = vsmask.f32 256 }
   0xd   : > { %s3701_s22 = smov (!%p242_p3, %s2346_s22), 1  ;;  %v2768_v9 = vld [vmem:[%s3630_s1 + $0x38] sm:$0xff]  ;;  %2659 = vmatpush.bf16.msra.mxu1 %v2626_v8  ;;  %v2778_v11 = vld [vmem:[%s3630_s1 + $0x30] sm:$0xff]  ;;  %vm2783_vm4 = vmand %vm272_vm2, %vm273_vm3  ;;  %vm582_vm5 = vsmask.f32 3328  ;;  %vm404_vm8 = vcmask 261120  }
   0xe   : > { %s2609_s29 = sshll.u32 %s3701_s22, 5  ;;  %2663 = vmatpush.bf16.msra.mxu2 %v2768_v9  ;;  %v2638_v12 = vld [vmem:[%s3630_s1 + $0x58] sm:$0xff]  ;;  %v284_v14 = vld [vmem:[#allocation2 + $0x14] sm:$0x1]  ;;  %vm583_vm6 = vsmask.f32 7440 }
   0xf   : > { %s2753_s10 = scalar_lea.vmem %s3629_s0, %s2609_s29  ;;  %v287_v15 = vld [vmem:[#allocation2 + $0x1c] sm:$0x1]  ;;  %v285_v16 = vsel %vm2783_vm4, 0, %v284_v14  ;;  %v2624_v20 = vld [vmem:[%s3630_s1 + $0x8] sm:$0xff]  ;;  %v2637_v21 = vld [vmem:[%s3630_s1 + $0x50] sm:$0xff]  ;;  %vm426_vm9 = vcmask 253952  }
  0x10   : > { %379 = vmatpush.bf16.msra.mxu0 %v2617_v1  ;;  %2656 = vmatpush.bf16.msra.mxu3 %v2617_v1  ;;  %v2611_v4 = vld [vmem:[%s2753_s10] sm:$0xff]  ;;  %v2612_v5 = vld [vmem:[%s2753_s10 + $0x8] sm:$0xff]  ;;  %v288_v17 = vsel %vm2783_vm4, 0, %v287_v15  ;;  %286 = vst [vmem:[#allocation2 + $0x14] sm:$0x1] %v285_v16  ;;  %v2613_v38 = vld [vmem:[%s2753_s10 + $0x10] sm:$0xff] }
  0x11   : > { %v255_v6 = vld [vmem:[%s2753_s10 + $0x8] sm:$0xf]  ;;  %v256_v7 = vld [vmem:[%s2753_s10 + $0xc] sm:$0xf]  ;;  %v253_v18 = vld [vmem:[%s2753_s10] sm:$0xf]  ;;  %2660 = vmatpush.bf16.msra.mxu1 %v2625_v10 }
  0x12   : > { %264 = vst.msk [vmem:[#allocation2 + $0x10] sm:$0xf] %vm261_vm1, %v255_v6  ;;  %v254_v19 = vld [vmem:[%s2753_s10 + $0x4] sm:$0xf]  ;;  %v257_v22 = vld [vmem:[%s2753_s10 + $0x10] sm:$0xf]  ;;  %2664 = vmatpush.bf16.msra.mxu2 %v2778_v11  ;;  %vm2836_vm7 = vmor %vm582_vm5, %vm583_vm6 }
  0x13   : > { %265 = vst.msk [vmem:[#allocation2 + $0x18] sm:$0xf] %vm261_vm1, %v256_v7  ;;  %v2804_v23 = vld [vmem:[%s3630_s1 + $0x28] sm:$0xff]  ;;  %v2623_v26 = vld [vmem:[%s3630_s1] sm:$0xff]  ;;  %v258_v34 = vld [vmem:[%s2753_s10 + $0x14] sm:$0xf] }
  0x14   : > { %380 = vmatpush.bf16.msra.mxu0 %v2616_v2  ;;  %2657 = vmatpush.bf16.msra.mxu3 %v2616_v2  ;;  %289 = vst [vmem:[#allocation2 + $0x1c] sm:$0x1] %v288_v17  ;;  %v2636_v25 = vld [vmem:[%s3630_s1 + $0x48] sm:$0xff]  ;;  %v290_v37 = vld [vmem:[#allocation2 + $0x24] sm:$0x1]  ;;  %v2650_v17 = vld [vmem:[%s3630_s1 + $0x98] sm:$0xff] }
  0x15   : > { %262 = vst.msk [vmem:[#allocation2] sm:$0xf] %vm261_vm1, %v253_v18  ;;  %2661 = vmatpush.bf16.msra.mxu1 %v2624_v20  ;;  %v2820_v39 = vld [vmem:[%s3630_s1 + $0x20] sm:$0xff]  ;;  %v291_v42 = vsel %vm2783_vm4, 0, %v290_v37  ;;  %v293_v44 = vld [vmem:[#allocation2 + $0x2c] sm:$0x1] }
  0x16   : > { %263 = vst.msk [vmem:[#allocation2 + $0x8] sm:$0xf] %vm261_vm1, %v254_v19  ;;  %2665 = vmatpush.bf16.msra.mxu2 %v2804_v23  ;;  %v2635_v45 = vld [vmem:[%s3630_s1 + $0x40] sm:$0xff]  ;;  %v294_v50 = vsel %vm2783_vm4, 0, %v293_v44  ;;  %v281_v58 = vld [vmem:[#allocation2 + $0xc] sm:$0x1] }
  0x17   : > { %266 = vst.msk [vmem:[#allocation2 + $0x20] sm:$0xf] %vm261_vm1, %v257_v22  ;;  %v278_v46 = vld [vmem:[#allocation2 + $0x4] sm:$0x1]  ;;  %v571_v48 = vld [vmem:[#allocation2 + $0x14] sm:$0x1] }
  0x18   : > { %381 = vmatpush.bf16.msra.mxu0 %v2615_v3  ;;  %2658 = vmatpush.bf16.msra.mxu3 %v2615_v3  ;;  %267 = vst.msk [vmem:[#allocation2 + $0x28] sm:$0xf] %vm261_vm1, %v258_v34  ;;  %v279_v51 = vsel %vm2783_vm4, 0, %v278_v46  ;;  %v623_v54 = vshll.u32 %v571_v48, 16  ;;  %v282_v61 = vsel %vm2783_vm4, 0, %v281_v58  ;;  %v2641_v48 = vld [vmem:[%s3630_s1 + $0x70] sm:$0xff] }
  0x19   : > { %v570_v24 = vld [vmem:[#allocation2 + $0x10] sm:$0xf]  ;;  %292 = vst [vmem:[#allocation2 + $0x24] sm:$0x1] %v291_v42  ;;  %2662 = vmatpush.bf16.msra.mxu1 %v2623_v26  ;;  %v299_v58 = vld [vmem:[#allocation2 + $0x3c] sm:$0x1] }
  0x1a   : > { %v2397_v27 = vld [vmem:[#allocation2 + $0x10] sm:$0xf]  ;;  %v2620_v28 = vld [vmem:[#allocation2 + $0x14] sm:$0xf0]  ;;  %v614_v30 = vshrl.u32 %v570_v24, 16  ;;  %v617_v31 = vshll.u32 %v570_v24, 16  ;;  %2666 = vmatpush.bf16.msra.mxu2 %v2820_v39 }
  0x1b   : > { %2387 = vmatmul.msk.bf16.vlgmr.msra.gmra.mxu0 %vm361_vm0, %v2611_v4  ;;  %2388 = vmatmul.msk.bf16.vlgmr.msra.gmra.mxu3 %vm361_vm0, %v2612_v5  ;;  %v572_v29 = vld [vmem:[#allocation2 + $0x18] sm:$0xf]  ;;  %v2398_v47 = vor.u32 %v2620_v28, %v2397_v27  ;;  %v573_v52 = vld [vmem:[#allocation2 + $0x1c] sm:$0x1]  ;;  %295 = vst [vmem:[#allocation2 + $0x2c] sm:$0x1] %v294_v50 }
  0x1c   : > { %533 = vmatpush.bf16.msrb.mxu0 %v2626_v8  ;;  %1269 = vmatpush.bf16.msrb.mxu3 %v2638_v12  ;;  %v628_v32 = vshrl.u32 %v572_v29, 16  ;;  %v631_v33 = vshll.u32 %v572_v29, 16  ;;  %v616_v35 = vrot.slane %v614_v30, 4  ;;  %v619_v36 = vrot.slane %v617_v31, 5  ;;  %280 = vst [vmem:[#allocation2 + $0x4] sm:$0x1] %v279_v51 }
  0x1d   : > { %v637_v57 = vshll.u32 %v573_v52, 16  ;;  %v625_v59 = vrot.slane %v623_v54, 5  ;;  %v2393_v60 = vld [vmem:[#allocation2] sm:$0xf]  ;;  %2424 = vmatmul.msk.bf16.vlgmr.msra.gmra.mxu1 %vm361_vm0, %v2398_v47  ;;  %v2619_v0 = vld [vmem:[#allocation2 + $0x4] sm:$0xf0] }
  0x1e   : > { %v630_v40 = vrot.slane %v628_v32, 4  ;;  %v633_v41 = vrot.slane %v631_v33, 5  ;;  %v620_v43 = vor.u32 %v619_v36, %v616_v35  ;;  %v566_v62 = vld [vmem:[#allocation2] sm:$0xf]  ;;  %283 = vst [vmem:[#allocation2 + $0xc] sm:$0x1] %v282_v61  ;;  %v2394_v3 = vor.u32 %v2619_v0, %v2393_v60  ;;  %1618 = vmatpush.bf16.msrb.mxu1 %v2650_v17 }
  0x1f   : > { %v639_v63 = vrot.slane %v637_v57, 5  ;;  %v586_v1 = vshrl.u32 %v566_v62, 16  ;;  %v574_v4 = vld [vmem:[#allocation2 + $0x20] sm:$0xf]  ;;  %v576_v7 = vld [vmem:[#allocation2 + $0x28] sm:$0xf] }
  0x20   : > { %534 = vmatpush.bf16.msrb.mxu0 %v2625_v10  ;;  %1270 = vmatpush.bf16.msrb.mxu3 %v2637_v21  ;;  %v634_v49 = vor.u32 %v633_v41, %v630_v40  ;;  %v621_v53 = vrot.slane %v620_v43, 4  ;;  %v642_v8 = vshrl.u32 %v574_v4, 16  ;;  %v568_v10 = vld [vmem:[#allocation2 + $0x8] sm:$0xf]  ;;  %v575_v14 = vld [vmem:[#allocation2 + $0x24] sm:$0x1] }
  0x21   : > { %v656_v15 = vshrl.u32 %v576_v7, 16  ;;  %v659_v16 = vshll.u32 %v576_v7, 16  ;;  %v651_v21 = vshll.u32 %v575_v14, 16  ;;  %v588_v22 = vrot.slane %v586_v1, 4  ;;  %v2654_v32 = vld [vmem:[%s3630_s1 + $0xb8] sm:$0xff]  ;;  %v2649_v54 = vld [vmem:[%s3630_s1 + $0x90] sm:$0xff] }
  0x22   : > { %v635_v56 = vrot.slane %v634_v49, 4  ;;  %v626_v2 = vsel %vm2836_vm7, %v621_v53, %v625_v59  ;;  %v577_v18 = vld [vmem:[#allocation2 + $0x2c] sm:$0x1]  ;;  %v644_v19 = vrot.slane %v642_v8, 4  ;;  %v589_v30 = vshll.u32 %v566_v62, 16  ;;  %1856 = vmatpush.bf16.msrb.mxu2 %v2654_v32  ;;  %v2614_v59 = vld [vmem:[%s2753_s10 + $0x18] sm:$0xff]  ;;  %1619 = vmatpush.bf16.msrb.mxu1 %v2649_v54 }
  0x23   : > { %v708_v6 = vunpack.c.l.b16 %v626_v2  ;;  %v658_v24 = vrot.slane %v656_v15, 4  ;;  %v567_v27 = vld [vmem:[#allocation2 + $0x4] sm:$0x1]  ;;  %v653_v29 = vrot.slane %v651_v21, 5  ;;  %v2401_v33 = vld [vmem:[#allocation2 + $0x20] sm:$0xf] }
  0x24   : > { %535 = vmatpush.bf16.msrb.mxu0 %v2624_v20  ;;  %1271 = vmatpush.bf16.msrb.mxu3 %v2636_v25  ;;  %v640_v5 = vsel %vm2836_vm7, %v635_v56, %v639_v63  ;;  %v661_v25 = vrot.slane %v659_v16, 5  ;;  %v595_v31 = vshll.u32 %v567_v27, 16  ;;  %v600_v37 = vshrl.u32 %v568_v10, 16  ;;  %v2621_v40 = vld [vmem:[#allocation2 + $0x24] sm:$0xf0]  ;;  %s2691_s18 = smov 32  }
  0x25   : > { %v709_v12 = vunpack.c.l.b16 %v640_v5  ;;  %v569_v36 = vld [vmem:[#allocation2 + $0xc] sm:$0x1]  ;;  %v591_v42 = vrot.slane %v589_v30, 5  ;;  %v259_v49 = vld [vmem:[%s2753_s10 + $0x18] sm:$0xf]  ;;  %v2402_v60 = vor.u32 %v2621_v40, %v2401_v33  ;;  %v300_v63 = vsel %vm2783_vm4, 0, %v299_v58 }
  0x26   : > { %v662_v34 = vor.u32 %v661_v25, %v658_v24  ;;  %v609_v43 = vshll.u32 %v569_v36, 16  ;;  %v602_v46 = vrot.slane %v600_v37, 4  ;;  %v260_v53 = vld [vmem:[%s2753_s10 + $0x1c] sm:$0xf]  ;;  %268 = vst.msk [vmem:[#allocation2 + $0x30] sm:$0xf] %vm261_vm1, %v259_v49 }
  0x27   : > { %v592_v51 = vor.u32 %v591_v42, %v588_v22  ;;  %269 = vst.msk [vmem:[#allocation2 + $0x38] sm:$0xf] %vm261_vm1, %v260_v53  ;;  %v1302_v0 = vld [vmem:[#allocation2] sm:$0xf]  ;;  %v1304_v7 = vld [vmem:[#allocation2 + $0x8] sm:$0xf] }
  0x28   : > { %536 = vmatpush.bf16.msrb.mxu0 %v2623_v26  ;;  %1272 = vmatpush.bf16.msrb.mxu3 %v2635_v45  ;;  %v665_v26 = vshll.u32 %v577_v18, 16  ;;  %v663_v44 = vrot.slane %v662_v34, 4  ;;  %v597_v45 = vrot.slane %v595_v31, 5  ;;  %v611_v52 = vrot.slane %v609_v43, 5  ;;  %301 = vst [vmem:[#allocation2 + $0x3c] sm:$0x1] %v300_v63 }
  0x29   : > { %v593_v61 = vrot.slane %v592_v51, 4  ;;  %v1319_v5 = vshrl.u32 %v1302_v0, 16  ;;  %v1322_v14 = vshll.u32 %v1302_v0, 16  ;;  %v1305_v16 = vld [vmem:[#allocation2 + $0xc] sm:$0x1]  ;;  %v1333_v18 = vshrl.u32 %v1304_v7, 16 }
  0x2a   : > { %v667_v35 = vrot.slane %v665_v26, 5  ;;  %v2639_v30 = vld [vmem:[%s3630_s1 + $0x60] sm:$0xff]  ;;  %v1342_v34 = vshll.u32 %v1305_v16, 16  ;;  %vm967_vm10 = vcmask 1046528   ;;  %s2610_s25 = sshll.u32 %s3701_s22, 6 }
  0x2b   : > { %2389 = vmatmul.msk.bf16.gmra.mxu3 %vm361_vm0, %v2613_v38  ;;  %2423 = vmatmul.msk.bf16.vlgmr.msrb.gmra.mxu0 %vm361_vm0, %v2394_v3  ;;  %v603_v38 = vshll.u32 %v568_v10, 16  ;;  %v2640_v10 = vld [vmem:[%s3630_s1 + $0x68] sm:$0xff]  ;;  %v1335_v40 = vrot.slane %v1333_v18, 4  ;;  %v1307_v18 = vld [vmem:[#allocation2 + $0x14] sm:$0x1]  ;;  %s3510_s29 = scalar_lea.vmem %s3635_s6, %s2610_s25 }
  0x2c   : > { %758 = vmatpush.bf16.msra.mxu0 %v2768_v9  ;;  %v645_v9 = vshll.u32 %v574_v4, 16  ;;  %v668_v56 = vsel %vm2836_vm7, %v663_v44, %v667_v35  ;;  %v1303_v4 = vld [vmem:[#allocation2 + $0x4] sm:$0x1]  ;;  %v2652_v35 = vld [vmem:[%s3630_s1 + $0xa8] sm:$0xff] }
  0x2d   : > { %v605_v47 = vrot.slane %v603_v38, 5  ;;  %v711_v2 = vunpack.c.l.b16 %v668_v56  ;;  %2425 = vmatmul.msk.bf16.gmra.mxu1 %vm361_vm0, %v2402_v60  ;;  %v1328_v17 = vshll.u32 %v1303_v4, 16  ;;  %v578_v22 = vld [vmem:[#allocation2 + $0x30] sm:$0xf]  ;;  %v1344_v56 = vrot.slane %v1342_v34, 5 }
  0x2e   : > { %v647_v20 = vrot.slane %v645_v9, 5  ;;  %v580_v25 = vld [vmem:[#allocation2 + $0x38] sm:$0xf]  ;;  %v670_v26 = vshrl.u32 %v578_v22, 16  ;;  %v673_v27 = vshll.u32 %v578_v22, 16  ;;  %v1356_v34 = vshll.u32 %v1307_v18, 16 }
  0x2f   : > { %v606_v57 = vor.u32 %v605_v47, %v602_v46  ;;  %v684_v31 = vshrl.u32 %v580_v25, 16  ;;  %v687_v32 = vshll.u32 %v580_v25, 16  ;;  %v2465_v46 = vld [vmem:[#allocation2] sm:$0xf]  ;;  %v2631_v47 = vld [vmem:[#allocation2 + $0x4] sm:$0xf0] }
  0x30   : > { %759 = vmatpush.bf16.msra.mxu0 %v2778_v11  ;;  %v715_v11 = vpack.c.b16 %v709_v12, %v708_v6  ;;  %v648_v28 = vor.u32 %v647_v20, %v644_v19  ;;  %v598_v6 = vsel %vm2836_vm7, %v593_v61, %v597_v45  ;;  %v1321_v12 = vrot.slane %v1319_v5, 4  ;;  %v2653_v19 = vld [vmem:[%s3630_s1 + $0xb0] sm:$0xff]  ;;  %v2648_v20 = vld [vmem:[%s3630_s1 + $0x88] sm:$0xff]  ;;  %v2622_v53 = vld [vmem:[#allocation2 + $0x34] sm:$0xf0] }
  0x31   : > { %v607_v3 = vrot.slane %v606_v57, 4  ;;  %v706_v9 = vunpack.c.l.b16 %v598_v6  ;;  %1857 = vmatpush.bf16.msrb.mxu2 %v2653_v19  ;;  %1620 = vmatpush.bf16.msrb.mxu1 %v2648_v20  ;;  %v672_v37 = vrot.slane %v670_v26, 4  ;;  %v675_v38 = vrot.slane %v673_v27, 5  ;;  %v1667_v57 = vld [vmem:[#allocation2 + $0x8] sm:$0xf] }
  0x32   : > { %2452 = vmatmul.msk.bf16.vlgmr.msra.gmra.mxu2 %vm361_vm0, %v715_v11  ;;  %v649_v41 = vrot.slane %v648_v28, 4  ;;  %v1324_v11 = vrot.slane %v1322_v14, 5  ;;  %v1336_v28 = vshll.u32 %v1304_v7, 16  ;;  %v686_v43 = vrot.slane %v684_v31, 4  ;;  %v1669_v61 = vld [vmem:[#allocation2 + $0x10] sm:$0xf] }
  0x33   : > { %v612_v8 = vsel %vm2836_vm7, %v607_v3, %v611_v52  ;;  %v689_v44 = vrot.slane %v687_v32, 5  ;;  %v676_v49 = vor.u32 %v675_v38, %v672_v37  ;;  %v2651_v52 = vld [vmem:[%s3630_s1 + $0xa0] sm:$0xff]  ;;  %v1684_v0 = vshrl.u32 %v1667_v57, 16  ;;  %v1306_v7 = vld [vmem:[#allocation2 + $0x10] sm:$0xf] }
  0x34   : > { %760 = vmatpush.bf16.msra.mxu0 %v2804_v23  ;;  %v2642_v23 = vld [vmem:[%s3630_s1 + $0x78] sm:$0xff]  ;;  %v654_v50 = vsel %vm2836_vm7, %v649_v41, %v653_v29  ;;  %v707_v15 = vunpack.c.l.b16 %v612_v8  ;;  %v2647_v29 = vld [vmem:[%s3630_s1 + $0x80] sm:$0xff]  ;;  %v1325_v33 = vor.u32 %v1324_v11, %v1321_v12  ;;  %v1338_v51 = vrot.slane %v1336_v28, 5  ;;  %v1668_v14 = vld [vmem:[#allocation2 + $0xc] sm:$0x1] }
  0x35   : > { %v710_v1 = vunpack.c.l.b16 %v654_v50  ;;  %v581_v41 = vld [vmem:[#allocation2 + $0x3c] sm:$0x1]  ;;  %1621 = vmatpush.bf16.msrb.mxu1 %v2647_v29  ;;  %1858 = vmatpush.bf16.msrb.mxu2 %v2652_v35  ;;  %v690_v54 = vor.u32 %v689_v44, %v686_v43  ;;  %v1698_v3 = vshrl.u32 %v1669_v61, 16  ;;  %v1701_v4 = vshll.u32 %v1669_v61, 16  ;;  %v1308_v19 = vld [vmem:[#allocation2 + $0x18] sm:$0xf] }
  0x36   : > { %v714_v24 = vpack.c.b16 %v707_v15, %v706_v9  ;;  %v1326_v45 = vrot.slane %v1325_v33, 4  ;;  %v693_v50 = vshll.u32 %v581_v41, 16  ;;  %v1339_v60 = vor.u32 %v1338_v51, %v1335_v40  ;;  %v1309_v22 = vld [vmem:[#allocation2 + $0x1c] sm:$0x1]  ;;  %v1670_v27 = vld [vmem:[#allocation2 + $0x14] sm:$0x1] }
  0x37   : > { %v716_v21 = vpack.c.b16 %v711_v2, %v710_v1  ;;  %v1687_v1 = vshll.u32 %v1667_v57, 16  ;;  %v2466_v5 = vor.u32 %v2631_v47, %v2465_v46  ;;  %v1686_v16 = vrot.slane %v1684_v0, 4  ;;  %v2469_v43 = vld [vmem:[#allocation2 + $0x10] sm:$0xf]  ;;  %v2632_v44 = vld [vmem:[#allocation2 + $0x14] sm:$0xf0] }
  0x38   : > { %761 = vmatpush.bf16.msra.mxu0 %v2820_v39  ;;  %v296_v39 = vld [vmem:[#allocation2 + $0x34] sm:$0x1]  ;;  %v1340_v2 = vrot.slane %v1339_v60, 4  ;;  %v1700_v20 = vrot.slane %v1698_v3, 4  ;;  %v1347_v11 = vshrl.u32 %v1306_v7, 16  ;;  %v1693_v28 = vshll.u32 %v1668_v14, 16 }
  0x39   : > { %v297_v62 = vsel %vm2783_vm4, 0, %v296_v39  ;;  %v677_v39 = vrot.slane %v676_v49, 4  ;;  %1859 = vmatpush.bf16.msrb.mxu2 %v2651_v52  ;;  %v1361_v32 = vshrl.u32 %v1308_v19, 16  ;;  %v1364_v35 = vshll.u32 %v1308_v19, 16  ;;  %v2537_v49 = vld [vmem:[#allocation2 + $0x8] sm:$0xf] }
  0x3a   : > { %298 = vst [vmem:[#allocation2 + $0x34] sm:$0x1] %v297_v62  ;;  %v691_v62 = vrot.slane %v690_v54, 4  ;;  %v1707_v38 = vshll.u32 %v1670_v27, 16  ;;  %v1358_v46 = vrot.slane %v1356_v34, 5  ;;  %v1695_v51 = vrot.slane %v1693_v28, 5 }
  0x3b   : > { %2390 = vmatmul.msk.bf16.gmra.mxu3 %vm361_vm0, %v2614_v59  ;;  %2451 = vmatmul.msk.bf16.vlgmr.msra.gmra.mxu0 %vm361_vm0, %v714_v24  ;;  %v695_v59 = vrot.slane %v693_v50, 5  ;;  %v1350_v24 = vshll.u32 %v1306_v7, 16  ;;  %v1363_v40 = vrot.slane %v1361_v32, 4  ;;  %v2643_v54 = vld [vmem:[#allocation2 + $0xc] sm:$0xf0]  ;;  %v2470_v0 = vor.u32 %v2632_v44, %v2469_v43 }
  0x3c   : > { %1491 = vmatpush.bf16.msrb.mxu0 %v2642_v23  ;;  %v1330_v23 = vrot.slane %v1328_v17, 5  ;;  %v1689_v17 = vrot.slane %v1687_v1, 5  ;;  %v1310_v57 = vld [vmem:[#allocation2 + $0x20] sm:$0xf]  ;;  %v2538_v1 = vor.u32 %v2643_v54, %v2537_v49  ;;  %v1313_v18 = vld [vmem:[#allocation2 + $0x2c] sm:$0x1] }
  0x3d   : > { %v696_v9 = vsel %vm2836_vm7, %v691_v62, %v695_v59  ;;  %v1352_v31 = vrot.slane %v1350_v24, 5  ;;  %v1312_v59 = vld [vmem:[#allocation2 + $0x28] sm:$0xf]  ;;  %v1375_v62 = vshrl.u32 %v1310_v57, 16  ;;  %v1672_v27 = vld [vmem:[#allocation2 + $0x1c] sm:$0x1] }
  0x3e   : > { %v1331_v63 = vsel %vm2836_vm7, %v1326_v45, %v1330_v23  ;;  %v713_v26 = vunpack.c.l.b16 %v696_v9  ;;  %v1690_v33 = vor.u32 %v1689_v17, %v1686_v16  ;;  %v1389_v7 = vshrl.u32 %v1312_v59, 16  ;;  %v1311_v17 = vld [vmem:[#allocation2 + $0x24] sm:$0x1]  ;;  %v2633_v43 = vld [vmem:[#allocation2 + $0x24] sm:$0xf0] }
  0x3f   : > { %v1439_v12 = vunpack.c.l.b16 %v1331_v63  ;;  %v1378_v63 = vshll.u32 %v1310_v57, 16  ;;  %v1377_v14 = vrot.slane %v1375_v62, 4  ;;  %v1674_v28 = vld [vmem:[#allocation2 + $0x24] sm:$0x1]  ;;  %v1398_v32 = vshll.u32 %v1313_v18, 16 }
  0x40   : > { %1492 = vmatpush.bf16.msrb.mxu0 %v2641_v48  ;;  %v2405_v48 = vld [vmem:[#allocation2 + $0x30] sm:$0xf]  ;;  %v1691_v50 = vrot.slane %v1690_v33, 4  ;;  %v1391_v16 = vrot.slane %v1389_v7, 4  ;;  %v2541_v44 = vld [vmem:[#allocation2 + $0x18] sm:$0xf] }
  0x41   : > { %v579_v36 = vld [vmem:[#allocation2 + $0x34] sm:$0x1]  ;;  %v2406_v6 = vor.u32 %v2622_v53, %v2405_v48  ;;  %v1709_v53 = vrot.slane %v1707_v38, 5  ;;  %v2477_v62 = vld [vmem:[#allocation2 + $0x30] sm:$0xf] }
  0x42   : > { %v679_v42 = vshll.u32 %v579_v36, 16  ;;  %2453 = vmatmul.msk.bf16.gmra.mxu2 %vm361_vm0, %v716_v21  ;;  %v1703_v21 = vrot.slane %v1701_v4, 5  ;;  %v1370_v36 = vshll.u32 %v1309_v22, 16 }
  0x43   : > { %2426 = vmatmul.msk.bf16.gmra.mxu1 %vm361_vm0, %v2406_v6 }
  0x44   : > { %1493 = vmatpush.bf16.msrb.mxu0 %v2640_v10  ;;  %v681_v58 = vrot.slane %v679_v42, 5  ;;  %v1345_v10 = vsel %vm2836_vm7, %v1340_v2, %v1344_v56  ;;  %v1704_v37 = vor.u32 %v1703_v21, %v1700_v20  ;;  %v1366_v42 = vrot.slane %v1364_v35, 5 }
  0x45   : > { %v1440_v15 = vunpack.c.l.b16 %v1345_v10  ;;  %v1372_v48 = vrot.slane %v1370_v36, 5  ;;  %v1696_v2 = vsel %vm2836_vm7, %v1691_v50, %v1695_v51  ;;  %v1721_v35 = vshll.u32 %v1672_v27, 16 }
  0x46   : > { %v682_v8 = vsel %vm2836_vm7, %v677_v39, %v681_v58  ;;  %v1367_v47 = vor.u32 %v1366_v42, %v1363_v40  ;;  %v1705_v52 = vrot.slane %v1704_v37, 4  ;;  %v1671_v39 = vld [vmem:[#allocation2 + $0x18] sm:$0xf]  ;;  %v1673_v58 = vld [vmem:[#allocation2 + $0x20] sm:$0xf]  ;;  %v1804_v20 = vunpack.c.l.b16 %v1696_v2 }
  0x47   : > { %v712_v25 = vunpack.c.l.b16 %v682_v8  ;;  %v1447_v29 = vpack.c.b16 %v1440_v15, %v1439_v12  ;;  %v1712_v4 = vshrl.u32 %v1671_v39, 16  ;;  %v1726_v6 = vshrl.u32 %v1673_v58, 16  ;;  %v2473_v42 = vld [vmem:[#allocation2 + $0x20] sm:$0xf] }
  0x48   : > { %1494 = vmatpush.bf16.msrb.mxu0 %v2639_v30  ;;  %v1349_v30 = vrot.slane %v1347_v11, 4  ;;  %v1368_v56 = vrot.slane %v1367_v47, 4  ;;  %v1710_v3 = vsel %vm2836_vm7, %v1705_v52, %v1709_v53  ;;  %v1729_v10 = vshll.u32 %v1673_v58, 16 }
  0x49   : > { %v717_v41 = vpack.c.b16 %v713_v26, %v712_v25  ;;  %v1392_v12 = vshll.u32 %v1312_v59, 16  ;;  %v1380_v15 = vrot.slane %v1378_v63, 5  ;;  %v1805_v21 = vunpack.c.l.b16 %v1710_v3  ;;  %v2634_v63 = vld [vmem:[#allocation2 + $0x34] sm:$0xf0] }
  0x4a   : > { %v1353_v23 = vor.u32 %v1352_v31, %v1349_v30  ;;  %v1373_v61 = vsel %vm2836_vm7, %v1368_v56, %v1372_v48  ;;  %v1714_v22 = vrot.slane %v1712_v4, 4  ;;  %v1728_v25 = vrot.slane %v1726_v6, 4 }
  0x4b   : > { %2495 = vmatmul.msk.bf16.vlgmr.msrb.gmra.mxu3 %vm361_vm0, %v2466_v5  ;;  %2523 = vmatmul.msk.bf16.vlgmr.msrb.gmra.mxu0 %vm361_vm0, %v1447_v29  ;;  %v1715_v5 = vshll.u32 %v1671_v39, 16  ;;  %v1442_v9 = vunpack.c.l.b16 %v1373_v61  ;;  %v1394_v19 = vrot.slane %v1392_v12, 5  ;;  %v1731_v26 = vrot.slane %v1729_v10, 5  ;;  %v1676_v12 = vld [vmem:[#allocation2 + $0x2c] sm:$0x1] }
  0x4c   : > { %v1354_v45 = vrot.slane %v1353_v23, 4  ;;  %v1381_v29 = vor.u32 %v1380_v15, %v1377_v14  ;;  %v1384_v30 = vshll.u32 %v1311_v17, 16  ;;  %v1812_v33 = vpack.c.b16 %v1805_v21, %v1804_v20  ;;  %v1678_v14 = vld [vmem:[#allocation2 + $0x34] sm:$0x1]  ;;  %v1314_v15 = vld [vmem:[#allocation2 + $0x30] sm:$0xf] }
  0x4d   : > { %v1717_v24 = vrot.slane %v1715_v5, 5  ;;  %v1395_v31 = vor.u32 %v1394_v19, %v1391_v16  ;;  %v1732_v36 = vor.u32 %v1731_v26, %v1728_v25  ;;  %v1735_v37 = vshll.u32 %v1674_v28, 16  ;;  %v1316_v19 = vld [vmem:[#allocation2 + $0x38] sm:$0xf]  ;;  %v2645_v25 = vld [vmem:[#allocation2 + $0x2c] sm:$0xf0] }
  0x4e   : > { %v1359_v60 = vsel %vm2836_vm7, %v1354_v45, %v1358_v46  ;;  %v1382_v38 = vrot.slane %v1381_v29, 4  ;;  %v1386_v23 = vrot.slane %v1384_v30, 5  ;;  %v2644_v45 = vld [vmem:[#allocation2 + $0x1c] sm:$0xf0]  ;;  %v1723_v47 = vrot.slane %v1721_v35, 5 }
  0x4f   : > { %v1441_v8 = vunpack.c.l.b16 %v1359_v60  ;;  %v1718_v34 = vor.u32 %v1717_v24, %v1714_v22  ;;  %v1396_v40 = vrot.slane %v1395_v31, 4  ;;  %v1733_v48 = vrot.slane %v1732_v36, 4  ;;  %v2545_v24 = vld [vmem:[#allocation2 + $0x28] sm:$0xf]  ;;  %v1315_v31 = vld [vmem:[#allocation2 + $0x34] sm:$0x1] }
  0x50   : > { %v1737_v49 = vrot.slane %v1735_v37, 5  ;;  %v1387_v50 = vsel %vm2836_vm7, %v1382_v38, %v1386_v23  ;;  %v2474_v52 = vor.u32 %v2633_v43, %v2473_v42  ;;  %v2542_v53 = vor.u32 %v2644_v45, %v2541_v44  ;;  %v275_v37 = vld [vmem:[#allocation2 + $0x44] sm:$0x1] }
  0x51   : > { %v1448_v11 = vpack.c.b16 %v1442_v9, %v1441_v8  ;;  %v1719_v46 = vrot.slane %v1718_v34, 4  ;;  %v1443_v57 = vunpack.c.l.b16 %v1387_v50  ;;  %v2478_v6 = vor.u32 %v2634_v63, %v2477_v62 }
  0x52   : > { %2454 = vmatmul.msk.bf16.gmra.mxu2 %vm361_vm0, %v717_v41  ;;  %v1400_v41 = vrot.slane %v1398_v32, 5  ;;  %v1738_v56 = vsel %vm2836_vm7, %v1733_v48, %v1737_v49  ;;  %v1749_v17 = vshll.u32 %v1676_v12, 16  ;;  %v1763_v20 = vshll.u32 %v1678_v14, 16  ;;  %v1317_v32 = vld [vmem:[#allocation2 + $0x3c] sm:$0x1] }
  0x53   : > { %2567 = vmatmul.msk.bf16.vlgmr.msrb.gmra.mxu1 %vm361_vm0, %v2538_v1  ;;  %v1724_v54 = vsel %vm2836_vm7, %v1719_v46, %v1723_v47  ;;  %v1807_v59 = vunpack.c.l.b16 %v1738_v56  ;;  %v1677_v1 = vld [vmem:[#allocation2 + $0x30] sm:$0xf]  ;;  %v1403_v21 = vshrl.u32 %v1314_v15, 16  ;;  %v1406_v22 = vshll.u32 %v1314_v15, 16 }
  0x54   : > { %v1401_v51 = vsel %vm2836_vm7, %v1396_v40, %v1400_v41  ;;  %v1806_v58 = vunpack.c.l.b16 %v1724_v54  ;;  %v1754_v4 = vshrl.u32 %v1677_v1, 16  ;;  %v1757_v5 = vshll.u32 %v1677_v1, 16 }
  0x55   : > { %v1444_v39 = vunpack.c.l.b16 %v1401_v51  ;;  %v1751_v27 = vrot.slane %v1749_v17, 5  ;;  %v2546_v28 = vor.u32 %v2645_v25, %v2545_v24  ;;  %v1765_v30 = vrot.slane %v1763_v20, 5 }
  0x56   : > { %v1813_v61 = vpack.c.b16 %v1807_v59, %v1806_v58  ;;  %v1756_v9 = vrot.slane %v1754_v4, 4  ;;  %v1759_v10 = vrot.slane %v1757_v5, 5  ;;  %v1405_v34 = vrot.slane %v1403_v21, 4  ;;  %v1680_v4 = vld [vmem:[#allocation2 + $0x3c] sm:$0x1] }
  0x57   : > { %v1449_v60 = vpack.c.b16 %v1444_v39, %v1443_v57  ;;  %v1408_v35 = vrot.slane %v1406_v22, 5  ;;  %v1412_v36 = vshll.u32 %v1315_v31, 16  ;;  %v1420_v41 = vshll.u32 %v1316_v19, 16  ;;  %v1679_v39 = vld [vmem:[#allocation2 + $0x38] sm:$0xf] }
  0x58   : > { %v1760_v18 = vor.u32 %v1759_v10, %v1756_v9  ;;  %v1426_v45 = vshll.u32 %v1317_v32, 16  ;;  %v276_v47 = vsel %vm2783_vm4, 0, %v275_v37  ;;  %v2690_v50 = vmov 0   ;;  %v2549_v10 = vld [vmem:[#allocation2 + $0x38] sm:$0xf] }
  0x59   : > { %v1409_v43 = vor.u32 %v1408_v35, %v1405_v34  ;;  %v1414_v44 = vrot.slane %v1412_v36, 5  ;;  %v1422_v46 = vrot.slane %v1420_v41, 5  ;;  %271 = vst.msk [vmem:[#allocation2 + $0x40] sm:$0xf] %vm261_vm1, %v2690_v50  ;;  %v1768_v59 = vshrl.u32 %v1679_v39, 16 }
  0x5a   : > { %v1761_v29 = vrot.slane %v1760_v18, 4  ;;  %277 = vst [vmem:[#allocation2 + $0x44] sm:$0x1] %v276_v47  ;;  %v2970_v21 = vld [vmem:[%s3632_s3] ss:$0 sm:$0xff] }
  0x5b   : > { %2496 = vmatmul.msk.bf16.gmra.mxu3 %vm361_vm0, %v2470_v0  ;;  %2524 = vmatmul.msk.bf16.gmra.mxu0 %vm361_vm0, %v1448_v11  ;;  %v1675_v0 = vld [vmem:[#allocation2 + $0x28] sm:$0xf]  ;;  %v1417_v11 = vshrl.u32 %v1316_v19, 16  ;;  %v1410_v49 = vrot.slane %v1409_v43, 4 }
  0x5c   : > { %v1740_v2 = vshrl.u32 %v1675_v0, 16  ;;  %v1743_v3 = vshll.u32 %v1675_v0, 16  ;;  %v1766_v38 = vsel %vm2836_vm7, %v1761_v29, %v1765_v30  ;;  %v1770_v0 = vrot.slane %v1768_v59, 4 }
  0x5d   : > { %v1419_v40 = vrot.slane %v1417_v11, 4  ;;  %v1809_v42 = vunpack.c.l.b16 %v1766_v38 }
  0x5e   : > { %v1742_v7 = vrot.slane %v1740_v2, 4  ;;  %v1745_v8 = vrot.slane %v1743_v3, 5 }
  0x5f   : > { %v1423_v51 = vor.u32 %v1422_v46, %v1419_v40 }
  0x60   : > { %v1746_v16 = vor.u32 %v1745_v8, %v1742_v7  ;;  %v1777_v7 = vshll.u32 %v1680_v4, 16  ;;  %v2646_v12 = vld [vmem:[#allocation2 + $0x3c] sm:$0xf0] }
  0x61   : > { %v1424_v54 = vrot.slane %v1423_v51, 4  ;;  %v302_v63 = vld [vmem:[#allocation2 + $0x44] sm:$0x1]  ;;  %v2550_v14 = vor.u32 %v2646_v12, %v2549_v10 }
  0x62   : > { %2595 = vmatmul.msk.bf16.vlgmr.msrb.gmra.mxu2 %vm361_vm0, %v1812_v33  ;;  %v1747_v26 = vrot.slane %v1746_v16, 4  ;;  %v303_v3 = vsel %vm2783_vm4, 0, %v302_v63  ;;  %v1779_v16 = vrot.slane %v1777_v7, 5 }
  0x63   : > { %2568 = vmatmul.msk.bf16.gmra.mxu1 %vm361_vm0, %v2542_v53  ;;  %v1415_v53 = vsel %vm2836_vm7, %v1410_v49, %v1414_v44  ;;  %304 = vst [vmem:[#allocation2 + $0x44] sm:$0x1] %v303_v3 }
  0x64   : > { %v1752_v33 = vsel %vm2836_vm7, %v1747_v26, %v1751_v27  ;;  %v1445_v56 = vunpack.c.l.b16 %v1415_v53 }
  0x65   : > { %v1808_v23 = vunpack.c.l.b16 %v1752_v33 }
  0x67   : > { %v1814_v48 = vpack.c.b16 %v1809_v42, %v1808_v23 }
  0x6a   : > { %v1682_v18 = vld [vmem:[#allocation2 + $0x44] sm:$0x1] }
  0x6b   : > { %2497 = vmatmul.msk.bf16.gmra.mxu3 %vm361_vm0, %v2474_v52  ;;  %2525 = vmatmul.msk.bf16.gmra.mxu0 %vm361_vm0, %v1449_v60  ;;  %v1428_v52 = vrot.slane %v1426_v45, 5  ;;  %v1771_v60 = vshll.u32 %v1679_v39, 16  ;;  %v1791_v20 = vshll.u32 %v1682_v18, 16 }
  0x6d   : > { %v1429_v57 = vsel %vm2836_vm7, %v1424_v54, %v1428_v52  ;;  %v1773_v1 = vrot.slane %v1771_v60, 5  ;;  %v1793_v22 = vrot.slane %v1791_v20, 5 }
  0x6e   : > { %v1446_v58 = vunpack.c.l.b16 %v1429_v57 }
  0x70   : > { %v1450_v62 = vpack.c.b16 %v1446_v58, %v1445_v56 }
  0x72   : > { %2596 = vmatmul.msk.bf16.gmra.mxu2 %vm361_vm0, %v1813_v61  ;;  %v1681_v61 = vld [vmem:[#allocation2 + $0x40] sm:$0xf] }
  0x73   : > { %2569 = vmatmul.msk.bf16.gmra.mxu1 %vm361_vm0, %v2546_v28  ;;  %v1782_v2 = vshrl.u32 %v1681_v61, 16  ;;  %v1785_v5 = vshll.u32 %v1681_v61, 16 }
  0x75   : > { %v1784_v8 = vrot.slane %v1782_v2, 4  ;;  %v1787_v9 = vrot.slane %v1785_v5, 5 }
  0x77   : > { %v1788_v17 = vor.u32 %v1787_v9, %v1784_v8 }
  0x79   : > { %v1789_v19 = vrot.slane %v1788_v17, 4 }
  0x7b   : > { %2498 = vmatmul.msk.bf16.gmra.mxu3 %vm361_vm0, %v2478_v6  ;;  %2526 = vmatmul.msk.bf16.gmra.mxu0 %vm361_vm0, %v1450_v62  ;;  %v1774_v6 = vor.u32 %v1773_v1, %v1770_v0  ;;  %v1794_v24 = vsel %vm2836_vm7, %v1789_v19, %v1793_v22 }
  0x7c   : > { %v1811_v26 = vunpack.c.l.b16 %v1794_v24 }
  0x7d   : > { %v1775_v15 = vrot.slane %v1774_v6, 4 }
  0x7f   : > { %v1780_v13 = vsel %vm2836_vm7, %v1775_v15, %v1779_v16 }
  0x80   : > { %v1810_v11 = vunpack.c.l.b16 %v1780_v13 }
  0x82   : > { %2597 = vmatmul.msk.bf16.gmra.mxu2 %vm361_vm0, %v1814_v48  ;;  %v1815_v28 = vpack.c.b16 %v1811_v26, %v1810_v11 }
  0x83   : > { %2570 = vmatmul.msk.bf16.gmra.mxu1 %vm361_vm0, %v2550_v14 }
  0x92   : > { %2598 = vmatmul.msk.bf16.gmra.mxu2 %vm361_vm0, %v1815_v28 }
  0x98   : > { %v383_v25 = vpop.f32.mrf.mxu0 }
  0x99   : > { %v384_v27 = vadd.f32 %v2970_v21, %v383_v25 }
  0x9a   : > { %v543_v1 = vpop.f32.mrf.mxu1 }
  0x9b   : > { %405 = vst.msk [vmem:[#allocation3 + $0x11] sm:$0xff] %vm404_vm8, %v384_v27 }
  0x9c   : > { %413 = vst.msk [vmem:[#allocation3 + $0x1] sm:$0xff] %vm404_vm8, %v384_v27 }
  0x9d   : > { %560 = vst.msk [vmem:[#allocation4 + $0x10] sm:$0xff] %vm361_vm0, %v543_v1 }
  0x9e   : > { %v388_v29 = vpop.f32.mrf.mxu3 }
  0x9f   : > { %v389_v30 = vadd.f32 %v2970_v21, %v388_v29 }
  0xa0   : > { %v385_v31 = vpop.f32.mrf.mxu0 }
  0xa1   : > { %407 = vst.msk [vmem:[#allocation3 + $0x31] sm:$0xff] %vm404_vm8, %v389_v30  ;;  %v386_v35 = vadd.f32 %v2970_v21, %v385_v31 }
  0xa2   : > { %v417_v55 = vld [vmem:[#allocation3 + $0x11] sm:$0x1]  ;;  %v438_v32 = vld [vmem:[#allocation3 + $0x18] sm:$0x1] }
  0xa3   : > { %v416_v33 = vld [vmem:[#allocation3 + $0x1] sm:$0x1]  ;;  %428 = vst.msk [vmem:[#allocation3 + $0x10] sm:$0x1] %vm426_vm9, %v417_v55  ;;  %v437_v34 = vld [vmem:[#allocation3 + $0x8] sm:$0x1] }
  0xa4   : > { %427 = vst.msk [vmem:[#allocation3] sm:$0x1] %vm426_vm9, %v416_v33 }
  0xa5   : > { %447 = vst.msk [vmem:[#allocation3 + $0x9] sm:$0x1] %vm426_vm9, %v437_v34 }
  0xa6   : > { %448 = vst.msk [vmem:[#allocation3 + $0x19] sm:$0x1] %vm426_vm9, %v438_v32  ;;  %v390_v36 = vpop.f32.mrf.mxu3 }
  0xa7   : > { %406 = vst.msk [vmem:[#allocation3 + $0x21] sm:$0xff] %vm404_vm8, %v386_v35  ;;  %v391_v37 = vadd.f32 %v2970_v21, %v390_v36 }
  0xa8   : > { %v419_v38 = vld [vmem:[#allocation3 + $0x31] sm:$0x1]  ;;  %v440_v23 = vld [vmem:[#allocation3 + $0x38] sm:$0x1]  ;;  %v538_v34 = vpop.f32.mrf.mxu0 }
  0xa9   : > { %430 = vst.msk [vmem:[#allocation3 + $0x30] sm:$0x1] %vm426_vm9, %v419_v38 }
  0xaa   : > { %450 = vst.msk [vmem:[#allocation3 + $0x39] sm:$0x1] %vm426_vm9, %v440_v23  ;;  %v879_v40 = vld [vmem:[#allocation3 + $0x10] sm:$0xff] }
  0xab   : > { %408 = vst.msk [vmem:[#allocation3 + $0x41] sm:$0xff] %vm404_vm8, %v391_v37  ;;  %v847_v41 = vld [vmem:[#allocation3] sm:$0xff]  ;;  %v895_v42 = vmul.f32 0.75, %v879_v40  ;;  %v865_v4 = vmul.f32 0.25, %v879_v40 }
  0xac   : > { %v848_v43 = vld [vmem:[#allocation3 + $0x8] sm:$0x3]  ;;  %v863_v44 = vmul.f32 0.25, %v847_v41  ;;  %558 = vst.msk [vmem:[#allocation4] sm:$0xff] %vm361_vm0, %v538_v34 }
  0xad   : > { %v864_v45 = vmul.f32 0.25, %v848_v43  ;;  %v880_v46 = vld [vmem:[#allocation3 + $0x18] sm:$0x3] }
  0xae   : > { %v418_v47 = vld [vmem:[#allocation3 + $0x21] sm:$0x1]  ;;  %v439_v48 = vld [vmem:[#allocation3 + $0x28] sm:$0x1]  ;;  %v393_v49 = vpop.f32.mrf.mxu3  ;;  %v896_v50 = vmul.f32 0.75, %v880_v46  ;;  %v911_v51 = vadd.f32 %v895_v42, %v863_v44 }
  0xaf   : > { %429 = vst.msk [vmem:[#allocation3 + $0x20] sm:$0x1] %vm426_vm9, %v418_v47  ;;  %v394_v52 = vadd.f32 %v2970_v21, %v393_v49  ;;  %v1946_v57 = vld [vmem:[#allocation3 + $0x18] sm:$0x3] }
  0xb0   : > { %449 = vst.msk [vmem:[#allocation3 + $0x29] sm:$0x1] %vm426_vm9, %v439_v48  ;;  %v912_v53 = vadd.f32 %v896_v50, %v864_v45  ;;  %v2993_v54 = vmul.f32 0.25, %v911_v51  ;;  %v2996_v56 = vmul.f32 0.75, %v911_v51  ;;  %v850_v39 = vld [vmem:[#allocation3 + $0x18] sm:$0x3] }
  0xb1   : > { %409 = vst.msk [vmem:[#allocation3 + $0x51] sm:$0xff] %vm404_vm8, %v394_v52  ;;  %v884_v60 = vld [vmem:[#allocation3 + $0x38] sm:$0x3]  ;;  %v883_v0 = vld [vmem:[#allocation3 + $0x30] sm:$0xff]  ;;  %v1962_v3 = vmul.f32 0.75, %v1946_v57  ;;  %v866_v10 = vmul.f32 0.25, %v850_v39  ;;  %v545_v57 = vpop.f32.mrf.mxu1 }
  0xb2   : > { %3649 = vst [vmem:[#allocation5_spill] sm:$0xff] %v2993_v54  ;;  %v420_v58 = vld [vmem:[#allocation3 + $0x41] sm:$0x1]  ;;  %v441_v59 = vld [vmem:[#allocation3 + $0x48] sm:$0x1]  ;;  %v2999_v61 = vmul.f32 0.75, %v912_v53 }
  0xb3   : > { %431 = vst.msk [vmem:[#allocation3 + $0x40] sm:$0x1] %vm426_vm9, %v420_v58  ;;  %v1008_v62 = vmul.f32 0.25, %v912_v53  ;;  %v1032_v63 = vrot.slane %v2993_v54, 1  ;;  %v3005_v8 = vmul.f32 0.75, %v883_v0  ;;  %v900_v9 = vmul.f32 0.75, %v884_v60 }
  0xb4   : > { %451 = vst.msk [vmem:[#allocation3 + $0x49] sm:$0x1] %vm426_vm9, %v441_v59  ;;  %v854_v13 = vld [vmem:[#allocation3 + $0x38] sm:$0x3]  ;;  %v3013_v30 = vmul.f32 0.25, %v883_v0 }
  0xb5   : > { %v1033_v2 = vrot.slane %v1008_v62, 1  ;;  %v1981_v19 = vld [vmem:[#allocation3 + $0x38] sm:$0x3]  ;;  %v870_v41 = vmul.f32 0.25, %v854_v13  ;;  %561 = vst.msk [vmem:[#allocation4 + $0x18] sm:$0xff] %vm361_vm0, %v545_v57 }
  0xb6   : > { %v395_v5 = vpop.f32.mrf.mxu3  ;;  %v851_v7 = vld [vmem:[#allocation3 + $0x20] sm:$0xff]  ;;  %v3027_v43 = vmul.f32 0.25, %v1981_v19  ;;  %v1950_v62 = vld [vmem:[#allocation3 + $0x38] sm:$0x3] }
  0xb7   : > { %v396_v12 = vadd.f32 %v2970_v21, %v395_v5  ;;  %v1034_v14 = vsel %vm967_vm10, %v1032_v63, %v1033_v2  ;;  %v1073_v15 = vadd.f32 %v1033_v2, %v2999_v61  ;;  %v852_v16 = vld [vmem:[#allocation3 + $0x28] sm:$0x3]  ;;  %v867_v17 = vmul.f32 0.25, %v851_v7 }
  0xb8   : > { %v1979_v18 = vld [vmem:[#allocation3 + $0x28] sm:$0x3]  ;;  %v421_v20 = vld [vmem:[#allocation3 + $0x51] sm:$0x1]  ;;  %v442_v22 = vld [vmem:[#allocation3 + $0x58] sm:$0x1]  ;;  %v1072_v11 = vadd.f32 %v1034_v14, %v2996_v56 }
  0xb9   : > { %v868_v24 = vmul.f32 0.25, %v852_v16  ;;  %v1995_v25 = vmul.f32 0.25, %v1979_v18  ;;  %432 = vst.msk [vmem:[#allocation3 + $0x50] sm:$0x1] %vm426_vm9, %v421_v20  ;;  %v1105_v26 = vrot.slane %v1073_v15, 1  ;;  %v915_v27 = vadd.f32 %v3005_v8, %v867_v17 }
  0xba   : > { %v2010_v28 = vadd.f32 %v895_v42, %v867_v17  ;;  %v882_v29 = vld [vmem:[#allocation3 + $0x28] sm:$0x3]  ;;  %452 = vst.msk [vmem:[#allocation3 + $0x59] sm:$0x1] %vm426_vm9, %v442_v22  ;;  %v1104_v55 = vrot.slane %v1072_v11, 1  ;;  %v3022_v37 = vmul.f32 0.75, %v851_v7 }
  0xbb   : > { %v916_v32 = vadd.f32 %v900_v9, %v868_v24  ;;  %v2011_v33 = vadd.f32 %v1995_v25, %v1962_v3  ;;  %410 = vst.msk [vmem:[#allocation3 + $0x61] sm:$0xff] %vm404_vm8, %v396_v12  ;;  %v3018_v35 = vmul.f32 0.25, %v915_v27  ;;  %v898_v38 = vmul.f32 0.75, %v882_v29  ;;  %v3025_v42 = vld [vmem:[#allocation3 + $0x40] sm:$0xff]  ;;  %v886_v48 = vld [vmem:[#allocation3 + $0x48] sm:$0x3]  ;;  %v540_v25 = vpop.f32.mrf.mxu0 }
  0xbc   : > { %v3020_v36 = vmul.f32 0.25, %v2010_v28  ;;  %v1106_v23 = vsel %vm967_vm10, %v1104_v55, %v1105_v26  ;;  %v3031_v44 = vmul.f32 0.75, %v915_v27  ;;  %v3034_v46 = vmul.f32 0.75, %v2010_v28  ;;  %559 = vst.msk [vmem:[#allocation4 + $0x8] sm:$0xff] %vm361_vm0, %v540_v25 }
  0xbd   : > { %3650 = vst [vmem:[#allocation6_spill] sm:$0xff] %v3018_v35  ;;  %v1010_v40 = vmul.f32 0.25, %v916_v32  ;;  %1128 = vrot.lane.b32.xlu0 %v1106_v23, %s2691_s18  ;;  %v1038_v45 = vrot.slane %v3018_v35, 1  ;;  %v2106_v47 = vmul.f32 0.25, %v2011_v33  ;;  %v3036_v50 = vmul.f32 0.75, %v916_v32 }
  0xbe   : > { %3651 = vst [vmem:[#allocation7_spill] sm:$0xff] %v3020_v36  ;;  %v398_v49 = vpop.f32.mrf.mxu3  ;;  %v3038_v52 = vmul.f32 0.75, %v2011_v33  ;;  %v2130_v53 = vrot.slane %v3020_v36, 1  ;;  %v913_v59 = vadd.f32 %v3022_v37, %v865_v4  ;;  %v914_v60 = vadd.f32 %v898_v38, %v866_v10  ;;  %v1948_v23 = vld [vmem:[#allocation3 + $0x28] sm:$0x3] }
  0xbf   : > { %v1039_v51 = vrot.slane %v1010_v40, 1  ;;  %v399_v39 = vadd.f32 %v2970_v21, %v398_v49  ;;  %v2131_v58 = vrot.slane %v2106_v47, 1  ;;  %v3047_v1 = vmul.f32 0.75, %v3025_v42  ;;  %v768_v40 = vpop.f32.mrf.mxu2  ;;  %v856_v49 = vld [vmem:[#allocation3 + $0x48] sm:$0x3] }
  0xc0   : > { %v902_v2 = vmul.f32 0.75, %v886_v48  ;;  %v3053_v7 = vmul.f32 0.25, %v913_v59  ;;  %v3058_v16 = vmul.f32 0.75, %v1950_v62  ;;  %v1009_v19 = vmul.f32 0.25, %v914_v60 }
  0xc1   : > { %v1040_v63 = vsel %vm967_vm10, %v1038_v45, %v1039_v51  ;;  %v1077_v0 = vadd.f32 %v1039_v51, %v3036_v50  ;;  %411 = vst.msk [vmem:[#allocation3 + $0x71] sm:$0xff] %vm404_vm8, %v399_v39  ;;  %v2132_v5 = vsel %vm967_vm10, %v2130_v53, %v2131_v58  ;;  %v2171_v4 = vadd.f32 %v2131_v58, %v3038_v52  ;;  %v3081_v51 = vld [vmem:[#allocation3 + $0x50] sm:$0xff] }
  0xc2   : > { %v1076_v3 = vadd.f32 %v1040_v63, %v3031_v44  ;;  %3652 = vst [vmem:[#allocation8_spill] sm:$0xff] %v3053_v7  ;;  %v422_v9 = vld [vmem:[#allocation3 + $0x61] sm:$0x1]  ;;  %v443_v10 = vld [vmem:[#allocation3 + $0x68] sm:$0x1]  ;;  %v2170_v14 = vadd.f32 %v2132_v5, %v3034_v46  ;;  %v917_v15 = vadd.f32 %v3047_v1, %v3013_v30  ;;  %v2066_v20 = vrot.slane %v3034_v46, 1 }
  0xc3   : > { %v1111_v12 = vrot.slane %v1077_v0, 1  ;;  %433 = vst.msk [vmem:[#allocation3 + $0x60] sm:$0x1] %vm426_vm9, %v422_v9  ;;  %v2203_v13 = vrot.slane %v2171_v4, 1  ;;  %v1035_v11 = vrot.slane %v3053_v7, 1  ;;  %v918_v24 = vadd.f32 %v902_v2, %v870_v41  ;;  %v784_v17 = vld [vmem:[#allocation4 + $0x8] sm:$0xff] }
  0xc4   : > { %v1110_v18 = vrot.slane %v1076_v3, 1  ;;  %453 = vst.msk [vmem:[#allocation3 + $0x69] sm:$0x1] %vm426_vm9, %v443_v10  ;;  %v2202_v22 = vrot.slane %v2170_v14, 1  ;;  %v3066_v27 = vmul.f32 0.75, %v914_v60  ;;  %v1036_v28 = vrot.slane %v1009_v19, 1 }
  0xc5   : > { %v3068_v29 = vmul.f32 0.25, %v917_v15  ;;  %v3074_v33 = vmul.f32 0.75, %v913_v59  ;;  %v1011_v38 = vmul.f32 0.25, %v918_v24  ;;  %v2012_v58 = vadd.f32 %v3022_v37, %v3013_v30  ;;  %v888_v59 = vld [vmem:[#allocation3 + $0x58] sm:$0x3] }
  0xc6   : > { %v1112_v26 = vsel %vm967_vm10, %v1110_v18, %v1111_v12  ;;  %v2204_v32 = vsel %vm967_vm10, %v2202_v22, %v2203_v13  ;;  %v400_v34 = vpop.f32.mrf.mxu3  ;;  %v1037_v41 = vsel %vm967_vm10, %v1035_v11, %v1036_v28  ;;  %v1075_v45 = vadd.f32 %v1036_v28, %v3066_v27  ;;  %v1983_v10 = vld [vmem:[#allocation3 + $0x48] sm:$0x3]  ;;  %v785_v18 = vld [vmem:[#allocation4 + $0x10] sm:$0xff]  ;;  %v548_v13 = vpop.f32.mrf.mxu1 }
  0xc7   : > { %1132 = vrot.lane.b32.xlu1 %v1112_v26, %s2691_s18  ;;  %2226 = vrot.lane.b32.xlu2 %v2204_v32, %s2691_s18  ;;  %v401_v47 = vadd.f32 %v2970_v21, %v400_v34  ;;  %v1041_v48 = vrot.slane %v3068_v29, 1  ;;  %v1074_v39 = vadd.f32 %v1037_v41, %v3074_v33  ;;  %v3087_v62 = vmul.f32 0.75, %v918_v24  ;;  %562 = vst.msk [vmem:[#allocation4 + $0x20] sm:$0xff] %vm361_vm0, %v548_v13 }
  0xc8   : > { %v423_v53 = vld [vmem:[#allocation3 + $0x71] sm:$0x1]  ;;  %v444_v57 = vld [vmem:[#allocation3 + $0x78] sm:$0x1]  ;;  %v1108_v60 = vrot.slane %v1075_v45, 1  ;;  %v1042_v63 = vrot.slane %v1011_v38, 1  ;;  %v793_v38 = vadd.f32 %v785_v18, %v768_v40  ;;  %v763_v40 = vpop.f32.mrf.mxu0 }
  0xc9   : > { %434 = vst.msk [vmem:[#allocation3 + $0x70] sm:$0x1] %vm426_vm9, %v423_v53  ;;  %v1964_v21 = vmul.f32 0.75, %v1948_v23  ;;  %v2067_v0 = vrot.slane %v3038_v52, 1  ;;  %v1107_v2 = vrot.slane %v1074_v39, 1  ;;  %v3091_v3 = vmul.f32 0.75, %v917_v15 }
  0xca   : > { %454 = vst.msk [vmem:[#allocation3 + $0x79] sm:$0x1] %vm426_vm9, %v444_v57  ;;  %v3093_v5 = vmul.f32 0.25, %v2012_v58  ;;  %v1043_v30 = vsel %vm967_vm10, %v1041_v48, %v1042_v63  ;;  %v1079_v37 = vadd.f32 %v1042_v63, %v3087_v62  ;;  %v3100_v9 = vmul.f32 0.75, %v3081_v51  ;;  %v770_v48 = vpop.f32.mrf.mxu2  ;;  %v1954_v18 = vld [vmem:[#allocation3 + $0x58] sm:$0x3] }
  0xcb   : > { %412 = vst.msk [vmem:[#allocation3 + $0x81] sm:$0xff] %vm404_vm8, %v401_v47  ;;  %v2013_v4 = vadd.f32 %v3027_v43, %v1964_v21  ;;  %v1109_v12 = vsel %vm967_vm10, %v1107_v2, %v1108_v60  ;;  %v1078_v52 = vadd.f32 %v1043_v30, %v3091_v3  ;;  %v871_v14 = vmul.f32 0.25, %v3025_v42  ;;  %v1952_v30 = vld [vmem:[#allocation3 + $0x48] sm:$0x3] }
  0xcc   : > { %415 = vst.msk [vmem:[#allocation3 + $0x91] sm:$0xff] %vm404_vm8, %v401_v47  ;;  %v872_v15 = vmul.f32 0.25, %v856_v49  ;;  %1130 = vrot.lane.b32.xlu0 %v1109_v12, %s2691_s18  ;;  %v1114_v19 = vrot.slane %v1079_v37, 1  ;;  %v2133_v43 = vrot.slane %v3093_v5, 1  ;;  %v904_v11 = vmul.f32 0.75, %v888_v59  ;;  %v786_v49 = vld [vmem:[#allocation4 + $0x18] sm:$0xff] }
  0xcd   : > { %v2107_v22 = vmul.f32 0.25, %v2013_v4  ;;  %v1113_v25 = vrot.slane %v1078_v52, 1  ;;  %v919_v26 = vadd.f32 %v3100_v9, %v871_v14  ;;  %v1999_v28 = vmul.f32 0.25, %v1983_v10  ;;  %801 = vst.msk [vmem:[#allocation4 + $0x10] sm:$0xff] %vm361_vm0, %v793_v38  ;;  %v1985_v10 = vld [vmem:[#allocation3 + $0x58] sm:$0x3] }
  0xce   : > { %v3111_v32 = vmul.f32 0.75, %v2013_v4  ;;  %v920_v34 = vadd.f32 %v904_v11, %v872_v15  ;;  %v3114_v41 = vmul.f32 0.75, %v2012_v58  ;;  %v2014_v47 = vadd.f32 %v3005_v8, %v871_v14  ;;  %v783_v58 = vld [vmem:[#allocation4] sm:$0xff] }
  0xcf   : > { %v2134_v42 = vrot.slane %v2107_v22, 1  ;;  %v1115_v23 = vsel %vm967_vm10, %v1113_v25, %v1114_v19  ;;  %v3116_v45 = vmul.f32 0.25, %v919_v26  ;;  %v2015_v59 = vadd.f32 %v1999_v28, %v3058_v16  ;;  %v1986_v28 = vld [vmem:[#allocation3 + $0x60] sm:$0xff] }
  0xd0   : > { %1134 = vrot.lane.b32.xlu1 %v1115_v23, %s2691_s18  ;;  %v1012_v39 = vmul.f32 0.25, %v920_v34  ;;  %v3125_v8 = vmul.f32 0.75, %v920_v34  ;;  %v794_v12 = vadd.f32 %v786_v49, %v770_v48  ;;  %v3132_v16 = vsel %vm967_vm10, %v2066_v20, %v2067_v0 }
  0xd1   : > { %v2135_v53 = vsel %vm967_vm10, %v2133_v43, %v2134_v42  ;;  %v2173_v57 = vadd.f32 %v2134_v42, %v3111_v32  ;;  %v1044_v2 = vrot.slane %v3116_v45, 1  ;;  %3653 = vst [vmem:[#allocation9_spill] sm:$0xff] %v3132_v16  ;;  %v791_v13 = vadd.f32 %v783_v58, %v763_v40  ;;  %v1987_v42 = vld [vmem:[#allocation3 + $0x68] sm:$0x3] }
  0xd2   : > { %v424_v60 = vld [vmem:[#allocation3 + $0x81] sm:$0x1]  ;;  %v445_v63 = vld [vmem:[#allocation3 + $0x88] sm:$0x1]  ;;  %v2172_v21 = vadd.f32 %v2135_v53, %v3114_v41  ;;  %v1045_v15 = vrot.slane %v1012_v39, 1  ;;  %v3137_v22 = vmul.f32 0.75, %v919_v26 }
  0xd3   : > { %v425_v37 = vld [vmem:[#allocation3 + $0x91] sm:$0x1]  ;;  %435 = vst.msk [vmem:[#allocation3 + $0x80] sm:$0x1] %vm426_vm9, %v424_v60  ;;  %v446_v4 = vld [vmem:[#allocation3 + $0x98] sm:$0x1] }
  0xd4   : > { %436 = vst.msk [vmem:[#allocation3 + $0x90] sm:$0x1] %vm426_vm9, %v425_v37  ;;  %v2205_v52 = vrot.slane %v2172_v21, 1  ;;  %v2206_v14 = vrot.slane %v2173_v57, 1  ;;  %v3139_v43 = vmul.f32 0.25, %v2014_v47  ;;  %v2108_v11 = vmul.f32 0.25, %v2015_v59 }
  0xd5   : > { %455 = vst.msk [vmem:[#allocation3 + $0x89] sm:$0x1] %vm426_vm9, %v445_v63  ;;  %v1046_v20 = vsel %vm967_vm10, %v1044_v2, %v1045_v15  ;;  %v1081_v0 = vadd.f32 %v1045_v15, %v3125_v8  ;;  %v3145_v25 = vmul.f32 0.75, %v2014_v47  ;;  %v3149_v34 = vmul.f32 0.75, %v2015_v59  ;;  %v550_v47 = vpop.f32.mrf.mxu1 }
  0xd6   : > { %456 = vst.msk [vmem:[#allocation3 + $0x99] sm:$0x1] %vm426_vm9, %v446_v4  ;;  %v2207_v46 = vsel %vm967_vm10, %v2205_v52, %v2206_v14  ;;  %v1080_v26 = vadd.f32 %v1046_v20, %v3137_v22  ;;  %v2136_v38 = vrot.slane %v3139_v43, 1  ;;  %v1968_v23 = vmul.f32 0.75, %v1952_v30  ;;  %v3161_v30 = vpop.f32.mrf.mxu2  ;;  %v1274_v52 = vpop.f32.mrf.mxu3 }
  0xd7   : > { %2228 = vrot.lane.b32.xlu0 %v2207_v46, %s2691_s18  ;;  %802 = vst.msk [vmem:[#allocation4 + $0x18] sm:$0xff] %vm361_vm0, %v794_v12  ;;  %v1117_v48 = vrot.slane %v1081_v0, 1  ;;  %v2137_v49 = vrot.slane %v2108_v11, 1  ;;  %v2000_v53 = vmul.f32 0.25, %v3081_v51  ;;  %v2001_v57 = vmul.f32 0.25, %v1985_v10  ;;  %v3167_v12 = vpop.f32.mrf.mxu0 }
  0xd8   : > { %799 = vst.msk [vmem:[#allocation4] sm:$0xff] %vm361_vm0, %v791_v13  ;;  %v1116_v39 = vrot.slane %v1080_v26, 1  ;;  %v1970_v40 = vmul.f32 0.75, %v1954_v18  ;;  %v3155_v58 = vmul.f32 0.25, %v1986_v28  ;;  %v2003_v60 = vmul.f32 0.25, %v1987_v42 }
  0xd9   : > { %563 = vst.msk [vmem:[#allocation4 + $0x28] sm:$0xff] %vm361_vm0, %v550_v47  ;;  %v2138_v59 = vsel %vm967_vm10, %v2136_v38, %v2137_v49  ;;  %v2175_v63 = vadd.f32 %v2137_v49, %v3149_v34  ;;  %v2016_v21 = vadd.f32 %v2000_v53, %v3047_v1  ;;  %v2017_v2 = vadd.f32 %v2001_v57, %v1968_v23  ;;  %v890_v23 = vld [vmem:[#allocation3 + $0x68] sm:$0x3]  ;;  %v892_v13 = vld [vmem:[#allocation3 + $0x78] sm:$0x3] }
  0xda   : > { %v1118_v51 = vsel %vm967_vm10, %v1116_v39, %v1117_v48  ;;  %v2174_v37 = vadd.f32 %v2138_v59, %v3145_v25  ;;  %v2018_v4 = vadd.f32 %v3155_v58, %v3100_v9  ;;  %v2019_v10 = vadd.f32 %v2003_v60, %v1970_v40  ;;  %v858_v9 = vld [vmem:[#allocation3 + $0x58] sm:$0x3]  ;;  %v3185_v39 = vld [vmem:[#allocation3 + $0x70] sm:$0xff] }
  0xdb   : > { %1136 = vrot.lane.b32.xlu2 %v1118_v51, %s2691_s18  ;;  %v2209_v1 = vrot.slane %v2175_v63, 1  ;;  %v3172_v18 = vmul.f32 0.25, %v2016_v21  ;;  %v2109_v46 = vmul.f32 0.25, %v2017_v2  ;;  %v3179_v26 = vmul.f32 0.75, %v2016_v21 }
  0xdc   : > { %v2208_v11 = vrot.slane %v2174_v37, 1  ;;  %v3175_v20 = vmul.f32 0.25, %v2018_v4  ;;  %v3183_v49 = vmul.f32 0.75, %v2017_v2  ;;  %v2110_v47 = vmul.f32 0.25, %v2019_v10 }
  0xdd   : > { %v2139_v38 = vrot.slane %v3172_v18, 1  ;;  %v2140_v57 = vrot.slane %v2109_v46, 1  ;;  %v3190_v60 = vmul.f32 0.75, %v2019_v10  ;;  %v874_v63 = vmul.f32 0.25, %v858_v9 }
  0xde   : > { %3654 = vst [vmem:[#allocation10_spill] sm:$0xff] %v3175_v20  ;;  %v2210_v48 = vsel %vm967_vm10, %v2208_v11, %v2209_v1  ;;  %v2142_v59 = vrot.slane %v3175_v20, 1  ;;  %v3193_v21 = vmul.f32 0.75, %v1986_v28  ;;  %v2143_v37 = vrot.slane %v2110_v47, 1  ;;  %v3211_v14 = vpop.f32.mrf.mxu2 }
  0xdf   : > { %v3187_v40 = vld [vmem:[#allocation4] sm:$0xff]  ;;  %2230 = vrot.lane.b32.xlu1 %v2210_v48, %s2691_s18  ;;  %v2141_v2 = vsel %vm967_vm10, %v2139_v38, %v2140_v57  ;;  %v2177_v51 = vadd.f32 %v2140_v57, %v3183_v49  ;;  %v906_v1 = vmul.f32 0.75, %v890_v23  ;;  %v3199_v46 = vmul.f32 0.75, %v2018_v4  ;;  %v860_v48 = vld [vmem:[#allocation3 + $0x68] sm:$0x3]  ;;  %v3255_v57 = vld [vmem:[#allocation4 + $0x10] sm:$0xff] }
  0xe0   : > { %3655 = vst [vmem:[#allocation11_spill] sm:$0xff] %v3187_v40  ;;  %v2176_v11 = vadd.f32 %v2141_v2, %v3179_v26  ;;  %v921_v10 = vadd.f32 %v2000_v53, %v3193_v21  ;;  %v3203_v9 = vmul.f32 0.75, %v3185_v39  ;;  %v2179_v38 = vadd.f32 %v2143_v37, %v3190_v60  ;;  %v787_v2 = vld [vmem:[#allocation4 + $0x20] sm:$0xff]  ;;  %v553_v53 = vpop.f32.mrf.mxu1 }
  0xe1   : > { %1294 = vst.msk [vmem:[#allocation4] sm:$0xff] %vm361_vm0, %v1274_v52  ;;  %v2212_v28 = vrot.slane %v2177_v51, 1  ;;  %v2144_v52 = vsel %vm967_vm10, %v2142_v59, %v2143_v37  ;;  %v922_v0 = vadd.f32 %v906_v1, %v874_v63  ;;  %v876_v19 = vmul.f32 0.25, %v860_v48  ;;  %v3214_v59 = vpop.f32.mrf.mxu3  ;;  %v3216_v63 = vpop.f32.mrf.mxu0 }
  0xe2   : > { %v2211_v23 = vrot.slane %v2176_v11, 1  ;;  %v2178_v47 = vadd.f32 %v2144_v52, %v3199_v46  ;;  %v3209_v4 = vmul.f32 0.25, %v921_v10  ;;  %v2215_v15 = vrot.slane %v2179_v38, 1  ;;  %564 = vst.msk [vmem:[#allocation4 + $0x30] sm:$0xff] %vm361_vm0, %v553_v53 }
  0xe3   : > { %v1013_v24 = vmul.f32 0.25, %v922_v0  ;;  %v908_v51 = vmul.f32 0.75, %v892_v13  ;;  %v3222_v38 = vmul.f32 0.75, %v922_v0  ;;  %v923_v13 = vadd.f32 %v3155_v58, %v3203_v9  ;;  %3657 = vst [vmem:[#allocation13_spill] sm:$0xff] %v3255_v57  ;;  %v1992_v57 = vld [vmem:[#allocation3 + $0x90] sm:$0xff] }
  0xe4   : > { %v2213_v1 = vsel %vm967_vm10, %v2211_v23, %v2212_v28  ;;  %v2214_v11 = vrot.slane %v2178_v47, 1  ;;  %v1047_v52 = vrot.slane %v3209_v4, 1  ;;  %v3227_v6 = vmul.f32 0.75, %v921_v10  ;;  %v862_v23 = vld [vmem:[#allocation3 + $0x78] sm:$0x3]  ;;  %v893_v47 = vld [vmem:[#allocation3 + $0x80] sm:$0xff] }
  0xe5   : > { %2232 = vrot.lane.b32.xlu2 %v2213_v1, %s2691_s18  ;;  %v1048_v48 = vrot.slane %v1013_v24, 1  ;;  %v924_v53 = vadd.f32 %v908_v51, %v876_v19  ;;  %v795_v37 = vadd.f32 %v787_v2, %v3161_v30  ;;  %v792_v28 = vadd.f32 %v784_v17, %v3167_v12  ;;  %v894_v19 = vld [vmem:[#allocation3 + $0x88] sm:$0x3] }
  0xe6   : > { %v2216_v55 = vsel %vm967_vm10, %v2214_v11, %v2215_v15  ;;  %v3235_v58 = vmul.f32 0.25, %v923_v13  ;;  %v1958_v15 = vld [vmem:[#allocation3 + $0x78] sm:$0x3]  ;;  %v3238_v51 = vmul.f32 0.75, %v923_v13  ;;  %v3242_v17 = vmul.f32 0.25, %v3185_v39  ;;  %v3250_v42 = vpop.f32.mrf.mxu2 }
  0xe7   : > { %2234 = vrot.lane.b32.xlu0 %v2216_v55, %s2691_s18  ;;  %v1049_v24 = vsel %vm967_vm10, %v1047_v52, %v1048_v48  ;;  %v1083_v0 = vadd.f32 %v1048_v48, %v3222_v38  ;;  %v1014_v30 = vmul.f32 0.25, %v924_v53  ;;  %803 = vst.msk [vmem:[#allocation4 + $0x20] sm:$0xff] %vm361_vm0, %v795_v37  ;;  %v1991_v12 = vld [vmem:[#allocation3 + $0x88] sm:$0x3]  ;;  %v3244_v2 = vmul.f32 0.75, %v924_v53 }
  0xe8   : > { %3656 = vst [vmem:[#allocation12_spill] sm:$0xff] %v3235_v58  ;;  %v1082_v10 = vadd.f32 %v1049_v24, %v3227_v6  ;;  %v1050_v1 = vrot.slane %v3235_v58, 1  ;;  %v3248_v11 = vmul.f32 0.75, %v893_v47  ;;  %v878_v13 = vmul.f32 0.25, %v862_v23  ;;  %v555_v31 = vpop.f32.mrf.mxu1  ;;  %v1516_v40 = vld [vmem:[#allocation4] sm:$0xff] }
  0xe9   : > { %v1120_v55 = vrot.slane %v1083_v0, 1  ;;  %800 = vst.msk [vmem:[#allocation4 + $0x8] sm:$0xff] %vm361_vm0, %v792_v28  ;;  %v1051_v48 = vrot.slane %v1014_v30, 1  ;;  %v910_v24 = vmul.f32 0.75, %v894_v19  ;;  %v1974_v37 = vmul.f32 0.75, %v1958_v15  ;;  %v1279_v28 = vpop.f32.mrf.mxu3  ;;  %v3257_v7 = vpop.f32.mrf.mxu0 }
  0xea   : > { %v1119_v52 = vrot.slane %v1082_v10, 1  ;;  %v925_v39 = vadd.f32 %v3248_v11, %v3242_v17  ;;  %v2006_v0 = vmul.f32 0.25, %v893_v47  ;;  %v2007_v53 = vmul.f32 0.25, %v1991_v12  ;;  %565 = vst.msk [vmem:[#allocation4 + $0x38] sm:$0xff] %vm361_vm0, %v555_v31  ;;  %v1956_v15 = vld [vmem:[#allocation3 + $0x68] sm:$0x3] }
  0xeb   : > { %v1052_v23 = vsel %vm967_vm10, %v1050_v1, %v1051_v48  ;;  %v1085_v19 = vadd.f32 %v1051_v48, %v3244_v2  ;;  %v926_v30 = vadd.f32 %v910_v24, %v878_v13  ;;  %1296 = vst.msk [vmem:[#allocation4 + $0x10] sm:$0xff] %vm361_vm0, %v1279_v28  ;;  %v788_v48 = vld [vmem:[#allocation4 + $0x28] sm:$0xff]  ;;  %v2008_v36 = vmul.f32 0.25, %v1992_v57 }
  0xec   : > { %v1121_v10 = vsel %vm967_vm10, %v1119_v52, %v1120_v55  ;;  %v1084_v31 = vadd.f32 %v1052_v23, %v3238_v51  ;;  %v3266_v47 = vmul.f32 0.25, %v925_v39  ;;  %v2022_v12 = vadd.f32 %v2006_v0, %v3203_v9  ;;  %v1993_v0 = vld [vmem:[#allocation3 + $0x98] sm:$0x3] }
  0xed   : > { %1138 = vrot.lane.b32.xlu2 %v1121_v10, %s2691_s18  ;;  %v1123_v55 = vrot.slane %v1085_v19, 1  ;;  %v1015_v52 = vmul.f32 0.25, %v926_v30  ;;  %v2023_v1 = vadd.f32 %v2007_v53, %v1974_v37  ;;  %v1960_v10 = vld [vmem:[#allocation3 + $0x88] sm:$0x3]  ;;  %v3274_v23 = vmul.f32 0.75, %v925_v39 }
  0xee   : > { %3658 = vst [vmem:[#allocation14_spill] sm:$0xff] %v3266_v47  ;;  %v1122_v13 = vrot.slane %v1084_v31, 1  ;;  %v1053_v24 = vrot.slane %v3266_v47, 1  ;;  %v3272_v28 = vmul.f32 0.25, %v2022_v12  ;;  %v3276_v54 = vmul.f32 0.75, %v926_v30 }
  0xef   : > { %v1054_v9 = vrot.slane %v1015_v52, 1  ;;  %v3281_v53 = vmul.f32 0.75, %v2022_v12  ;;  %v2112_v19 = vmul.f32 0.25, %v2023_v1  ;;  %v3289_v52 = vmul.f32 0.75, %v2023_v1  ;;  %v3293_v12 = vpop.f32.mrf.mxu2 }
  0xf0   : > { %3659 = vst [vmem:[#allocation15_spill] sm:$0xff] %v3272_v28  ;;  %v3278_v35 = vld [vmem:[#allocation4 + $0x8] sm:$0xff]  ;;  %v1124_v37 = vsel %vm967_vm10, %v1122_v13, %v1123_v55  ;;  %v2148_v31 = vrot.slane %v3272_v28, 1  ;;  %v3291_v55 = vpop.f32.mrf.mxu1  ;;  %v2009_v47 = vmul.f32 0.25, %v1993_v0  ;;  %v3296_v28 = vld [vmem:[#allocation4 + $0x18] sm:$0xff]  ;;  %v1524_v1 = vadd.f32 %v1516_v40, %v3216_v63 }
  0xf1   : > { %3660 = vst [vmem:[#allocation16_spill] sm:$0xff] %v3276_v54  ;;  %1140 = vrot.lane.b32.xlu0 %v1124_v37, %s2691_s18  ;;  %v1055_v39 = vsel %vm967_vm10, %v1053_v24, %v1054_v9  ;;  %v1087_v30 = vadd.f32 %v1054_v9, %v3276_v54  ;;  %v2149_v16 = vrot.slane %v2112_v19, 1  ;;  %v1281_v37 = vpop.f32.mrf.mxu3  ;;  %v1501_v58 = vpop.f32.mrf.mxu0  ;;  %v796_v9 = vadd.f32 %v788_v48, %v3211_v14 }
  0xf2   : > { %3661 = vst [vmem:[#allocation17_spill] sm:$0xff] %v3278_v35  ;;  %v1976_v35 = vmul.f32 0.75, %v1960_v10  ;;  %v1086_v13 = vadd.f32 %v1055_v39, %v3274_v23  ;;  %v1972_v10 = vmul.f32 0.75, %v1956_v15  ;;  %v2024_v57 = vadd.f32 %v2008_v36, %v3248_v11  ;;  %v789_v11 = vld [vmem:[#allocation4 + $0x30] sm:$0xff] }
  0xf3   : > { %1295 = vst.msk [vmem:[#allocation4 + $0x8] sm:$0xff] %vm361_vm0, %v3214_v59  ;;  %v1989_v59 = vld [vmem:[#allocation3 + $0x78] sm:$0x3]  ;;  %v1126_v24 = vrot.slane %v1087_v30, 1  ;;  %v2150_v20 = vsel %vm967_vm10, %v2148_v31, %v2149_v16  ;;  %v2183_v19 = vadd.f32 %v2149_v16, %v3289_v52  ;;  %v2020_v14 = vadd.f32 %v3193_v21, %v3242_v17  ;;  %v3333_v21 = vld [vmem:[#allocation4 + $0x20] sm:$0xff] }
  0xf4   : > { %3662 = vst [vmem:[#allocation18_spill] sm:$0xff] %v3296_v28  ;;  %v1125_v54 = vrot.slane %v1086_v13, 1  ;;  %v2182_v0 = vadd.f32 %v2150_v20, %v3281_v53  ;;  %v2025_v39 = vadd.f32 %v2009_v47, %v1976_v35  ;;  %v2005_v30 = vmul.f32 0.25, %v1989_v59 }
  0xf5   : > { %1297 = vst.msk [vmem:[#allocation4 + $0x18] sm:$0xff] %vm361_vm0, %v1281_v37  ;;  %v2221_v15 = vrot.slane %v2183_v19, 1  ;;  %v3310_v48 = vmul.f32 0.25, %v2024_v57  ;;  %v984_v47 = vrot.slane %v3222_v38, 1  ;;  %v3329_v38 = vmul.f32 0.75, %v2024_v57 }
  0xf6   : > { %804 = vst.msk [vmem:[#allocation4 + $0x28] sm:$0xff] %vm361_vm0, %v796_v9  ;;  %v1127_v63 = vsel %vm967_vm10, %v1125_v54, %v1126_v24  ;;  %v2220_v35 = vrot.slane %v2182_v0, 1  ;;  %v2113_v16 = vmul.f32 0.25, %v2025_v39  ;;  %v2021_v20 = vadd.f32 %v2005_v30, %v1972_v10  ;;  %v790_v9 = vld [vmem:[#allocation4 + $0x38] sm:$0xff] }
  0xf7   : > { %1532 = vst.msk [vmem:[#allocation4] sm:$0xff] %vm361_vm0, %v1524_v1  ;;  %1142 = vrot.lane.b32.xlu1 %v1127_v63, %s2691_s18  ;;  %v2151_v17 = vrot.slane %v3310_v48, 1  ;;  %v3318_v54 = vmul.f32 0.25, %v2020_v14  ;;  %v3322_v37 = vmul.f32 0.75, %v2025_v39  ;;  %v1518_v1 = vld [vmem:[#allocation4 + $0x10] sm:$0xff]  ;;  %v3326_v19 = vpop.f32.mrf.mxu2  ;;  %v797_v63 = vadd.f32 %v789_v11, %v3250_v42 }
  0xf8   : > { %v2222_v59 = vsel %vm967_vm10, %v2220_v35, %v2221_v15  ;;  %v2152_v24 = vrot.slane %v2113_v16, 1  ;;  %v3324_v10 = vpop.f32.mrf.mxu1  ;;  %v2111_v0 = vmul.f32 0.25, %v2021_v20  ;;  %3663 = vst [vmem:[#allocation19_spill] sm:$0xff] %v3333_v21  ;;  %v3337_v40 = vmul.f32 0.75, %v2021_v20 }
  0xf9   : > { %2238 = vrot.lane.b32.xlu2 %v2222_v59, %s2691_s18  ;;  %v2145_v30 = vrot.slane %v3318_v54, 1  ;;  %v1284_v39 = vpop.f32.mrf.mxu3  ;;  %v1503_v15 = vpop.f32.mrf.mxu0  ;;  %805 = vst.msk [vmem:[#allocation4 + $0x30] sm:$0xff] %vm361_vm0, %v797_v63  ;;  %v798_v42 = vadd.f32 %v790_v9, %v3293_v12  ;;  %v1526_v11 = vadd.f32 %v1518_v1, %v1501_v58  ;;  %v2044_v21 = vmul.f32 0.75, %v2020_v14 }
  0xfa   : > { %v1517_v31 = vld [vmem:[#allocation4 + $0x8] sm:$0xff]  ;;  %v2153_v16 = vsel %vm967_vm10, %v2151_v17, %v2152_v24  ;;  %v2185_v13 = vadd.f32 %v2152_v24, %v3322_v37  ;;  %1298 = vst.msk [vmem:[#allocation4 + $0x20] sm:$0xff] %vm361_vm0, %v1284_v39  ;;  %v2146_v36 = vrot.slane %v2111_v0, 1  ;;  %v3664_v20 = vrot.slane %v3125_v8, 1 }
  0xfb   : > { %v1525_v59 = vadd.f32 %v1517_v31, %v3257_v7  ;;  %v2184_v57 = vadd.f32 %v2153_v16, %v3329_v38  ;;  %v3665_v7 = vrot.slane %v3137_v22, 1  ;;  %806 = vst.msk [vmem:[#allocation4 + $0x38] sm:$0xff] %vm361_vm0, %v798_v42  ;;  %v3666_v8 = vrot.slane %v2999_v61, 1 }
  0xfc   : > { %v1519_v35 = vld [vmem:[#allocation4 + $0x18] sm:$0xff]  ;;  %v2224_v28 = vrot.slane %v2185_v13, 1  ;;  %v2147_v0 = vsel %vm967_vm10, %v2145_v30, %v2146_v36  ;;  %v2181_v63 = vadd.f32 %v2146_v36, %v3337_v40  ;;  %1534 = vst.msk [vmem:[#allocation4 + $0x10] sm:$0xff] %vm361_vm0, %v1526_v11  ;;  %v3667_v22 = vrot.slane %v2996_v56, 1 }
  0xfd   : > { %1533 = vst.msk [vmem:[#allocation4 + $0x8] sm:$0xff] %vm361_vm0, %v1525_v59  ;;  %v1527_v24 = vadd.f32 %v1519_v35, %v1503_v15  ;;  %v982_v31 = vsel %vm967_vm10, %v3665_v7, %v3664_v20  ;;  %v2223_v39 = vrot.slane %v2184_v57, 1  ;;  %v2180_v58 = vadd.f32 %v2147_v0, %v2044_v21 }
  0xfe   : > { %v1643_v17 = vld [vmem:[#allocation4] sm:$0xff]  ;;  %v3356_v14 = vadd.f32 %v982_v31, %v3116_v45  ;;  %v3363_v13 = vsel %vm967_vm10, %v3667_v22, %v3666_v8  ;;  %v3668_v9 = vrot.slane %v3183_v49, 1  ;;  %v3669_v36 = vrot.slane %v3179_v26, 1 }
  0xff   : > { %v1651_v12 = vadd.f32 %v1643_v17, %v3291_v55  ;;  %v989_v1 = vrot.slane %v3274_v23, 1  ;;  %v2225_v30 = vsel %vm967_vm10, %v2223_v39, %v2224_v28  ;;  %v2218_v15 = vrot.slane %v2181_v63, 1  ;;  %1535 = vst.msk [vmem:[#allocation4 + $0x18] sm:$0xff] %vm361_vm0, %v1527_v24  ;;  %v1863_v49 = vpop.f32.mrf.mxu2 }
 0x100   : > { %v2077_v55 = vsel %vm967_vm10, %v3669_v36, %v3668_v9  ;;  %2240 = vrot.lane.b32.xlu0 %v2225_v30, %s2691_s18  ;;  %v2217_v56 = vrot.slane %v2180_v58, 1  ;;  %v1628_v45 = vpop.f32.mrf.mxu1  ;;  %v3670_v26 = vrot.slane %v3036_v50, 1  ;;  %v3671_v35 = vrot.slane %v3031_v44, 1  ;;  %v3396_v50 = vld [vmem:[#allocation4 + $0x28] sm:$0xff]  ;;  %v3687_v9 = vld [vmem:[#allocation16_spill] sm:$0xff] }
 0x101   : > { %1659 = vst.msk [vmem:[#allocation4] sm:$0xff] %vm361_vm0, %v1651_v12  ;;  %v3374_v61 = vadd.f32 %v2077_v55, %v3172_v18  ;;  %v3672_v28 = vrot.slane %v3066_v27, 1  ;;  %v3673_v16 = vrot.slane %v3074_v33, 1  ;;  %v3674_v59 = vrot.slane %v3227_v6, 1  ;;  %v1286_v44 = vpop.f32.mrf.mxu3  ;;  %v1506_v17 = vpop.f32.mrf.mxu0  ;;  %v1520_v24 = vld [vmem:[#allocation4 + $0x20] sm:$0xff] }
 0x102   : > { %v3383_v23 = vsel %vm967_vm10, %v3671_v35, %v3670_v26  ;;  %v2081_v42 = vrot.slane %v2044_v21, 1  ;;  %v2082_v11 = vrot.slane %v3337_v40, 1  ;;  %v3675_v27 = vrot.slane %v3087_v62, 1  ;;  %1299 = vst.msk [vmem:[#allocation4 + $0x28] sm:$0xff] %vm361_vm0, %v1286_v44  ;;  %v3689_v44 = vld [vmem:[#allocation14_spill] sm:$0xff] }
 0x103   : > { %v3390_v18 = vsel %vm967_vm10, %v3673_v16, %v3672_v28  ;;  %v985_v57 = vsel %vm967_vm10, %v3674_v59, %v984_v47  ;;  %v3676_v33 = vrot.slane %v3091_v3, 1  ;;  %v2219_v6 = vsel %vm967_vm10, %v2217_v56, %v2218_v15  ;;  %v1645_v55 = vld [vmem:[#allocation4 + $0x10] sm:$0xff] }
 0x104   : > { %v3399_v20 = vadd.f32 %v985_v57, %v3209_v4  ;;  %v1528_v47 = vadd.f32 %v1520_v24, %v1506_v17  ;;  %v3677_v21 = vrot.slane %v3111_v32, 1  ;;  %v3678_v31 = vrot.slane %v3114_v41, 1  ;;  %2236 = vrot.lane.b32.xlu1 %v2219_v6, %s2691_s18  ;;  %v1644_v62 = vld [vmem:[#allocation4 + $0x8] sm:$0xff] }
 0x105   : > { %v979_v7 = vsel %vm967_vm10, %v3676_v33, %v3675_v27  ;;  %v3679_v39 = vrot.slane %v3149_v34, 1  ;;  %v3680_v0 = vrot.slane %v3145_v25, 1  ;;  %v3682_v32 = vrot.slane %v3199_v46, 1  ;;  %v3685_v34 = vld [vmem:[#allocation10_spill] sm:$0xff] }
 0x106   : > { %v3409_v40 = vadd.f32 %v979_v7, %v3068_v29  ;;  %v2071_v4 = vsel %vm967_vm10, %v3678_v31, %v3677_v21  ;;  %v3681_v29 = vrot.slane %v3190_v60, 1  ;;  %v3683_v12 = vrot.slane %v3244_v2, 1  ;;  %1536 = vst.msk [vmem:[#allocation4 + $0x20] sm:$0xff] %vm361_vm0, %v1528_v47  ;;  %v3686_v60 = vld [vmem:[#allocation12_spill] sm:$0xff] }
 0x107   : > { %v3418_v3 = vadd.f32 %v2071_v4, %v3093_v5  ;;  %v2074_v63 = vsel %vm967_vm10, %v3680_v0, %v3679_v39  ;;  %v3684_v58 = vrot.slane %v3238_v51, 1  ;;  %v1652_v5 = vadd.f32 %v1644_v62, %v3324_v10  ;;  %v1646_v28 = vld [vmem:[#allocation4 + $0x18] sm:$0xff] }
 0x108   : > { %v2080_v41 = vsel %vm967_vm10, %v3682_v32, %v3681_v29  ;;  %v3438_v25 = vadd.f32 %v2074_v63, %v3139_v43  ;;  %v990_v36 = vrot.slane %v3687_v9, 1  ;;  %v2084_v2 = vrot.slane %v3281_v53, 1  ;;  %v1881_v15 = vld [vmem:[#allocation4] sm:$0xff]  ;;  %v1630_v53 = vpop.f32.mrf.mxu1  ;;  %v3479_v47 = vld [vmem:[%s3633_s4] ss:$0 sm:$0xff] }
 0x109   : > { %v988_v8 = vsel %vm967_vm10, %v3684_v58, %v3683_v12  ;;  %v3441_v22 = vadd.f32 %v2080_v41, %v3685_v34  ;;  %v2085_v51 = vrot.slane %v3289_v52, 1  ;;  %v2083_v10 = vsel %vm967_vm10, %v2081_v42, %v2082_v11  ;;  %1660 = vst.msk [vmem:[#allocation4 + $0x8] sm:$0xff] %vm361_vm0, %v1652_v5  ;;  %v1866_v52 = vpop.f32.mrf.mxu2  ;;  %v1508_v59 = vpop.f32.mrf.mxu0  ;;  %v1521_v57 = vld [vmem:[#allocation4 + $0x28] sm:$0xff]  ;;  %v3688_v42 = vld [vmem:[#allocation15_spill] sm:$0xff]  ;;  %v3487_v32 = vld [vmem:[%s3634_s5] ss:$0 sm:$0xff] }
 0x10a   : > { %v3444_v46 = vadd.f32 %v988_v8, %v3686_v60  ;;  %v2087_v30 = vrot.slane %v3329_v38, 1  ;;  %v2088_v43 = vrot.slane %v3322_v37, 1  ;;  %v1653_v56 = vadd.f32 %v1645_v55, %v1628_v45  ;;  %v3459_v38 = vld [vmem:[#allocation4 + $0x30] sm:$0xff]  ;;  %v1289_v37 = vpop.f32.mrf.mxu3 }
 0x10b   : > { %v3454_v26 = vadd.f32 %v2083_v10, %v3318_v54  ;;  %v1889_v35 = vadd.f32 %v1881_v15, %v3326_v19  ;;  %v1654_v16 = vadd.f32 %v1646_v28, %v1630_v53  ;;  %v2086_v45 = vsel %vm967_vm10, %v2084_v2, %v2085_v51  ;;  %1300 = vst.msk [vmem:[#allocation4 + $0x30] sm:$0xff] %vm361_vm0, %v1289_v37  ;;  %v3494_v51 = vld [vmem:[#allocation4 + $0x38] sm:$0xff]  ;;  %v3690_v55 = vld [vmem:[#allocation7_spill] sm:$0xff]  ;;  %v3691_v10 = vld [vmem:[#allocation9_spill] sm:$0xff] }
 0x10c   : > { %1661 = vst.msk [vmem:[#allocation4 + $0x10] sm:$0xff] %vm361_vm0, %v1653_v56  ;;  %v991_v54 = vsel %vm967_vm10, %v989_v1, %v990_v36  ;;  %v1529_v19 = vadd.f32 %v1521_v57, %v1508_v59  ;;  %v3465_v11 = vadd.f32 %v2086_v45, %v3688_v42  ;;  %v2089_v24 = vsel %vm967_vm10, %v2087_v30, %v2088_v43  ;;  %v3505_v37 = vld [vmem:[%s3633_s4] ss:$0 sm:$0xff] }
 0x10d   : > { %1897 = vst.msk [vmem:[#allocation4] sm:$0xff] %vm361_vm0, %v1889_v35  ;;  %v3468_v17 = vadd.f32 %v991_v54, %v3689_v44  ;;  %v3473_v27 = vadd.f32 %v2089_v24, %v3310_v48  ;;  %v1647_v7 = vld [vmem:[#allocation4 + $0x20] sm:$0xff]  ;;  %v2098_v30 = vadd.f32 %v3691_v10, %v3690_v55  ;;  %v3692_v54 = vld [vmem:[#allocation11_spill] sm:$0xff]  ;;  %v3520_v42 = vld [vmem:[%s3634_s5] ss:$0 sm:$0xff] }
 0x10e   : > { %1662 = vst.msk [vmem:[#allocation4 + $0x18] sm:$0xff] %vm361_vm0, %v1654_v16 }
 0x10f   : > { %1537 = vst.msk [vmem:[#allocation4 + $0x28] sm:$0xff] %vm361_vm0, %v1529_v19  ;;  %v819_v19 = vmul.f32 %v3505_v37, %v3692_v54 }
 0x110   : > { %v1882_v33 = vld [vmem:[#allocation4 + $0x8] sm:$0xff]  ;;  %v1633_v31 = vpop.f32.mrf.mxu1 }
 0x111   : > { %v1890_v1 = vadd.f32 %v1882_v33, %v1863_v49  ;;  %v1868_v4 = vpop.f32.mrf.mxu2  ;;  %v1655_v39 = vadd.f32 %v1647_v7, %v1633_v31  ;;  %v1511_v48 = vpop.f32.mrf.mxu0  ;;  %v3694_v31 = vld [vmem:[#allocation5_spill] sm:$0xff] }
 0x112   : > { %v1522_v0 = vld [vmem:[#allocation4 + $0x30] sm:$0xff]  ;;  %v1291_v9 = vpop.f32.mrf.mxu3 }
 0x113   : > { %v1883_v6 = vld [vmem:[#allocation4 + $0x10] sm:$0xff]  ;;  %1898 = vst.msk [vmem:[#allocation4 + $0x8] sm:$0xff] %vm361_vm0, %v1890_v1  ;;  %v1530_v49 = vadd.f32 %v1522_v0, %v1511_v48  ;;  %v831_v1 = vadd.f32 %v3520_v42, %v819_v19 }
 0x114   : > { %v1891_v21 = vadd.f32 %v1883_v6, %v1866_v52  ;;  %v1905_v62 = vld [vmem:[#allocation4] sm:$0xff]  ;;  %1663 = vst.msk [vmem:[#allocation4 + $0x20] sm:$0xff] %vm361_vm0, %v1655_v39  ;;  %v3693_v6 = vld [vmem:[#allocation19_spill] sm:$0xff] }
 0x115   : > { %v1884_v63 = vld [vmem:[#allocation4 + $0x18] sm:$0xff]  ;;  %v1917_v41 = vmul.f32 %v3479_v47, %v1905_v62  ;;  %1538 = vst.msk [vmem:[#allocation4 + $0x30] sm:$0xff] %vm361_vm0, %v1530_v49  ;;  %v839_v48 = vmax.f32 %v831_v1, 0.0  ;;  %v3695_v49 = vld [vmem:[#allocation13_spill] sm:$0xff] }
 0x116   : > { %1899 = vst.msk [vmem:[#allocation4 + $0x10] sm:$0xff] %vm361_vm0, %v1891_v21  ;;  %v1892_v29 = vadd.f32 %v1884_v63, %v1868_v4  ;;  %v1648_v12 = vld [vmem:[#allocation4 + $0x28] sm:$0xff]  ;;  %v823_v21 = vmul.f32 %v3505_v37, %v3693_v6  ;;  %v1000_v4 = vadd.f32 %v3363_v13, %v3694_v31 }
 0x117   : > { %v1929_v58 = vadd.f32 %v3487_v32, %v1917_v41  ;;  %1301 = vst.msk [vmem:[#allocation4 + $0x38] sm:$0xff] %vm361_vm0, %v1291_v9 }
 0x118   : > { %1900 = vst.msk [vmem:[#allocation4 + $0x18] sm:$0xff] %vm361_vm0, %v1892_v29  ;;  %v1635_v8 = vpop.f32.mrf.mxu1  ;;  %v821_v29 = vmul.f32 %v3505_v37, %v3695_v49 }
 0x119   : > { %v1871_v5 = vpop.f32.mrf.mxu2  ;;  %v1656_v34 = vadd.f32 %v1648_v12, %v1635_v8  ;;  %v1937_v36 = vmax.f32 %v1929_v58, 0.0  ;;  %v1513_v44 = vpop.f32.mrf.mxu0  ;;  %v835_v12 = vadd.f32 %v3520_v42, %v823_v21 }
 0x11a   : > { %v833_v13 = vadd.f32 %v3520_v42, %v821_v29  ;;  %v1906_v1 = vld [vmem:[#allocation4 + $0x8] sm:$0xff] }
 0x11b   : > { %v1885_v60 = vld [vmem:[#allocation4 + $0x20] sm:$0xff]  ;;  %1664 = vst.msk [vmem:[#allocation4 + $0x28] sm:$0xff] %vm361_vm0, %v1656_v34 }
 0x11c   : > { %v1893_v2 = vadd.f32 %v1885_v60, %v1871_v5  ;;  %v1649_v56 = vld [vmem:[#allocation4 + $0x30] sm:$0xff] }
 0x11e   : > { %1901 = vst.msk [vmem:[#allocation4 + $0x20] sm:$0xff] %vm361_vm0, %v1893_v2  ;;  %v1523_v24 = vld [vmem:[#allocation4 + $0x38] sm:$0xff] }
 0x11f   : > { %v1531_v33 = vadd.f32 %v1523_v24, %v1513_v44  ;;  %v1908_v34 = vld [vmem:[#allocation4 + $0x18] sm:$0xff] }
 0x120   : > { %v1638_v28 = vpop.f32.mrf.mxu1  ;;  %v1920_v10 = vmul.f32 %v3479_v47, %v1908_v34  ;;  %v3699_v24 = vld [vmem:[#allocation8_spill] sm:$0xff] }
 0x121   : > { %v2227_v43 = vpop.permute.xlu2 %2226  ;;  %v1873_v53 = vpop.f32.mrf.mxu2  ;;  %v1657_v16 = vadd.f32 %v1649_v56, %v1638_v28  ;;  %1539 = vst.msk [vmem:[#allocation4 + $0x38] sm:$0xff] %vm361_vm0, %v1531_v33  ;;  %v841_v28 = vmax.f32 %v833_v13, 0.0  ;;  %v1001_v33 = vadd.f32 %v3390_v18, %v3699_v24 }
 0x122   : > { %v2250_v15 = vsel %vm404_vm8, %v2098_v30, %v2227_v43  ;;  %v1886_v59 = vld [vmem:[#allocation4 + $0x28] sm:$0xff] }
 0x123   : > { %v2258_v35 = vadd.f32 %v2250_v15, %v1937_v36  ;;  %1665 = vst.msk [vmem:[#allocation4 + $0x30] sm:$0xff] %vm361_vm0, %v1657_v16  ;;  %v1894_v45 = vadd.f32 %v1886_v59, %v1873_v53  ;;  %v843_v36 = vmax.f32 %v835_v12, 0.0  ;;  %v3696_v30 = vld [vmem:[#allocation6_spill] sm:$0xff]  ;;  %v3697_v15 = vld [vmem:[#allocation17_spill] sm:$0xff] }
 0x124   : > { %v1002_v43 = vadd.f32 %v3383_v23, %v3696_v30  ;;  %v820_v56 = vmul.f32 %v3505_v37, %v3697_v15 }
 0x125   : > { %v2266_v52 = vmax.f32 %v2258_v35, 0.0  ;;  %1902 = vst.msk [vmem:[#allocation4 + $0x28] sm:$0xff] %vm361_vm0, %v1894_v45  ;;  %v3698_v45 = vld [vmem:[#allocation18_spill] sm:$0xff] }
 0x126   : > { %v822_v54 = vmul.f32 %v3505_v37, %v3698_v45  ;;  %v1909_v45 = vld [vmem:[#allocation4 + $0x20] sm:$0xff] }
 0x127   : > { %v2274_v57 = vpack.c.bf16 %v2266_v52, %v2266_v52 }
 0x128   : > { %v1640_v58 = vpop.f32.mrf.mxu1  ;;  %v1650_v5 = vld [vmem:[#allocation4 + $0x38] sm:$0xff]  ;;  %v834_v31 = vadd.f32 %v3520_v42, %v822_v54 }
 0x129   : > { %2599 = vst.msk [vmem:[%s3510_s29 + $0x4] sm:$0xf] %vm261_vm1, %v2274_v57  ;;  %v1876_v7 = vpop.f32.mrf.mxu2  ;;  %v1658_v60 = vadd.f32 %v1650_v5, %v1640_v58  ;;  %v832_v57 = vadd.f32 %v3520_v42, %v820_v56 }
 0x12a   : > { %v1887_v62 = vld [vmem:[#allocation4 + $0x30] sm:$0xff]  ;;  %v842_v29 = vmax.f32 %v834_v31, 0.0 }
 0x12b   : > { %v1895_v0 = vadd.f32 %v1887_v62, %v1876_v7  ;;  %1666 = vst.msk [vmem:[#allocation4 + $0x38] sm:$0xff] %vm361_vm0, %v1658_v60  ;;  %v840_v21 = vmax.f32 %v832_v57, 0.0  ;;  %v824_v62 = vmul.f32 %v3505_v37, %v3396_v50 }
 0x12d   : > { %1903 = vst.msk [vmem:[#allocation4 + $0x30] sm:$0xff] %vm361_vm0, %v1895_v0  ;;  %v1918_v0 = vmul.f32 %v3479_v47, %v1906_v1 }
 0x12f   : > { %v1129_v39 = vpop.permute.xlu0 %1128 }
 0x130   : > { %v1152_v63 = vsel %vm404_vm8, %v1000_v4, %v1129_v39 }
 0x131   : > { %v1160_v41 = vadd.f32 %v1152_v63, %v839_v48  ;;  %v1878_v12 = vpop.f32.mrf.mxu2 }
 0x132   : > { %v1888_v58 = vld [vmem:[#allocation4 + $0x38] sm:$0xff] }
 0x133   : > { %v1168_v8 = vmax.f32 %v1160_v41, 0.0  ;;  %v1896_v5 = vadd.f32 %v1888_v58, %v1878_v12  ;;  %v826_v12 = vmul.f32 %v3505_v37, %v3494_v51 }
 0x135   : > { %v1176_v9 = vpack.c.bf16 %v1168_v8, %v1168_v8  ;;  %v1137_v2 = vpop.permute.xlu2 %1136  ;;  %v836_v8 = vadd.f32 %v3520_v42, %v824_v62  ;;  %1904 = vst.msk [vmem:[#allocation4 + $0x38] sm:$0xff] %vm361_vm0, %v1896_v5 }
 0x136   : > { %v1156_v55 = vsel %vm404_vm8, %v3356_v14, %v1137_v2  ;;  %v1932_v14 = vadd.f32 %v3487_v32, %v1920_v10  ;;  %v1907_v2 = vld [vmem:[#allocation4 + $0x10] sm:$0xff] }
 0x137   : > { %1184 = vst.msk [vmem:[%s3510_s29] sm:$0xf] %vm261_vm1, %v1176_v9  ;;  %v1164_v35 = vadd.f32 %v1156_v55, %v843_v36  ;;  %v1930_v9 = vadd.f32 %v3487_v32, %v1918_v0  ;;  %v844_v55 = vmax.f32 %v836_v8, 0.0 }
 0x138   : > { %v1940_v7 = vmax.f32 %v1932_v14, 0.0 }
 0x139   : > { %v1133_v53 = vpop.permute.xlu1 %1132  ;;  %v1172_v16 = vmax.f32 %v1164_v35, 0.0  ;;  %v1911_v35 = vld [vmem:[#allocation4 + $0x30] sm:$0xff] }
 0x13a   : > { %v1154_v52 = vsel %vm404_vm8, %v1002_v43, %v1133_v53  ;;  %v1938_v43 = vmax.f32 %v1930_v9, 0.0  ;;  %v1923_v14 = vmul.f32 %v3479_v47, %v1911_v35 }
 0x13b   : > { %v1162_v59 = vadd.f32 %v1154_v52, %v841_v28  ;;  %v1180_v19 = vpack.c.bf16 %v1172_v16, %v1172_v16  ;;  %v1919_v28 = vmul.f32 %v3479_v47, %v1907_v2 }
 0x13c   : > { %v1912_v5 = vld [vmem:[#allocation4 + $0x38] sm:$0xff] }
 0x13d   : > { %v1170_v23 = vmax.f32 %v1162_v59, 0.0  ;;  %1188 = vst.msk [vmem:[%s3510_s29 + $0x20] sm:$0xf] %vm261_vm1, %v1180_v19  ;;  %v1931_v57 = vadd.f32 %v3487_v32, %v1919_v28  ;;  %v1921_v19 = vmul.f32 %v3479_v47, %v1909_v45 }
 0x13e   : > { %v1131_v6 = vpop.permute.xlu0 %1130 }
 0x13f   : > { %v1178_v44 = vpack.c.bf16 %v1170_v23, %v1170_v23  ;;  %v1153_v4 = vsel %vm404_vm8, %v1001_v33, %v1131_v6  ;;  %v2233_v39 = vpop.permute.xlu2 %2232 }
 0x140   : > { %v1161_v48 = vadd.f32 %v1153_v4, %v840_v21  ;;  %v2253_v18 = vsel %vm404_vm8, %v3374_v61, %v2233_v39 }
 0x141   : > { %1186 = vst.msk [vmem:[%s3510_s29 + $0x10] sm:$0xf] %vm261_vm1, %v1178_v44  ;;  %v2261_v63 = vadd.f32 %v2253_v18, %v1940_v7  ;;  %v1939_v44 = vmax.f32 %v1931_v57, 0.0  ;;  %v1933_v7 = vadd.f32 %v3487_v32, %v1921_v19 }
 0x142   : > { %v1169_v49 = vmax.f32 %v1161_v48, 0.0  ;;  %v1135_v41 = vpop.permute.xlu1 %1134 }
 0x143   : > { %v1155_v50 = vsel %vm404_vm8, %v3409_v40, %v1135_v41  ;;  %v2269_v34 = vmax.f32 %v2261_v63, 0.0  ;;  %v1941_v39 = vmax.f32 %v1933_v7, 0.0 }
 0x144   : > { %v1177_v13 = vpack.c.bf16 %v1169_v49, %v1169_v49  ;;  %v1163_v60 = vadd.f32 %v1155_v50, %v842_v29  ;;  %v825_v49 = vmul.f32 %v3505_v37, %v3459_v38  ;;  %v838_v38 = vadd.f32 %v3520_v42, %v826_v12  ;;  %v1910_v37 = vld [vmem:[#allocation4 + $0x28] sm:$0xff] }
 0x145   : > { %v2277_v61 = vpack.c.bf16 %v2269_v34, %v2269_v34 }
 0x146   : > { %1185 = vst.msk [vmem:[%s3510_s29 + $0x8] sm:$0xf] %vm261_vm1, %v1177_v13  ;;  %v1171_v36 = vmax.f32 %v1163_v60, 0.0  ;;  %v846_v60 = vmax.f32 %v838_v38, 0.0 }
 0x147   : > { %2602 = vst.msk [vmem:[%s3510_s29 + $0x1c] sm:$0xf] %vm261_vm1, %v2277_v61  ;;  %v1139_v10 = vpop.permute.xlu2 %1138  ;;  %v1924_v61 = vmul.f32 %v3479_v47, %v1912_v5 }
 0x148   : > { %v1179_v30 = vpack.c.bf16 %v1171_v36, %v1171_v36  ;;  %v1157_v15 = vsel %vm404_vm8, %v3399_v20, %v1139_v10 }
 0x149   : > { %v2229_v40 = vpop.permute.xlu0 %2228  ;;  %v1165_v53 = vadd.f32 %v1157_v15, %v844_v55 }
 0x14a   : > { %v2251_v56 = vsel %vm404_vm8, %v3418_v3, %v2229_v40  ;;  %1187 = vst.msk [vmem:[%s3510_s29 + $0x18] sm:$0xf] %vm261_vm1, %v1179_v30  ;;  %v1935_v3 = vadd.f32 %v3487_v32, %v1923_v14 }
 0x14b   : > { %v2259_v52 = vadd.f32 %v2251_v56, %v1938_v43  ;;  %v1173_v16 = vmax.f32 %v1165_v53, 0.0 }
 0x14c   : > { %v1943_v1 = vmax.f32 %v1935_v3, 0.0 }
 0x14d   : > { %v2267_v59 = vmax.f32 %v2259_v52, 0.0  ;;  %v1181_v54 = vpack.c.bf16 %v1173_v16, %v1173_v16 }
 0x14f   : > { %v2275_v20 = vpack.c.bf16 %v2267_v59, %v2267_v59  ;;  %1189 = vst.msk [vmem:[%s3510_s29 + $0x28] sm:$0xf] %vm261_vm1, %v1181_v54 }
 0x151   : > { %2600 = vst.msk [vmem:[%s3510_s29 + $0xc] sm:$0xf] %vm261_vm1, %v2275_v20  ;;  %v2231_v23 = vpop.permute.xlu1 %2230 }
 0x152   : > { %v2252_v24 = vsel %vm404_vm8, %v3438_v25, %v2231_v23 }
 0x153   : > { %v2260_v33 = vadd.f32 %v2252_v24, %v1939_v44  ;;  %v2239_v21 = vpop.permute.xlu2 %2238 }
 0x154   : > { %v2256_v31 = vsel %vm404_vm8, %v3465_v11, %v2239_v21  ;;  %v837_v11 = vadd.f32 %v3520_v42, %v825_v49  ;;  %v1922_v42 = vmul.f32 %v3479_v47, %v1910_v37 }
 0x155   : > { %v2268_v6 = vmax.f32 %v2260_v33, 0.0  ;;  %v2264_v62 = vadd.f32 %v2256_v31, %v1943_v1 }
 0x156   : > { %v845_v58 = vmax.f32 %v837_v11, 0.0  ;;  %v1934_v30 = vadd.f32 %v3487_v32, %v1922_v42 }
 0x157   : > { %v2276_v4 = vpack.c.bf16 %v2268_v6, %v2268_v6  ;;  %v2272_v48 = vmax.f32 %v2264_v62, 0.0 }
 0x158   : > { %v1942_v56 = vmax.f32 %v1934_v30, 0.0 }
 0x159   : > { %2601 = vst.msk [vmem:[%s3510_s29 + $0x14] sm:$0xf] %vm261_vm1, %v2276_v4  ;;  %v2235_v0 = vpop.permute.xlu0 %2234  ;;  %v2280_v18 = vpack.c.bf16 %v2272_v48, %v2272_v48 }
 0x15a   : > { %v2254_v25 = vsel %vm404_vm8, %v3441_v22, %v2235_v0 }
 0x15b   : > { %v2262_v63 = vadd.f32 %v2254_v25, %v1941_v39  ;;  %2605 = vst.msk [vmem:[%s3510_s29 + $0x34] sm:$0xf] %vm261_vm1, %v2280_v18 }
 0x15d   : > { %v2270_v29 = vmax.f32 %v2262_v63, 0.0 }
 0x15f   : > { %v2278_v41 = vpack.c.bf16 %v2270_v29, %v2270_v29 }
 0x161   : > { %2603 = vst.msk [vmem:[%s3510_s29 + $0x24] sm:$0xf] %vm261_vm1, %v2278_v41 }
 0x163   : > { %v1141_v8 = vpop.permute.xlu0 %1140 }
 0x164   : > { %v1158_v22 = vsel %vm404_vm8, %v3444_v46, %v1141_v8  ;;  %v1936_v46 = vadd.f32 %v3487_v32, %v1924_v61 }
 0x165   : > { %v1166_v50 = vadd.f32 %v1158_v22, %v845_v58 }
 0x166   : > { %v1944_v10 = vmax.f32 %v1936_v46, 0.0 }
 0x167   : > { %v1174_v34 = vmax.f32 %v1166_v50, 0.0 }
 0x169   : > { %v1182_v13 = vpack.c.bf16 %v1174_v34, %v1174_v34  ;;  %v1143_v9 = vpop.permute.xlu1 %1142 }
 0x16a   : > { %v1159_v36 = vsel %vm404_vm8, %v3468_v17, %v1143_v9 }
 0x16b   : > { %1190 = vst.msk [vmem:[%s3510_s29 + $0x30] sm:$0xf] %vm261_vm1, %v1182_v13  ;;  %v1167_v51 = vadd.f32 %v1159_v36, %v846_v60 }
 0x16d   : > { %v1175_v2 = vmax.f32 %v1167_v51, 0.0 }
 0x16f   : > { %v1183_v55 = vpack.c.bf16 %v1175_v2, %v1175_v2 }
 0x171   : > { %1191 = vst.msk [vmem:[%s3510_s29 + $0x38] sm:$0xf] %vm261_vm1, %v1183_v55 }
 0x172   : > { %v2241_v40 = vpop.permute.xlu0 %2240 }
 0x173   : > { %v2257_v17 = vsel %vm404_vm8, %v3473_v27, %v2241_v40 }
 0x174   : > { %v2265_v43 = vadd.f32 %v2257_v17, %v1944_v10 }
 0x176   : > { %v2237_v15 = vpop.permute.xlu1 %2236  ;;  %v2273_v35 = vmax.f32 %v2265_v43, 0.0 }
 0x177   : > { %v2255_v28 = vsel %vm404_vm8, %v3454_v26, %v2237_v15 }
 0x178   : > { %v2263_v53 = vadd.f32 %v2255_v28, %v1942_v56  ;;  %v2281_v47 = vpack.c.bf16 %v2273_v35, %v2273_v35 }
 0x17a   : > { %v2271_v52 = vmax.f32 %v2263_v53, 0.0  ;;  %2606 = vst.msk [vmem:[%s3510_s29 + $0x3c] sm:$0xf] %vm261_vm1, %v2281_v47 }
 0x17c   : > { %v2279_v16 = vpack.c.bf16 %v2271_v52, %v2271_v52 }
 0x17e   : > { %2604 = vst.msk [vmem:[%s3510_s29 + $0x2c] sm:$0xf] %vm261_vm1, %v2279_v16 }
 0x17f PF: > { %s16_s21 = sadd.s32 1, %s2688_s21  }
 0x180   : > { %p13_p4 = scmp.ge.s32.totalorder %s16_s21, 4  }
 0x182   :  { %15 = sbr.rel (!%p13_p4) target bundleno = 1 (0x1), region = 85 }

// kernel: gated_residual_up_head.5
= control target key start
LH: loop header
LB: loop body
LE: loop exit
PB: predicated region body
PF: predicated region fallthrough
CT: control target
= control target key end

     0   :  { %s8574_s0 = inlined_call_operand.vmem [shape: bf16[2,16,16,32], index: 0, kind: input, shape index: {}]   ;;  %s8575_s1 = inlined_call_operand.vmem [shape: bf16[3,3,32,32], index: 1, kind: input, shape index: {}]   ;;  %s8576_s2 = inlined_call_operand.vmem [shape: f32[1,32], index: 2, kind: input, shape index: {}]   ;;  %s8577_s3 = inlined_call_operand.vmem [shape: f32[32,1], index: 3, kind: input, shape index: {}]   ;;  %s8578_s4 = inlined_call_operand.<no memory space> [shape: f32[1,1], index: 4, kind: input, shape index: {}]   ;;  %s8579_s5 = inlined_call_operand.hbm [shape: f32[2,1,16,16], index: 5, kind: output, shape index: {}]  }
   0x1   :  { %10 = sst [smem:[#allocation4]] %s8578_s4 }
   0x2   :  { %11 = vsyncpa [#allocation6], 0 }
   0x3   :  { %13 = vsyncpa [#allocation6 + $0x1], 0  ;;  %s6761_s20 = smov 0   ;;  %s6763_s21 = smov 0  }
   0x4   :  { %s6765_s22 = smov 0   ;;  %s6767_s23 = smov 0  }
   0x5 LB: > { %s6782_s4 = sadd.s32 4294967295, %s6723_s23   ;;  %s6041_s24 = sadd.s32 4294967294, %s6723_s23   ;;  %s6723_s23 = sphi %s6767_s23, %s8597_s23   ;;  %s6719_s22 = sphi %s6765_s22, %s8596_s22   ;;  %s6715_s21 = sphi %s6763_s21, %s8595_s21   ;;  %s6711_s20 = sphi %s6761_s20, %s8594_s20  }
   0x6   : > { %s6786_s25 = sadd.s32 1, %s6723_s23   ;;  %s136_s26 = sadd.s32 1, %s6719_s22 }
   0x7   : > { %s133_s27 = ssub.s32 %s6723_s23, %s6786_s25  ;;  %p146_p0 = scmp.ne.s32.totalorder %s6719_s22, %s6715_s21 }
   0x8   : > { %p134_p1 = scmp.eq.s32.totalorder %s133_s27, 0  ;;  %p147_p2 = scmp.eq.s32.totalorder %s6782_s4, 1 }
   0x9   : > { %p152_p3 = scmp.ne.s32.totalorder %s6715_s21, %s6711_s20  ;;  %p153_p4 = scmp.eq.s32.totalorder %s6041_s24, 1 }
   0xa   : > { %s6797_s28 = scalar_select %p134_p1, %s6719_s22, %s136_s26  }
   0xb   : > { %p6799_p5 = por %p147_p2, %p146_p0  ;;  %p6803_p6 = por %p153_p4, %p152_p3 }
   0xc   : > { %p6044_p7 = scmp.ge.s32.totalorder %s6723_s23, 1  ;;  %p191_p8 = scmp.lt.s32.totalorder %s6723_s23, 3 }
   0xe   : > { %p192_p9 = pnand %p6044_p7, %p191_p8 }
   0xf   : > { %p219_p10 = scmp.lt.s32.totalorder (!%p192_p9), %s6782_s4, 1  ;;  %s5830_s9 = sld [smem:[#allocation4]] (!%p192_p9) }
  0x10   : > { %195 = sbr.rel (%p192_p9) target bundleno = 917 (0x395), region = 40  ;;  %s6681_s6 = scalar_lea.hbm (!%p192_p9), %s8579_s5, 32 }
  0x15   : > { %v6559_v0 = vld [vmem:[%s8575_s1 + $0x8] sm:$0xff]  ;;  %v6558_v1 = vld [vmem:[%s8575_s1] sm:$0xff]  ;;  %s220_s10 = scalar_select %p219_p10, %s6782_s4, 1  ;;  %v6561_v2 = vld [vmem:[%s8575_s1 + $0x18] sm:$0xff]  ;;  %vm257_vm0 = vsmask.f32 256 }
  0x16   : > { %6609 = vmatpush.bf16.msra.mxu1 %v6559_v0  ;;  %6610 = vmatpush.bf16.msra.mxu2 %v6559_v0  ;;  %vm581_vm1 = vcmask 257024   ;;  %v6563_v3 = vld [vmem:[%s8575_s1 + $0x28] sm:$0xff]  ;;  %vm258_vm2 = vsmask.f32 4368  ;;  %vm582_vm3 = vsmask.f32 7938 }
  0x17   : > { %6611 = vmatpush.bf16.msra.mxu3 %v6559_v0  ;;  %999 = vmatpush.bf16.msra.mxu0 %v6559_v0  ;;  %s6541_s13 = sshll.u32 %s220_s10, 7  ;;  %v6581_v4 = vld [vmem:[%s8575_s1 + $0x38] sm:$0xff]  ;;  %v608_v13 = vld [vmem:[#allocation2 + $0x30] sm:$0xf]  ;;  %vm6838_vm4 = vmor %vm257_vm0, %vm258_vm2  ;;  %vm589_vm5 = vcmask 253952   ;;  %v6725_v24 = vmov 0  }
  0x18   : > { %s6826_s18 = scalar_lea.vmem %s8574_s0, %s6541_s13  ;;  %6657 = vset.pattern.permute.xlu0 %v6725_v24  ;;  %vm6848_vm6 = vmand %vm581_vm1, %vm582_vm3  ;;  %v636_v28 = vld [vmem:[#allocation2 + $0x60] sm:$0xf]  ;;  %6658 = vset.pattern.permute.xlu1 %v6725_v24  ;;  %v640_v34 = vld [vmem:[#allocation2 + $0x68] sm:$0x1]  ;;  %699 = vst.msk [vmem:[#allocation2] sm:$0xf] %vm581_vm1, %v6725_v24 }
  0x19   : > { %v231_v5 = vld [vmem:[%s6826_s18 + $0x18] sm:$0xf]  ;;  %v232_v6 = vld [vmem:[%s6826_s18 + $0x1c] sm:$0xf]  ;;  %v233_v36 = vld [vmem:[%s6826_s18 + $0x20] sm:$0xf] }
  0x1a   : > { %6612 = vmatpush.bf16.msra.mxu1 %v6558_v1  ;;  %6613 = vmatpush.bf16.msra.mxu2 %v6558_v1  ;;  %v239_v7 = vld [vmem:[%s6826_s18 + $0x38] sm:$0xf]  ;;  %v312_v8 = vshrl.u32 %v231_v5, 16  ;;  %v315_v9 = vshll.u32 %v231_v5, 16  ;;  %v320_v10 = vshrl.u32 %v232_v6, 16  ;;  %v323_v11 = vshll.u32 %v232_v6, 16  ;;  %vm6859_vm7 = vmand %vm589_vm5, %vm257_vm0 }
  0x1b   : > { %v240_v12 = vld [vmem:[%s6826_s18 + $0x3c] sm:$0xf]  ;;  %6614 = vmatpush.bf16.msra.mxu3 %v6558_v1  ;;  %v380_v14 = vshrl.u32 %v239_v7, 16  ;;  %v383_v15 = vshll.u32 %v239_v7, 16  ;;  %v247_v18 = vld [vmem:[%s6826_s18 + $0x58] sm:$0xf]  ;;  %1000 = vmatpush.bf16.msra.mxu0 %v6558_v1  ;;  %vm7036_vm9 = vmand %vm589_vm5, %vm582_vm3 }
  0x1c   : > { %v388_v16 = vshrl.u32 %v240_v12, 16  ;;  %v391_v17 = vshll.u32 %v240_v12, 16  ;;  %v314_v20 = vrot.slane %v312_v8, 7  ;;  %v6842_v21 = vrot.slane %v320_v10, 7  ;;  %v248_v22 = vld [vmem:[%s6826_s18 + $0x5c] sm:$0xf] }
  0x1d   : > { %v448_v23 = vshrl.u32 %v247_v18, 16  ;;  %v382_v26 = vrot.slane %v380_v14, 7  ;;  %v451_v29 = vshll.u32 %v247_v18, 16  ;;  %v456_v30 = vshrl.u32 %v248_v22, 16  ;;  %v664_v41 = vld [vmem:[#allocation2 + $0x90] sm:$0xf] }
  0x1e   : > { %1668 = vmatpush.bf16.msrb.mxu1 %v6561_v2  ;;  %2177 = vmatpush.bf16.msrb.mxu2 %v6563_v3  ;;  %v390_v27 = vrot.slane %v388_v16, 7  ;;  %v317_v31 = vor.u32 %v315_v9, %v314_v20  ;;  %v318_v32 = vrot.slane %v314_v20, 4  ;;  %v325_v33 = vor.u32 %v323_v11, %v6842_v21  ;;  %v668_v42 = vld [vmem:[#allocation2 + $0x98] sm:$0x1]  ;;  %v234_v48 = vld [vmem:[%s6826_s18 + $0x24] sm:$0xf] }
  0x1f   : > { %2539 = vmatpush.bf16.msrb.mxu3 %v6581_v4  ;;  %v459_v35 = vshll.u32 %v248_v22, 16  ;;  %v385_v37 = vor.u32 %v383_v15, %v382_v26  ;;  %v386_v38 = vrot.slane %v382_v26, 4  ;;  %v450_v46 = vrot.slane %v448_v23, 7  ;;  %v241_v53 = vld [vmem:[%s6826_s18 + $0x40] sm:$0xf]  ;;  %s216_s10 = sand.u32 1, %s6715_s21  }
  0x20   : > { %v393_v39 = vor.u32 %v391_v17, %v390_v27  ;;  %v395_v40 = vrot.slane %v390_v27, 4  ;;  %v326_v43 = vsel %vm6838_vm4, %v318_v32, %v325_v33  ;;  %v609_v45 = vsel %vm6848_vm6, %v317_v31, %v608_v13  ;;  %v615_v58 = vld [vmem:[#allocation2 + $0x3c] sm:$0xf]  ;;  %v242_v59 = vld [vmem:[%s6826_s18 + $0x44] sm:$0xf]  ;;  %s6045_s11 = sshll.u32 %s216_s10, 4 }
  0x21   : > { %v458_v47 = vrot.slane %v456_v30, 7  ;;  %610 = vst [vmem:[#allocation2 + $0x30] sm:$0xf] %v609_v45  ;;  %v637_v50 = vsel %vm6848_vm6, %v385_v37, %v636_v28  ;;  %v329_v52 = vshrl.u32 %v233_v36, 16  ;;  %v453_v54 = vor.u32 %v451_v29, %v450_v46  ;;  %v6885_v4 = vld [vmem:[%s6826_s18 + $0x60] sm:$0xf] }
  0x22   : > { %v394_v49 = vsel %vm6838_vm4, %v386_v38, %v393_v39  ;;  %v641_v51 = vsel %vm6859_vm7, %v395_v40, %v640_v34  ;;  %611 = vst.msk [vmem:[#allocation2 + $0x34] sm:$0xf] %vm581_vm1, %v326_v43  ;;  %v454_v55 = vrot.slane %v450_v46, 4  ;;  %v332_v61 = vshll.u32 %v233_v36, 16  ;;  %v643_v14 = vld [vmem:[#allocation2 + $0x6c] sm:$0xf] }
  0x23   : > { %v461_v56 = vor.u32 %v459_v35, %v458_v47  ;;  %v463_v57 = vrot.slane %v458_v47, 4  ;;  %638 = vst [vmem:[#allocation2 + $0x60] sm:$0xf] %v637_v50  ;;  %v331_v60 = vrot.slane %v329_v52, 7  ;;  %v337_v62 = vshrl.u32 %v234_v48, 16  ;;  %v6583_v35 = vld [vmem:[%s8575_s1 + $0x48] sm:$0xff] }
  0x24   : > { %v340_v63 = vshll.u32 %v234_v48, 16  ;;  %639 = vst.msk [vmem:[#allocation2 + $0x64] sm:$0xf] %vm581_vm1, %v394_v49  ;;  %v665_v1 = vsel %vm6848_vm6, %v453_v54, %v664_v41  ;;  %v397_v3 = vshrl.u32 %v241_v53, 16  ;;  %v400_v8 = vshll.u32 %v241_v53, 16  ;;  %3269 = vmatpush.bf16.msrb.mxu0 %v6583_v35  ;;  %s8486_s12 = scalar_lea.vmem [#allocation5], %s6045_s11 }
  0x25   : > { %v462_v0 = vsel %vm6838_vm4, %v454_v55, %v461_v56  ;;  %v669_v2 = vsel %vm6859_vm7, %v463_v57, %v668_v42  ;;  %642 = vst [vmem:[#allocation2 + $0x68] sm:$0x1] %v641_v51  ;;  %v334_v5 = vor.u32 %v332_v61, %v331_v60  ;;  %v335_v6 = vrot.slane %v331_v60, 4  ;;  %v250_v15 = vld [vmem:[%s6826_s18 + $0x64] sm:$0xf]  ;;  %s6608_s13 = sshll.u32 %s6782_s4, 4 }
  0x26   : > { %v6887_v7 = vrot.slane %v337_v62, 7  ;;  %666 = vst [vmem:[#allocation2 + $0x90] sm:$0xf] %v665_v1  ;;  %v399_v9 = vrot.slane %v397_v3, 7  ;;  %v405_v10 = vshrl.u32 %v242_v59, 16  ;;  %v408_v11 = vshll.u32 %v242_v59, 16  ;;  %s5975_s14 = scalar_lea.hbm %s8579_s5, %s6608_s13 }
  0x27   : > { %667 = vst.msk [vmem:[#allocation2 + $0x94] sm:$0xf] %vm581_vm1, %v462_v0  ;;  %v616_v13 = vsel %vm6848_vm6, %v334_v5, %v615_v58  ;;  %v647_v22 = vld [vmem:[#allocation2 + $0x74] sm:$0x1]  ;;  %v707_v27 = vld [vmem:[#allocation2] sm:$0x1] }
  0x28   : > { %v342_v12 = vor.u32 %v340_v63, %v6887_v7  ;;  %v719_v16 = vld [vmem:[#allocation2 + $0x30] sm:$0x1]  ;;  %670 = vst [vmem:[#allocation2 + $0x98] sm:$0x1] %v669_v2  ;;  %v402_v17 = vor.u32 %v400_v8, %v399_v9  ;;  %v403_v18 = vrot.slane %v399_v9, 4  ;;  %v407_v20 = vrot.slane %v405_v10, 7 }
  0x29   : > { %v720_v23 = vsel %vm6859_vm7, 0, %v719_v16  ;;  %617 = vst [vmem:[#allocation2 + $0x3c] sm:$0xf] %v616_v13  ;;  %v465_v28 = vshrl.u32 %v6885_v4, 16  ;;  %v473_v34 = vshrl.u32 %v250_v15, 16  ;;  %vm944_vm8 = vcmask 261120  }
  0x2a   : > { %v343_v26 = vsel %vm6838_vm4, %v335_v6, %v342_v12  ;;  %721 = vst [vmem:[#allocation2 + $0x30] sm:$0x1] %v720_v23  ;;  %v731_v29 = vld [vmem:[#allocation2 + $0x60] sm:$0x1]  ;;  %v410_v30 = vor.u32 %v408_v11, %v407_v20  ;;  %v412_v31 = vrot.slane %v407_v20, 4  ;;  %v644_v32 = vsel %vm6848_vm6, %v402_v17, %v643_v14  ;;  %s5976_s15 = sshll.u32 %s8486_s12, 4  ;;  %s5977_s15 = int_to_ptr.vmem [resolvable:$true] %s5976_s15 }
  0x2b   : > { %v732_v33 = vsel %vm6859_vm7, 0, %v731_v29  ;;  %618 = vst.msk [vmem:[#allocation2 + $0x40] sm:$0xf] %vm581_vm1, %v343_v26  ;;  %v468_v37 = vshll.u32 %v6885_v4, 16  ;;  %v708_v40 = vsel %vm6859_vm7, 0, %v707_v27  ;;  %v467_v41 = vrot.slane %v465_v28, 7 }
  0x2c   : > { %733 = vst [vmem:[#allocation2 + $0x60] sm:$0x1] %v732_v33  ;;  %v411_v36 = vsel %vm6838_vm4, %v403_v18, %v410_v30  ;;  %v648_v39 = vsel %vm6859_vm7, %v412_v31, %v647_v22  ;;  %v476_v43 = vshll.u32 %v250_v15, 16  ;;  %v235_v45 = vld [vmem:[%s6826_s18 + $0x28] sm:$0xf]  ;;  %v475_v46 = vrot.slane %v473_v34, 7 }
  0x2d   : > { %v743_v38 = vld [vmem:[#allocation2 + $0x90] sm:$0x1]  ;;  %645 = vst [vmem:[#allocation2 + $0x6c] sm:$0xf] %v644_v32  ;;  %v236_v47 = vld [vmem:[%s6826_s18 + $0x2c] sm:$0xf]  ;;  %v470_v56 = vor.u32 %v468_v37, %v467_v41 }
  0x2e   : > { %v744_v42 = vsel %vm6859_vm7, 0, %v743_v38  ;;  %646 = vst.msk [vmem:[#allocation2 + $0x70] sm:$0xf] %vm581_vm1, %v411_v36  ;;  %v346_v48 = vshrl.u32 %v235_v45, 16  ;;  %v349_v50 = vshll.u32 %v235_v45, 16  ;;  %v354_v51 = vshrl.u32 %v236_v47, 16 }
  0x2f   : > { %745 = vst [vmem:[#allocation2 + $0x90] sm:$0x1] %v744_v42  ;;  %v357_v55 = vshll.u32 %v236_v47, 16  ;;  %v471_v57 = vrot.slane %v467_v41, 4  ;;  %v671_v58 = vld [vmem:[#allocation2 + $0x9c] sm:$0xf]  ;;  %v478_v61 = vor.u32 %v476_v43, %v475_v46 }
  0x30   : > { %v722_v49 = vld [vmem:[#allocation2 + $0x3c] sm:$0x1]  ;;  %649 = vst [vmem:[#allocation2 + $0x74] sm:$0x1] %v648_v39  ;;  %v348_v54 = vrot.slane %v346_v48, 7  ;;  %v6923_v59 = vrot.slane %v354_v51, 7  ;;  %v672_v12 = vsel %vm6848_vm6, %v470_v56, %v671_v58 }
  0x31   : > { %v6546_v52 = vld [vmem:[#allocation2 + $0x30] sm:$0xff]  ;;  %v723_v53 = vsel %vm6859_vm7, 0, %v722_v49  ;;  %700 = vst.msk [vmem:[#allocation2 + $0x4] sm:$0xf] %vm581_vm1, %v6725_v24  ;;  %v480_v62 = vrot.slane %v475_v46, 4  ;;  %v479_v16 = vsel %vm6838_vm4, %v471_v57, %v478_v61  ;;  %v6562_v27 = vld [vmem:[%s8575_s1 + $0x20] sm:$0xff] }
  0x32   : > { %724 = vst [vmem:[#allocation2 + $0x3c] sm:$0x1] %v723_v53  ;;  %6124 = vmatmul.msk.bf16.vlgmr.msra.gmra.mxu1 %vm944_vm8, %v6546_v52  ;;  %v675_v63 = vld [vmem:[#allocation2 + $0xa4] sm:$0x1]  ;;  %v243_v0 = vld [vmem:[%s6826_s18 + $0x48] sm:$0xf]  ;;  %v351_v6 = vor.u32 %v349_v50, %v348_v54  ;;  %v359_v8 = vor.u32 %v357_v55, %v6923_v59  ;;  %2178 = vmatpush.bf16.msrb.mxu2 %v6562_v27 }
  0x33   : > { %v6550_v60 = vld [vmem:[#allocation2 + $0x60] sm:$0xff]  ;;  %709 = vst [vmem:[#allocation2] sm:$0x1] %v708_v40  ;;  %v352_v2 = vrot.slane %v348_v54, 4  ;;  %v622_v3 = vld [vmem:[#allocation2 + $0x48] sm:$0xf]  ;;  %v676_v18 = vsel %vm6859_vm7, %v480_v62, %v675_v63 }
  0x34   : > { %v734_v1 = vld [vmem:[#allocation2 + $0x6c] sm:$0x1]  ;;  %702 = vst.msk [vmem:[#allocation2 + $0x8] sm:$0x1] %vm589_vm5, %v6725_v24  ;;  %v414_v4 = vshrl.u32 %v243_v0, 16  ;;  %6128 = vmatmul.msk.bf16.vlgmr.msra.gmra.mxu2 %vm944_vm8, %v6550_v60  ;;  %v417_v10 = vshll.u32 %v243_v0, 16 }
  0x35   : > { %v735_v5 = vsel %vm6859_vm7, 0, %v734_v1  ;;  %704 = vst.msk [vmem:[#allocation2 + $0xcc] sm:$0xf] %vm581_vm1, %v6725_v24  ;;  %v244_v9 = vld [vmem:[%s6826_s18 + $0x4c] sm:$0xf]  ;;  %v6560_v26 = vld [vmem:[%s8575_s1 + $0x10] sm:$0xff]  ;;  %v360_v28 = vsel %vm6838_vm4, %v352_v2, %v359_v8 }
  0x36   : > { %v6554_v11 = vld [vmem:[#allocation2 + $0x90] sm:$0xff]  ;;  %736 = vst [vmem:[#allocation2 + $0x6c] sm:$0x1] %v735_v5  ;;  %v416_v13 = vrot.slane %v414_v4, 7  ;;  %v422_v14 = vshrl.u32 %v244_v9, 16  ;;  %v425_v15 = vshll.u32 %v244_v9, 16  ;;  %1669 = vmatpush.bf16.msrb.mxu1 %v6560_v26 }
  0x37   : > { %705 = vst.msk [vmem:[#allocation2 + $0xd0] sm:$0xf] %vm581_vm1, %v6725_v24  ;;  %v650_v17 = vld [vmem:[#allocation2 + $0x78] sm:$0xf]  ;;  %6132 = vmatmul.msk.bf16.vlgmr.msra.gmra.mxu3 %vm944_vm8, %v6554_v11  ;;  %v654_v29 = vld [vmem:[#allocation2 + $0x80] sm:$0x1] }
  0x38   : > { %706 = vst.msk [vmem:[#allocation2 + $0xd4] sm:$0x1] %vm589_vm5, %v6725_v24  ;;  %v419_v20 = vor.u32 %v417_v10, %v416_v13  ;;  %v420_v22 = vrot.slane %v416_v13, 4  ;;  %v424_v23 = vrot.slane %v422_v14, 7  ;;  %v623_v24 = vsel %vm6848_vm6, %v351_v6, %v622_v3  ;;  %v225_v30 = vld [vmem:[%s6826_s18] sm:$0xf] }
  0x39   : > { %673 = vst [vmem:[#allocation2 + $0x9c] sm:$0xf] %v672_v12  ;;  %v226_v35 = vld [vmem:[%s6826_s18 + $0x4] sm:$0xf]  ;;  %v261_v36 = vshrl.u32 %v225_v30, 16  ;;  %v264_v37 = vshll.u32 %v225_v30, 16 }
  0x3a   : > { %v6542_v31 = vld [vmem:[#allocation2] sm:$0xff]  ;;  %674 = vst.msk [vmem:[#allocation2 + $0xa0] sm:$0xf] %vm581_vm1, %v479_v16  ;;  %v427_v32 = vor.u32 %v425_v15, %v424_v23  ;;  %v429_v33 = vrot.slane %v424_v23, 4  ;;  %v651_v34 = vsel %vm6848_vm6, %v419_v20, %v650_v17  ;;  %v269_v38 = vshrl.u32 %v226_v35, 16  ;;  %v6580_v51 = vld [vmem:[%s8575_s1 + $0x30] sm:$0xff] }
  0x3b   : > { %677 = vst [vmem:[#allocation2 + $0xa4] sm:$0x1] %v676_v18  ;;  %v272_v39 = vshll.u32 %v226_v35, 16  ;;  %6120 = vmatmul.msk.bf16.vlgmr.msra.gmra.mxu0 %vm944_vm8, %v6542_v31  ;;  %v584_v41 = vld [vmem:[#allocation2 + $0xc] sm:$0xf]  ;;  %v6547_v43 = vld [vmem:[#allocation2 + $0x3c] sm:$0xff]  ;;  %2540 = vmatpush.bf16.msrb.mxu3 %v6580_v51 }
  0x3c   : > { %624 = vst [vmem:[#allocation2 + $0x48] sm:$0xf] %v623_v24  ;;  %v428_v40 = vsel %vm6838_vm4, %v420_v22, %v427_v32  ;;  %v251_v42 = vld [vmem:[%s6826_s18 + $0x68] sm:$0xf]  ;;  %v655_v45 = vsel %vm6859_vm7, %v429_v33, %v654_v29  ;;  %v263_v46 = vrot.slane %v261_v36, 7  ;;  %v6969_v47 = vrot.slane %v269_v38, 7 }
  0x3d   : > { %625 = vst.msk [vmem:[#allocation2 + $0x4c] sm:$0xf] %vm581_vm1, %v360_v28  ;;  %v482_v48 = vshrl.u32 %v251_v42, 16  ;;  %v252_v49 = vld [vmem:[%s6826_s18 + $0x6c] sm:$0xf]  ;;  %v485_v50 = vshll.u32 %v251_v42, 16 }
  0x3e   : > { %652 = vst [vmem:[#allocation2 + $0x78] sm:$0xf] %v651_v34  ;;  %v6551_v52 = vld [vmem:[#allocation2 + $0x6c] sm:$0xff]  ;;  %v266_v53 = vor.u32 %v264_v37, %v263_v46  ;;  %v267_v54 = vrot.slane %v263_v46, 4  ;;  %v274_v55 = vor.u32 %v272_v39, %v6969_v47  ;;  %v678_v56 = vld [vmem:[#allocation2 + $0xa8] sm:$0xf] }
  0x3f   : > { %653 = vst.msk [vmem:[#allocation2 + $0x7c] sm:$0xf] %vm581_vm1, %v428_v40  ;;  %v484_v58 = vrot.slane %v482_v48, 7  ;;  %v490_v60 = vshrl.u32 %v252_v49, 16  ;;  %v493_v0 = vshll.u32 %v252_v49, 16  ;;  %v6582_v46 = vld [vmem:[%s8575_s1 + $0x40] sm:$0xff] }
  0x40   : > { %v746_v57 = vld [vmem:[#allocation2 + $0x9c] sm:$0x1]  ;;  %656 = vst [vmem:[#allocation2 + $0x80] sm:$0x1] %v655_v45  ;;  %v275_v62 = vsel %vm6838_vm4, %v267_v54, %v274_v55  ;;  %v585_v63 = vsel %vm6848_vm6, %v266_v53, %v584_v41  ;;  %v682_v1 = vld [vmem:[#allocation2 + $0xb0] sm:$0x1]  ;;  %3270 = vmatpush.bf16.msrb.mxu0 %v6582_v46 }
  0x41   : > { %v747_v61 = vsel %vm6859_vm7, 0, %v746_v57  ;;  %v237_v2 = vld [vmem:[%s6826_s18 + $0x30] sm:$0xf]  ;;  %v487_v3 = vor.u32 %v485_v50, %v484_v58  ;;  %v488_v4 = vrot.slane %v484_v58, 4  ;;  %v492_v5 = vrot.slane %v490_v60, 7  ;;  %s5978_s16 = sshll.u32 %s5975_s14, 4  ;;  %s5979_s16 = int_to_ptr.hbm [resolvable:$true] %s5978_s16 }
  0x42   : > { %748 = vst [vmem:[#allocation2 + $0x9c] sm:$0x1] %v747_v61  ;;  %v238_v6 = vld [vmem:[%s6826_s18 + $0x34] sm:$0xf]  ;;  %6125 = vmatmul.msk.bf16.gmra.mxu1 %vm944_vm8, %v6547_v43  ;;  %v363_v9 = vshrl.u32 %v237_v2, 16  ;;  %v366_v10 = vshll.u32 %v237_v2, 16 }
  0x43   : > { %v725_v8 = vld [vmem:[#allocation2 + $0x48] sm:$0x1]  ;;  %586 = vst [vmem:[#allocation2 + $0xc] sm:$0xf] %v585_v63  ;;  %v495_v12 = vor.u32 %v493_v0, %v492_v5  ;;  %v497_v13 = vrot.slane %v492_v5, 4  ;;  %v679_v14 = vsel %vm6848_vm6, %v487_v3, %v678_v56  ;;  %v371_v18 = vshrl.u32 %v238_v6, 16 }
  0x44   : > { %v726_v11 = vsel %vm6859_vm7, 0, %v725_v8  ;;  %588 = vst.msk [vmem:[#allocation2 + $0x10] sm:$0xf] %vm581_vm1, %v275_v62  ;;  %v629_v15 = vld [vmem:[#allocation2 + $0x54] sm:$0xf]  ;;  %6129 = vmatmul.msk.bf16.gmra.mxu2 %vm944_vm8, %v6551_v52  ;;  %v365_v17 = vrot.slane %v363_v9, 7 }
  0x45   : > { %727 = vst [vmem:[#allocation2 + $0x48] sm:$0x1] %v726_v11  ;;  %v737_v16 = vld [vmem:[#allocation2 + $0x78] sm:$0x1]  ;;  %v496_v22 = vsel %vm6838_vm4, %v488_v4, %v495_v12  ;;  %v683_v23 = vsel %vm6859_vm7, %v497_v13, %v682_v1  ;;  %v374_v26 = vshll.u32 %v238_v6, 16  ;;  %v6999_v29 = vrot.slane %v371_v18, 7 }
  0x46   : > { %v738_v20 = vsel %vm6859_vm7, 0, %v737_v16  ;;  %680 = vst [vmem:[#allocation2 + $0xa8] sm:$0xf] %v679_v14  ;;  %v245_v27 = vld [vmem:[%s6826_s18 + $0x50] sm:$0xf]  ;;  %v368_v28 = vor.u32 %v366_v10, %v365_v17  ;;  %v369_v24 = vrot.slane %v365_v17, 4 }
  0x47   : > { %739 = vst [vmem:[#allocation2 + $0x78] sm:$0x1] %v738_v20  ;;  %v246_v30 = vld [vmem:[%s6826_s18 + $0x54] sm:$0xf]  ;;  %v431_v31 = vshrl.u32 %v245_v27, 16  ;;  %v434_v32 = vshll.u32 %v245_v27, 16  ;;  %v376_v36 = vor.u32 %v374_v26, %v6999_v29 }
  0x48   : > { %681 = vst.msk [vmem:[#allocation2 + $0xac] sm:$0xf] %vm581_vm1, %v496_v22  ;;  %v439_v33 = vshrl.u32 %v246_v30, 16  ;;  %v442_v34 = vshll.u32 %v246_v30, 16  ;;  %v630_v37 = vsel %vm6848_vm6, %v368_v28, %v629_v15  ;;  %v657_v43 = vld [vmem:[#allocation2 + $0x84] sm:$0xf] }
  0x49   : > { %v6555_v35 = vld [vmem:[#allocation2 + $0x9c] sm:$0xff]  ;;  %684 = vst [vmem:[#allocation2 + $0xb0] sm:$0x1] %v683_v23  ;;  %v433_v39 = vrot.slane %v431_v31, 7  ;;  %v377_v42 = vsel %vm6838_vm4, %v369_v24, %v376_v36  ;;  %v661_v45 = vld [vmem:[#allocation2 + $0x8c] sm:$0x1] }
  0x4a   : > { %v710_v38 = vld [vmem:[#allocation2 + $0xc] sm:$0x1]  ;;  %631 = vst [vmem:[#allocation2 + $0x54] sm:$0xf] %v630_v37  ;;  %v441_v40 = vrot.slane %v439_v33, 7  ;;  %6133 = vmatmul.msk.bf16.gmra.mxu3 %vm944_vm8, %v6555_v35  ;;  %v6585_v37 = vld [vmem:[%s8575_s1 + $0x58] sm:$0xff] }
  0x4b   : > { %v711_v41 = vsel %vm6859_vm7, 0, %v710_v38  ;;  %v436_v48 = vor.u32 %v434_v32, %v433_v39  ;;  %v437_v49 = vrot.slane %v433_v39, 4  ;;  %v227_v52 = vld [vmem:[%s6826_s18 + $0x8] sm:$0xf]  ;;  %632 = vst.msk [vmem:[#allocation2 + $0x58] sm:$0xf] %vm581_vm1, %v377_v42  ;;  %3775 = vmatpush.bf16.msra.mxu1 %v6585_v37 }
  0x4c   : > { %712 = vst [vmem:[#allocation2 + $0xc] sm:$0x1] %v711_v41  ;;  %v444_v50 = vor.u32 %v442_v34, %v441_v40  ;;  %v446_v51 = vrot.slane %v441_v40, 4  ;;  %v228_v54 = vld [vmem:[%s6826_s18 + $0xc] sm:$0xf]  ;;  %v278_v63 = vshrl.u32 %v227_v52, 16 }
  0x4d   : > { %v749_v53 = vld [vmem:[#allocation2 + $0xa8] sm:$0x1]  ;;  %v658_v58 = vsel %vm6848_vm6, %v436_v48, %v657_v43  ;;  %v253_v61 = vld [vmem:[%s6826_s18 + $0x70] sm:$0xf]  ;;  %v281_v0 = vshll.u32 %v227_v52, 16  ;;  %v286_v1 = vshrl.u32 %v228_v54, 16 }
  0x4e   : > { %v6548_v55 = vld [vmem:[#allocation2 + $0x48] sm:$0xff]  ;;  %v750_v56 = vsel %vm6859_vm7, 0, %v749_v53  ;;  %v445_v57 = vsel %vm6838_vm4, %v437_v49, %v444_v50  ;;  %v662_v60 = vsel %vm6859_vm7, %v446_v51, %v661_v45  ;;  %v6552_v62 = vld [vmem:[#allocation2 + $0x78] sm:$0xff]  ;;  %v289_v2 = vshll.u32 %v228_v54, 16  ;;  %659 = vst [vmem:[#allocation2 + $0x84] sm:$0xf] %v658_v58 }
  0x4f   : > { %751 = vst [vmem:[#allocation2 + $0xa8] sm:$0x1] %v750_v56  ;;  %v594_v3 = vld [vmem:[#allocation2 + $0x18] sm:$0xf]  ;;  %v254_v4 = vld [vmem:[%s6826_s18 + $0x74] sm:$0xf] }
  0x50   : > { %v499_v5 = vshrl.u32 %v253_v61, 16  ;;  %v502_v6 = vshll.u32 %v253_v61, 16  ;;  %660 = vst.msk [vmem:[#allocation2 + $0x88] sm:$0xf] %vm581_vm1, %v445_v57  ;;  %v280_v9 = vrot.slane %v278_v63, 7  ;;  %v7028_v10 = vrot.slane %v286_v1, 7 }
  0x51   : > { %v728_v8 = vld [vmem:[#allocation2 + $0x54] sm:$0x1]  ;;  %663 = vst [vmem:[#allocation2 + $0x8c] sm:$0x1] %v662_v60  ;;  %v507_v13 = vshrl.u32 %v254_v4, 16  ;;  %v510_v14 = vshll.u32 %v254_v4, 16 }
  0x52   : > { %v729_v11 = vsel %vm6859_vm7, 0, %v728_v8  ;;  %v501_v12 = vrot.slane %v499_v5, 7  ;;  %6126 = vmatmul.msk.bf16.gmra.mxu1 %vm944_vm8, %v6548_v55  ;;  %v283_v16 = vor.u32 %v281_v0, %v280_v9  ;;  %v284_v17 = vrot.slane %v280_v9, 4  ;;  %v685_v27 = vld [vmem:[#allocation2 + $0xb4] sm:$0xf]  ;;  %v6603_v45 = vld [vmem:[%s8575_s1 + $0x68] sm:$0xff] }
  0x53   : > { %v6543_v15 = vld [vmem:[#allocation2 + $0xc] sm:$0xff]  ;;  %730 = vst [vmem:[#allocation2 + $0x54] sm:$0x1] %v729_v11  ;;  %v291_v18 = vor.u32 %v289_v2, %v7028_v10  ;;  %v509_v26 = vrot.slane %v507_v13, 7  ;;  %v689_v30 = vld [vmem:[#allocation2 + $0xbc] sm:$0x1]  ;;  %4138 = vmatpush.bf16.msra.mxu2 %v6603_v45 }
  0x54   : > { %v504_v22 = vor.u32 %v502_v6, %v501_v12  ;;  %v505_v23 = vrot.slane %v501_v12, 4  ;;  %6130 = vmatmul.msk.bf16.gmra.mxu2 %vm944_vm8, %v6552_v62  ;;  %6121 = vmatmul.msk.bf16.gmra.mxu0 %vm944_vm8, %v6543_v15  ;;  %v595_v24 = vsel %vm6848_vm6, %v283_v16, %v594_v3  ;;  %v762_v31 = vld [vmem:[#allocation2 + $0x8] sm:$0x1]  ;;  %v1114_v32 = vld [vmem:[#allocation2] sm:$0xf]  ;;  %v276_v51 = vrot.slane %v6969_v47, 4 }
  0x55   : > { %v292_v28 = vsel %vm6838_vm4, %v284_v17, %v291_v18  ;;  %596 = vst [vmem:[#allocation2 + $0x18] sm:$0xf] %v595_v24  ;;  %v512_v33 = vor.u32 %v510_v14, %v509_v26  ;;  %v514_v34 = vrot.slane %v509_v26, 4  ;;  %v1115_v36 = vld [vmem:[#allocation2 + $0x4] sm:$0xf]  ;;  %v763_v43 = vsel %vm7036_vm9, 0, %v762_v31 }
  0x56   : > { %v686_v35 = vsel %vm6848_vm6, %v504_v22, %v685_v27  ;;  %v6556_v38 = vld [vmem:[#allocation2 + $0xa8] sm:$0xff]  ;;  %v740_v39 = vld [vmem:[#allocation2 + $0x84] sm:$0x1]  ;;  %597 = vst.msk [vmem:[#allocation2 + $0x1c] sm:$0xf] %vm581_vm1, %v292_v28  ;;  %v1166_v46 = vshrl.u32 %v1114_v32, 16 }
  0x57   : > { %v741_v40 = vsel %vm6859_vm7, 0, %v740_v39  ;;  %v513_v41 = vsel %vm6838_vm4, %v505_v23, %v512_v33  ;;  %687 = vst [vmem:[#allocation2 + $0xb4] sm:$0xf] %v686_v35  ;;  %v690_v42 = vsel %vm6859_vm7, %v514_v34, %v689_v30  ;;  %v1169_v48 = vshll.u32 %v1114_v32, 16  ;;  %v1847_v56 = vld [vmem:[#allocation2] sm:$0xe] }
  0x58   : > { %742 = vst [vmem:[#allocation2 + $0x84] sm:$0x1] %v741_v40  ;;  %v1175_v49 = vshll.u32 %v1115_v36, 16  ;;  %v1179_v50 = vshrl.u32 %v1115_v36, 16  ;;  %vm1162_vm10 = vsmask.f32 3328 }
  0x59   : > { %688 = vst.msk [vmem:[#allocation2 + $0xb8] sm:$0xf] %vm581_vm1, %v513_v41  ;;  %v1168_v52 = vrot.slane %v1166_v46, 4  ;;  %v1171_v53 = vrot.slane %v1169_v48, 5  ;;  %vm1163_vm11 = vsmask.f32 7440 }
  0x5a   : > { %6134 = vmatmul.msk.bf16.gmra.mxu3 %vm944_vm8, %v6556_v38  ;;  %691 = vst [vmem:[#allocation2 + $0xbc] sm:$0x1] %v690_v42  ;;  %v7066_v54 = vrot.slane %v1175_v49, 5  ;;  %v1181_v55 = vrot.slane %v1179_v50, 4  ;;  %v1848_v47 = vld [vmem:[#allocation2 + $0x4] sm:$0xf]  ;;  %vm7094_vm15 = vmor %vm1162_vm10, %vm1163_vm11 }
  0x5b   : > { %764 = vst [vmem:[#allocation2 + $0x8] sm:$0x1] %v763_v43  ;;  %v1172_v58 = vor.u32 %v1171_v53, %v1168_v52  ;;  %v229_v60 = vld [vmem:[%s6826_s18 + $0x10] sm:$0xf]  ;;  %v6549_v61 = vld [vmem:[#allocation2 + $0x54] sm:$0xff]  ;;  %vm1943_vm12 = vcmask 1042432  }
  0x5c   : > { %v713_v57 = vld [vmem:[#allocation2 + $0x18] sm:$0x1]  ;;  %v1182_v63 = vor.u32 %v1181_v55, %v7066_v54  ;;  %v230_v0 = vld [vmem:[%s6826_s18 + $0x14] sm:$0xf]  ;;  %v295_v1 = vshrl.u32 %v229_v60, 16  ;;  %v298_v2 = vshll.u32 %v229_v60, 16 }
  0x5d   : > { %v714_v62 = vsel %vm6859_vm7, 0, %v713_v57  ;;  %vm1944_vm13 = vcmask 1046532   ;;  %v6164_v5 = vrot.slane %v1847_v56, 9  ;;  %v1948_v6 = vrot.slane %v1848_v47, 5  ;;  %v601_v9 = vld [vmem:[#allocation2 + $0x24] sm:$0xf] }
  0x5e   : > { %715 = vst [vmem:[#allocation2 + $0x18] sm:$0x1] %v714_v62  ;;  %v752_v3 = vld [vmem:[#allocation2 + $0xb4] sm:$0x1]  ;;  %v297_v8 = vrot.slane %v295_v1, 7  ;;  %v303_v12 = vshrl.u32 %v230_v0, 16  ;;  %vm7085_vm14 = vmor %vm1943_vm12, %vm1944_vm13 }
  0x5f   : > { %v753_v4 = vsel %vm6859_vm7, 0, %v752_v3  ;;  %v6553_v11 = vld [vmem:[#allocation2 + $0x84] sm:$0xff]  ;;  %v306_v13 = vshll.u32 %v230_v0, 16  ;;  %v6605_v14 = vld [vmem:[%s8575_s1 + $0x78] sm:$0xff]  ;;  %v1173_v15 = vrot.slane %v1172_v58, 4  ;;  %v1183_v16 = vrot.slane %v1182_v63, 4 }
  0x60   : > { %754 = vst [vmem:[#allocation2 + $0xb4] sm:$0x1] %v753_v4  ;;  %v300_v17 = vor.u32 %v298_v2, %v297_v8  ;;  %v591_v18 = vld [vmem:[#allocation2 + $0x14] sm:$0x1]  ;;  %v1117_v22 = vld [vmem:[#allocation2 + $0xc] sm:$0xf]  ;;  %4868 = vmatpush.bf16.msra.mxu3 %v6605_v14  ;;  %v1949_v41 = vsel %vm7085_vm14, %v6164_v5, %v1948_v6 }
  0x61   : > { %v301_v27 = vrot.slane %v297_v8, 4  ;;  %v7079_v28 = vrot.slane %v303_v12, 7  ;;  %v592_v24 = vsel %vm6859_vm7, %v276_v51, %v591_v18  ;;  %v1950_v32 = vrot.slane %v1948_v6, 4  ;;  %v1118_v37 = vld [vmem:[#allocation2 + $0x10] sm:$0xf]  ;;  %v6607_v62 = vld [vmem:[%s8575_s1 + $0x88] sm:$0xff] }
  0x62   : > { %6127 = vmatmul.msk.bf16.gmra.mxu1 %vm944_vm8, %v6549_v61  ;;  %v1116_v23 = vld [vmem:[#allocation2 + $0x8] sm:$0x1]  ;;  %v602_v34 = vsel %vm6848_vm6, %v300_v17, %v601_v9  ;;  %593 = vst [vmem:[#allocation2 + $0x14] sm:$0x1] %v592_v24  ;;  %v1190_v40 = vshrl.u32 %v1117_v22, 16  ;;  %v1193_v43 = vshll.u32 %v1117_v22, 16  ;;  %v1178_v46 = vsel %vm7094_vm15, %v1173_v15, %v7066_v54  ;;  %5374 = vmatpush.bf16.msra.mxu0 %v6607_v62 }
  0x63   : > { %v1849_v26 = vld [vmem:[#allocation2 + $0x8] sm:$0x1]  ;;  %v1185_v30 = vshll.u32 %v1116_v23, 16  ;;  %v308_v36 = vor.u32 %v306_v13, %v7079_v28  ;;  %603 = vst [vmem:[#allocation2 + $0x24] sm:$0xf] %v602_v34  ;;  %v1199_v50 = vshll.u32 %v1118_v37, 16  ;;  %v2063_v55 = vunpack.c.l.b16 %v1949_v41 }
  0x64   : > { %v1951_v33 = vrot.slane %v1849_v26, 5  ;;  %6131 = vmatmul.msk.bf16.gmra.mxu2 %vm944_vm8, %v6553_v11  ;;  %v1203_v51 = vshrl.u32 %v1118_v37, 16  ;;  %v2718_v52 = vld [vmem:[#allocation2 + $0xc] sm:$0xf]  ;;  %v293_v53 = vrot.slane %v7028_v10, 4  ;;  %v1192_v56 = vrot.slane %v1190_v40, 4 }
  0x65   : > { %v6544_v38 = vld [vmem:[#allocation2 + $0x18] sm:$0xff]  ;;  %v1187_v39 = vrot.slane %v1185_v30, 5  ;;  %v309_v42 = vsel %vm6838_vm4, %v301_v27, %v308_v36  ;;  %v2719_v57 = vld [vmem:[#allocation2 + $0x10] sm:$0xf]  ;;  %v1554_v58 = vunpack.c.l.b16 %v1178_v46  ;;  %v1195_v61 = vrot.slane %v1193_v43, 5  ;;  %s5964_s17 = scalar_lea.sflag [#allocation6], %s216_s10 }
  0x66   : > { %6122 = vmatmul.msk.bf16.gmra.mxu0 %vm944_vm8, %v6544_v38  ;;  %v1952_v49 = vsel %vm7085_vm14, %v1950_v32, %v1951_v33  ;;  %604 = vst.msk [vmem:[#allocation2 + $0x28] sm:$0xf] %vm581_vm1, %v309_v42  ;;  %v598_v63 = vld [vmem:[#allocation2 + $0x20] sm:$0x1]  ;;  %v7119_v10 = vrot.slane %v1199_v50, 5  ;;  %v2767_v2 = vshrl.u32 %v2718_v52, 16 }
  0x67   : > { %v6557_v45 = vld [vmem:[#allocation2 + $0xb4] sm:$0xff]  ;;  %v1188_v48 = vsel %vm7094_vm15, %v1183_v16, %v1187_v39  ;;  %v2064_v47 = vunpack.c.l.b16 %v1952_v49  ;;  %v2770_v3 = vshll.u32 %v2718_v52, 16  ;;  %v1205_v5 = vrot.slane %v1203_v51, 4  ;;  %v1851_v13 = vld [vmem:[#allocation2 + $0x10] sm:$0xf]  ;;  %s6675_s19 = sshra.s32 %s5979_s16, 4  ;;  %s6676_s19 = int_to_ptr.hbm [resolvable:$true] %s6675_s19 }
  0x68   : > { %v1555_v54 = vunpack.c.l.b16 %v1188_v48  ;;  %v2776_v6 = vshll.u32 %v2719_v57, 16  ;;  %v2780_v8 = vshrl.u32 %v2719_v57, 16  ;;  %v599_v9 = vsel %vm6859_vm7, %v293_v53, %v598_v63  ;;  %v1850_v15 = vld [vmem:[#allocation2 + $0xc] sm:$0xe]  ;;  %v1120_v24 = vld [vmem:[#allocation2 + $0x18] sm:$0xf]  ;;  %p6682_p0 = scmp.lt.s32.totalorder %s6676_s19, %s8579_s5 }
  0x69   : > { %v765_v60 = vld [vmem:[#allocation2 + $0x14] sm:$0x1]  ;;  %v1196_v12 = vor.u32 %v1195_v61, %v1192_v56  ;;  %600 = vst [vmem:[#allocation2 + $0x20] sm:$0x1] %v599_v9  ;;  %v310_v14 = vrot.slane %v7079_v28, 4  ;;  %v2769_v16 = vrot.slane %v2767_v2, 4  ;;  %v2095_v18 = vpack.c.b16 %v2064_v47, %v2063_v55 }
  0x6a   : > { %6135 = vmatmul.msk.bf16.gmra.mxu3 %vm944_vm8, %v6557_v45  ;;  %v716_v0 = vld [vmem:[#allocation2 + $0x24] sm:$0x1]  ;;  %v766_v1 = vsel %vm7036_vm9, 0, %v765_v60  ;;  %v1586_v11 = vpack.c.b16 %v1555_v54, %v1554_v58  ;;  %v2772_v17 = vrot.slane %v2770_v3, 5  ;;  %v1206_v22 = vor.u32 %v1205_v5, %v7119_v10  ;;  %v1121_v30 = vld [vmem:[#allocation2 + $0x1c] sm:$0xf] }
  0x6b   : > { %v717_v4 = vsel %vm6859_vm7, 0, %v716_v0  ;;  %767 = vst [vmem:[#allocation2 + $0x14] sm:$0x1] %v766_v1  ;;  %v7127_v23 = vrot.slane %v2776_v6, 5  ;;  %v2782_v26 = vrot.slane %v2780_v8, 4  ;;  %v1955_v27 = vrot.slane %v1851_v13, 5 }
  0x6c   : > { %718 = vst [vmem:[#allocation2 + $0x24] sm:$0x1] %v717_v4  ;;  %v1197_v32 = vrot.slane %v1196_v12, 4  ;;  %v6165_v33 = vrot.slane %v1850_v15, 9  ;;  %v605_v34 = vld [vmem:[#allocation2 + $0x2c] sm:$0x1]  ;;  %v2773_v38 = vor.u32 %v2772_v17, %v2769_v16 }
  0x6d   : > { %v606_v39 = vsel %vm6859_vm7, %v310_v14, %v605_v34  ;;  %v6564_v41 = vld [vmem:[#allocation2 + $0xc] sm:$0xff]  ;;  %v1207_v42 = vrot.slane %v1206_v22, 4  ;;  %v2783_v45 = vor.u32 %v2782_v26, %v7127_v23  ;;  %v1957_v48 = vrot.slane %v1955_v27, 4  ;;  %v2721_v63 = vld [vmem:[#allocation2 + $0x18] sm:$0xf]  ;;  %s6677_s24 = scalar_lea.hbm %s6676_s19, 16 }
  0x6e   : > { %v1214_v51 = vshrl.u32 %v1120_v24, 16  ;;  %v1217_v52 = vshll.u32 %v1120_v24, 16  ;;  %v1223_v56 = vshll.u32 %v1121_v30, 16  ;;  %v1227_v57 = vshrl.u32 %v1121_v30, 16  ;;  %607 = vst [vmem:[#allocation2 + $0x2c] sm:$0x1] %v606_v39  ;;  %p6678_p11 = scmp.ne.s32.totalorder %s6676_s19, %s6677_s24  ;;  %p6683_p1 = scmp.lt.s32.totalorder %s6681_s6, %s6677_s24 }
  0x6f   : > { %v1202_v58 = vsel %vm7094_vm15, %v1197_v32, %v7119_v10  ;;  %v2774_v54 = vrot.slane %v2773_v38, 4  ;;  %v1956_v60 = vsel %vm7085_vm14, %v6165_v33, %v1955_v27  ;;  %v2784_v61 = vrot.slane %v2783_v45, 4  ;;  %v2722_v4 = vld [vmem:[#allocation2 + $0x1c] sm:$0xf]  ;;  %v612_v14 = vld [vmem:[#allocation2 + $0x38] sm:$0x1] }
  0x70   : > { %v768_v50 = vld [vmem:[#allocation2 + $0x20] sm:$0x1]  ;;  %v327_v0 = vrot.slane %v6842_v21, 4  ;;  %v1216_v2 = vrot.slane %v1214_v51, 4  ;;  %v1219_v3 = vrot.slane %v1217_v52, 5  ;;  %v1556_v10 = vunpack.c.l.b16 %v1202_v58  ;;  %p6679_p12 = pnand %p6678_p11, %p6799_p5  ;;  %p6684_p2 = por %p6683_p1, %p6682_p0 }
  0x71   : > { %v769_v55 = vsel %vm7036_vm9, 0, %v768_v50  ;;  %v7148_v6 = vrot.slane %v1223_v56, 5  ;;  %v1229_v8 = vrot.slane %v1227_v57, 4  ;;  %v1854_v9 = vld [vmem:[#allocation2 + $0x1c] sm:$0xf]  ;;  %v2779_v12 = vsel %vm7094_vm15, %v2774_v54, %v7127_v23 }
  0x72   : > { %6148 = vmatmul.msk.bf16.vlgmr.msrb.gmra.mxu1 %vm944_vm8, %v1586_v11  ;;  %v1119_v36 = vld [vmem:[#allocation2 + $0x14] sm:$0x1]  ;;  %770 = vst [vmem:[#allocation2 + $0x20] sm:$0x1] %v769_v55  ;;  %v2065_v11 = vunpack.c.l.b16 %v1956_v60  ;;  %v2791_v21 = vshrl.u32 %v2721_v63, 16  ;;  %v2794_v13 = vshll.u32 %v2721_v63, 16  ;;  %v1220_v22 = vor.u32 %v1219_v3, %v1216_v2  ;;  %p6680_p13 = pneg %p6679_p12 }
  0x73   : > { %v1852_v37 = vld [vmem:[#allocation2 + $0x14] sm:$0x1]  ;;  %v6545_v40 = vld [vmem:[#allocation2 + $0x24] sm:$0xff]  ;;  %v1209_v43 = vshll.u32 %v1119_v36, 16  ;;  %v2800_v17 = vshll.u32 %v2722_v4, 16  ;;  %v1962_v26 = vrot.slane %v1854_v9, 5  ;;  %v3155_v30 = vunpack.c.l.b16 %v2779_v12 }
  0x74   : > { %v2720_v28 = vld [vmem:[#allocation2 + $0x14] sm:$0x1]  ;;  %6192 = vmatmul.msk.bf16.vlgmr.msrb.gmra.mxu2 %vm944_vm8, %v2095_v18  ;;  %v1958_v49 = vrot.slane %v1852_v37, 5  ;;  %v2804_v18 = vshrl.u32 %v2722_v4, 16  ;;  %v1230_v33 = vor.u32 %v1229_v8, %v7148_v6  ;;  %v613_v23 = vsel %vm6859_vm7, %v327_v0, %v612_v14  ;;  %v1853_v37 = vld [vmem:[#allocation2 + $0x18] sm:$0xe]  ;;  %p6685_p3 = pnand %p6684_p2, %p6680_p13 }
  0x75   : > { %v2786_v46 = vshll.u32 %v2720_v28, 16  ;;  %v1211_v53 = vrot.slane %v1209_v43, 5  ;;  %v771_v27 = vld [vmem:[#allocation2 + $0x2c] sm:$0x1]  ;;  %v2793_v28 = vrot.slane %v2791_v21, 4  ;;  %v2796_v38 = vrot.slane %v2794_v13, 5 }
  0x76   : > { %6123 = vmatmul.msk.bf16.gmra.mxu0 %vm944_vm8, %v6545_v40  ;;  %v1959_v1 = vsel %vm7085_vm14, %v1957_v48, %v1958_v49  ;;  %v7158_v40 = vrot.slane %v2800_v17, 5  ;;  %614 = vst [vmem:[#allocation2 + $0x38] sm:$0x1] %v613_v23  ;;  %v1123_v45 = vld [vmem:[#allocation2 + $0x24] sm:$0xf]  ;;  %v6166_v49 = vrot.slane %v1853_v37, 9 }
  0x77   : > { %v1212_v47 = vsel %vm7094_vm15, %v1207_v42, %v1211_v53  ;;  %v2788_v62 = vrot.slane %v2786_v46, 5  ;;  %v2066_v15 = vunpack.c.l.b16 %v1959_v1  ;;  %v772_v42 = vsel %vm7036_vm9, 0, %v771_v27  ;;  %v1124_v55 = vld [vmem:[#allocation2 + $0x28] sm:$0xf]  ;;  %v2724_v0 = vld [vmem:[#allocation2 + $0x24] sm:$0xf] }
  0x78   : > { %v1557_v5 = vunpack.c.l.b16 %v1212_v47  ;;  %773 = vst [vmem:[#allocation2 + $0x2c] sm:$0x1] %v772_v42  ;;  %v1221_v46 = vrot.slane %v1220_v22, 4  ;;  %v1231_v51 = vrot.slane %v1230_v33, 4  ;;  %v2797_v53 = vor.u32 %v2796_v38, %v2793_v28  ;;  %v1856_v37 = vld [vmem:[#allocation2 + $0x24] sm:$0xe] }
  0x79   : > { %v2789_v16 = vsel %vm7094_vm15, %v2784_v61, %v2788_v62  ;;  %v1122_v32 = vld [vmem:[#allocation2 + $0x20] sm:$0x1]  ;;  %v2096_v39 = vpack.c.b16 %v2066_v15, %v2065_v11  ;;  %v1238_v58 = vshrl.u32 %v1123_v45, 16  ;;  %v1241_v54 = vshll.u32 %v1123_v45, 16  ;;  %v6565_v61 = vld [vmem:[#allocation2 + $0x18] sm:$0xff] }
  0x7a   : > { %6284 = vmatmul.msk.bf16.vlgmr.msrb.gmra.mxu3 %vm944_vm8, %v6564_v41  ;;  %v1587_v24 = vpack.c.b16 %v1557_v5, %v1556_v10  ;;  %v3156_v34 = vunpack.c.l.b16 %v2789_v16  ;;  %v1233_v36 = vshll.u32 %v1122_v32, 16  ;;  %v2806_v41 = vrot.slane %v2804_v18, 4  ;;  %v2723_v43 = vld [vmem:[#allocation2 + $0x20] sm:$0x1]  ;;  %v2725_v10 = vld [vmem:[#allocation2 + $0x28] sm:$0xf] }
  0x7b   : > { %v1855_v48 = vld [vmem:[#allocation2 + $0x20] sm:$0x1]  ;;  %v2810_v57 = vshll.u32 %v2723_v43, 16  ;;  %v1964_v47 = vrot.slane %v1962_v26, 4  ;;  %v1226_v62 = vsel %vm7094_vm15, %v1221_v46, %v7148_v6  ;;  %v1247_v63 = vshll.u32 %v1124_v55, 16 }
  0x7c   : > { %v3187_v50 = vpack.c.b16 %v3156_v34, %v3155_v30  ;;  %v1235_v52 = vrot.slane %v1233_v36, 5  ;;  %v2807_v56 = vor.u32 %v2806_v41, %v7158_v40  ;;  %v1965_v60 = vrot.slane %v1855_v48, 5  ;;  %v1857_v16 = vld [vmem:[#allocation2 + $0x28] sm:$0xf]  ;;  %v1126_v46 = vld [vmem:[#allocation2 + $0x30] sm:$0xf] }
  0x7d   : > { %v1963_v2 = vsel %vm7085_vm14, %v6166_v49, %v1962_v26  ;;  %v2798_v3 = vrot.slane %v2797_v53, 4  ;;  %v1251_v4 = vshrl.u32 %v1124_v55, 16  ;;  %v774_v5 = vld [vmem:[#allocation2 + $0x38] sm:$0x1]  ;;  %v2812_v9 = vrot.slane %v2810_v57, 5 }
  0x7e   : > { %v1236_v1 = vsel %vm7094_vm15, %v1231_v51, %v1235_v52  ;;  %v2808_v8 = vrot.slane %v2807_v56, 4  ;;  %v1240_v11 = vrot.slane %v1238_v58, 4  ;;  %v1243_v12 = vrot.slane %v1241_v54, 5  ;;  %v619_v52 = vld [vmem:[#allocation2 + $0x44] sm:$0x1] }
  0x7f   : > { %v1558_v21 = vunpack.c.l.b16 %v1226_v62  ;;  %v1966_v6 = vsel %vm7085_vm14, %v1964_v47, %v1965_v60  ;;  %v2815_v13 = vshrl.u32 %v2724_v0, 16  ;;  %v2818_v14 = vshll.u32 %v2724_v0, 16  ;;  %v1125_v23 = vld [vmem:[#allocation2 + $0x2c] sm:$0x1] }
  0x80   : > { %v1559_v15 = vunpack.c.l.b16 %v1236_v1  ;;  %v2824_v17 = vshll.u32 %v2725_v10, 16  ;;  %v2828_v18 = vshrl.u32 %v2725_v10, 16  ;;  %v775_v22 = vsel %vm7036_vm9, 0, %v774_v5  ;;  %v1858_v42 = vld [vmem:[#allocation2 + $0x2c] sm:$0x1] }
  0x81   : > { %v2067_v26 = vunpack.c.l.b16 %v1963_v2  ;;  %v1249_v27 = vrot.slane %v1247_v63, 5  ;;  %776 = vst [vmem:[#allocation2 + $0x38] sm:$0x1] %v775_v22  ;;  %v2068_v30 = vunpack.c.l.b16 %v1966_v6  ;;  %v2803_v32 = vsel %vm7094_vm15, %v2798_v3, %v7158_v40  ;;  %v2726_v51 = vld [vmem:[#allocation2 + $0x2c] sm:$0x1] }
  0x82   : > { %6149 = vmatmul.msk.bf16.gmra.mxu1 %vm944_vm8, %v1587_v24  ;;  %v1253_v24 = vrot.slane %v1251_v4, 4  ;;  %v2813_v33 = vsel %vm7094_vm15, %v2808_v8, %v2812_v9  ;;  %v1244_v34 = vor.u32 %v1243_v12, %v1240_v11  ;;  %v344_v36 = vrot.slane %v6887_v7, 4  ;;  %v1127_v2 = vld [vmem:[#allocation2 + $0x34] sm:$0xf]  ;;  %v6566_v11 = vld [vmem:[#allocation2 + $0x24] sm:$0xff] }
  0x83   : > { %v1969_v28 = vrot.slane %v1857_v16, 5  ;;  %v2817_v38 = vrot.slane %v2815_v13, 4  ;;  %v1588_v41 = vpack.c.b16 %v1559_v15, %v1558_v21  ;;  %v7184_v43 = vrot.slane %v2824_v17, 5  ;;  %v2727_v16 = vld [vmem:[#allocation2 + $0x30] sm:$0xf] }
  0x84   : > { %6193 = vmatmul.msk.bf16.gmra.mxu2 %vm944_vm8, %v2096_v39  ;;  %v2820_v39 = vrot.slane %v2818_v14, 5  ;;  %v2830_v45 = vrot.slane %v2828_v18, 4  ;;  %v3157_v48 = vunpack.c.l.b16 %v2803_v32  ;;  %v3158_v49 = vunpack.c.l.b16 %v2813_v33  ;;  %v626_v17 = vld [vmem:[#allocation2 + $0x50] sm:$0x1] }
  0x85   : > { %v1254_v40 = vor.u32 %v1253_v24, %v1249_v27  ;;  %v2097_v53 = vpack.c.b16 %v2068_v30, %v2067_v26  ;;  %v1245_v55 = vrot.slane %v1244_v34, 4  ;;  %v6167_v56 = vrot.slane %v1856_v37, 9  ;;  %v2728_v24 = vld [vmem:[#allocation2 + $0x34] sm:$0xf] }
  0x86   : > { %6312 = vmatmul.msk.bf16.vlgmr.msrb.gmra.mxu0 %vm944_vm8, %v3187_v50  ;;  %v1257_v50 = vshll.u32 %v1125_v23, 16  ;;  %v1971_v7 = vrot.slane %v1969_v28, 4  ;;  %v2821_v57 = vor.u32 %v2820_v39, %v2817_v38  ;;  %v1262_v58 = vshrl.u32 %v1126_v46, 16  ;;  %v1860_v23 = vld [vmem:[#allocation2 + $0x34] sm:$0xf] }
  0x87   : > { %v1265_v54 = vshll.u32 %v1126_v46, 16  ;;  %v1972_v47 = vrot.slane %v1858_v42, 5  ;;  %v2831_v60 = vor.u32 %v2830_v45, %v7184_v43  ;;  %v620_v62 = vsel %vm6859_vm7, %v344_v36, %v619_v52 }
  0x88   : > { %v3188_v63 = vpack.c.b16 %v3158_v49, %v3157_v48  ;;  %v1255_v0 = vrot.slane %v1254_v40, 4  ;;  %v1259_v1 = vrot.slane %v1257_v50, 5  ;;  %621 = vst [vmem:[#allocation2 + $0x44] sm:$0x1] %v620_v62  ;;  %v361_v3 = vrot.slane %v6923_v59, 4 }
  0x89   : > { %v1970_v4 = vsel %vm7085_vm14, %v6167_v56, %v1969_v28  ;;  %v1250_v10 = vsel %vm7094_vm15, %v1245_v55, %v1249_v27  ;;  %v2822_v5 = vrot.slane %v2821_v57, 4  ;;  %v1264_v8 = vrot.slane %v1262_v58, 4  ;;  %v1861_v55 = vld [vmem:[#allocation2 + $0x38] sm:$0x1] }
  0x8a   : > { %6285 = vmatmul.msk.bf16.gmra.mxu3 %vm944_vm8, %v6565_v61  ;;  %v2834_v61 = vshll.u32 %v2726_v51, 16  ;;  %v1267_v9 = vrot.slane %v1265_v54, 5  ;;  %v1973_v12 = vsel %vm7085_vm14, %v1971_v7, %v1972_v47  ;;  %v2832_v21 = vrot.slane %v2831_v60, 4  ;;  %v2729_v56 = vld [vmem:[#allocation2 + $0x38] sm:$0x1] }
  0x8b   : > { %v1271_v13 = vshll.u32 %v1127_v2, 16  ;;  %v1260_v59 = vsel %vm7094_vm15, %v1255_v0, %v1259_v1  ;;  %v1275_v14 = vshrl.u32 %v1127_v2, 16  ;;  %v2069_v15 = vunpack.c.l.b16 %v1970_v4  ;;  %v1129_v47 = vld [vmem:[#allocation2 + $0x3c] sm:$0xf]  ;;  %v1130_v0 = vld [vmem:[#allocation2 + $0x40] sm:$0xf] }
  0x8c   : > { %v2836_v6 = vrot.slane %v2834_v61, 5  ;;  %v1560_v18 = vunpack.c.l.b16 %v1250_v10  ;;  %v2070_v22 = vunpack.c.l.b16 %v1973_v12  ;;  %v2827_v26 = vsel %vm7094_vm15, %v2822_v5, %v7184_v43 }
  0x8d   : > { %v1268_v27 = vor.u32 %v1267_v9, %v1264_v8  ;;  %v1561_v30 = vunpack.c.l.b16 %v1260_v59  ;;  %v1273_v33 = vrot.slane %v1271_v13, 5  ;;  %v627_v36 = vsel %vm6859_vm7, %v361_v3, %v626_v17 }
  0x8e   : > { %v2837_v32 = vsel %vm7094_vm15, %v2832_v21, %v2836_v6  ;;  %v1277_v37 = vrot.slane %v1275_v14, 4  ;;  %v2839_v28 = vshrl.u32 %v2727_v16, 16  ;;  %v2842_v38 = vshll.u32 %v2727_v16, 16  ;;  %628 = vst [vmem:[#allocation2 + $0x50] sm:$0x1] %v627_v36  ;;  %v6567_v21 = vld [vmem:[#allocation2 + $0x30] sm:$0xff] }
  0x8f   : > { %v777_v34 = vld [vmem:[#allocation2 + $0x44] sm:$0x1]  ;;  %v2848_v42 = vshll.u32 %v2728_v24, 16  ;;  %v2852_v43 = vshrl.u32 %v2728_v24, 16  ;;  %v3159_v45 = vunpack.c.l.b16 %v2827_v26  ;;  %v1589_v46 = vpack.c.b16 %v1561_v30, %v1560_v18  ;;  %v2731_v16 = vld [vmem:[#allocation2 + $0x40] sm:$0xf] }
  0x90   : > { %v778_v39 = vsel %vm7036_vm9, 0, %v777_v34  ;;  %v3160_v48 = vunpack.c.l.b16 %v2837_v32  ;;  %v1269_v49 = vrot.slane %v1268_v27, 4  ;;  %v1976_v40 = vrot.slane %v1860_v23, 5  ;;  %v633_v32 = vld [vmem:[#allocation2 + $0x5c] sm:$0x1] }
  0x91   : > { %779 = vst [vmem:[#allocation2 + $0x44] sm:$0x1] %v778_v39  ;;  %v2098_v50 = vpack.c.b16 %v2070_v22, %v2069_v15  ;;  %v1278_v51 = vor.u32 %v1277_v37, %v1273_v33  ;;  %v2841_v7 = vrot.slane %v2839_v28, 4  ;;  %v2844_v57 = vrot.slane %v2842_v38, 5  ;;  %v2730_v15 = vld [vmem:[#allocation2 + $0x3c] sm:$0xf] }
  0x92   : > { %6150 = vmatmul.msk.bf16.gmra.mxu1 %vm944_vm8, %v1588_v41  ;;  %v1128_v41 = vld [vmem:[#allocation2 + $0x38] sm:$0x1]  ;;  %v7211_v58 = vrot.slane %v2848_v42, 5  ;;  %v2854_v54 = vrot.slane %v2852_v43, 4  ;;  %v3189_v60 = vpack.c.b16 %v3160_v48, %v3159_v45  ;;  %v1274_v61 = vsel %vm7094_vm15, %v1269_v49, %v1273_v33  ;;  %v1863_v49 = vld [vmem:[#allocation2 + $0x40] sm:$0xf] }
  0x93   : > { %v1281_v52 = vshll.u32 %v1128_v41, 16  ;;  %v1279_v2 = vrot.slane %v1278_v51, 4  ;;  %v1979_v4 = vrot.slane %v1861_v55, 5  ;;  %v2858_v10 = vshll.u32 %v2729_v56, 16 }
  0x94   : > { %6194 = vmatmul.msk.bf16.gmra.mxu2 %vm944_vm8, %v2097_v53  ;;  %v1859_v53 = vld [vmem:[#allocation2 + $0x30] sm:$0xe]  ;;  %v2845_v5 = vor.u32 %v2844_v57, %v2841_v7  ;;  %v2855_v8 = vor.u32 %v2854_v54, %v7211_v58  ;;  %v1286_v9 = vshrl.u32 %v1129_v47, 16  ;;  %v378_v12 = vrot.slane %v6999_v29, 4 }
  0x95   : > { %v6168_v62 = vrot.slane %v1859_v53, 9  ;;  %v780_v1 = vld [vmem:[#allocation2 + $0x50] sm:$0x1]  ;;  %v1283_v3 = vrot.slane %v1281_v52, 5  ;;  %v1295_v6 = vshll.u32 %v1130_v0, 16  ;;  %v1299_v13 = vshrl.u32 %v1130_v0, 16 }
  0x96   : > { %6313 = vmatmul.msk.bf16.gmra.mxu0 %vm944_vm8, %v3188_v63  ;;  %v1978_v63 = vrot.slane %v1976_v40, 4  ;;  %v781_v59 = vsel %vm7036_vm9, 0, %v780_v1  ;;  %v1562_v18 = vunpack.c.l.b16 %v1274_v61  ;;  %v2860_v22 = vrot.slane %v2858_v10, 5 }
  0x97   : > { %v1977_v14 = vsel %vm7085_vm14, %v6168_v62, %v1976_v40  ;;  %782 = vst [vmem:[#allocation2 + $0x50] sm:$0x1] %v781_v59  ;;  %v1284_v17 = vsel %vm7094_vm15, %v1279_v2, %v1283_v3  ;;  %v2846_v26 = vrot.slane %v2845_v5, 4  ;;  %v2856_v27 = vrot.slane %v2855_v8, 4  ;;  %v1862_v62 = vld [vmem:[#allocation2 + $0x3c] sm:$0xe] }
  0x98   : > { %v1980_v29 = vsel %vm7085_vm14, %v1978_v63, %v1979_v4  ;;  %v1288_v24 = vrot.slane %v1286_v9, 4  ;;  %v2863_v33 = vshrl.u32 %v2730_v15, 16  ;;  %v2866_v23 = vshll.u32 %v2730_v15, 16  ;;  %v1131_v42 = vld [vmem:[#allocation2 + $0x44] sm:$0x1] }
  0x99   : > { %v2872_v34 = vshll.u32 %v2731_v16, 16  ;;  %v2876_v36 = vshrl.u32 %v2731_v16, 16  ;;  %v1563_v37 = vunpack.c.l.b16 %v1284_v17  ;;  %v1297_v28 = vrot.slane %v1295_v6, 5  ;;  %v2732_v7 = vld [vmem:[#allocation2 + $0x44] sm:$0x1]  ;;  %v6568_v16 = vld [vmem:[#allocation2 + $0x3c] sm:$0xff] }
  0x9a   : > { %6286 = vmatmul.msk.bf16.gmra.mxu3 %vm944_vm8, %v6566_v11  ;;  %v1289_v11 = vshll.u32 %v1129_v47, 16  ;;  %v1301_v38 = vrot.slane %v1299_v13, 4  ;;  %v634_v39 = vsel %vm6859_vm7, %v378_v12, %v633_v32  ;;  %v2071_v41 = vunpack.c.l.b16 %v1977_v14  ;;  %v1864_v4 = vld [vmem:[#allocation2 + $0x44] sm:$0x1]  ;;  %v1132_v8 = vld [vmem:[#allocation2 + $0x48] sm:$0xf] }
  0x9b   : > { %635 = vst [vmem:[#allocation2 + $0x5c] sm:$0x1] %v634_v39  ;;  %v2072_v43 = vunpack.c.l.b16 %v1980_v29  ;;  %v2851_v45 = vsel %vm7094_vm15, %v2846_v26, %v7211_v58  ;;  %v2865_v40 = vrot.slane %v2863_v33, 4  ;;  %v7236_v51 = vrot.slane %v2872_v34, 5  ;;  %v1133_v6 = vld [vmem:[#allocation2 + $0x4c] sm:$0xf] }
  0x9c   : > { %v1291_v30 = vrot.slane %v1289_v11, 5  ;;  %v2878_v52 = vrot.slane %v2876_v36, 4  ;;  %v1590_v53 = vpack.c.b16 %v1563_v37, %v1562_v18  ;;  %v1302_v55 = vor.u32 %v1301_v38, %v1297_v28  ;;  %v2734_v32 = vld [vmem:[#allocation2 + $0x4c] sm:$0xf] }
  0x9d   : > { %v1305_v56 = vshll.u32 %v1131_v42, 16  ;;  %v3161_v54 = vunpack.c.l.b16 %v2851_v45  ;;  %v2099_v58 = vpack.c.b16 %v2072_v43, %v2071_v41  ;;  %v1983_v61 = vrot.slane %v1863_v49, 5 }
  0x9e   : > { %v1292_v48 = vor.u32 %v1291_v30, %v1288_v24  ;;  %v2879_v0 = vor.u32 %v2878_v52, %v7236_v51  ;;  %v2882_v1 = vshll.u32 %v2732_v7, 16  ;;  %v1303_v2 = vrot.slane %v1302_v55, 4  ;;  %v2733_v30 = vld [vmem:[#allocation2 + $0x48] sm:$0xf]  ;;  %v1134_v52 = vld [vmem:[#allocation2 + $0x50] sm:$0x1] }
  0x9f   : > { %v1307_v3 = vrot.slane %v1305_v56, 5  ;;  %v6169_v12 = vrot.slane %v1862_v62, 9  ;;  %v1986_v13 = vrot.slane %v1864_v4, 5  ;;  %v1310_v18 = vshrl.u32 %v1132_v8, 16  ;;  %v1866_v7 = vld [vmem:[#allocation2 + $0x4c] sm:$0xf] }
  0xa0   : > { %v2880_v14 = vrot.slane %v2879_v0, 4  ;;  %v2884_v15 = vrot.slane %v2882_v1, 5  ;;  %v1313_v29 = vshll.u32 %v1132_v8, 16  ;;  %v1323_v24 = vshrl.u32 %v1133_v6, 16  ;;  %v2735_v1 = vld [vmem:[#allocation2 + $0x50] sm:$0x1] }
  0xa1   : > { %v1308_v17 = vsel %vm7094_vm15, %v1303_v2, %v1307_v3  ;;  %v2887_v41 = vshrl.u32 %v2733_v30, 16  ;;  %v2890_v42 = vshll.u32 %v2733_v30, 16  ;;  %v2896_v43 = vshll.u32 %v2734_v32, 16  ;;  %v1865_v4 = vld [vmem:[#allocation2 + $0x48] sm:$0xe] }
  0xa2   : > { %6151 = vmatmul.msk.bf16.gmra.mxu1 %vm944_vm8, %v1589_v46  ;;  %v2861_v46 = vsel %vm7094_vm15, %v2856_v27, %v2860_v22  ;;  %v783_v10 = vld [vmem:[#allocation2 + $0x5c] sm:$0x1]  ;;  %v1319_v27 = vshll.u32 %v1133_v6, 16  ;;  %v1565_v36 = vunpack.c.l.b16 %v1308_v17  ;;  %v2885_v38 = vsel %vm7094_vm15, %v2880_v14, %v2884_v15  ;;  %v1867_v8 = vld [vmem:[#allocation2 + $0x50] sm:$0x1] }
  0xa3   : > { %v3162_v47 = vunpack.c.l.b16 %v2861_v46  ;;  %v784_v9 = vsel %vm7036_vm9, 0, %v783_v10  ;;  %v2900_v45 = vshrl.u32 %v2734_v32, 16  ;;  %v1312_v46 = vrot.slane %v1310_v18, 4  ;;  %v1135_v10 = vld [vmem:[#allocation2 + $0x54] sm:$0xf]  ;;  %v6569_v32 = vld [vmem:[#allocation2 + $0x48] sm:$0xff] }
  0xa4   : > { %6195 = vmatmul.msk.bf16.gmra.mxu2 %vm944_vm8, %v2098_v50  ;;  %v2868_v50 = vrot.slane %v2866_v23, 5  ;;  %785 = vst [vmem:[#allocation2 + $0x5c] sm:$0x1] %v784_v9  ;;  %v1984_v23 = vsel %vm7085_vm14, %v6169_v12, %v1983_v61  ;;  %v7263_v49 = vrot.slane %v1319_v27, 5  ;;  %v3164_v56 = vunpack.c.l.b16 %v2885_v38 }
  0xa5   : > { %v3190_v5 = vpack.c.b16 %v3162_v47, %v3161_v54  ;;  %v2892_v54 = vrot.slane %v2890_v42, 5  ;;  %v7265_v47 = vrot.slane %v2896_v43, 5  ;;  %v1329_v0 = vshll.u32 %v1134_v52, 16  ;;  %v2736_v42 = vld [vmem:[#allocation2 + $0x54] sm:$0xf] }
  0xa6   : > { %6314 = vmatmul.msk.bf16.gmra.mxu0 %vm944_vm8, %v3189_v60  ;;  %v1293_v60 = vrot.slane %v1292_v48, 4  ;;  %v2869_v63 = vor.u32 %v2868_v50, %v2865_v40  ;;  %v1315_v48 = vrot.slane %v1313_v29, 5  ;;  %v1325_v40 = vrot.slane %v1323_v24, 4  ;;  %v2737_v43 = vld [vmem:[#allocation2 + $0x58] sm:$0xf] }
  0xa7   : > { %v2073_v50 = vunpack.c.l.b16 %v1984_v23  ;;  %v1990_v9 = vrot.slane %v1866_v7, 5  ;;  %v1331_v17 = vrot.slane %v1329_v0, 5  ;;  %v1334_v18 = vshrl.u32 %v1135_v10, 16 }
  0xa8   : > { %v1298_v11 = vsel %vm7094_vm15, %v1293_v60, %v1297_v28  ;;  %v2870_v59 = vrot.slane %v2869_v63, 4  ;;  %v1316_v62 = vor.u32 %v1315_v48, %v1312_v46  ;;  %v1326_v63 = vor.u32 %v1325_v40, %v7263_v49  ;;  %v7291_v40 = vld [vmem:[#allocation2 + $0x58] sm:$0xf] }
  0xa9   : > { %v1564_v33 = vunpack.c.l.b16 %v1298_v11  ;;  %v786_v11 = vld [vmem:[#allocation2 + $0x68] sm:$0x1]  ;;  %v6170_v29 = vrot.slane %v1865_v4, 9  ;;  %v1993_v27 = vrot.slane %v1867_v8, 5  ;;  %v2914_v7 = vshll.u32 %v2736_v42, 16 }
  0xaa   : > { %6287 = vmatmul.msk.bf16.gmra.mxu3 %vm944_vm8, %v6567_v21  ;;  %v1985_v21 = vrot.slane %v1983_v61, 4  ;;  %v2875_v28 = vsel %vm7094_vm15, %v2870_v59, %v7236_v51  ;;  %v1136_v59 = vld [vmem:[#allocation2 + $0x58] sm:$0xf]  ;;  %v787_v14 = vsel %vm7036_vm9, 0, %v786_v11  ;;  %v1317_v15 = vrot.slane %v1316_v62, 4 }
  0xab   : > { %v3163_v55 = vunpack.c.l.b16 %v2875_v28  ;;  %788 = vst [vmem:[#allocation2 + $0x68] sm:$0x1] %v787_v14  ;;  %v1343_v24 = vshll.u32 %v1136_v59, 16  ;;  %v1347_v30 = vshrl.u32 %v1136_v59, 16  ;;  %v1997_v62 = vrot.slane %v7291_v40, 5 }
  0xac   : > { %v1987_v37 = vsel %vm7085_vm14, %v1985_v21, %v1986_v13  ;;  %v2906_v13 = vshll.u32 %v2735_v1, 16  ;;  %v1322_v28 = vsel %vm7094_vm15, %v1317_v15, %v7263_v49  ;;  %vm5678_vm0 = vcmask 130112  }
  0xad   : > { %v2074_v51 = vunpack.c.l.b16 %v1987_v37  ;;  %v7289_v48 = vrot.slane %v1343_v24, 5  ;;  %v1349_v49 = vrot.slane %v1347_v30, 4  ;;  %v1999_v15 = vrot.slane %v1997_v62, 4 }
  0xae   : > { %vm5686_vm2 = vcmask 261312   ;;  %vm5688_vm3 = vcmask 1041409   ;;  %vm5691_vm5 = vcmask 1043459   ;;  %vm5960_vm10 = vcmask 130048  }
  0xaf   : > { %v1022_v57 = vpop.f32.mrf.mxu1  ;;  %v2100_v2 = vpack.c.b16 %v2074_v51, %v2073_v50  ;;  %v1566_v50 = vunpack.c.l.b16 %v1322_v28 }
  0xb0   : > { %1090 = vst.msk [vmem:[#allocation3 + $0x40] sm:$0xff] %vm944_vm8, %v1022_v57  ;;  %v2889_v57 = vrot.slane %v2887_v41, 4 }
  0xb2   : > { %6152 = vmatmul.msk.bf16.gmra.mxu1 %vm944_vm8, %v1590_v53  ;;  %v1591_v53 = vpack.c.b16 %v1565_v36, %v1564_v33  ;;  %v2893_v21 = vor.u32 %v2892_v54, %v2889_v57  ;;  %v2920_v57 = vshll.u32 %v2737_v43, 16  ;;  %v2924_v54 = vshrl.u32 %v2737_v43, 16  ;;  %v6570_v43 = vld [vmem:[#allocation2 + $0x54] sm:$0xff] }
  0xb4   : > { %6196 = vmatmul.msk.bf16.gmra.mxu2 %vm944_vm8, %v2099_v58  ;;  %v2902_v58 = vrot.slane %v2900_v45, 4  ;;  %v2894_v33 = vrot.slane %v2893_v21, 4  ;;  %v1991_v45 = vsel %vm7085_vm14, %v6170_v29, %v1990_v9  ;;  %v7302_v21 = vrot.slane %v2920_v57, 5 }
  0xb6   : > { %6315 = vmatmul.msk.bf16.gmra.mxu0 %vm944_vm8, %v3190_v5  ;;  %v3191_v5 = vpack.c.b16 %v3164_v56, %v3163_v55  ;;  %v2903_v6 = vor.u32 %v2902_v58, %v7265_v47  ;;  %v2899_v52 = vsel %vm7094_vm15, %v2894_v33, %v7265_v47  ;;  %v1137_v55 = vld [vmem:[#allocation2 + $0x5c] sm:$0x1]  ;;  %v2911_v56 = vshrl.u32 %v2736_v42, 16  ;;  %v2739_v42 = vld [vmem:[#allocation2 + $0x60] sm:$0xf] }
  0xb7   : > { %v1042_v22 = vpop.f32.mrf.mxu2  ;;  %v1024_v26 = vpop.f32.mrf.mxu1  ;;  %v2075_v58 = vunpack.c.l.b16 %v1991_v45  ;;  %v3165_v0 = vunpack.c.l.b16 %v2899_v52  ;;  %v1353_v4 = vshll.u32 %v1137_v55, 16 }
  0xb8   : > { %1098 = vst.msk [vmem:[#allocation3 + $0x80] sm:$0xff] %vm944_vm8, %v1042_v22  ;;  %v1002_v34 = vpop.f32.mrf.mxu0  ;;  %v1337_v22 = vshll.u32 %v1135_v10, 16  ;;  %v2904_v23 = vrot.slane %v2903_v6, 4  ;;  %v1870_v10 = vld [vmem:[#allocation2 + $0x5c] sm:$0x1]  ;;  %v2913_v11 = vrot.slane %v2911_v56, 4 }
  0xb9   : > { %1091 = vst.msk [vmem:[#allocation3 + $0x48] sm:$0xff] %vm944_vm8, %v1024_v26  ;;  %v1992_v26 = vrot.slane %v1990_v9, 4  ;;  %v2738_v9 = vld [vmem:[#allocation2 + $0x5c] sm:$0x1]  ;;  %v2926_v6 = vrot.slane %v2924_v54, 4  ;;  %v2000_v24 = vrot.slane %v1870_v10, 5 }
  0xba   : > { %6288 = vmatmul.msk.bf16.gmra.mxu3 %vm944_vm8, %v6568_v16  ;;  %v1062_v39 = vpop.f32.mrf.mxu3  ;;  %1082 = vst.msk [vmem:[#allocation3] sm:$0xff] %vm944_vm8, %v1002_v34  ;;  %v1327_v16 = vrot.slane %v1326_v63, 4  ;;  %v2908_v34 = vrot.slane %v2906_v13, 5  ;;  %v1339_v41 = vrot.slane %v1337_v22, 5  ;;  %v1139_v22 = vld [vmem:[#allocation2 + $0x64] sm:$0xf] }
  0xbb   : > { %1106 = vst.msk [vmem:[#allocation3 + $0xc0] sm:$0xff] %vm944_vm8, %v1062_v39  ;;  %v1336_v39 = vrot.slane %v1334_v18, 4  ;;  %v1994_v46 = vsel %vm7085_vm14, %v1992_v26, %v1993_v27  ;;  %v789_v26 = vld [vmem:[#allocation2 + $0x74] sm:$0x1]  ;;  %v1355_v27 = vrot.slane %v1353_v4, 5  ;;  %v2930_v30 = vshll.u32 %v2738_v9, 16 }
  0xbc   : > { %v1332_v38 = vsel %vm7094_vm15, %v1327_v16, %v1331_v17  ;;  %v1138_v16 = vld [vmem:[#allocation2 + $0x60] sm:$0xf]  ;;  %v1371_v28 = vshrl.u32 %v1139_v22, 16  ;;  %v2935_v54 = vshrl.u32 %v2739_v42, 16  ;;  %v1872_v9 = vld [vmem:[#allocation2 + $0x64] sm:$0xf] }
  0xbd   : > { %v1567_v51 = vunpack.c.l.b16 %v1332_v38  ;;  %v6584_v38 = vld [vmem:[%s8575_s1 + $0x50] sm:$0xff]  ;;  %v2932_v40 = vrot.slane %v2930_v30, 5 }
  0xbe   : > { %3776 = vmatpush.bf16.msra.mxu1 %v6584_v38  ;;  %v1373_v57 = vrot.slane %v1371_v28, 4  ;;  %v792_v28 = vld [vmem:[#allocation2 + $0x80] sm:$0x1] }
  0xbf   : > { %v1044_v60 = vpop.f32.mrf.mxu2  ;;  %v1027_v61 = vpop.f32.mrf.mxu1  ;;  %v1592_v47 = vpack.c.b16 %v1567_v51, %v1566_v50  ;;  %v2740_v50 = vld [vmem:[#allocation2 + $0x64] sm:$0xf] }
  0xc0   : > { %1099 = vst.msk [vmem:[#allocation3 + $0x88] sm:$0xff] %vm944_vm8, %v1044_v60  ;;  %v1004_v3 = vpop.f32.mrf.mxu0  ;;  %v2076_v60 = vunpack.c.l.b16 %v1994_v46 }
  0xc1   : > { %1092 = vst.msk [vmem:[#allocation3 + $0x50] sm:$0xff] %vm944_vm8, %v1027_v61  ;;  %v1340_v61 = vor.u32 %v1339_v41, %v1336_v39 }
  0xc2   : > { %6153 = vmatmul.msk.bf16.gmra.mxu1 %vm944_vm8, %v1591_v53  ;;  %v1064_v12 = vpop.f32.mrf.mxu3  ;;  %1083 = vst.msk [vmem:[#allocation3 + $0x8] sm:$0xff] %vm944_vm8, %v1004_v3  ;;  %v2909_v53 = vsel %vm7094_vm15, %v2904_v23, %v2908_v34  ;;  %v1868_v3 = vld [vmem:[#allocation2 + $0x54] sm:$0xe]  ;;  %v2101_v13 = vpack.c.b16 %v2076_v60, %v2075_v58  ;;  %v2927_v23 = vor.u32 %v2926_v6, %v7302_v21  ;;  %v1358_v34 = vshrl.u32 %v1138_v16, 16 }
  0xc3   : > { %1107 = vst.msk [vmem:[#allocation3 + $0xc8] sm:$0xff] %vm944_vm8, %v1064_v12  ;;  %v3166_v1 = vunpack.c.l.b16 %v2909_v53  ;;  %v2916_v12 = vrot.slane %v2914_v7, 5  ;;  %v1341_v59 = vrot.slane %v1340_v61, 4  ;;  %v6171_v14 = vrot.slane %v1868_v3, 9  ;;  %v1140_v61 = vld [vmem:[#allocation2 + $0x68] sm:$0x1] }
  0xc4   : > { %6197 = vmatmul.msk.bf16.gmra.mxu2 %vm944_vm8, %v2100_v2  ;;  %v1350_v2 = vor.u32 %v1349_v49, %v7289_v48  ;;  %v2001_v49 = vsel %vm7085_vm14, %v1999_v15, %v2000_v24  ;;  %v2928_v53 = vrot.slane %v2927_v23, 4  ;;  %v1360_v55 = vrot.slane %v1358_v34, 4 }
  0xc5   : > { %v3192_v18 = vpack.c.b16 %v3166_v1, %v3165_v0  ;;  %v2917_v33 = vor.u32 %v2916_v12, %v2913_v11  ;;  %v1346_v41 = vsel %vm7094_vm15, %v1341_v59, %v7289_v48  ;;  %v1998_v46 = vsel %vm7085_vm14, %v6171_v14, %v1997_v62  ;;  %v6602_v11 = vld [vmem:[%s8575_s1 + $0x60] sm:$0xff]  ;;  %v2741_v59 = vld [vmem:[#allocation2 + $0x68] sm:$0x1] }
  0xc6   : > { %6316 = vmatmul.msk.bf16.gmra.mxu0 %vm944_vm8, %v3191_v5  ;;  %v1351_v29 = vrot.slane %v1350_v2, 4  ;;  %v2938_v58 = vshll.u32 %v2739_v42, 16  ;;  %v2944_v62 = vshll.u32 %v2740_v50, 16  ;;  %v1568_v0 = vunpack.c.l.b16 %v1346_v41  ;;  %4139 = vmatpush.bf16.msra.mxu2 %v6602_v11 }
  0xc7   : > { %v1047_v36 = vpop.f32.mrf.mxu2  ;;  %v1029_v37 = vpop.f32.mrf.mxu1  ;;  %v2918_v48 = vrot.slane %v2917_v33, 4  ;;  %v2077_v2 = vunpack.c.l.b16 %v1998_v46  ;;  %v2078_v3 = vunpack.c.l.b16 %v2001_v49  ;;  %v2933_v4 = vsel %vm7094_vm15, %v2928_v53, %v2932_v40  ;;  %v1873_v33 = vld [vmem:[#allocation2 + $0x68] sm:$0x1] }
  0xc8   : > { %1100 = vst.msk [vmem:[#allocation3 + $0x90] sm:$0xff] %vm944_vm8, %v1047_v36  ;;  %v1361_v36 = vshll.u32 %v1138_v16, 16  ;;  %v1356_v45 = vsel %vm7094_vm15, %v1351_v29, %v1355_v27  ;;  %v2937_v12 = vrot.slane %v2935_v54, 4  ;;  %v2940_v6 = vrot.slane %v2938_v58, 5  ;;  %v1871_v27 = vld [vmem:[#allocation2 + $0x60] sm:$0xe] }
  0xc9   : > { %1093 = vst.msk [vmem:[#allocation3 + $0x58] sm:$0xff] %vm944_vm8, %v1029_v37  ;;  %v1367_v37 = vshll.u32 %v1139_v22, 16  ;;  %v1569_v1 = vunpack.c.l.b16 %v1356_v45  ;;  %v7341_v14 = vrot.slane %v2944_v62, 5  ;;  %v2102_v22 = vpack.c.b16 %v2078_v3, %v2077_v2  ;;  %v6604_v54 = vld [vmem:[%s8575_s1 + $0x70] sm:$0xff] }
  0xca   : > { %6289 = vmatmul.msk.bf16.gmra.mxu3 %vm944_vm8, %v6569_v32  ;;  %v790_v32 = vsel %vm7036_vm9, 0, %v789_v26  ;;  %v1363_v56 = vrot.slane %v1361_v36, 5  ;;  %v2004_v24 = vrot.slane %v1872_v9, 5  ;;  %v2941_v23 = vor.u32 %v2940_v6, %v2937_v12 }
  0xcb   : > { %791 = vst [vmem:[#allocation2 + $0x74] sm:$0x1] %v790_v32  ;;  %v7327_v7 = vrot.slane %v1367_v37, 5  ;;  %v2954_v34 = vshll.u32 %v2741_v59, 16  ;;  %v1141_v37 = vld [vmem:[#allocation2 + $0x6c] sm:$0xf]  ;;  %4869 = vmatpush.bf16.msra.mxu3 %v6604_v54 }
  0xcc   : > { %v1364_v10 = vor.u32 %v1363_v56, %v1360_v55  ;;  %v793_v41 = vsel %vm7036_vm9, 0, %v792_v28  ;;  %v2006_v45 = vrot.slane %v2004_v24, 4  ;;  %v2007_v46 = vrot.slane %v1873_v33, 5  ;;  %v1144_v28 = vld [vmem:[#allocation2 + $0x78] sm:$0xf] }
  0xcd   : > { %v1067_v63 = vpop.f32.mrf.mxu3  ;;  %794 = vst [vmem:[#allocation2 + $0x80] sm:$0x1] %v793_v41  ;;  %v1385_v55 = vshll.u32 %v1141_v37, 16  ;;  %v1874_v41 = vld [vmem:[#allocation2 + $0x6c] sm:$0xe] }
  0xce   : > { %1108 = vst.msk [vmem:[#allocation3 + $0xd0] sm:$0xff] %vm944_vm8, %v1067_v63  ;;  %v2948_v63 = vshrl.u32 %v2740_v50, 16  ;;  %v1365_v26 = vrot.slane %v1364_v10, 4  ;;  %v2942_v50 = vrot.slane %v2941_v23, 4  ;;  %v2008_v2 = vsel %vm7085_vm14, %v2006_v45, %v2007_v46 }
  0xcf   : > { %v1049_v5 = vpop.f32.mrf.mxu2  ;;  %v1032_v8 = vpop.f32.mrf.mxu1  ;;  %v1387_v10 = vrot.slane %v1385_v55, 5  ;;  %v1406_v55 = vshrl.u32 %v1144_v28, 16 }
  0xd0   : > { %1101 = vst.msk [vmem:[#allocation3 + $0x98] sm:$0xff] %vm944_vm8, %v1049_v5  ;;  %v1374_v5 = vor.u32 %v1373_v57, %v7327_v7  ;;  %v2950_v15 = vrot.slane %v2948_v63, 4  ;;  %v1370_v42 = vsel %vm7094_vm15, %v1365_v26, %v7327_v7  ;;  %v6571_v57 = vld [vmem:[#allocation2 + $0x60] sm:$0xff]  ;;  %v2742_v63 = vld [vmem:[#allocation2 + $0x6c] sm:$0xf]  ;;  %v2947_v3 = vsel %vm7094_vm15, %v2942_v50, %v7341_v14 }
  0xd1   : > { %1094 = vst.msk [vmem:[#allocation3 + $0x60] sm:$0xff] %vm944_vm8, %v1032_v8  ;;  %v1007_v17 = vpop.f32.mrf.mxu0  ;;  %v1377_v8 = vshll.u32 %v1140_v61, 16  ;;  %v1570_v61 = vunpack.c.l.b16 %v1370_v42  ;;  %v2959_v11 = vshrl.u32 %v2742_v63, 16  ;;  %v2962_v12 = vshll.u32 %v2742_v63, 16  ;;  %v795_v50 = vld [vmem:[#allocation2 + $0x8c] sm:$0x1] }
  0xd2   : > { %6154 = vmatmul.msk.bf16.gmra.mxu1 %vm944_vm8, %v1592_v47  ;;  %1084 = vst.msk [vmem:[#allocation3 + $0x10] sm:$0xff] %vm944_vm8, %v1007_v17  ;;  %v2923_v47 = vsel %vm7094_vm15, %v2918_v48, %v7302_v21  ;;  %v1593_v21 = vpack.c.b16 %v1569_v1, %v1568_v0  ;;  %v3168_v17 = vunpack.c.l.b16 %v2933_v4  ;;  %v1375_v30 = vrot.slane %v1374_v5, 4  ;;  %v2743_v0 = vld [vmem:[#allocation2 + $0x70] sm:$0xf]  ;;  %v1143_v9 = vld [vmem:[#allocation2 + $0x74] sm:$0x1] }
  0xd3   : > { %v3167_v16 = vunpack.c.l.b16 %v2923_v47  ;;  %v1379_v32 = vrot.slane %v1377_v8, 5  ;;  %v2951_v36 = vor.u32 %v2950_v15, %v7341_v14  ;;  %v2968_v6 = vshll.u32 %v2743_v0, 16 }
  0xd4   : > { %6198 = vmatmul.msk.bf16.gmra.mxu2 %vm944_vm8, %v2101_v13  ;;  %v1401_v26 = vshll.u32 %v1143_v9, 16  ;;  %v796_v54 = vsel %vm7036_vm9, 0, %v795_v50  ;;  %v6173_v63 = vrot.slane %v1874_v41, 9 }
  0xd5   : > { %v1069_v39 = vpop.f32.mrf.mxu3  ;;  %v3193_v38 = vpack.c.b16 %v3168_v17, %v3167_v16  ;;  %v1380_v40 = vsel %vm7094_vm15, %v1375_v30, %v1379_v32  ;;  %v2952_v53 = vrot.slane %v2951_v36, 4  ;;  %v3169_v16 = vunpack.c.l.b16 %v2947_v3  ;;  %v1751_v36 = vld [vmem:[#allocation3] sm:$0xff]  ;;  %797 = vst [vmem:[#allocation2 + $0x8c] sm:$0x1] %v796_v54 }
  0xd6   : > { %1109 = vst.msk [vmem:[#allocation3 + $0xd8] sm:$0xff] %vm944_vm8, %v1069_v39  ;;  %6317 = vmatmul.msk.bf16.gmra.mxu0 %vm944_vm8, %v3192_v18  ;;  %v1142_v39 = vld [vmem:[#allocation2 + $0x70] sm:$0xf]  ;;  %v1571_v1 = vunpack.c.l.b16 %v1380_v40  ;;  %v2964_v30 = vrot.slane %v2962_v12, 5  ;;  %v7381_v32 = vrot.slane %v2968_v6, 5  ;;  %v1403_v40 = vrot.slane %v1401_v26, 5 }
  0xd7   : > { %v1052_v51 = vpop.f32.mrf.mxu2  ;;  %v1034_v52 = vpop.f32.mrf.mxu1  ;;  %v1391_v56 = vshll.u32 %v1142_v39, 16  ;;  %v1395_v7 = vshrl.u32 %v1142_v39, 16  ;;  %v1752_v12 = vld [vmem:[#allocation3 + $0x8] sm:$0xff]  ;;  %v1408_v6 = vrot.slane %v1406_v55, 4 }
  0xd8   : > { %1102 = vst.msk [vmem:[#allocation3 + $0xa0] sm:$0xff] %vm944_vm8, %v1052_v51  ;;  %v2956_v51 = vrot.slane %v2954_v34, 5  ;;  %v1594_v14 = vpack.c.b16 %v1571_v1, %v1570_v61 }
  0xd9   : > { %1095 = vst.msk [vmem:[#allocation3 + $0x68] sm:$0xff] %vm944_vm8, %v1034_v52  ;;  %v1009_v60 = vpop.f32.mrf.mxu0  ;;  %v1382_v52 = vshrl.u32 %v1141_v37, 16  ;;  %v7373_v5 = vrot.slane %v1391_v56, 5  ;;  %v1397_v8 = vrot.slane %v1395_v7, 4  ;;  %v2744_v37 = vld [vmem:[#allocation2 + $0x74] sm:$0x1] }
  0xda   : > { %6290 = vmatmul.msk.bf16.gmra.mxu3 %vm944_vm8, %v6570_v43  ;;  %1085 = vst.msk [vmem:[#allocation3 + $0x18] sm:$0xff] %vm944_vm8, %v1009_v60  ;;  %v6172_v43 = vrot.slane %v1871_v27, 9  ;;  %v2957_v4 = vsel %vm7094_vm15, %v2952_v53, %v2956_v51  ;;  %v7378_v27 = vld [vmem:[#allocation2 + $0x70] sm:$0xf]  ;;  %v1876_v51 = vld [vmem:[#allocation2 + $0x74] sm:$0x1] }
  0xdb   : > { %v1384_v47 = vrot.slane %v1382_v52, 4  ;;  %v2011_v42 = vrot.slane %v7378_v27, 5  ;;  %v2978_v53 = vshll.u32 %v2744_v37, 16  ;;  %v1409_v56 = vshll.u32 %v1144_v28, 16 }
  0xdc   : > { %v2005_v62 = vsel %vm7085_vm14, %v6172_v43, %v2004_v24  ;;  %v2961_v24 = vrot.slane %v2959_v11, 4  ;;  %v1145_v43 = vld [vmem:[#allocation2 + $0x7c] sm:$0xf]  ;;  %v2014_v1 = vrot.slane %v1876_v51, 5 }
  0xdd   : > { %v1072_v13 = vpop.f32.mrf.mxu3  ;;  %v2079_v15 = vunpack.c.l.b16 %v2005_v62  ;;  %v1415_v7 = vshll.u32 %v1145_v43, 16 }
  0xde   : > { %1110 = vst.msk [vmem:[#allocation3 + $0xe0] sm:$0xff] %vm944_vm8, %v1072_v13  ;;  %v2972_v13 = vshrl.u32 %v2743_v0, 16  ;;  %v2965_v52 = vor.u32 %v2964_v30, %v2961_v24  ;;  %v2013_v0 = vrot.slane %v2011_v42, 4 }
  0xdf   : > { %v1054_v18 = vpop.f32.mrf.mxu2  ;;  %v1037_v29 = vpop.f32.mrf.mxu1 }
  0xe0   : > { %1103 = vst.msk [vmem:[#allocation3 + $0xa8] sm:$0xff] %vm944_vm8, %v1054_v18  ;;  %v3170_v18 = vunpack.c.l.b16 %v2957_v4  ;;  %v2974_v33 = vrot.slane %v2972_v13, 4  ;;  %v7399_v13 = vrot.slane %v1415_v7, 5 }
  0xe1   : > { %1096 = vst.msk [vmem:[#allocation3 + $0x70] sm:$0xff] %vm944_vm8, %v1037_v29  ;;  %v1388_v29 = vor.u32 %v1387_v10, %v1384_v47  ;;  %v2966_v47 = vrot.slane %v2965_v52, 4  ;;  %v2980_v10 = vrot.slane %v2978_v53, 5 }
  0xe2   : > { %6155 = vmatmul.msk.bf16.gmra.mxu1 %vm944_vm8, %v1593_v21  ;;  %v2080_v21 = vunpack.c.l.b16 %v2008_v2  ;;  %v3194_v45 = vpack.c.b16 %v3170_v18, %v3169_v16  ;;  %v2745_v2 = vld [vmem:[#allocation2 + $0x78] sm:$0xf] }
  0xe3   : > { %v1012_v49 = vpop.f32.mrf.mxu0  ;;  %v1389_v46 = vrot.slane %v1388_v29, 4  ;;  %v2983_v16 = vshrl.u32 %v2745_v2, 16  ;;  %v2012_v29 = vsel %vm7085_vm14, %v6173_v63, %v2011_v42 }
  0xe4   : > { %6199 = vmatmul.msk.bf16.gmra.mxu2 %vm944_vm8, %v2102_v22  ;;  %1086 = vst.msk [vmem:[#allocation3 + $0x20] sm:$0xff] %vm944_vm8, %v1012_v49  ;;  %v1398_v22 = vor.u32 %v1397_v8, %v7373_v5  ;;  %v2103_v39 = vpack.c.b16 %v2080_v21, %v2079_v15  ;;  %v2746_v8 = vld [vmem:[#allocation2 + $0x7c] sm:$0xf]  ;;  %v6606_v15 = vld [vmem:[%s8575_s1 + $0x80] sm:$0xff]  ;;  %v2081_v41 = vunpack.c.l.b16 %v2012_v29 }
  0xe5   : > { %v1074_v48 = vpop.f32.mrf.mxu3  ;;  %v1394_v62 = vsel %vm7094_vm15, %v1389_v46, %v7373_v5  ;;  %v1411_v5 = vrot.slane %v1409_v56, 5  ;;  %v1146_v21 = vld [vmem:[#allocation2 + $0x80] sm:$0x1]  ;;  %v2992_v26 = vshll.u32 %v2746_v8, 16  ;;  %v2996_v27 = vshrl.u32 %v2746_v8, 16  ;;  %5375 = vmatpush.bf16.msra.mxu0 %v6606_v15  ;;  %v1753_v56 = vld [vmem:[#allocation3 + $0x10] sm:$0xff] }
  0xe6   : > { %1111 = vst.msk [vmem:[#allocation3 + $0xe8] sm:$0xff] %vm944_vm8, %v1074_v48  ;;  %6318 = vmatmul.msk.bf16.gmra.mxu0 %vm944_vm8, %v3193_v38  ;;  %v1399_v49 = vrot.slane %v1398_v22, 4  ;;  %v2975_v48 = vor.u32 %v2974_v33, %v7381_v32  ;;  %v2015_v22 = vsel %vm7085_vm14, %v2013_v0, %v2014_v1  ;;  %v1572_v30 = vunpack.c.l.b16 %v1394_v62  ;;  %v1879_v62 = vld [vmem:[#allocation2 + $0x80] sm:$0x1] }
  0xe7   : > { %v1057_v58 = vpop.f32.mrf.mxu2  ;;  %v1039_v60 = vpop.f32.mrf.mxu1  ;;  %v1425_v28 = vshll.u32 %v1146_v21, 16  ;;  %v2082_v42 = vunpack.c.l.b16 %v2015_v22 }
  0xe8   : > { %1104 = vst.msk [vmem:[#allocation3 + $0xb0] sm:$0xff] %vm944_vm8, %v1057_v58  ;;  %v1404_v3 = vsel %vm7094_vm15, %v1399_v49, %v1403_v40  ;;  %v2976_v4 = vrot.slane %v2975_v48, 4  ;;  %v2998_v49 = vrot.slane %v2996_v27, 4  ;;  %v2747_v48 = vld [vmem:[#allocation2 + $0x80] sm:$0x1] }
  0xe9   : > { %1097 = vst.msk [vmem:[#allocation3 + $0x78] sm:$0xff] %vm944_vm8, %v1039_v60  ;;  %v6572_v60 = vld [vmem:[#allocation2 + $0x6c] sm:$0xff]  ;;  %v1573_v33 = vunpack.c.l.b16 %v1404_v3  ;;  %v1427_v54 = vrot.slane %v1425_v28, 5  ;;  %v1147_v3 = vld [vmem:[#allocation2 + $0x84] sm:$0xf] }
  0xea   : > { %6291 = vmatmul.msk.bf16.gmra.mxu3 %vm944_vm8, %v6571_v57  ;;  %v1419_v57 = vshrl.u32 %v1145_v43, 16  ;;  %v2985_v43 = vrot.slane %v2983_v16, 4 }
  0xeb   : > { %v1014_v59 = vpop.f32.mrf.mxu0  ;;  %v1595_v40 = vpack.c.b16 %v1573_v33, %v1572_v30  ;;  %v2748_v30 = vld [vmem:[#allocation2 + $0x84] sm:$0xf] }
  0xec   : > { %1087 = vst.msk [vmem:[#allocation3 + $0x28] sm:$0xff] %vm944_vm8, %v1014_v59  ;;  %v1421_v59 = vrot.slane %v1419_v57, 4 }
  0xed   : > { %v1077_v17 = vpop.f32.mrf.mxu3 }
  0xee   : > { %1112 = vst.msk [vmem:[#allocation3 + $0xf0] sm:$0xff] %vm944_vm8, %v1077_v17  ;;  %v2986_v17 = vshll.u32 %v2745_v2, 16  ;;  %v1422_v37 = vor.u32 %v1421_v59, %v7399_v13  ;;  %v3002_v2 = vshll.u32 %v2747_v48, 16  ;;  %v2021_v59 = vrot.slane %v1879_v62, 5  ;;  %v1149_v48 = vld [vmem:[#allocation2 + $0x8c] sm:$0x1] }
  0xef   : > { %v1059_v23 = vpop.f32.mrf.mxu2  ;;  %v1671_v34 = vpop.f32.mrf.mxu1 }
  0xf0   : > { %1105 = vst.msk [vmem:[#allocation3 + $0xb8] sm:$0xff] %vm944_vm8, %v1059_v23  ;;  %v1783_v38 = vadd.f32 %v1751_v36, %v1671_v34  ;;  %v2971_v23 = vsel %vm7094_vm15, %v2966_v47, %v7381_v32  ;;  %v2981_v34 = vsel %vm7094_vm15, %v2976_v4, %v2980_v10  ;;  %v1412_v36 = vor.u32 %v1411_v5, %v1408_v6  ;;  %v798_v47 = vld [vmem:[#allocation2 + $0x98] sm:$0x1] }
  0xf1   : > { %v7420_v32 = vrot.slane %v2992_v26, 5  ;;  %v3171_v50 = vunpack.c.l.b16 %v2971_v23  ;;  %v3172_v51 = vunpack.c.l.b16 %v2981_v34  ;;  %v1423_v57 = vrot.slane %v1422_v37, 4  ;;  %v1754_v34 = vld [vmem:[#allocation3 + $0x18] sm:$0xff] }
  0xf2   : > { %1815 = vst.msk [vmem:[#allocation3] sm:$0xff] %vm944_vm8, %v1783_v38  ;;  %6156 = vmatmul.msk.bf16.gmra.mxu1 %vm944_vm8, %v1594_v14  ;;  %v7416_v38 = vld [vmem:[#allocation2 + $0x7c] sm:$0xf]  ;;  %v1413_v7 = vrot.slane %v1412_v36, 4  ;;  %v3004_v26 = vrot.slane %v3002_v2, 5 }
  0xf3   : > { %v1017_v58 = vpop.f32.mrf.mxu0  ;;  %v2018_v52 = vrot.slane %v7416_v38, 5  ;;  %v2999_v1 = vor.u32 %v2998_v49, %v7420_v32  ;;  %v3195_v10 = vpack.c.b16 %v3172_v51, %v3171_v50  ;;  %v1428_v5 = vsel %vm7094_vm15, %v1423_v57, %v1427_v54 }
  0xf4   : > { %6200 = vmatmul.msk.bf16.gmra.mxu2 %vm944_vm8, %v2103_v39  ;;  %1088 = vst.msk [vmem:[#allocation3 + $0x30] sm:$0xff] %vm944_vm8, %v1017_v58  ;;  %v1877_v58 = vld [vmem:[#allocation2 + $0x78] sm:$0xe]  ;;  %v1418_v6 = vsel %vm7094_vm15, %v1413_v7, %v7399_v13  ;;  %v1575_v37 = vunpack.c.l.b16 %v1428_v5  ;;  %v3007_v51 = vshrl.u32 %v2748_v30, 16 }
  0xf5   : > { %v1079_v61 = vpop.f32.mrf.mxu3  ;;  %v6174_v8 = vrot.slane %v1877_v58, 9  ;;  %v3000_v22 = vrot.slane %v2999_v1, 4  ;;  %v7437_v36 = vunpack.c.l.b16 %v1418_v6 }
  0xf6   : > { %1113 = vst.msk [vmem:[#allocation3 + $0xf8] sm:$0xff] %vm944_vm8, %v1079_v61  ;;  %6319 = vmatmul.msk.bf16.gmra.mxu0 %vm944_vm8, %v3194_v45  ;;  %v2988_v45 = vrot.slane %v2986_v17, 5  ;;  %v2104_v61 = vpack.c.b16 %v2082_v42, %v2081_v41  ;;  %v1430_v17 = vshrl.u32 %v1147_v3, 16 }
  0xf7   : > { %v2180_v9 = vpop.f32.mrf.mxu2  ;;  %v1673_v11 = vpop.f32.mrf.mxu1  ;;  %v2019_v28 = vsel %vm7085_vm14, %v6174_v8, %v2018_v52  ;;  %v3005_v49 = vsel %vm7094_vm15, %v3000_v22, %v3004_v26  ;;  %v1880_v8 = vld [vmem:[#allocation2 + $0x84] sm:$0xe]  ;;  %v1150_v22 = vld [vmem:[#allocation2 + $0x90] sm:$0xf] }
  0xf8   : > { %v1784_v14 = vadd.f32 %v1752_v12, %v1673_v11  ;;  %v2989_v63 = vor.u32 %v2988_v45, %v2985_v43  ;;  %v1148_v11 = vld [vmem:[#allocation2 + $0x88] sm:$0xf]  ;;  %v1432_v43 = vrot.slane %v1430_v17, 4  ;;  %v2083_v7 = vunpack.c.l.b16 %v2019_v28 }
  0xf9   : > { %v2260_v18 = vld [vmem:[#allocation3] sm:$0xff]  ;;  %v1439_v13 = vshll.u32 %v1148_v11, 16  ;;  %v1443_v27 = vshrl.u32 %v1148_v11, 16  ;;  %v3174_v2 = vunpack.c.l.b16 %v3005_v49  ;;  %v1457_v49 = vshll.u32 %v1150_v22, 16 }
  0xfa   : > { %v2292_v24 = vadd.f32 %v2260_v18, %v2180_v9  ;;  %1816 = vst.msk [vmem:[#allocation3 + $0x8] sm:$0xff] %vm944_vm8, %v1784_v14  ;;  %6292 = vmatmul.msk.bf16.gmra.mxu3 %vm944_vm8, %v6572_v60  ;;  %v2020_v9 = vrot.slane %v2018_v52, 4  ;;  %v799_v14 = vsel %vm7036_vm9, 0, %v798_v47  ;;  %v2990_v16 = vrot.slane %v2989_v63, 4  ;;  %v1881_v63 = vld [vmem:[#allocation2 + $0x88] sm:$0xf] }
  0xfb   : > { %v1019_v39 = vpop.f32.mrf.mxu0  ;;  %v1433_v18 = vshll.u32 %v1147_v3, 16  ;;  %800 = vst [vmem:[#allocation2 + $0x98] sm:$0x1] %v799_v14  ;;  %v1445_v50 = vrot.slane %v1443_v27, 4  ;;  %v1449_v47 = vshll.u32 %v1149_v48, 16  ;;  %v2025_v14 = vrot.slane %v1881_v63, 5 }
  0xfc   : > { %2324 = vst.msk [vmem:[#allocation3] sm:$0xff] %vm944_vm8, %v2292_v24  ;;  %v6573_v24 = vld [vmem:[#allocation2 + $0x78] sm:$0xff]  ;;  %v2022_v38 = vsel %vm7085_vm14, %v2020_v9, %v2021_v59  ;;  %v2995_v42 = vsel %vm7094_vm15, %v2990_v16, %v7420_v32 }
  0xfd   : > { %v2542_v46 = vpop.f32.mrf.mxu3  ;;  %1089 = vst.msk [vmem:[#allocation3 + $0x38] sm:$0xff] %vm944_vm8, %v1019_v39  ;;  %v2749_v39 = vld [vmem:[#allocation2 + $0x88] sm:$0xf]  ;;  %v1435_v45 = vrot.slane %v1433_v18, 5  ;;  %v2084_v57 = vunpack.c.l.b16 %v2022_v38  ;;  %v1755_v59 = vld [vmem:[#allocation3 + $0x20] sm:$0xff]  ;;  %v1451_v27 = vrot.slane %v1449_v47, 5 }
  0xfe   : > { %v2027_v38 = vrot.slane %v2025_v14, 4 }
  0xff   : > { %v2182_v53 = vpop.f32.mrf.mxu2  ;;  %v1676_v55 = vpop.f32.mrf.mxu1  ;;  %v1436_v62 = vor.u32 %v1435_v45, %v1432_v43  ;;  %v2105_v17 = vpack.c.b16 %v2084_v57, %v2083_v7 }
 0x100   : > { %v1785_v60 = vadd.f32 %v1753_v56, %v1676_v55  ;;  %v3016_v55 = vshll.u32 %v2749_v39, 16  ;;  %v3020_v56 = vshrl.u32 %v2749_v39, 16 }
 0x101   : > { %v2261_v0 = vld [vmem:[#allocation3 + $0x8] sm:$0xff]  ;;  %v1437_v18 = vrot.slane %v1436_v62, 4 }
 0x102   : > { %v2293_v4 = vadd.f32 %v2261_v0, %v2182_v53  ;;  %1817 = vst.msk [vmem:[#allocation3 + $0x10] sm:$0xff] %vm944_vm8, %v1785_v60  ;;  %6157 = vmatmul.msk.bf16.gmra.mxu1 %vm944_vm8, %v1595_v40  ;;  %v7448_v40 = vrot.slane %v1439_v13, 5  ;;  %v3010_v53 = vshll.u32 %v2748_v30, 16  ;;  %v1596_v60 = vpack.c.b16 %v1575_v37, %v7437_v36  ;;  %v801_v30 = vld [vmem:[#allocation2 + $0xa4] sm:$0x1] }
 0x103   : > { %v2622_v12 = vld [vmem:[#allocation3] sm:$0xff]  ;;  %v3272_v21 = vpop.f32.mrf.mxu0  ;;  %v7458_v11 = vrot.slane %v3016_v55, 5  ;;  %v1151_v37 = vld [vmem:[#allocation2 + $0x94] sm:$0xf] }
 0x104   : > { %v2654_v15 = vadd.f32 %v2622_v12, %v2542_v46  ;;  %2325 = vst.msk [vmem:[#allocation3 + $0x8] sm:$0xff] %vm944_vm8, %v2293_v4  ;;  %6201 = vmatmul.msk.bf16.gmra.mxu2 %vm944_vm8, %v2104_v61  ;;  %v7454_v61 = vunpack.c.l.b16 %v2995_v42  ;;  %v1446_v3 = vor.u32 %v1445_v50, %v7448_v40  ;;  %v3009_v4 = vrot.slane %v3007_v51, 4 }
 0x105   : > { %v2544_v29 = vpop.f32.mrf.mxu3  ;;  %v3012_v9 = vrot.slane %v3010_v53, 5  ;;  %v3022_v12 = vrot.slane %v3020_v56, 4  ;;  %v802_v42 = vsel %vm7036_vm9, 0, %v801_v30  ;;  %v1463_v53 = vshll.u32 %v1151_v37, 16  ;;  %v1757_v30 = vld [vmem:[#allocation3 + $0x30] sm:$0xff] }
 0x106   : > { %2686 = vst.msk [vmem:[#allocation3] sm:$0xff] %vm944_vm8, %v2654_v15  ;;  %6320 = vmatmul.msk.bf16.gmra.mxu0 %vm944_vm8, %v3195_v10  ;;  %v2750_v15 = vld [vmem:[#allocation2 + $0x8c] sm:$0x1]  ;;  %v1447_v13 = vrot.slane %v1446_v3, 4  ;;  %v1467_v55 = vshrl.u32 %v1151_v37, 16 }
 0x107   : > { %v2185_v33 = vpop.f32.mrf.mxu2  ;;  %v1678_v23 = vpop.f32.mrf.mxu1  ;;  %v3026_v36 = vshll.u32 %v2750_v15, 16  ;;  %803 = vst [vmem:[#allocation2 + $0xa4] sm:$0x1] %v802_v42  ;;  %v2752_v3 = vld [vmem:[#allocation2 + $0x94] sm:$0xf] }
 0x108   : > { %v1786_v41 = vadd.f32 %v1754_v34, %v1678_v23  ;;  %v3013_v23 = vor.u32 %v3012_v9, %v3009_v4  ;;  %v3023_v34 = vor.u32 %v3022_v12, %v7458_v11  ;;  %v1469_v9 = vrot.slane %v1467_v55, 4  ;;  %v7492_v15 = vld [vmem:[#allocation2 + $0x94] sm:$0xf]  ;;  %v1885_v42 = vld [vmem:[#allocation2 + $0x98] sm:$0x1] }
 0x109   : > { %v2262_v46 = vld [vmem:[#allocation3 + $0x10] sm:$0xff] }
 0x10a   : > { %v2294_v52 = vadd.f32 %v2262_v46, %v2185_v33  ;;  %1818 = vst.msk [vmem:[#allocation3 + $0x18] sm:$0xff] %vm944_vm8, %v1786_v41  ;;  %6293 = vmatmul.msk.bf16.gmra.mxu3 %vm944_vm8, %v6573_v24  ;;  %v6175_v24 = vrot.slane %v1880_v8, 9  ;;  %v1454_v41 = vshrl.u32 %v1150_v22, 16  ;;  %v1442_v46 = vsel %vm7094_vm15, %v1437_v18, %v7448_v40 }
 0x10b   : > { %v2623_v32 = vld [vmem:[#allocation3 + $0x8] sm:$0xff]  ;;  %v3274_v58 = vpop.f32.mrf.mxu0  ;;  %v3014_v7 = vrot.slane %v3013_v23, 4  ;;  %v3024_v57 = vrot.slane %v3023_v34, 4  ;;  %v7483_v8 = vrot.slane %v1463_v53, 5  ;;  %v3044_v22 = vshrl.u32 %v2752_v3, 16 }
 0x10c   : > { %v2655_v54 = vadd.f32 %v2623_v32, %v2544_v29  ;;  %2326 = vst.msk [vmem:[#allocation3 + $0x10] sm:$0xff] %vm944_vm8, %v2294_v52  ;;  %v1882_v29 = vld [vmem:[#allocation2 + $0x8c] sm:$0x1]  ;;  %v1452_v52 = vsel %vm7094_vm15, %v1447_v13, %v1451_v27  ;;  %v2026_v48 = vsel %vm7085_vm14, %v6175_v24, %v2025_v14  ;;  %v6574_v32 = vld [vmem:[#allocation2 + $0x84] sm:$0xff]  ;;  %v1456_v63 = vrot.slane %v1454_v41, 4 }
 0x10d   : > { %v3352_v0 = vld [vmem:[#allocation3] sm:$0xff]  ;;  %v2547_v1 = vpop.f32.mrf.mxu3  ;;  %v2028_v39 = vrot.slane %v1882_v29, 5  ;;  %v1577_v4 = vunpack.c.l.b16 %v1452_v52  ;;  %v3040_v29 = vshll.u32 %v2752_v3, 16  ;;  %v1470_v23 = vor.u32 %v1469_v9, %v7483_v8  ;;  %v1883_v41 = vld [vmem:[#allocation2 + $0x90] sm:$0xe] }
 0x10e   : > { %2687 = vst.msk [vmem:[#allocation3 + $0x8] sm:$0xff] %vm944_vm8, %v2655_v54  ;;  %v3384_v10 = vadd.f32 %v3352_v0, %v3272_v21  ;;  %v3196_v21 = vpack.c.b16 %v3174_v2, %v7454_v61  ;;  %v3028_v54 = vrot.slane %v3026_v36, 5  ;;  %v1756_v61 = vld [vmem:[#allocation3 + $0x28] sm:$0xff]  ;;  %v1459_v2 = vrot.slane %v1457_v49, 5  ;;  %v1152_v14 = vld [vmem:[#allocation2 + $0x98] sm:$0x1] }
 0x10f   : > { %v2187_v6 = vpop.f32.mrf.mxu2  ;;  %v1681_v5 = vpop.f32.mrf.mxu1  ;;  %v2029_v62 = vsel %vm7085_vm14, %v2027_v38, %v2028_v39  ;;  %v2032_v34 = vrot.slane %v7492_v15, 5  ;;  %v1153_v36 = vld [vmem:[#allocation2 + $0x9c] sm:$0xf]  ;;  %v1473_v39 = vshll.u32 %v1152_v14, 16  ;;  %v2753_v49 = vld [vmem:[#allocation2 + $0x98] sm:$0x1] }
 0x110   : > { %3416 = vst.msk [vmem:[#allocation3] sm:$0xff] %vm944_vm8, %v3384_v10  ;;  %v1787_v16 = vadd.f32 %v1755_v59, %v1681_v5  ;;  %v2085_v10 = vunpack.c.l.b16 %v2026_v48  ;;  %v3019_v5 = vsel %vm7094_vm15, %v3014_v7, %v7458_v11  ;;  %v3029_v59 = vsel %vm7094_vm15, %v3024_v57, %v3028_v54 }
 0x111   : > { %v2263_v26 = vld [vmem:[#allocation3 + $0x18] sm:$0xff]  ;;  %v1460_v13 = vor.u32 %v1459_v2, %v1456_v63  ;;  %v7495_v11 = vunpack.c.l.b16 %v3019_v5  ;;  %v7501_v52 = vrot.slane %v3040_v29, 5  ;;  %v3046_v48 = vrot.slane %v3044_v22, 4  ;;  %v2754_v22 = vld [vmem:[#allocation2 + $0x9c] sm:$0xf] }
 0x112   : > { %v2295_v33 = vadd.f32 %v2263_v26, %v2187_v6  ;;  %1819 = vst.msk [vmem:[#allocation3 + $0x20] sm:$0xff] %vm944_vm8, %v1787_v16  ;;  %6158 = vmatmul.msk.bf16.gmra.mxu1 %vm944_vm8, %v1596_v60  ;;  %v2086_v6 = vunpack.c.l.b16 %v2029_v62  ;;  %v1471_v54 = vrot.slane %v1470_v23, 4  ;;  %v1475_v63 = vrot.slane %v1473_v39, 5 }
 0x113   : > { %v2624_v28 = vld [vmem:[#allocation3 + $0x10] sm:$0xff]  ;;  %v3277_v45 = vpop.f32.mrf.mxu0  ;;  %v1461_v55 = vrot.slane %v1460_v13, 4  ;;  %v3047_v3 = vor.u32 %v3046_v48, %v7501_v52  ;;  %v3055_v39 = vshrl.u32 %v2754_v22, 16 }
 0x114   : > { %v2656_v43 = vadd.f32 %v2624_v28, %v2547_v1  ;;  %2327 = vst.msk [vmem:[#allocation3 + $0x18] sm:$0xff] %vm944_vm8, %v2295_v33  ;;  %6202 = vmatmul.msk.bf16.gmra.mxu2 %vm944_vm8, %v2105_v17  ;;  %v7481_v1 = vunpack.c.l.b16 %v1442_v46  ;;  %v3176_v33 = vunpack.c.l.b16 %v3029_v59  ;;  %v2106_v38 = vpack.c.b16 %v2086_v6, %v2085_v10 }
 0x115   : > { %v3353_v50 = vld [vmem:[#allocation3 + $0x8] sm:$0xff]  ;;  %v2549_v51 = vpop.f32.mrf.mxu3 }
 0x116   : > { %2688 = vst.msk [vmem:[#allocation3 + $0x10] sm:$0xff] %vm944_vm8, %v2656_v43  ;;  %v3385_v56 = vadd.f32 %v3353_v50, %v3274_v58  ;;  %6321 = vmatmul.msk.bf16.gmra.mxu0 %vm944_vm8, %v3196_v21  ;;  %v2751_v58 = vld [vmem:[#allocation2 + $0x90] sm:$0xf]  ;;  %v1597_v28 = vpack.c.b16 %v1577_v4, %v7481_v1  ;;  %v3197_v57 = vpack.c.b16 %v3176_v33, %v7495_v11  ;;  %v3050_v1 = vshll.u32 %v2753_v49, 16  ;;  %v2755_v33 = vld [vmem:[#allocation2 + $0xa0] sm:$0xf] }
 0x117   : > { %v2190_v40 = vpop.f32.mrf.mxu2  ;;  %v1683_v60 = vpop.f32.mrf.mxu1  ;;  %v3031_v17 = vshrl.u32 %v2751_v58, 16  ;;  %v3034_v18 = vshll.u32 %v2751_v58, 16  ;;  %v3064_v49 = vshll.u32 %v2755_v33, 16 }
 0x118   : > { %3417 = vst.msk [vmem:[#allocation3 + $0x8] sm:$0xff] %vm944_vm8, %v3385_v56  ;;  %v1788_v0 = vadd.f32 %v1756_v61, %v1683_v60  ;;  %v1154_v56 = vld [vmem:[#allocation2 + $0xa0] sm:$0xf]  ;;  %v2034_v60 = vrot.slane %v2032_v34, 4  ;;  %v804_v61 = vld [vmem:[#allocation2 + $0xb0] sm:$0x1] }
 0x119   : > { %v2264_v47 = vld [vmem:[#allocation3 + $0x20] sm:$0xff]  ;;  %v3033_v50 = vrot.slane %v3031_v17, 4  ;;  %v805_v4 = vsel %vm7036_vm9, 0, %v804_v61  ;;  %v1491_v5 = vshrl.u32 %v1154_v56, 16  ;;  %v1466_v17 = vsel %vm7094_vm15, %v1461_v55, %v7483_v8 }
 0x11a   : > { %v2296_v12 = vadd.f32 %v2264_v47, %v2190_v40  ;;  %1820 = vst.msk [vmem:[#allocation3 + $0x28] sm:$0xff] %vm944_vm8, %v1788_v0  ;;  %6294 = vmatmul.msk.bf16.gmra.mxu3 %vm944_vm8, %v6574_v32  ;;  %v1481_v32 = vshll.u32 %v1153_v36, 16  ;;  %v6176_v40 = vrot.slane %v1883_v41, 9  ;;  %v2035_v0 = vrot.slane %v1885_v42, 5 }
 0x11b   : > { %v2625_v16 = vld [vmem:[#allocation3 + $0x18] sm:$0xff]  ;;  %v3279_v21 = vpop.f32.mrf.mxu0  ;;  %v1487_v47 = vshll.u32 %v1154_v56, 16  ;;  %806 = vst [vmem:[#allocation2 + $0xb0] sm:$0x1] %v805_v4  ;;  %v3052_v11 = vrot.slane %v3050_v1, 5  ;;  %v3058_v41 = vshll.u32 %v2754_v22, 16 }
 0x11c   : > { %v2657_v26 = vadd.f32 %v2625_v16, %v2549_v51  ;;  %2328 = vst.msk [vmem:[#allocation3 + $0x20] sm:$0xff] %vm944_vm8, %v2296_v12  ;;  %v3036_v51 = vrot.slane %v3034_v18, 5  ;;  %v1483_v6 = vrot.slane %v1481_v32, 5  ;;  %v6575_v16 = vld [vmem:[#allocation2 + $0x90] sm:$0xff]  ;;  %v2033_v18 = vsel %vm7085_vm14, %v6176_v40, %v2032_v34 }
 0x11d   : > { %v3354_v27 = vld [vmem:[#allocation3 + $0x10] sm:$0xff]  ;;  %v2552_v24 = vpop.f32.mrf.mxu3  ;;  %v2036_v29 = vsel %vm7085_vm14, %v2034_v60, %v2035_v0  ;;  %v7524_v34 = vrot.slane %v1487_v47, 5  ;;  %v2087_v48 = vunpack.c.l.b16 %v2033_v18  ;;  %v3057_v0 = vrot.slane %v3055_v39, 4 }
 0x11e   : > { %2689 = vst.msk [vmem:[#allocation3 + $0x18] sm:$0xff] %vm944_vm8, %v2657_v26  ;;  %v3386_v37 = vadd.f32 %v3354_v27, %v3277_v45  ;;  %v1478_v45 = vshrl.u32 %v1153_v36, 16  ;;  %v3037_v58 = vor.u32 %v3036_v51, %v3033_v50  ;;  %v1758_v27 = vld [vmem:[#allocation3 + $0x38] sm:$0xff]  ;;  %v1493_v36 = vrot.slane %v1491_v5, 4 }
 0x11f   : > { %v2192_v43 = vpop.f32.mrf.mxu2  ;;  %v1686_v46 = vpop.f32.mrf.mxu1  ;;  %v3068_v50 = vshrl.u32 %v2755_v33, 16 }
 0x120   : > { %3418 = vst.msk [vmem:[#allocation3 + $0x10] sm:$0xff] %vm944_vm8, %v3386_v37  ;;  %v1789_v53 = vadd.f32 %v1757_v30, %v1686_v46  ;;  %v1480_v12 = vrot.slane %v1478_v45, 4  ;;  %v3048_v30 = vrot.slane %v3047_v3, 4  ;;  %v1155_v46 = vld [vmem:[#allocation2 + $0xa4] sm:$0x1]  ;;  %v7541_v3 = vrot.slane %v3064_v49, 5 }
 0x121   : > { %v2265_v7 = vld [vmem:[#allocation3 + $0x28] sm:$0xff]  ;;  %v3070_v47 = vrot.slane %v3068_v50, 4 }
 0x122   : > { %v2297_v62 = vadd.f32 %v2265_v7, %v2192_v43  ;;  %1821 = vst.msk [vmem:[#allocation3 + $0x30] sm:$0xff] %vm944_vm8, %v1789_v53  ;;  %6159 = vmatmul.msk.bf16.gmra.mxu1 %vm944_vm8, %v1597_v28  ;;  %v1484_v23 = vor.u32 %v1483_v6, %v1480_v12  ;;  %v1578_v28 = vunpack.c.l.b16 %v1466_v17  ;;  %v2088_v53 = vunpack.c.l.b16 %v2036_v29  ;;  %v1759_v12 = vld [vmem:[#allocation3 + $0x40] sm:$0xff] }
 0x123   : > { %v2626_v2 = vld [vmem:[#allocation3 + $0x20] sm:$0xff]  ;;  %v3282_v9 = vpop.f32.mrf.mxu0  ;;  %v3053_v56 = vsel %vm7094_vm15, %v3048_v30, %v3052_v11  ;;  %v3071_v11 = vor.u32 %v3070_v47, %v7541_v3 }
 0x124   : > { %v2658_v10 = vadd.f32 %v2626_v2, %v2552_v24  ;;  %2329 = vst.msk [vmem:[#allocation3 + $0x28] sm:$0xff] %vm944_vm8, %v2297_v62  ;;  %6203 = vmatmul.msk.bf16.gmra.mxu2 %vm944_vm8, %v2106_v38  ;;  %v3038_v24 = vrot.slane %v3037_v58, 4  ;;  %v7526_v38 = vld [vmem:[#allocation2 + $0xa0] sm:$0xf]  ;;  %v1485_v7 = vrot.slane %v1484_v23, 4  ;;  %v1497_v62 = vshll.u32 %v1155_v46, 16 }
 0x125   : > { %v3355_v59 = vld [vmem:[#allocation3 + $0x18] sm:$0xff]  ;;  %v2554_v14 = vpop.f32.mrf.mxu3  ;;  %v2039_v40 = vrot.slane %v7526_v38, 5  ;;  %v1888_v58 = vld [vmem:[#allocation2 + $0xa4] sm:$0x1]  ;;  %v2107_v6 = vpack.c.b16 %v2088_v53, %v2087_v48  ;;  %v7561_v46 = vld [vmem:[%s6826_s18 + $0x78] sm:$0xf] }
 0x126   : > { %2690 = vst.msk [vmem:[#allocation3 + $0x20] sm:$0xff] %vm944_vm8, %v2658_v10  ;;  %v3387_v15 = vadd.f32 %v3355_v59, %v3279_v21  ;;  %6322 = vmatmul.msk.bf16.gmra.mxu0 %vm944_vm8, %v3197_v57  ;;  %v1476_v21 = vsel %vm7094_vm15, %v1471_v54, %v1475_v63  ;;  %v3043_v55 = vsel %vm7094_vm15, %v3038_v24, %v7501_v52  ;;  %v1886_v54 = vld [vmem:[#allocation2 + $0x9c] sm:$0xe]  ;;  %v2756_v63 = vld [vmem:[#allocation2 + $0xa4] sm:$0x1]  ;;  %v3060_v52 = vrot.slane %v3058_v41, 5 }
 0x127   : > { %v2195_v26 = vpop.f32.mrf.mxu2  ;;  %v1688_v13 = vpop.f32.mrf.mxu1  ;;  %v1579_v43 = vunpack.c.l.b16 %v1476_v21  ;;  %v1494_v57 = vor.u32 %v1493_v36, %v7524_v34  ;;  %v3177_v5 = vunpack.c.l.b16 %v3043_v55  ;;  %v3178_v59 = vunpack.c.l.b16 %v3053_v56  ;;  %v807_v24 = vld [vmem:[#allocation2 + $0xbc] sm:$0x1]  ;;  %v2757_v56 = vld [vmem:[#allocation2 + $0xa8] sm:$0xf] }
 0x128   : > { %3419 = vst.msk [vmem:[#allocation3 + $0x18] sm:$0xff] %vm944_vm8, %v3387_v15  ;;  %v1790_v8 = vadd.f32 %v1758_v27, %v1688_v13  ;;  %v1156_v15 = vld [vmem:[#allocation2 + $0xa8] sm:$0xf]  ;;  %v2041_v18 = vrot.slane %v2039_v40, 4  ;;  %v3074_v29 = vshll.u32 %v2756_v63, 16  ;;  %v1499_v13 = vrot.slane %v1497_v62, 5 }
 0x129   : > { %v2266_v37 = vld [vmem:[#allocation3 + $0x30] sm:$0xff]  ;;  %v1598_v2 = vpack.c.b16 %v1579_v43, %v1578_v28  ;;  %v1495_v17 = vrot.slane %v1494_v57, 4  ;;  %v2042_v27 = vrot.slane %v1888_v58, 5  ;;  %v3061_v21 = vor.u32 %v3060_v52, %v3057_v0  ;;  %v6576_v41 = vld [vmem:[#allocation2 + $0x9c] sm:$0xff] }
 0x12a   : > { %v2298_v42 = vadd.f32 %v2266_v37, %v2195_v26  ;;  %1822 = vst.msk [vmem:[#allocation3 + $0x38] sm:$0xff] %vm944_vm8, %v1790_v8  ;;  %6295 = vmatmul.msk.bf16.gmra.mxu3 %vm944_vm8, %v6575_v16  ;;  %v1490_v26 = vsel %vm7094_vm15, %v1485_v7, %v7524_v34  ;;  %v1502_v33 = vshrl.u32 %v1156_v15, 16  ;;  %v1505_v8 = vshll.u32 %v1156_v15, 16  ;;  %v1760_v62 = vld [vmem:[#allocation3 + $0x48] sm:$0xff] }
 0x12b   : > { %v2627_v51 = vld [vmem:[#allocation3 + $0x28] sm:$0xff]  ;;  %v7536_v32 = vpop.f32.mrf.mxu0  ;;  %v3198_v36 = vpack.c.b16 %v3178_v59, %v3177_v5  ;;  %v808_v34 = vsel %vm7036_vm9, 0, %v807_v24  ;;  %v7558_v43 = vrot.slane %v3074_v29, 5  ;;  %v7565_v48 = vunpack.c.l.b16 %v1490_v26  ;;  %v7590_v29 = vld [vmem:[%s6826_s18 + $0x7c] sm:$0xf] }
 0x12c   : > { %v2659_v45 = vadd.f32 %v2627_v51, %v2554_v14  ;;  %2330 = vst.msk [vmem:[#allocation3 + $0x30] sm:$0xff] %vm944_vm8, %v2298_v42  ;;  %v6177_v14 = vrot.slane %v1886_v54, 9  ;;  %v1500_v51 = vsel %vm7094_vm15, %v1495_v17, %v1499_v13  ;;  %v2043_v53 = vsel %vm7085_vm14, %v2041_v18, %v2042_v27  ;;  %v7593_v26 = vld [vmem:[#allocation2 + $0xa8] sm:$0xe] }
 0x12d   : > { %v3356_v60 = vld [vmem:[#allocation3 + $0x20] sm:$0xff]  ;;  %v2557_v61 = vpop.f32.mrf.mxu3  ;;  %v3062_v55 = vrot.slane %v3061_v21, 4  ;;  %809 = vst [vmem:[#allocation2 + $0xbc] sm:$0x1] %v808_v34  ;;  %v3072_v7 = vrot.slane %v3071_v11, 4  ;;  %v1504_v57 = vrot.slane %v1502_v33, 4  ;;  %v7578_v58 = vunpack.c.l.b16 %v1500_v51 }
 0x12e   : > { %2691 = vst.msk [vmem:[#allocation3 + $0x28] sm:$0xff] %vm944_vm8, %v2659_v45  ;;  %v3388_v1 = vadd.f32 %v3356_v60, %v3282_v9  ;;  %v1157_v9 = vld [vmem:[#allocation2 + $0xac] sm:$0xf]  ;;  %v2040_v42 = vsel %vm7085_vm14, %v6177_v14, %v2039_v40  ;;  %v1507_v54 = vrot.slane %v1505_v8, 5  ;;  %v2090_v47 = vunpack.c.l.b16 %v2043_v53  ;;  %v7603_v33 = vld [vmem:[#allocation2 + $0xb0] sm:$0x1] }
 0x12f   : > { %v2197_v4 = vpop.f32.mrf.mxu2  ;;  %v1691_v10 = vpop.f32.mrf.mxu1  ;;  %v1511_v37 = vshll.u32 %v1157_v9, 16  ;;  %v1515_v28 = vshrl.u32 %v1157_v9, 16  ;;  %v2758_v40 = vld [vmem:[#allocation2 + $0xac] sm:$0xf]  ;;  %v2089_v63 = vunpack.c.l.b16 %v2040_v42  ;;  %v3082_v5 = vshll.u32 %v2757_v56, 16 }
 0x130   : > { %3420 = vst.msk [vmem:[#allocation3 + $0x20] sm:$0xff] %vm944_vm8, %v3388_v1  ;;  %v1791_v16 = vadd.f32 %v1759_v12, %v1691_v10  ;;  %v7574_v1 = vld [vmem:[#allocation2 + $0xac] sm:$0xf]  ;;  %v3079_v10 = vshrl.u32 %v2757_v56, 16  ;;  %v3088_v59 = vshll.u32 %v2758_v40, 16  ;;  %v3092_v14 = vshrl.u32 %v2758_v40, 16 }
 0x131   : > { %v2267_v22 = vld [vmem:[#allocation3 + $0x38] sm:$0xff]  ;;  %v7572_v0 = vrot.slane %v1511_v37, 5  ;;  %v1517_v52 = vrot.slane %v1515_v28, 4  ;;  %v1508_v17 = vor.u32 %v1507_v54, %v1504_v57  ;;  %v2046_v18 = vrot.slane %v7574_v1, 5  ;;  %v1761_v53 = vld [vmem:[#allocation3 + $0x50] sm:$0xff] }
 0x132   : > { %v2299_v30 = vadd.f32 %v2267_v22, %v2197_v4  ;;  %1823 = vst.msk [vmem:[#allocation3 + $0x40] sm:$0xff] %vm944_vm8, %v1791_v16  ;;  %6160 = vmatmul.msk.bf16.gmra.mxu1 %vm944_vm8, %v1598_v2  ;;  %v516_v2 = vshrl.u32 %v7561_v46, 16  ;;  %v1158_v4 = vld [vmem:[#allocation2 + $0xb0] sm:$0x1]  ;;  %v3077_v16 = vsel %vm7094_vm15, %v3072_v7, %v7558_v43  ;;  %v519_v27 = vshll.u32 %v7561_v46, 16 }
 0x133   : > { %v2628_v23 = vld [vmem:[#allocation3 + $0x30] sm:$0xff]  ;;  %v7554_v39 = vpop.f32.mrf.mxu0  ;;  %v1521_v22 = vshll.u32 %v1158_v4, 16  ;;  %v2108_v11 = vpack.c.b16 %v2090_v47, %v2089_v63  ;;  %v2759_v8 = vld [vmem:[#allocation2 + $0xb0] sm:$0x1]  ;;  %v3084_v28 = vrot.slane %v3082_v5, 5  ;;  %v7605_v34 = vrot.slane %v3088_v59, 5 }
 0x134   : > { %v2660_v38 = vadd.f32 %v2628_v23, %v2557_v61  ;;  %2331 = vst.msk [vmem:[#allocation3 + $0x38] sm:$0xff] %vm944_vm8, %v2299_v30  ;;  %6204 = vmatmul.msk.bf16.gmra.mxu2 %vm944_vm8, %v2107_v6  ;;  %v3067_v6 = vsel %vm7094_vm15, %v3062_v55, %v7541_v3  ;;  %v1518_v3 = vor.u32 %v1517_v52, %v7572_v0  ;;  %v7595_v13 = vrot.slane %v516_v2, 7  ;;  %v692_v57 = vld [vmem:[#allocation2 + $0xc0] sm:$0xf]  ;;  %v1160_v52 = vld [vmem:[#allocation2 + $0xb8] sm:$0xf] }
 0x135   : > { %v3357_v49 = vld [vmem:[#allocation3 + $0x28] sm:$0xff]  ;;  %v2559_v50 = vpop.f32.mrf.mxu3  ;;  %v1599_v30 = vpack.c.b16 %v7578_v58, %v7565_v48  ;;  %v3081_v23 = vrot.slane %v3079_v10, 4  ;;  %v3179_v43 = vunpack.c.l.b16 %v3067_v6  ;;  %v3180_v46 = vunpack.c.l.b16 %v3077_v16 }
 0x136   : > { %2692 = vst.msk [vmem:[#allocation3 + $0x30] sm:$0xff] %vm944_vm8, %v2660_v38  ;;  %v3389_v45 = vadd.f32 %v3357_v49, %v7536_v32  ;;  %6323 = vmatmul.msk.bf16.gmra.mxu0 %vm944_vm8, %v3198_v36  ;;  %v3094_v38 = vrot.slane %v3092_v14, 4  ;;  %v7610_v49 = vrot.slane %v1508_v17, 4  ;;  %v1519_v55 = vrot.slane %v1518_v3, 4  ;;  %v696_v14 = vld [vmem:[#allocation2 + $0xc8] sm:$0x1] }
 0x137   : > { %v2200_v60 = vpop.f32.mrf.mxu2  ;;  %v1693_v61 = vpop.f32.mrf.mxu1  ;;  %v6178_v56 = vrot.slane %v7593_v26, 9  ;;  %v521_v7 = vor.u32 %v519_v27, %v7595_v13  ;;  %v1523_v54 = vrot.slane %v1521_v22, 5  ;;  %v2049_v40 = vrot.slane %v7603_v33, 5 }
 0x138   : > { %3421 = vst.msk [vmem:[#allocation3 + $0x28] sm:$0xff] %vm944_vm8, %v3389_v45  ;;  %v1792_v32 = vadd.f32 %v1760_v62, %v1693_v61  ;;  %v2048_v45 = vrot.slane %v2046_v18, 4  ;;  %v3085_v62 = vor.u32 %v3084_v28, %v3081_v23  ;;  %v3095_v63 = vor.u32 %v3094_v38, %v7605_v34 }
 0x139   : > { %v2268_v12 = vld [vmem:[#allocation3 + $0x40] sm:$0xff]  ;;  %v522_v47 = vrot.slane %v7595_v13, 4  ;;  %v527_v4 = vshll.u32 %v7590_v29, 16  ;;  %v693_v10 = vsel %vm6848_vm6, %v521_v7, %v692_v57  ;;  %v3199_v6 = vpack.c.b16 %v3180_v46, %v3179_v43 }
 0x13a   : > { %v2300_v15 = vadd.f32 %v2268_v12, %v2200_v60  ;;  %1824 = vst.msk [vmem:[#allocation3 + $0x48] sm:$0xff] %vm944_vm8, %v1792_v32  ;;  %6296 = vmatmul.msk.bf16.gmra.mxu3 %vm944_vm8, %v6576_v41  ;;  %v524_v41 = vshrl.u32 %v7590_v29, 16  ;;  %v3098_v60 = vshll.u32 %v2759_v8, 16  ;;  %v1514_v5 = vsel %vm7094_vm15, %v7610_v49, %v7572_v0 }
 0x13b   : > { %v2629_v9 = vld [vmem:[#allocation3 + $0x38] sm:$0xff]  ;;  %v7599_v24 = vpop.f32.mrf.mxu0  ;;  %694 = vst [vmem:[#allocation2 + $0xc0] sm:$0xf] %v693_v10  ;;  %v1535_v29 = vshll.u32 %v1160_v52, 16  ;;  %v1524_v22 = vsel %vm7094_vm15, %v1519_v55, %v1523_v54  ;;  %v3086_v26 = vrot.slane %v3085_v62, 4  ;;  %v1539_v0 = vshrl.u32 %v1160_v52, 16 }
 0x13c   : > { %v2661_v21 = vadd.f32 %v2629_v9, %v2559_v50  ;;  %2332 = vst.msk [vmem:[#allocation3 + $0x40] sm:$0xff] %vm944_vm8, %v2300_v15  ;;  %v1159_v50 = vld [vmem:[#allocation2 + $0xb4] sm:$0xf]  ;;  %v526_v32 = vrot.slane %v524_v41, 7  ;;  %v3100_v13 = vrot.slane %v3098_v60, 5  ;;  %v1582_v46 = vunpack.c.l.b16 %v1514_v5  ;;  %v1763_v10 = vld [vmem:[#allocation3 + $0x60] sm:$0xff] }
 0x13d   : > { %v3358_v36 = vld [vmem:[#allocation3 + $0x30] sm:$0xff]  ;;  %v2562_v37 = vpop.f32.mrf.mxu3  ;;  %v1526_v2 = vshrl.u32 %v1159_v50, 16  ;;  %v1529_v17 = vshll.u32 %v1159_v50, 16  ;;  %v7646_v41 = vrot.slane %v1535_v29, 5  ;;  %v1583_v49 = vunpack.c.l.b16 %v1524_v22  ;;  %v1161_v55 = vld [vmem:[#allocation2 + $0xbc] sm:$0x1] }
 0x13e   : > { %2693 = vst.msk [vmem:[#allocation3 + $0x38] sm:$0xff] %vm944_vm8, %v2661_v21  ;;  %v3390_v42 = vadd.f32 %v3358_v36, %v7554_v39  ;;  %v531_v59 = vrot.slane %v526_v32, 4  ;;  %v529_v25 = vor.u32 %v527_v4, %v526_v32  ;;  %v6577_v21 = vld [vmem:[#allocation2 + $0xa8] sm:$0xff]  ;;  %v1762_v36 = vld [vmem:[#allocation3 + $0x58] sm:$0xff]  ;;  %v2050_v1 = vsel %vm7085_vm14, %v2048_v45, %v2049_v40 }
 0x13f   : > { %v2202_v51 = vpop.f32.mrf.mxu2  ;;  %v1696_v48 = vpop.f32.mrf.mxu1  ;;  %v1528_v28 = vrot.slane %v1526_v2, 4  ;;  %v1531_v38 = vrot.slane %v1529_v17, 5  ;;  %v1541_v50 = vrot.slane %v1539_v0, 4  ;;  %v1600_v2 = vpack.c.b16 %v1583_v49, %v1582_v46  ;;  %v1892_v5 = vld [vmem:[#allocation2 + $0xb4] sm:$0xe] }
 0x140   : > { %3422 = vst.msk [vmem:[#allocation3 + $0x30] sm:$0xff] %vm944_vm8, %v3390_v42  ;;  %v1793_v39 = vadd.f32 %v1761_v53, %v1696_v48  ;;  %v697_v33 = vsel %vm6859_vm7, %v531_v59, %v696_v14  ;;  %v2761_v42 = vld [vmem:[#allocation2 + $0xb8] sm:$0xf]  ;;  %v3091_v48 = vsel %vm7094_vm15, %v3086_v26, %v7605_v34  ;;  %v1894_v17 = vld [vmem:[#allocation2 + $0xbc] sm:$0x1]  ;;  %vm5693_vm6 = vcmask 1044484  }
 0x141   : > { %v2269_v61 = vld [vmem:[#allocation3 + $0x48] sm:$0xff]  ;;  %698 = vst [vmem:[#allocation2 + $0xc8] sm:$0x1] %v697_v33  ;;  %v3112_v54 = vshll.u32 %v2761_v42, 16  ;;  %v3116_v40 = vshrl.u32 %v2761_v42, 16  ;;  %v3181_v32 = vunpack.c.l.b16 %v3091_v48 }
 0x142   : > { %v2301_v58 = vadd.f32 %v2269_v61, %v2202_v51  ;;  %1825 = vst.msk [vmem:[#allocation3 + $0x50] sm:$0xff] %vm944_vm8, %v1793_v39  ;;  %6161 = vmatmul.msk.bf16.gmra.mxu1 %vm944_vm8, %v1599_v30  ;;  %v3096_v30 = vrot.slane %v3095_v63, 4  ;;  %v7650_v51 = vld [vmem:[#allocation2 + $0xb8] sm:$0xf]  ;;  %v2092_v63 = vunpack.c.l.b16 %v2050_v1 }
 0x143   : > { %v2630_v12 = vld [vmem:[#allocation3 + $0x40] sm:$0xff]  ;;  %v3292_v16 = vpop.f32.mrf.mxu0  ;;  %v2053_v59 = vrot.slane %v7650_v51, 5 }
 0x144   : > { %v2662_v15 = vadd.f32 %v2630_v12, %v2562_v37  ;;  %2333 = vst.msk [vmem:[#allocation3 + $0x48] sm:$0xff] %vm944_vm8, %v2301_v58  ;;  %6205 = vmatmul.msk.bf16.gmra.mxu2 %vm944_vm8, %v2108_v11  ;;  %v530_v11 = vsel %vm6838_vm4, %v522_v47, %v529_v25  ;;  %v2047_v37 = vsel %vm7085_vm14, %v6178_v56, %v2046_v18  ;;  %v755_v56 = vld [vmem:[#allocation2 + $0xc0] sm:$0x1]  ;;  %vm5689_vm4 = vcmask 1042434  }
 0x145   : > { %v3359_v9 = vld [vmem:[#allocation3 + $0x38] sm:$0xff]  ;;  %v2564_v3 = vpop.f32.mrf.mxu3  ;;  %695 = vst.msk [vmem:[#allocation2 + $0xc4] sm:$0xf] %vm581_vm1, %v530_v11  ;;  %v3101_v53 = vsel %vm7094_vm15, %v3096_v30, %v3100_v13  ;;  %v756_v57 = vsel %vm6859_vm7, 0, %v755_v56  ;;  %v2091_v62 = vunpack.c.l.b16 %v2047_v37  ;;  %v1532_v47 = vor.u32 %v1531_v38, %v1528_v28  ;;  %v1764_v56 = vld [vmem:[#allocation3 + $0x68] sm:$0xff] }
 0x146   : > { %2694 = vst.msk [vmem:[#allocation3 + $0x40] sm:$0xff] %vm944_vm8, %v2662_v15  ;;  %v3391_v27 = vadd.f32 %v3359_v9, %v7599_v24  ;;  %6324 = vmatmul.msk.bf16.gmra.mxu0 %vm944_vm8, %v3199_v6  ;;  %v2760_v24 = vld [vmem:[#allocation2 + $0xb4] sm:$0xf]  ;;  %v3182_v58 = vunpack.c.l.b16 %v3101_v53  ;;  %v1542_v12 = vor.u32 %v1541_v50, %v7646_v41  ;;  %v1545_v6 = vshll.u32 %v1161_v55, 16 }
 0x147   : > { %v2205_v8 = vpop.f32.mrf.mxu2  ;;  %v1698_v23 = vpop.f32.mrf.mxu1  ;;  %v3103_v7 = vshrl.u32 %v2760_v24, 16  ;;  %v3106_v39 = vshll.u32 %v2760_v24, 16  ;;  %757 = vst [vmem:[#allocation2 + $0xc0] sm:$0x1] %v756_v57  ;;  %v7665_v9 = vrot.slane %v3112_v54, 5  ;;  %v2109_v26 = vpack.c.b16 %v2092_v63, %v2091_v62  ;;  %v6578_v50 = vld [vmem:[#allocation2 + $0xb4] sm:$0xff] }
 0x148   : > { %3423 = vst.msk [vmem:[#allocation3 + $0x38] sm:$0xff] %vm944_vm8, %v3391_v27  ;;  %v1794_v19 = vadd.f32 %v1762_v36, %v1698_v23  ;;  %v810_v13 = vld [vmem:[#allocation2 + $0xc8] sm:$0x1]  ;;  %v3200_v27 = vpack.c.b16 %v3182_v58, %v3181_v32  ;;  %v6179_v30 = vrot.slane %v1892_v5, 9  ;;  %v2055_v23 = vrot.slane %v2053_v59, 4 }
 0x149   : > { %v2270_v43 = vld [vmem:[#allocation3 + $0x50] sm:$0xff]  ;;  %v3105_v29 = vrot.slane %v3103_v7, 4  ;;  %v3108_v25 = vrot.slane %v3106_v39, 5  ;;  %v811_v11 = vsel %vm7036_vm9, 0, %v810_v13  ;;  %v2056_v36 = vrot.slane %v1894_v17, 5 }
 0x14a   : > { %v2302_v18 = vadd.f32 %v2270_v43, %v2205_v8  ;;  %1826 = vst.msk [vmem:[#allocation3 + $0x58] sm:$0xff] %vm944_vm8, %v1794_v19  ;;  %6297 = vmatmul.msk.bf16.gmra.mxu3 %vm944_vm8, %v6577_v21  ;;  %v1533_v21 = vrot.slane %v1532_v47, 4  ;;  %v1543_v8 = vrot.slane %v1542_v12, 4  ;;  %v1547_v24 = vrot.slane %v1545_v6, 5  ;;  %v4317_v63 = vld [vmem:[#allocation2 + $0x18] sm:$0xf] }
 0x14b   : > { %v2631_v45 = vld [vmem:[#allocation3 + $0x48] sm:$0xff]  ;;  %v3294_v61 = vpop.f32.mrf.mxu0  ;;  %v3109_v19 = vor.u32 %v3108_v25, %v3105_v29  ;;  %812 = vst [vmem:[#allocation2 + $0xc8] sm:$0x1] %v811_v11  ;;  %v2057_v48 = vsel %vm7085_vm14, %v2055_v23, %v2056_v36  ;;  %v4318_v32 = vld [vmem:[#allocation2 + $0x1c] sm:$0xf]  ;;  %v4366_v29 = vshrl.u32 %v4317_v63, 16 }
 0x14c   : > { %v2663_v60 = vadd.f32 %v2631_v45, %v2564_v3  ;;  %2334 = vst.msk [vmem:[#allocation3 + $0x50] sm:$0xff] %vm944_vm8, %v2302_v18  ;;  %v3118_v3 = vrot.slane %v3116_v40, 4  ;;  %v1538_v51 = vsel %vm7094_vm15, %v1533_v21, %v7646_v41  ;;  %v2054_v18 = vsel %vm7085_vm14, %v6179_v30, %v2053_v59  ;;  %v2764_v54 = vld [vmem:[#allocation2 + $0xc4] sm:$0xf]  ;;  %v3450_v23 = vld [vmem:[#allocation2 + $0x14] sm:$0x1] }
 0x14d   : > { %v3360_v34 = vld [vmem:[#allocation3 + $0x40] sm:$0xff]  ;;  %v2567_v52 = vpop.f32.mrf.mxu3  ;;  %v1548_v7 = vsel %vm7094_vm15, %v1543_v8, %v1547_v24  ;;  %v3110_v45 = vrot.slane %v3109_v19, 4  ;;  %v3136_v12 = vshll.u32 %v2764_v54, 16  ;;  %v3140_v6 = vshrl.u32 %v2764_v54, 16 }
 0x14e   : > { %2695 = vst.msk [vmem:[#allocation3 + $0x48] sm:$0xff] %vm944_vm8, %v2663_v60  ;;  %v3392_v4 = vadd.f32 %v3360_v34, %v3292_v16  ;;  %v2762_v16 = vld [vmem:[#allocation2 + $0xbc] sm:$0x1]  ;;  %v3119_v28 = vor.u32 %v3118_v3, %v7665_v9  ;;  %v2093_v60 = vunpack.c.l.b16 %v2054_v18  ;;  %v2763_v62 = vld [vmem:[#allocation2 + $0xc0] sm:$0xf]  ;;  %vm5682_vm1 = vcmask 195712  }
 0x14f   : > { %v2207_v14 = vpop.f32.mrf.mxu2  ;;  %v1701_v15 = vpop.f32.mrf.mxu1  ;;  %v3122_v38 = vshll.u32 %v2762_v16, 16  ;;  %v3115_v47 = vsel %vm7094_vm15, %v3110_v45, %v7665_v9  ;;  %v3130_v17 = vshll.u32 %v2763_v62, 16  ;;  %v4375_v16 = vshll.u32 %v4318_v32, 16 }
 0x150   : > { %3424 = vst.msk [vmem:[#allocation3 + $0x40] sm:$0xff] %vm944_vm8, %v3392_v4  ;;  %v1795_v22 = vadd.f32 %v1763_v10, %v1701_v15  ;;  %v3120_v57 = vrot.slane %v3119_v28, 4  ;;  %v3449_v10 = vld [vmem:[#allocation2 + $0x10] sm:$0xf]  ;;  %v3127_v15 = vshrl.u32 %v2763_v62, 16  ;;  %v4379_v9 = vshrl.u32 %v4318_v32, 16 }
 0x151   : > { %v2271_v0 = vld [vmem:[#allocation3 + $0x58] sm:$0xff]  ;;  %v3124_v39 = vrot.slane %v3122_v38, 5  ;;  %v3546_v21 = vrot.slane %v3449_v10, 5  ;;  %v3142_v24 = vrot.slane %v3140_v6, 4  ;;  %v3132_v38 = vrot.slane %v3130_v17, 5 }
 0x152   : > { %v2303_v33 = vadd.f32 %v2271_v0, %v2207_v14  ;;  %1827 = vst.msk [vmem:[#allocation3 + $0x60] sm:$0xff] %vm944_vm8, %v1795_v22  ;;  %6162 = vmatmul.msk.bf16.gmra.mxu1 %vm944_vm8, %v1600_v2  ;;  %v1585_v2 = vunpack.c.l.b16 %v1548_v7  ;;  %v3448_v14 = vld [vmem:[#allocation2 + $0xc] sm:$0xe]  ;;  %v3129_v28 = vrot.slane %v3127_v15, 4 }
 0x153   : > { %v2632_v37 = vld [vmem:[#allocation3 + $0x50] sm:$0xff]  ;;  %v3297_v43 = vpop.f32.mrf.mxu0  ;;  %v3125_v4 = vsel %vm7094_vm15, %v3120_v57, %v3124_v39  ;;  %v6328_v36 = vrot.slane %v3448_v14, 9  ;;  %v3548_v18 = vrot.slane %v3546_v21, 4 }
 0x154   : > { %v2664_v42 = vadd.f32 %v2632_v37, %v2567_v52  ;;  %2335 = vst.msk [vmem:[#allocation3 + $0x58] sm:$0xff] %vm944_vm8, %v2303_v33  ;;  %6206 = vmatmul.msk.bf16.gmra.mxu2 %vm944_vm8, %v2109_v26  ;;  %v1584_v52 = vunpack.c.l.b16 %v1538_v51  ;;  %v4369_v26 = vshll.u32 %v4317_v63, 16  ;;  %v1765_v33 = vld [vmem:[#allocation3 + $0x70] sm:$0xff]  ;;  %v3184_v8 = vunpack.c.l.b16 %v3125_v4 }
 0x155   : > { %v3361_v46 = vld [vmem:[#allocation3 + $0x48] sm:$0xff]  ;;  %v2569_v49 = vpop.f32.mrf.mxu3  ;;  %v7696_v37 = vrot.slane %v3136_v12, 5  ;;  %v3547_v7 = vsel %vm7085_vm14, %v6328_v36, %v3546_v21  ;;  %v3133_v39 = vor.u32 %v3132_v38, %v3129_v28  ;;  %v3451_v36 = vld [vmem:[#allocation2 + $0x18] sm:$0xe] }
 0x156   : > { %2696 = vst.msk [vmem:[#allocation3 + $0x50] sm:$0xff] %vm944_vm8, %v2664_v42  ;;  %v3393_v1 = vadd.f32 %v3361_v46, %v3294_v61  ;;  %6325 = vmatmul.msk.bf16.gmra.mxu0 %vm944_vm8, %v3200_v27  ;;  %v2094_v61 = vunpack.c.l.b16 %v2057_v48  ;;  %v1601_v0 = vpack.c.b16 %v1585_v2, %v1584_v52  ;;  %v3183_v27 = vunpack.c.l.b16 %v3115_v47  ;;  %v6579_v52 = vld [vmem:[#allocation2 + $0xc0] sm:$0xff]  ;;  %v1766_v47 = vld [vmem:[#allocation3 + $0x78] sm:$0xff] }
 0x157   : > { %v2210_v53 = vpop.f32.mrf.mxu2  ;;  %v1703_v55 = vpop.f32.mrf.mxu1  ;;  %v4368_v42 = vrot.slane %v4366_v29, 4  ;;  %v3549_v48 = vrot.slane %v3450_v23, 5  ;;  %v3661_v4 = vunpack.c.l.b16 %v3547_v7  ;;  %v3134_v12 = vrot.slane %v3133_v39, 4  ;;  %v5048_v7 = vld [vmem:[#allocation2 + $0x1c] sm:$0xf] }
 0x158   : > { %3425 = vst.msk [vmem:[#allocation3 + $0x48] sm:$0xff] %vm944_vm8, %v3393_v1  ;;  %v1796_v41 = vadd.f32 %v1764_v56, %v1703_v55  ;;  %v2110_v22 = vpack.c.b16 %v2094_v61, %v2093_v60  ;;  %v7699_v1 = vrot.slane %v4375_v16, 5  ;;  %v3201_v56 = vpack.c.b16 %v3184_v8, %v3183_v27  ;;  %v4321_v27 = vld [vmem:[#allocation2 + $0x28] sm:$0xf] }
 0x159   : > { %v2272_v40 = vld [vmem:[#allocation3 + $0x60] sm:$0xff]  ;;  %v3550_v2 = vsel %vm7085_vm14, %v3548_v18, %v3549_v48 }
 0x15a   : > { %v2304_v34 = vadd.f32 %v2272_v40, %v2210_v53  ;;  %1828 = vst.msk [vmem:[#allocation3 + $0x68] sm:$0xff] %vm944_vm8, %v1796_v41  ;;  %6298 = vmatmul.msk.bf16.gmra.mxu3 %vm944_vm8, %v6578_v50  ;;  %v4381_v50 = vrot.slane %v4379_v9, 4  ;;  %v4319_v53 = vld [vmem:[#allocation2 + $0x20] sm:$0x1]  ;;  %v3143_v41 = vor.u32 %v3142_v24, %v7696_v37  ;;  %v3662_v15 = vunpack.c.l.b16 %v3550_v2  ;;  %v6586_v18 = vld [vmem:[#allocation2 + $0x18] sm:$0xff] }
 0x15b   : > { %v2633_v58 = vld [vmem:[#allocation3 + $0x58] sm:$0xff]  ;;  %v3299_v59 = vpop.f32.mrf.mxu0  ;;  %v4385_v63 = vshll.u32 %v4319_v53, 16  ;;  %v5047_v2 = vld [vmem:[#allocation2 + $0x18] sm:$0xe] }
 0x15c   : > { %v2665_v5 = vadd.f32 %v2633_v58, %v2569_v49  ;;  %2336 = vst.msk [vmem:[#allocation3 + $0x60] sm:$0xff] %vm944_vm8, %v2304_v34  ;;  %v4371_v49 = vrot.slane %v4369_v26, 5  ;;  %v4382_v62 = vor.u32 %v4381_v50, %v7699_v1  ;;  %v3144_v6 = vrot.slane %v3143_v41, 4  ;;  %v4320_v26 = vld [vmem:[#allocation2 + $0x24] sm:$0xf] }
 0x15d   : > { %v3362_v25 = vld [vmem:[#allocation3 + $0x50] sm:$0xff]  ;;  %v2572_v3 = vpop.f32.mrf.mxu3  ;;  %v4387_v29 = vrot.slane %v4385_v63, 5  ;;  %v4399_v50 = vshll.u32 %v4321_v27, 16 }
 0x15e   : > { %2697 = vst.msk [vmem:[#allocation3 + $0x58] sm:$0xff] %vm944_vm8, %v2665_v5  ;;  %v3394_v13 = vadd.f32 %v3362_v25, %v3297_v43  ;;  %v2765_v43 = vld [vmem:[#allocation2 + $0xc8] sm:$0x1]  ;;  %v4372_v61 = vor.u32 %v4371_v49, %v4368_v42  ;;  %v1767_v42 = vld [vmem:[#allocation3 + $0x80] sm:$0xff]  ;;  %v3453_v49 = vld [vmem:[#allocation2 + $0x20] sm:$0x1] }
 0x15f   : > { %v2212_v30 = vpop.f32.mrf.mxu2  ;;  %v1706_v11 = vpop.f32.mrf.mxu1  ;;  %v3146_v54 = vshll.u32 %v2765_v43, 16 }
 0x160   : > { %3426 = vst.msk [vmem:[#allocation3 + $0x50] sm:$0xff] %vm944_vm8, %v3394_v13  ;;  %v1797_v19 = vadd.f32 %v1765_v33, %v1706_v11  ;;  %v4373_v17 = vrot.slane %v4372_v61, 4  ;;  %v3139_v13 = vsel %vm7094_vm15, %v3134_v12, %v7696_v37  ;;  %v3693_v11 = vpack.c.b16 %v3662_v15, %v3661_v4  ;;  %v5049_v4 = vld [vmem:[#allocation2 + $0x20] sm:$0x1] }
 0x161   : > { %v2273_v46 = vld [vmem:[#allocation3 + $0x68] sm:$0xff]  ;;  %v3148_v5 = vrot.slane %v3146_v54, 5  ;;  %v4390_v37 = vshrl.u32 %v4320_v26, 16  ;;  %v7731_v61 = vrot.slane %v4399_v50, 5 }
 0x162   : > { %v2305_v51 = vadd.f32 %v2273_v46, %v2212_v30  ;;  %1829 = vst.msk [vmem:[#allocation3 + $0x70] sm:$0xff] %vm944_vm8, %v1797_v19  ;;  %6163 = vmatmul.msk.bf16.gmra.mxu1 %vm944_vm8, %v1601_v0  ;;  %v4378_v33 = vsel %vm7094_vm15, %v4373_v17, %v7699_v1  ;;  %v4393_v19 = vshll.u32 %v4320_v26, 16  ;;  %v3185_v46 = vunpack.c.l.b16 %v3139_v13  ;;  %v1768_v17 = vld [vmem:[#allocation3 + $0x88] sm:$0xff]  ;;  %v4323_v13 = vld [vmem:[#allocation2 + $0x30] sm:$0xf] }
 0x163   : > { %v2634_v55 = vld [vmem:[#allocation3 + $0x60] sm:$0xff]  ;;  %v3302_v57 = vpop.f32.mrf.mxu0  ;;  %v3149_v0 = vsel %vm7094_vm15, %v3144_v6, %v3148_v5  ;;  %v4754_v53 = vunpack.c.l.b16 %v4378_v33  ;;  %v4392_v39 = vrot.slane %v4390_v37, 4 }
 0x164   : > { %v2666_v45 = vadd.f32 %v2634_v55, %v2572_v3  ;;  %2337 = vst.msk [vmem:[#allocation3 + $0x68] sm:$0xff] %vm944_vm8, %v2305_v51  ;;  %6207 = vmatmul.msk.bf16.gmra.mxu2 %vm944_vm8, %v2110_v22  ;;  %v3452_v22 = vld [vmem:[#allocation2 + $0x1c] sm:$0xf]  ;;  %v3186_v43 = vunpack.c.l.b16 %v3149_v0  ;;  %v4403_v51 = vshrl.u32 %v4321_v27, 16  ;;  %v4395_v41 = vrot.slane %v4393_v19, 5 }
 0x165   : > { %v3363_v40 = vld [vmem:[#allocation3 + $0x58] sm:$0xff]  ;;  %v2574_v60 = vpop.f32.mrf.mxu3  ;;  %v3553_v24 = vrot.slane %v3452_v22, 5 }
 0x166   : > { %2698 = vst.msk [vmem:[#allocation3 + $0x60] sm:$0xff] %vm944_vm8, %v2666_v45  ;;  %v3395_v34 = vadd.f32 %v3363_v40, %v3299_v59  ;;  %6326 = vmatmul.msk.bf16.gmra.mxu0 %vm944_vm8, %v3201_v56  ;;  %v4383_v59 = vrot.slane %v4382_v62, 4  ;;  %v6329_v56 = vrot.slane %v3451_v36, 9  ;;  %v3202_v40 = vpack.c.b16 %v3186_v43, %v3185_v46 }
 0x167   : > { %v2215_v32 = vpop.f32.mrf.mxu2  ;;  %v1708_v58 = vpop.f32.mrf.mxu1  ;;  %v4405_v62 = vrot.slane %v4403_v51, 4  ;;  %v4396_v5 = vor.u32 %v4395_v41, %v4392_v39  ;;  %v5653_v51 = vld [vmem:[%s8577_s3] sm:$0xff] }
 0x168   : > { %3427 = vst.msk [vmem:[#allocation3 + $0x58] sm:$0xff] %vm944_vm8, %v3395_v34  ;;  %v1798_v10 = vadd.f32 %v1766_v47, %v1708_v58  ;;  %v4388_v8 = vsel %vm7094_vm15, %v4383_v59, %v4387_v29  ;;  %v3554_v6 = vsel %vm7085_vm14, %v6329_v56, %v3553_v24  ;;  %5662 = vperm.xlu0 %6657, %v5653_v51   ;;  %v1769_v56 = vld [vmem:[#allocation3 + $0x90] sm:$0xff]  ;;  %v3454_v39 = vld [vmem:[#allocation2 + $0x24] sm:$0xe] }
 0x169   : > { %v2274_v14 = vld [vmem:[#allocation3 + $0x70] sm:$0xff]  ;;  %v4755_v55 = vunpack.c.l.b16 %v4388_v8  ;;  %v4406_v29 = vor.u32 %v4405_v62, %v7731_v61  ;;  %v3663_v27 = vunpack.c.l.b16 %v3554_v6 }
 0x16a   : > { %v2306_v25 = vadd.f32 %v2274_v14, %v2215_v32  ;;  %1830 = vst.msk [vmem:[#allocation3 + $0x78] sm:$0xff] %vm944_vm8, %v1798_v10  ;;  %6299 = vmatmul.msk.bf16.gmra.mxu3 %vm944_vm8, %v6579_v52  ;;  %v4322_v52 = vld [vmem:[#allocation2 + $0x2c] sm:$0x1]  ;;  %v5145_v32 = vrot.slane %v5048_v7, 5 }
 0x16b   : > { %v2635_v3 = vld [vmem:[#allocation3 + $0x68] sm:$0xff]  ;;  %v3304_v9 = vpop.f32.mrf.mxu0  ;;  %v4786_v12 = vpack.c.b16 %v4755_v55, %v4754_v53  ;;  %v4407_v8 = vrot.slane %v4406_v29, 4 }
 0x16c   : > { %v2667_v16 = vadd.f32 %v2635_v3, %v2574_v60  ;;  %2338 = vst.msk [vmem:[#allocation3 + $0x70] sm:$0xff] %vm944_vm8, %v2306_v25  ;;  %v3555_v60 = vrot.slane %v3553_v24, 4  ;;  %v4409_v25 = vshll.u32 %v4322_v52, 16  ;;  %v6492_v3 = vrot.slane %v5047_v2, 9 }
 0x16d   : > { %v3364_v21 = vld [vmem:[#allocation3 + $0x60] sm:$0xff]  ;;  %v2577_v30 = vpop.f32.mrf.mxu3  ;;  %v5147_v26 = vrot.slane %v5145_v32, 4 }
 0x16e   : > { %2699 = vst.msk [vmem:[#allocation3 + $0x68] sm:$0xff] %vm944_vm8, %v2667_v16  ;;  %v3396_v23 = vadd.f32 %v3364_v21, %v3302_v57  ;;  %v3556_v57 = vrot.slane %v3453_v49, 5  ;;  %v5148_v16 = vrot.slane %v5049_v4, 5  ;;  %v5146_v36 = vsel %vm7085_vm14, %v6492_v3, %v5145_v32  ;;  %v5051_v32 = vld [vmem:[#allocation2 + $0x28] sm:$0xf] }
 0x16f   : > { %v2217_v28 = vpop.f32.mrf.mxu2  ;;  %v1711_v38 = vpop.f32.mrf.mxu1  ;;  %v5152_v3 = vrot.slane %v5051_v32, 5 }
 0x170   : > { %3428 = vst.msk [vmem:[#allocation3 + $0x60] sm:$0xff] %vm944_vm8, %v3396_v23  ;;  %v1799_v1 = vadd.f32 %v1767_v42, %v1711_v38  ;;  %v3557_v59 = vsel %vm7085_vm14, %v3555_v60, %v3556_v57  ;;  %v4411_v23 = vrot.slane %v4409_v25, 5  ;;  %v5149_v19 = vsel %vm7085_vm14, %v5147_v26, %v5148_v16  ;;  %v6587_v60 = vld [vmem:[#allocation2 + $0x24] sm:$0xff] }
 0x171   : > { %v2275_v48 = vld [vmem:[#allocation3 + $0x78] sm:$0xff]  ;;  %v3664_v21 = vunpack.c.l.b16 %v3557_v59  ;;  %v4414_v38 = vshrl.u32 %v4323_v13, 16  ;;  %v4417_v42 = vshll.u32 %v4323_v13, 16  ;;  %v5261_v57 = vunpack.c.l.b16 %v5149_v19  ;;  %v5050_v25 = vld [vmem:[#allocation2 + $0x24] sm:$0xe] }
 0x172   : > { %v2307_v45 = vadd.f32 %v2275_v48, %v2217_v28  ;;  %1831 = vst.msk [vmem:[#allocation3 + $0x80] sm:$0xff] %vm944_vm8, %v1799_v1  ;;  %6356 = vmatmul.msk.bf16.vlgmr.msra.gmra.mxu1 %vm944_vm8, %v3693_v11  ;;  %v4324_v11 = vld [vmem:[#allocation2 + $0x34] sm:$0xf]  ;;  %v7750_v28 = vld [vmem:[#allocation2 + $0x28] sm:$0xf]  ;;  %v4412_v7 = vsel %vm7094_vm15, %v4407_v8, %v4411_v23 }
 0x173   : > { %v2636_v54 = vld [vmem:[#allocation3 + $0x70] sm:$0xff]  ;;  %v3307_v34 = vpop.f32.mrf.mxu0  ;;  %v4423_v49 = vshll.u32 %v4324_v11, 16  ;;  %v4427_v50 = vshrl.u32 %v4324_v11, 16  ;;  %v3560_v41 = vrot.slane %v7750_v28, 5  ;;  %v4416_v62 = vrot.slane %v4414_v38, 4 }
 0x174   : > { %v2668_v63 = vadd.f32 %v2636_v54, %v2577_v30  ;;  %2339 = vst.msk [vmem:[#allocation3 + $0x78] sm:$0xff] %vm944_vm8, %v2307_v45  ;;  %6448 = vmatmul.msk.bf16.vlgmr.msra.gmra.mxu2 %vm944_vm8, %v6586_v18  ;;  %v4397_v30 = vrot.slane %v4396_v5, 4  ;;  %v3694_v18 = vpack.c.b16 %v3664_v21, %v3663_v27  ;;  %v5260_v45 = vunpack.c.l.b16 %v5146_v36  ;;  %v5655_v54 = vld [vmem:[%s8577_s3 + $0x10] sm:$0xff]  ;;  %v5052_v13 = vld [vmem:[#allocation2 + $0x2c] sm:$0x1] }
 0x175   : > { %v3365_v58 = vld [vmem:[#allocation3 + $0x68] sm:$0xff]  ;;  %v2579_v47 = vpop.f32.mrf.mxu3  ;;  %5668 = vperm.xlu1 %6658, %v5655_v54   ;;  %v7766_v52 = vrot.slane %v4423_v49, 5  ;;  %v4429_v2 = vrot.slane %v4427_v50, 4  ;;  %v4757_v4 = vunpack.c.l.b16 %v4412_v7  ;;  %v6330_v5 = vrot.slane %v3454_v39, 9  ;;  %v7786_v49 = vld [vmem:[#allocation2 + $0x34] sm:$0xf] }
 0x176   : > { %2700 = vst.msk [vmem:[#allocation3 + $0x70] sm:$0xff] %vm944_vm8, %v2668_v63  ;;  %v3397_v10 = vadd.f32 %v3365_v58, %v3304_v9  ;;  %6327 = vmatmul.msk.bf16.gmra.mxu0 %vm944_vm8, %v3202_v40  ;;  %v4402_v48 = vsel %vm7094_vm15, %v4397_v30, %v7731_v61  ;;  %v3456_v61 = vld [vmem:[#allocation2 + $0x2c] sm:$0x1]  ;;  %v4419_v63 = vrot.slane %v4417_v42, 5  ;;  %v5292_v6 = vpack.c.b16 %v5261_v57, %v5260_v45 }
 0x177   : > { %v2220_v14 = vpop.f32.mrf.mxu2  ;;  %v1713_v15 = vpop.f32.mrf.mxu1  ;;  %v4430_v16 = vor.u32 %v4429_v2, %v7766_v52  ;;  %v3561_v8 = vsel %vm7085_vm14, %v6330_v5, %v3560_v41  ;;  %v6493_v36 = vrot.slane %v5050_v25, 9  ;;  %v5154_v28 = vrot.slane %v5152_v3, 4  ;;  %v3459_v2 = vld [vmem:[#allocation2 + $0x38] sm:$0x1]  ;;  %v5054_v5 = vld [vmem:[#allocation2 + $0x34] sm:$0xf] }
 0x178   : > { %3429 = vst.msk [vmem:[#allocation3 + $0x68] sm:$0xff] %vm944_vm8, %v3397_v10  ;;  %v1800_v22 = vadd.f32 %v1768_v17, %v1713_v15  ;;  %v4325_v10 = vld [vmem:[#allocation2 + $0x38] sm:$0x1]  ;;  %v3563_v15 = vrot.slane %v3456_v61, 5  ;;  %v4420_v29 = vor.u32 %v4419_v63, %v4416_v62  ;;  %v5155_v38 = vrot.slane %v5052_v13, 5 }
 0x179   : > { %v2276_v9 = vld [vmem:[#allocation3 + $0x80] sm:$0xff]  ;;  %v3665_v51 = vunpack.c.l.b16 %v3561_v8  ;;  %v3567_v39 = vrot.slane %v7786_v49, 5 }
 0x17a   : > { %v2308_v0 = vadd.f32 %v2276_v9, %v2220_v14  ;;  %1832 = vst.msk [vmem:[#allocation3 + $0x88] sm:$0xff] %vm944_vm8, %v1800_v22  ;;  %6476 = vmatmul.msk.bf16.vlgmr.msra.gmra.mxu3 %vm944_vm8, %v4786_v12  ;;  %v3562_v14 = vrot.slane %v3560_v41, 4  ;;  %v4433_v9 = vshll.u32 %v4325_v10, 16  ;;  %v4421_v19 = vrot.slane %v4420_v29, 4 }
 0x17b   : > { %v2637_v33 = vld [vmem:[#allocation3 + $0x78] sm:$0xff]  ;;  %v3309_v37 = vpop.f32.mrf.mxu0  ;;  %v5156_v57 = vsel %vm7085_vm14, %v5154_v28, %v5155_v38  ;;  %v3569_v25 = vrot.slane %v3567_v39, 4 }
 0x17c   : > { %v2669_v24 = vadd.f32 %v2637_v33, %v2579_v47  ;;  %2340 = vst.msk [vmem:[#allocation3 + $0x80] sm:$0xff] %vm944_vm8, %v2308_v0  ;;  %v4756_v47 = vunpack.c.l.b16 %v4402_v48  ;;  %v5654_v0 = vld [vmem:[%s8577_s3 + $0x8] sm:$0xff]  ;;  %v1770_v33 = vld [vmem:[#allocation3 + $0x98] sm:$0xff]  ;;  %v3564_v23 = vsel %vm7085_vm14, %v3562_v14, %v3563_v15  ;;  %v4426_v45 = vsel %vm7094_vm15, %v4421_v19, %v7766_v52 }
 0x17d   : > { %v3366_v46 = vld [vmem:[#allocation3 + $0x70] sm:$0xff]  ;;  %v2582_v43 = vpop.f32.mrf.mxu3  ;;  %5665 = vperm.xlu0 %6657, %v5654_v0   ;;  %v4758_v10 = vunpack.c.l.b16 %v4426_v45  ;;  %v6588_v15 = vld [vmem:[#allocation2 + $0x30] sm:$0xff] }
 0x17e   : > { %2701 = vst.msk [vmem:[#allocation3 + $0x78] sm:$0xff] %vm944_vm8, %v2669_v24  ;;  %v3398_v1 = vadd.f32 %v3366_v46, %v3307_v34  ;;  %v4787_v21 = vpack.c.b16 %v4757_v4, %v4756_v47  ;;  %v5656_v24 = vld [vmem:[%s8577_s3 + $0x18] sm:$0xff]  ;;  %v4431_v46 = vrot.slane %v4430_v16, 4 }
 0x17f   : > { %v2222_v53 = vpop.f32.mrf.mxu2  ;;  %v1716_v55 = vpop.f32.mrf.mxu1  ;;  %5671 = vperm.xlu1 %6658, %v5656_v24   ;;  %v1771_v4 = vld [vmem:[#allocation3 + $0xa0] sm:$0xff] }
 0x180   : > { %3430 = vst.msk [vmem:[#allocation3 + $0x70] sm:$0xff] %vm944_vm8, %v3398_v1  ;;  %v1801_v40 = vadd.f32 %v1769_v56, %v1716_v55  ;;  %v3666_v1 = vunpack.c.l.b16 %v3564_v23  ;;  %v4327_v55 = vld [vmem:[#allocation2 + $0x40] sm:$0xf] }
 0x181   : > { %v2277_v34 = vld [vmem:[#allocation3 + $0x88] sm:$0xff]  ;;  %v4447_v32 = vshll.u32 %v4327_v55, 16  ;;  %v4451_v52 = vshrl.u32 %v4327_v55, 16 }
 0x182   : > { %v2309_v58 = vadd.f32 %v2277_v34, %v2222_v53  ;;  %1833 = vst.msk [vmem:[#allocation3 + $0x90] sm:$0xff] %vm944_vm8, %v1801_v40  ;;  %6357 = vmatmul.msk.bf16.gmra.mxu1 %vm944_vm8, %v3694_v18  ;;  %v4326_v18 = vld [vmem:[#allocation2 + $0x3c] sm:$0xf]  ;;  %v5153_v53 = vsel %vm7085_vm14, %v6493_v36, %v5152_v3  ;;  %v3695_v34 = vpack.c.b16 %v3666_v1, %v3665_v51 }
 0x183   : > { %v2638_v12 = vld [vmem:[#allocation3 + $0x80] sm:$0xff]  ;;  %v3312_v59 = vpop.f32.mrf.mxu0  ;;  %v4438_v61 = vshrl.u32 %v4326_v18, 16  ;;  %v4441_v62 = vshll.u32 %v4326_v18, 16  ;;  %v7805_v13 = vrot.slane %v4447_v32, 5  ;;  %v4453_v0 = vrot.slane %v4451_v52, 4 }
 0x184   : > { %v2670_v17 = vadd.f32 %v2638_v12, %v2582_v43  ;;  %2341 = vst.msk [vmem:[#allocation3 + $0x88] sm:$0xff] %vm944_vm8, %v2309_v58  ;;  %6449 = vmatmul.msk.bf16.gmra.mxu2 %vm944_vm8, %v6587_v60  ;;  %v4435_v43 = vrot.slane %v4433_v9, 5  ;;  %v3457_v60 = vld [vmem:[#allocation2 + $0x30] sm:$0xe]  ;;  %v5262_v12 = vunpack.c.l.b16 %v5153_v53 }
 0x185   : > { %v3367_v22 = vld [vmem:[#allocation3 + $0x78] sm:$0xff]  ;;  %v2584_v26 = vpop.f32.mrf.mxu3  ;;  %v6331_v29 = vrot.slane %v3457_v60, 9  ;;  %v4443_v16 = vrot.slane %v4441_v62, 5  ;;  %v4454_v49 = vor.u32 %v4453_v0, %v7805_v13 }
 0x186   : > { %2702 = vst.msk [vmem:[#allocation3 + $0x80] sm:$0xff] %vm944_vm8, %v2670_v17  ;;  %v3399_v27 = vadd.f32 %v3367_v22, %v3309_v37  ;;  %6520 = vmatmul.msk.bf16.vlgmr.msra.gmra.mxu0 %vm944_vm8, %v5292_v6  ;;  %v4436_v40 = vsel %vm7094_vm15, %v4431_v46, %v4435_v43  ;;  %v5263_v6 = vunpack.c.l.b16 %v5156_v57  ;;  %v4328_v22 = vld [vmem:[#allocation2 + $0x44] sm:$0x1] }
 0x187   : > { %v2225_v30 = vpop.f32.mrf.mxu2  ;;  %v1718_v11 = vpop.f32.mrf.mxu1  ;;  %v4759_v17 = vunpack.c.l.b16 %v4436_v40  ;;  %v3568_v24 = vsel %vm7085_vm14, %v6331_v29, %v3567_v39  ;;  %v1773_v29 = vld [vmem:[#allocation3 + $0xb0] sm:$0xff] }
 0x188   : > { %3431 = vst.msk [vmem:[#allocation3 + $0x78] sm:$0xff] %vm944_vm8, %v3399_v27  ;;  %v1802_v37 = vadd.f32 %v1770_v33, %v1718_v11  ;;  %v5053_v27 = vld [vmem:[#allocation2 + $0x30] sm:$0xe]  ;;  %v5293_v11 = vpack.c.b16 %v5263_v6, %v5262_v12  ;;  %v5055_v33 = vld [vmem:[#allocation2 + $0x38] sm:$0x1] }
 0x189   : > { %v2278_v42 = vld [vmem:[#allocation3 + $0x90] sm:$0xff]  ;;  %v4788_v36 = vpack.c.b16 %v4759_v17, %v4758_v10  ;;  %v6494_v46 = vrot.slane %v5053_v27, 9  ;;  %v5162_v51 = vrot.slane %v5055_v33, 5 }
 0x18a   : > { %v2310_v50 = vadd.f32 %v2278_v42, %v2225_v30  ;;  %1834 = vst.msk [vmem:[#allocation3 + $0x98] sm:$0xff] %vm944_vm8, %v1802_v37  ;;  %6477 = vmatmul.msk.bf16.gmra.mxu3 %vm944_vm8, %v4787_v21  ;;  %v5159_v21 = vrot.slane %v5054_v5, 5  ;;  %v4457_v42 = vshll.u32 %v4328_v22, 16 }
 0x18b   : > { %v2639_v48 = vld [vmem:[#allocation3 + $0x88] sm:$0xff]  ;;  %v3314_v7 = vpop.f32.mrf.mxu0 }
 0x18c   : > { %v2671_v56 = vadd.f32 %v2639_v48, %v2584_v26  ;;  %2342 = vst.msk [vmem:[#allocation3 + $0x90] sm:$0xff] %vm944_vm8, %v2310_v50  ;;  %v4440_v26 = vrot.slane %v4438_v61, 4  ;;  %v5161_v50 = vrot.slane %v5159_v21, 4  ;;  %v1772_v48 = vld [vmem:[#allocation3 + $0xa8] sm:$0xff]  ;;  %v4459_v39 = vrot.slane %v4457_v42, 5 }
 0x18d   : > { %v3368_v41 = vld [vmem:[#allocation3 + $0x80] sm:$0xff]  ;;  %v2587_v54 = vpop.f32.mrf.mxu3  ;;  %v4329_v61 = vld [vmem:[#allocation2 + $0x48] sm:$0xf] }
 0x18e   : > { %2703 = vst.msk [vmem:[#allocation3 + $0x88] sm:$0xff] %vm944_vm8, %v2671_v56  ;;  %v3400_v63 = vadd.f32 %v3368_v41, %v3312_v59  ;;  %v3570_v59 = vrot.slane %v3459_v2, 5  ;;  %v4444_v38 = vor.u32 %v4443_v16, %v4440_v26  ;;  %v3667_v56 = vunpack.c.l.b16 %v3568_v24  ;;  %v4330_v2 = vld [vmem:[#allocation2 + $0x4c] sm:$0xf]  ;;  %v6589_v16 = vld [vmem:[#allocation2 + $0x3c] sm:$0xff] }
 0x18f   : > { %v2227_v58 = vpop.f32.mrf.mxu2  ;;  %v1721_v47 = vpop.f32.mrf.mxu1  ;;  %v5163_v40 = vsel %vm7085_vm14, %v5161_v50, %v5162_v51  ;;  %v4462_v5 = vshrl.u32 %v4329_v61, 16  ;;  %v4475_v22 = vshrl.u32 %v4330_v2, 16 }
 0x190   : > { %3432 = vst.msk [vmem:[#allocation3 + $0x80] sm:$0xff] %vm944_vm8, %v3400_v63  ;;  %v1803_v14 = vadd.f32 %v1771_v4, %v1721_v47  ;;  %v3571_v28 = vsel %vm7085_vm14, %v3569_v25, %v3570_v59  ;;  %v4445_v57 = vrot.slane %v4444_v38, 4  ;;  %v5265_v10 = vunpack.c.l.b16 %v5163_v40  ;;  %v3460_v25 = vld [vmem:[#allocation2 + $0x3c] sm:$0xe] }
 0x191   : > { %v2279_v3 = vld [vmem:[#allocation3 + $0x98] sm:$0xff]  ;;  %v3668_v45 = vunpack.c.l.b16 %v3571_v28  ;;  %v4471_v59 = vshll.u32 %v4330_v2, 16  ;;  %v6332_v33 = vrot.slane %v3460_v25, 9  ;;  %v4477_v28 = vrot.slane %v4475_v22, 4 }
 0x192   : > { %v2311_v9 = vadd.f32 %v2279_v3, %v2227_v58  ;;  %1835 = vst.msk [vmem:[#allocation3 + $0xa0] sm:$0xff] %vm944_vm8, %v1803_v14  ;;  %6358 = vmatmul.msk.bf16.gmra.mxu1 %vm944_vm8, %v3695_v34  ;;  %v3461_v34 = vld [vmem:[#allocation2 + $0x40] sm:$0xf]  ;;  %v4450_v47 = vsel %vm7094_vm15, %v4445_v57, %v7805_v13  ;;  %v4465_v14 = vshll.u32 %v4329_v61, 16  ;;  %v1774_v57 = vld [vmem:[#allocation3 + $0xb8] sm:$0xff] }
 0x193   : > { %v2640_v30 = vld [vmem:[#allocation3 + $0x90] sm:$0xff]  ;;  %v3317_v23 = vpop.f32.mrf.mxu0  ;;  %v3696_v58 = vpack.c.b16 %v3668_v45, %v3667_v56  ;;  %v3574_v3 = vrot.slane %v3461_v34, 5  ;;  %v4760_v0 = vunpack.c.l.b16 %v4450_v47 }
 0x194   : > { %v2672_v8 = vadd.f32 %v2640_v30, %v2587_v54  ;;  %2343 = vst.msk [vmem:[#allocation3 + $0x98] sm:$0xff] %vm944_vm8, %v2311_v9  ;;  %6450 = vmatmul.msk.bf16.gmra.mxu2 %vm944_vm8, %v6588_v15  ;;  %v5160_v54 = vsel %vm7085_vm14, %v6494_v46, %v5159_v21  ;;  %v3462_v9 = vld [vmem:[#allocation2 + $0x44] sm:$0x1]  ;;  %v5057_v30 = vld [vmem:[#allocation2 + $0x40] sm:$0xf] }
 0x195   : > { %v3369_v37 = vld [vmem:[#allocation3 + $0x88] sm:$0xff]  ;;  %v2589_v19 = vpop.f32.mrf.mxu3  ;;  %v5264_v4 = vunpack.c.l.b16 %v5160_v54  ;;  %v3576_v24 = vrot.slane %v3574_v3, 4  ;;  %v4331_v46 = vld [vmem:[#allocation2 + $0x50] sm:$0x1] }
 0x196   : > { %2704 = vst.msk [vmem:[#allocation3 + $0x90] sm:$0xff] %vm944_vm8, %v2672_v8  ;;  %v3401_v43 = vadd.f32 %v3369_v37, %v3314_v7  ;;  %6521 = vmatmul.msk.bf16.gmra.mxu0 %vm944_vm8, %v5293_v11  ;;  %v4455_v7 = vrot.slane %v4454_v49, 4  ;;  %v4464_v8 = vrot.slane %v4462_v5, 4  ;;  %v3577_v37 = vrot.slane %v3462_v9, 5 }
 0x197   : > { %v2230_v1 = vpop.f32.mrf.mxu2  ;;  %v1723_v18 = vpop.f32.mrf.mxu1  ;;  %v5294_v21 = vpack.c.b16 %v5265_v10, %v5264_v4  ;;  %v5166_v49 = vrot.slane %v5057_v30, 5 }
 0x198   : > { %3433 = vst.msk [vmem:[#allocation3 + $0x88] sm:$0xff] %vm944_vm8, %v3401_v43  ;;  %v1804_v53 = vadd.f32 %v1772_v48, %v1723_v18  ;;  %v4460_v6 = vsel %vm7094_vm15, %v4455_v7, %v4459_v39  ;;  %v5056_v43 = vld [vmem:[#allocation2 + $0x3c] sm:$0xe]  ;;  %v3578_v39 = vsel %vm7085_vm14, %v3576_v24, %v3577_v37  ;;  %v4481_v7 = vshll.u32 %v4331_v46, 16  ;;  %v3465_v24 = vld [vmem:[#allocation2 + $0x50] sm:$0x1] }
 0x199   : > { %v2280_v55 = vld [vmem:[#allocation3 + $0xa0] sm:$0xff]  ;;  %v4761_v27 = vunpack.c.l.b16 %v4460_v6  ;;  %v6495_v54 = vrot.slane %v5056_v43, 9  ;;  %v5060_v46 = vld [vmem:[#allocation2 + $0x4c] sm:$0xf] }
 0x19a   : > { %v2312_v41 = vadd.f32 %v2280_v55, %v2230_v1  ;;  %1836 = vst.msk [vmem:[#allocation3 + $0xa8] sm:$0xff] %vm944_vm8, %v1804_v53  ;;  %6478 = vmatmul.msk.bf16.gmra.mxu3 %vm944_vm8, %v4788_v36  ;;  %v5058_v1 = vld [vmem:[#allocation2 + $0x44] sm:$0x1]  ;;  %v3575_v53 = vsel %vm7085_vm14, %v6332_v33, %v3574_v3  ;;  %v4483_v10 = vrot.slane %v4481_v7, 5  ;;  %v3463_v33 = vld [vmem:[#allocation2 + $0x48] sm:$0xe] }
 0x19b   : > { %v2641_v60 = vld [vmem:[#allocation3 + $0x98] sm:$0xff]  ;;  %v3319_v63 = vpop.f32.mrf.mxu0  ;;  %v4789_v48 = vpack.c.b16 %v4761_v27, %v4760_v0  ;;  %v5169_v61 = vrot.slane %v5058_v1, 5  ;;  %v3669_v2 = vunpack.c.l.b16 %v3575_v53  ;;  %v1775_v27 = vld [vmem:[#allocation3 + $0xc0] sm:$0xff] }
 0x19c   : > { %v2673_v62 = vadd.f32 %v2641_v60, %v2589_v19  ;;  %2344 = vst.msk [vmem:[#allocation3 + $0xa0] sm:$0xff] %vm944_vm8, %v2312_v41  ;;  %v7833_v19 = vrot.slane %v4471_v59, 5  ;;  %v5168_v60 = vrot.slane %v5166_v49, 4 }
 0x19d   : > { %v3370_v32 = vld [vmem:[#allocation3 + $0x90] sm:$0xff]  ;;  %v2592_v52 = vpop.f32.mrf.mxu3 }
 0x19e   : > { %2705 = vst.msk [vmem:[#allocation3 + $0x98] sm:$0xff] %vm944_vm8, %v2673_v62  ;;  %v3402_v12 = vadd.f32 %v3370_v32, %v3317_v23  ;;  %v4467_v23 = vrot.slane %v4465_v14, 5  ;;  %v4478_v41 = vor.u32 %v4477_v28, %v7833_v19  ;;  %v3670_v32 = vunpack.c.l.b16 %v3578_v39  ;;  %v5059_v39 = vld [vmem:[#allocation2 + $0x48] sm:$0xe] }
 0x19f   : > { %v2232_v15 = vpop.f32.mrf.mxu2  ;;  %v1726_v17 = vpop.f32.mrf.mxu1  ;;  %v5170_v14 = vsel %vm7085_vm14, %v5168_v60, %v5169_v61  ;;  %v5061_v61 = vld [vmem:[#allocation2 + $0x50] sm:$0x1] }
 0x1a0   : > { %3434 = vst.msk [vmem:[#allocation3 + $0x90] sm:$0xff] %vm944_vm8, %v3402_v12  ;;  %v1805_v26 = vadd.f32 %v1773_v29, %v1726_v17  ;;  %v4468_v55 = vor.u32 %v4467_v23, %v4464_v8  ;;  %v4479_v4 = vrot.slane %v4478_v41, 4  ;;  %v5167_v12 = vsel %vm7085_vm14, %v6495_v54, %v5166_v49 }
 0x1a1   : > { %v2281_v13 = vld [vmem:[#allocation3 + $0xa8] sm:$0xff]  ;;  %v5266_v30 = vunpack.c.l.b16 %v5167_v12  ;;  %v5173_v41 = vrot.slane %v5060_v46, 5  ;;  %v1777_v46 = vld [vmem:[#allocation3 + $0xd0] sm:$0xff] }
 0x1a2   : > { %v2313_v11 = vadd.f32 %v2281_v13, %v2232_v15  ;;  %1837 = vst.msk [vmem:[#allocation3 + $0xb0] sm:$0xff] %vm944_vm8, %v1805_v26  ;;  %6359 = vmatmul.msk.bf16.gmra.mxu1 %vm944_vm8, %v3696_v58  ;;  %v4333_v58 = vld [vmem:[#allocation2 + $0x58] sm:$0xf]  ;;  %v3464_v15 = vld [vmem:[#allocation2 + $0x4c] sm:$0xf] }
 0x1a3   : > { %v2642_v36 = vld [vmem:[#allocation3 + $0xa0] sm:$0xff]  ;;  %v3322_v42 = vpop.f32.mrf.mxu0  ;;  %v4495_v59 = vshll.u32 %v4333_v58, 16  ;;  %v4499_v22 = vshrl.u32 %v4333_v58, 16  ;;  %v3581_v8 = vrot.slane %v3464_v15, 5  ;;  %v5175_v12 = vrot.slane %v5173_v41, 4 }
 0x1a4   : > { %v2674_v38 = vadd.f32 %v2642_v36, %v2592_v52  ;;  %2345 = vst.msk [vmem:[#allocation3 + $0xa8] sm:$0xff] %vm944_vm8, %v2313_v11  ;;  %6451 = vmatmul.msk.bf16.gmra.mxu2 %vm944_vm8, %v6589_v16  ;;  %v4469_v52 = vrot.slane %v4468_v55, 4  ;;  %v3697_v16 = vpack.c.b16 %v3670_v32, %v3669_v2  ;;  %v5267_v11 = vunpack.c.l.b16 %v5170_v14  ;;  %v6590_v36 = vld [vmem:[#allocation2 + $0x48] sm:$0xff]  ;;  %v1776_v32 = vld [vmem:[#allocation3 + $0xc8] sm:$0xff] }
 0x1a5   : > { %v3371_v50 = vld [vmem:[#allocation3 + $0x98] sm:$0xff]  ;;  %v2594_v51 = vpop.f32.mrf.mxu3  ;;  %v3583_v53 = vrot.slane %v3581_v8, 4  ;;  %v3584_v55 = vrot.slane %v3465_v24, 5 }
 0x1a6   : > { %2706 = vst.msk [vmem:[#allocation3 + $0xa0] sm:$0xff] %vm944_vm8, %v2674_v38  ;;  %v3403_v18 = vadd.f32 %v3371_v50, %v3319_v63  ;;  %6522 = vmatmul.msk.bf16.gmra.mxu0 %vm944_vm8, %v5294_v21  ;;  %v4332_v63 = vld [vmem:[#allocation2 + $0x54] sm:$0xf]  ;;  %v4474_v9 = vsel %vm7094_vm15, %v4469_v52, %v7833_v19  ;;  %v4484_v21 = vsel %vm7094_vm15, %v4479_v4, %v4483_v10  ;;  %v4501_v19 = vrot.slane %v4499_v22, 4 }
 0x1a7   : > { %v2235_v56 = vpop.f32.mrf.mxu2  ;;  %v1728_v45 = vpop.f32.mrf.mxu1  ;;  %v4486_v17 = vshrl.u32 %v4332_v63, 16  ;;  %v4489_v29 = vshll.u32 %v4332_v63, 16  ;;  %v4762_v49 = vunpack.c.l.b16 %v4474_v9  ;;  %v4763_v50 = vunpack.c.l.b16 %v4484_v21 }
 0x1a8   : > { %3435 = vst.msk [vmem:[#allocation3 + $0x98] sm:$0xff] %vm944_vm8, %v3403_v18  ;;  %v1806_v40 = vadd.f32 %v1774_v57, %v1728_v45  ;;  %v5295_v18 = vpack.c.b16 %v5267_v11, %v5266_v30  ;;  %v3585_v58 = vsel %vm7085_vm14, %v3583_v53, %v3584_v55  ;;  %v5063_v53 = vld [vmem:[#allocation2 + $0x58] sm:$0xf] }
 0x1a9   : > { %v2282_v62 = vld [vmem:[#allocation3 + $0xb0] sm:$0xff]  ;;  %v4488_v37 = vrot.slane %v4486_v17, 4  ;;  %v4491_v28 = vrot.slane %v4489_v29, 5  ;;  %v4790_v63 = vpack.c.b16 %v4763_v50, %v4762_v49  ;;  %v3468_v50 = vld [vmem:[#allocation2 + $0x5c] sm:$0x1] }
 0x1aa   : > { %v2314_v34 = vadd.f32 %v2282_v62, %v2235_v56  ;;  %1838 = vst.msk [vmem:[#allocation3 + $0xb8] sm:$0xff] %vm944_vm8, %v1806_v40  ;;  %6479 = vmatmul.msk.bf16.gmra.mxu3 %vm944_vm8, %v4789_v48  ;;  %v6333_v48 = vrot.slane %v3463_v33, 9 }
 0x1ab   : > { %v2643_v47 = vld [vmem:[#allocation3 + $0xa8] sm:$0xff]  ;;  %v3324_v5 = vpop.f32.mrf.mxu0  ;;  %v4492_v57 = vor.u32 %v4491_v28, %v4488_v37  ;;  %v3466_v37 = vld [vmem:[#allocation2 + $0x54] sm:$0xe] }
 0x1ac   : > { %v2675_v6 = vadd.f32 %v2643_v47, %v2594_v51  ;;  %2346 = vst.msk [vmem:[#allocation3 + $0xb0] sm:$0xff] %vm944_vm8, %v2314_v34  ;;  %v4334_v51 = vld [vmem:[#allocation2 + $0x5c] sm:$0x1]  ;;  %v3582_v52 = vsel %vm7085_vm14, %v6333_v48, %v3581_v8  ;;  %v6496_v47 = vrot.slane %v5059_v39, 9 }
 0x1ad   : > { %v3372_v25 = vld [vmem:[#allocation3 + $0xa0] sm:$0xff]  ;;  %v2597_v3 = vpop.f32.mrf.mxu3  ;;  %v4505_v60 = vshll.u32 %v4334_v51, 16  ;;  %v4493_v10 = vrot.slane %v4492_v57, 4  ;;  %v3671_v29 = vunpack.c.l.b16 %v3582_v52 }
 0x1ae   : > { %2707 = vst.msk [vmem:[#allocation3 + $0xa8] sm:$0xff] %vm944_vm8, %v2675_v6  ;;  %v3404_v26 = vadd.f32 %v3372_v25, %v3322_v42  ;;  %v7859_v42 = vrot.slane %v4495_v59, 5  ;;  %v5176_v6 = vrot.slane %v5061_v61, 5  ;;  %v3672_v25 = vunpack.c.l.b16 %v3585_v58  ;;  %v4335_v59 = vld [vmem:[#allocation2 + $0x60] sm:$0xf] }
 0x1af   : > { %v2237_v13 = vpop.f32.mrf.mxu2  ;;  %v1731_v0 = vpop.f32.mrf.mxu1  ;;  %v4507_v15 = vrot.slane %v4505_v60, 5  ;;  %v4510_v8 = vshrl.u32 %v4335_v59, 16  ;;  %v5064_v52 = vld [vmem:[#allocation2 + $0x5c] sm:$0x1] }
 0x1b0   : > { %3436 = vst.msk [vmem:[#allocation3 + $0xa0] sm:$0xff] %vm944_vm8, %v3404_v26  ;;  %v1807_v23 = vadd.f32 %v1775_v27, %v1731_v0  ;;  %v4502_v40 = vor.u32 %v4501_v19, %v7859_v42  ;;  %v4336_v26 = vld [vmem:[#allocation2 + $0x64] sm:$0xf]  ;;  %v5174_v0 = vsel %vm7085_vm14, %v6496_v47, %v5173_v41  ;;  %v5177_v27 = vsel %vm7085_vm14, %v5175_v12, %v5176_v6 }
 0x1b1   : > { %v2283_v38 = vld [vmem:[#allocation3 + $0xb8] sm:$0xff]  ;;  %v3698_v24 = vpack.c.b16 %v3672_v25, %v3671_v29  ;;  %v4519_v28 = vshll.u32 %v4336_v26, 16  ;;  %v5269_v49 = vunpack.c.l.b16 %v5177_v27  ;;  %v4512_v57 = vrot.slane %v4510_v8, 4 }
 0x1b2   : > { %v2315_v43 = vadd.f32 %v2283_v38, %v2237_v13  ;;  %1839 = vst.msk [vmem:[#allocation3 + $0xc0] sm:$0xff] %vm944_vm8, %v1807_v23  ;;  %6360 = vmatmul.msk.bf16.gmra.mxu1 %vm944_vm8, %v3697_v16  ;;  %v4503_v14 = vrot.slane %v4502_v40, 4  ;;  %v4498_v13 = vsel %vm7094_vm15, %v4493_v10, %v7859_v42  ;;  %v4513_v23 = vshll.u32 %v4335_v59, 16  ;;  %v1778_v25 = vld [vmem:[#allocation3 + $0xd8] sm:$0xff] }
 0x1b3   : > { %v2644_v1 = vld [vmem:[#allocation3 + $0xb0] sm:$0xff]  ;;  %v3327_v45 = vpop.f32.mrf.mxu0  ;;  %v4523_v38 = vshrl.u32 %v4336_v26, 16 }
 0x1b4   : > { %v2676_v56 = vadd.f32 %v2644_v1, %v2597_v3  ;;  %2347 = vst.msk [vmem:[#allocation3 + $0xb8] sm:$0xff] %vm944_vm8, %v2315_v43  ;;  %6452 = vmatmul.msk.bf16.gmra.mxu2 %vm944_vm8, %v6590_v36  ;;  %v3467_v3 = vld [vmem:[#allocation2 + $0x58] sm:$0xf]  ;;  %v4508_v11 = vsel %vm7094_vm15, %v4503_v14, %v4507_v15  ;;  %v5268_v43 = vunpack.c.l.b16 %v5174_v0  ;;  %v4515_v39 = vrot.slane %v4513_v23, 5 }
 0x1b5   : > { %v3373_v7 = vld [vmem:[#allocation3 + $0xa8] sm:$0xff]  ;;  %v2599_v54 = vpop.f32.mrf.mxu3  ;;  %v3588_v33 = vrot.slane %v3467_v3, 5  ;;  %v6591_v1 = vld [vmem:[#allocation2 + $0x54] sm:$0xff]  ;;  %v4765_v48 = vunpack.c.l.b16 %v4508_v11  ;;  %v4525_v40 = vrot.slane %v4523_v38, 4 }
 0x1b6   : > { %2708 = vst.msk [vmem:[#allocation3 + $0xb0] sm:$0xff] %vm944_vm8, %v2676_v56  ;;  %v3405_v62 = vadd.f32 %v3373_v7, %v3324_v5  ;;  %6523 = vmatmul.msk.bf16.gmra.mxu0 %vm944_vm8, %v5295_v18  ;;  %v4764_v18 = vunpack.c.l.b16 %v4498_v13  ;;  %v6334_v56 = vrot.slane %v3466_v37, 9  ;;  %v3591_v7 = vrot.slane %v3468_v50, 5 }
 0x1b7   : > { %v2240_v34 = vpop.f32.mrf.mxu2  ;;  %v1733_v2 = vpop.f32.mrf.mxu1  ;;  %v5296_v61 = vpack.c.b16 %v5269_v49, %v5268_v43  ;;  %v4516_v12 = vor.u32 %v4515_v39, %v4512_v57  ;;  %v3469_v39 = vld [vmem:[#allocation2 + $0x60] sm:$0xe] }
 0x1b8   : > { %3437 = vst.msk [vmem:[#allocation3 + $0xa8] sm:$0xff] %vm944_vm8, %v3405_v62  ;;  %v1808_v4 = vadd.f32 %v1776_v32, %v1733_v2  ;;  %v4337_v62 = vld [vmem:[#allocation2 + $0x68] sm:$0x1]  ;;  %v5062_v32 = vld [vmem:[#allocation2 + $0x54] sm:$0xe]  ;;  %v3589_v10 = vsel %vm7085_vm14, %v6334_v56, %v3588_v33 }
 0x1b9   : > { %v2284_v5 = vld [vmem:[#allocation3 + $0xc0] sm:$0xff]  ;;  %v4529_v15 = vshll.u32 %v4337_v62, 16  ;;  %v6497_v3 = vrot.slane %v5062_v32, 9  ;;  %v4517_v27 = vrot.slane %v4516_v12, 4  ;;  %v5066_v32 = vld [vmem:[#allocation2 + $0x64] sm:$0xf] }
 0x1ba   : > { %v2316_v17 = vadd.f32 %v2284_v5, %v2240_v34  ;;  %1840 = vst.msk [vmem:[#allocation3 + $0xc8] sm:$0xff] %vm944_vm8, %v1808_v4  ;;  %6480 = vmatmul.msk.bf16.gmra.mxu3 %vm944_vm8, %v4790_v63  ;;  %v5180_v63 = vrot.slane %v5063_v53, 5  ;;  %v4791_v4 = vpack.c.b16 %v4765_v48, %v4764_v18  ;;  %v1779_v18 = vld [vmem:[#allocation3 + $0xe0] sm:$0xff] }
 0x1bb   : > { %v2645_v22 = vld [vmem:[#allocation3 + $0xb8] sm:$0xff]  ;;  %v3329_v9 = vpop.f32.mrf.mxu0 }
 0x1bc   : > { %v2677_v16 = vadd.f32 %v2645_v22, %v2599_v54  ;;  %2348 = vst.msk [vmem:[#allocation3 + $0xc0] sm:$0xff] %vm944_vm8, %v2316_v17  ;;  %v7889_v54 = vrot.slane %v4519_v28, 5  ;;  %v5182_v59 = vrot.slane %v5180_v63, 4  ;;  %v5183_v22 = vrot.slane %v5064_v52, 5 }
 0x1bd   : > { %v3374_v21 = vld [vmem:[#allocation3 + $0xb0] sm:$0xff]  ;;  %v2602_v30 = vpop.f32.mrf.mxu3  ;;  %v5181_v23 = vsel %vm7085_vm14, %v6497_v3, %v5180_v63  ;;  %v5187_v3 = vrot.slane %v5066_v32, 5 }
 0x1be   : > { %2709 = vst.msk [vmem:[#allocation3 + $0xb8] sm:$0xff] %vm944_vm8, %v2677_v16  ;;  %v3406_v36 = vadd.f32 %v3374_v21, %v3327_v45  ;;  %v3590_v45 = vrot.slane %v3588_v33, 4  ;;  %v4526_v14 = vor.u32 %v4525_v40, %v7889_v54  ;;  %v4338_v16 = vld [vmem:[#allocation2 + $0x6c] sm:$0xf]  ;;  %v4339_v21 = vld [vmem:[#allocation2 + $0x70] sm:$0xf]  ;;  %v5270_v48 = vunpack.c.l.b16 %v5181_v23 }
 0x1bf   : > { %v2242_v42 = vpop.f32.mrf.mxu2  ;;  %v1736_v19 = vpop.f32.mrf.mxu1  ;;  %v4531_v33 = vrot.slane %v4529_v15, 5  ;;  %v4534_v37 = vshrl.u32 %v4338_v16, 16  ;;  %v4537_v28 = vshll.u32 %v4338_v16, 16 }
 0x1c0   : > { %3438 = vst.msk [vmem:[#allocation3 + $0xb0] sm:$0xff] %vm944_vm8, %v3406_v36  ;;  %v1809_v51 = vadd.f32 %v1777_v46, %v1736_v19  ;;  %v3592_v5 = vsel %vm7085_vm14, %v3590_v45, %v3591_v7  ;;  %v4527_v11 = vrot.slane %v4526_v14, 4  ;;  %v5184_v36 = vsel %vm7085_vm14, %v5182_v59, %v5183_v22 }
 0x1c1   : > { %v2285_v55 = vld [vmem:[#allocation3 + $0xc8] sm:$0xff]  ;;  %v3674_v0 = vunpack.c.l.b16 %v3592_v5  ;;  %v4543_v19 = vshll.u32 %v4339_v21, 16  ;;  %v4547_v46 = vshrl.u32 %v4339_v21, 16  ;;  %v5271_v53 = vunpack.c.l.b16 %v5184_v36 }
 0x1c2   : > { %v2317_v41 = vadd.f32 %v2285_v55, %v2242_v42  ;;  %1841 = vst.msk [vmem:[#allocation3 + $0xd0] sm:$0xff] %vm944_vm8, %v1809_v51  ;;  %6361 = vmatmul.msk.bf16.gmra.mxu1 %vm944_vm8, %v3698_v24  ;;  %v3470_v24 = vld [vmem:[#allocation2 + $0x64] sm:$0xf]  ;;  %v4522_v51 = vsel %vm7094_vm15, %v4517_v27, %v7889_v54  ;;  %v4532_v57 = vsel %vm7094_vm15, %v4527_v11, %v4531_v33  ;;  %v4536_v7 = vrot.slane %v4534_v37, 4 }
 0x1c3   : > { %v2646_v60 = vld [vmem:[#allocation3 + $0xc0] sm:$0xff]  ;;  %v3332_v2 = vpop.f32.mrf.mxu0  ;;  %v3595_v55 = vrot.slane %v3470_v24, 5  ;;  %v4539_v40 = vrot.slane %v4537_v28, 5  ;;  %v6592_v54 = vld [vmem:[#allocation2 + $0x60] sm:$0xff]  ;;  %v7915_v62 = vrot.slane %v4543_v19, 5  ;;  %v4549_v63 = vrot.slane %v4547_v46, 4 }
 0x1c4   : > { %v2678_v34 = vadd.f32 %v2646_v60, %v2602_v30  ;;  %2349 = vst.msk [vmem:[#allocation3 + $0xc8] sm:$0xff] %vm944_vm8, %v2317_v41  ;;  %6453 = vmatmul.msk.bf16.gmra.mxu2 %vm944_vm8, %v6591_v1  ;;  %v3471_v41 = vld [vmem:[#allocation2 + $0x68] sm:$0x1]  ;;  %v1780_v21 = vld [vmem:[#allocation3 + $0xe8] sm:$0xff]  ;;  %v5189_v24 = vrot.slane %v5187_v3, 4 }
 0x1c5   : > { %v3375_v58 = vld [vmem:[#allocation3 + $0xb8] sm:$0xff]  ;;  %v2604_v47 = vpop.f32.mrf.mxu3  ;;  %v3597_v12 = vrot.slane %v3595_v55, 4  ;;  %v4540_v5 = vor.u32 %v4539_v40, %v4536_v7 }
 0x1c6   : > { %2710 = vst.msk [vmem:[#allocation3 + $0xc0] sm:$0xff] %vm944_vm8, %v2678_v34  ;;  %v3407_v6 = vadd.f32 %v3375_v58, %v3329_v9  ;;  %6524 = vmatmul.msk.bf16.gmra.mxu0 %vm944_vm8, %v5296_v61  ;;  %v3673_v9 = vunpack.c.l.b16 %v3589_v10  ;;  %v4340_v61 = vld [vmem:[#allocation2 + $0x74] sm:$0x1]  ;;  %v4767_v58 = vunpack.c.l.b16 %v4532_v57 }
 0x1c7   : > { %v2245_v17 = vpop.f32.mrf.mxu2  ;;  %v1738_v29 = vpop.f32.mrf.mxu1  ;;  %v4553_v14 = vshll.u32 %v4340_v61, 16  ;;  %v4541_v11 = vrot.slane %v4540_v5, 4 }
 0x1c8   : > { %3439 = vst.msk [vmem:[#allocation3 + $0xb8] sm:$0xff] %vm944_vm8, %v3407_v6  ;;  %v1810_v26 = vadd.f32 %v1778_v25, %v1738_v29  ;;  %v3699_v50 = vpack.c.b16 %v3674_v0, %v3673_v9  ;;  %v3598_v6 = vrot.slane %v3471_v41, 5  ;;  %v4550_v29 = vor.u32 %v4549_v63, %v7915_v62  ;;  %v5065_v25 = vld [vmem:[#allocation2 + $0x60] sm:$0xe] }
 0x1c9   : > { %v2286_v13 = vld [vmem:[#allocation3 + $0xd0] sm:$0xff]  ;;  %v4555_v33 = vrot.slane %v4553_v14, 5 }
 0x1ca   : > { %v2318_v30 = vadd.f32 %v2286_v13, %v2245_v17  ;;  %1842 = vst.msk [vmem:[#allocation3 + $0xd8] sm:$0xff] %vm944_vm8, %v1810_v26  ;;  %6481 = vmatmul.msk.bf16.gmra.mxu3 %vm944_vm8, %v4791_v4  ;;  %v6335_v4 = vrot.slane %v3469_v39, 9  ;;  %v5067_v26 = vld [vmem:[#allocation2 + $0x68] sm:$0x1]  ;;  %v4551_v36 = vrot.slane %v4550_v29, 4 }
 0x1cb   : > { %v2647_v8 = vld [vmem:[#allocation3 + $0xc8] sm:$0xff]  ;;  %v3334_v42 = vpop.f32.mrf.mxu0  ;;  %v5190_v37 = vrot.slane %v5067_v26, 5 }
 0x1cc   : > { %v2679_v38 = vadd.f32 %v2647_v8, %v2604_v47  ;;  %2350 = vst.msk [vmem:[#allocation3 + $0xd0] sm:$0xff] %vm944_vm8, %v2318_v30  ;;  %v5297_v47 = vpack.c.b16 %v5271_v53, %v5270_v48  ;;  %v3596_v9 = vsel %vm7085_vm14, %v6335_v4, %v3595_v55  ;;  %v3599_v30 = vsel %vm7085_vm14, %v3597_v12, %v3598_v6  ;;  %v5069_v4 = vld [vmem:[#allocation2 + $0x70] sm:$0xf] }
 0x1cd   : > { %v3376_v43 = vld [vmem:[#allocation3 + $0xc0] sm:$0xff]  ;;  %v2607_v49 = vpop.f32.mrf.mxu3  ;;  %v6498_v8 = vrot.slane %v5065_v25, 9  ;;  %v3675_v19 = vunpack.c.l.b16 %v3596_v9  ;;  %v3676_v46 = vunpack.c.l.b16 %v3599_v30  ;;  %v4556_v53 = vsel %vm7094_vm15, %v4551_v36, %v4555_v33  ;;  %v6593_v12 = vld [vmem:[#allocation2 + $0x6c] sm:$0xff] }
 0x1ce   : > { %2711 = vst.msk [vmem:[#allocation3 + $0xc8] sm:$0xff] %vm944_vm8, %v2679_v38  ;;  %v3408_v1 = vadd.f32 %v3376_v43, %v3332_v2  ;;  %v4766_v2 = vunpack.c.l.b16 %v4522_v51  ;;  %v7929_v38 = vld [vmem:[#allocation2 + $0x70] sm:$0xf]  ;;  %v4341_v43 = vld [vmem:[#allocation2 + $0x78] sm:$0xf]  ;;  %v4546_v51 = vsel %vm7094_vm15, %v4541_v11, %v7915_v62  ;;  %v5191_v55 = vsel %vm7085_vm14, %v5189_v24, %v5190_v37 }
 0x1cf   : > { %v2247_v56 = vpop.f32.mrf.mxu2  ;;  %v1741_v45 = vpop.f32.mrf.mxu1  ;;  %v3602_v57 = vrot.slane %v7929_v38, 5  ;;  %v4558_v7 = vshrl.u32 %v4341_v43, 16  ;;  %v4561_v40 = vshll.u32 %v4341_v43, 16  ;;  %v3700_v62 = vpack.c.b16 %v3676_v46, %v3675_v19  ;;  %v5068_v9 = vld [vmem:[#allocation2 + $0x6c] sm:$0xe] }
 0x1d0   : > { %3440 = vst.msk [vmem:[#allocation3 + $0xc0] sm:$0xff] %vm944_vm8, %v3408_v1  ;;  %v1811_v60 = vadd.f32 %v1779_v18, %v1741_v45  ;;  %v4792_v13 = vpack.c.b16 %v4767_v58, %v4766_v2  ;;  %v5188_v1 = vsel %vm7085_vm14, %v6498_v8, %v5187_v3  ;;  %v3474_v45 = vld [vmem:[#allocation2 + $0x74] sm:$0x1]  ;;  %v1781_v2 = vld [vmem:[#allocation3 + $0xf0] sm:$0xff]  ;;  %v4768_v32 = vunpack.c.l.b16 %v4546_v51 }
 0x1d1   : > { %v2287_v34 = vld [vmem:[#allocation3 + $0xd8] sm:$0xff]  ;;  %v5272_v58 = vunpack.c.l.b16 %v5188_v1  ;;  %v3604_v5 = vrot.slane %v3602_v57, 4  ;;  %v3605_v14 = vrot.slane %v3474_v45, 5  ;;  %v4560_v29 = vrot.slane %v4558_v7, 4  ;;  %v4344_v1 = vld [vmem:[#allocation2 + $0x84] sm:$0xf] }
 0x1d2   : > { %v2319_v52 = vadd.f32 %v2287_v34, %v2247_v56  ;;  %1843 = vst.msk [vmem:[#allocation3 + $0xe0] sm:$0xff] %vm944_vm8, %v1811_v60  ;;  %6362 = vmatmul.msk.bf16.gmra.mxu1 %vm944_vm8, %v3699_v50  ;;  %v3472_v56 = vld [vmem:[#allocation2 + $0x6c] sm:$0xe]  ;;  %v4563_v25 = vrot.slane %v4561_v40, 5  ;;  %v5194_v26 = vrot.slane %v5069_v4, 5  ;;  %v6499_v38 = vrot.slane %v5068_v9, 9 }
 0x1d3   : > { %v2648_v10 = vld [vmem:[#allocation3 + $0xd0] sm:$0xff]  ;;  %v3337_v17 = vpop.f32.mrf.mxu0  ;;  %v6336_v6 = vrot.slane %v3472_v56, 9  ;;  %v3476_v7 = vld [vmem:[#allocation2 + $0x7c] sm:$0xf] }
 0x1d4   : > { %v2680_v15 = vadd.f32 %v2648_v10, %v2607_v49  ;;  %2351 = vst.msk [vmem:[#allocation3 + $0xd8] sm:$0xff] %vm944_vm8, %v2319_v52  ;;  %6454 = vmatmul.msk.bf16.gmra.mxu2 %vm944_vm8, %v6592_v54  ;;  %v4342_v49 = vld [vmem:[#allocation2 + $0x7c] sm:$0xf]  ;;  %v4769_v52 = vunpack.c.l.b16 %v4556_v53  ;;  %v4564_v36 = vor.u32 %v4563_v25, %v4560_v29  ;;  %v3477_v25 = vld [vmem:[#allocation2 + $0x80] sm:$0x1] }
 0x1d5   : > { %v3377_v59 = vld [vmem:[#allocation3 + $0xc8] sm:$0xff]  ;;  %v2609_v22 = vpop.f32.mrf.mxu3  ;;  %v4567_v60 = vshll.u32 %v4342_v49, 16  ;;  %v4571_v54 = vshrl.u32 %v4342_v49, 16  ;;  %v3603_v11 = vsel %vm7085_vm14, %v6336_v6, %v3602_v57  ;;  %v1782_v49 = vld [vmem:[#allocation3 + $0xf8] sm:$0xff] }
 0x1d6   : > { %2712 = vst.msk [vmem:[#allocation3 + $0xd0] sm:$0xff] %vm944_vm8, %v2680_v15  ;;  %v3409_v16 = vadd.f32 %v3377_v59, %v3334_v42  ;;  %6525 = vmatmul.msk.bf16.gmra.mxu0 %vm944_vm8, %v5297_v47  ;;  %v5273_v47 = vunpack.c.l.b16 %v5191_v55  ;;  %v4793_v30 = vpack.c.b16 %v4769_v52, %v4768_v32  ;;  %v3677_v51 = vunpack.c.l.b16 %v3603_v11 }
 0x1d7   : > { %v2250_v0 = vpop.f32.mrf.mxu2  ;;  %v1743_v27 = vpop.f32.mrf.mxu1  ;;  %v4573_v3 = vrot.slane %v4571_v54, 4  ;;  %v4565_v56 = vrot.slane %v4564_v36, 4  ;;  %v4585_v54 = vshll.u32 %v4344_v1, 16 }
 0x1d8   : > { %3441 = vst.msk [vmem:[#allocation3 + $0xc8] sm:$0xff] %vm944_vm8, %v3409_v16  ;;  %v1812_v23 = vadd.f32 %v1780_v21, %v1743_v27 }
 0x1d9   : > { %v2288_v28 = vld [vmem:[#allocation3 + $0xe0] sm:$0xff] }
 0x1da   : > { %v2320_v42 = vadd.f32 %v2288_v28, %v2250_v0  ;;  %1844 = vst.msk [vmem:[#allocation3 + $0xe8] sm:$0xff] %vm944_vm8, %v1812_v23  ;;  %6482 = vmatmul.msk.bf16.gmra.mxu3 %vm944_vm8, %v4792_v13  ;;  %v5298_v13 = vpack.c.b16 %v5273_v47, %v5272_v58  ;;  %v5070_v0 = vld [vmem:[#allocation2 + $0x74] sm:$0x1]  ;;  %v3606_v23 = vsel %vm7085_vm14, %v3604_v5, %v3605_v14  ;;  %v3475_v5 = vld [vmem:[#allocation2 + $0x78] sm:$0xe]  ;;  %v3609_v14 = vrot.slane %v3476_v7, 5 }
 0x1db   : > { %v2649_v50 = vld [vmem:[#allocation3 + $0xd8] sm:$0xff]  ;;  %v3339_v48 = vpop.f32.mrf.mxu0  ;;  %v5197_v19 = vrot.slane %v5070_v0, 5  ;;  %v3678_v55 = vunpack.c.l.b16 %v3606_v23  ;;  %v6337_v11 = vrot.slane %v3475_v5, 9  ;;  %v3478_v5 = vld [vmem:[#allocation2 + $0x84] sm:$0xe] }
 0x1dc   : > { %v2681_v18 = vadd.f32 %v2649_v50, %v2609_v22  ;;  %2352 = vst.msk [vmem:[#allocation3 + $0xe0] sm:$0xff] %vm944_vm8, %v2320_v42  ;;  %v4343_v22 = vld [vmem:[#allocation2 + $0x80] sm:$0x1]  ;;  %v5196_v42 = vrot.slane %v5194_v26, 4 }
 0x1dd   : > { %v3378_v39 = vld [vmem:[#allocation3 + $0xd0] sm:$0xff]  ;;  %v2612_v41 = vpop.f32.mrf.mxu3  ;;  %v4577_v37 = vshll.u32 %v4343_v22, 16  ;;  %v3701_v52 = vpack.c.b16 %v3678_v55, %v3677_v51 }
 0x1de   : > { %2713 = vst.msk [vmem:[#allocation3 + $0xd8] sm:$0xff] %vm944_vm8, %v2681_v18  ;;  %v3410_v61 = vadd.f32 %v3378_v39, %v3337_v17  ;;  %v7946_v17 = vrot.slane %v4567_v60, 5  ;;  %v4345_v18 = vld [vmem:[#allocation2 + $0x88] sm:$0xf]  ;;  %v5195_v39 = vsel %vm7085_vm14, %v6499_v38, %v5194_v26  ;;  %v4582_v60 = vshrl.u32 %v4344_v1, 16 }
 0x1df   : > { %v2252_v63 = vpop.f32.mrf.mxu2  ;;  %v1746_v34 = vpop.f32.mrf.mxu1  ;;  %v4579_v57 = vrot.slane %v4577_v37, 5 }
 0x1e0   : > { %3442 = vst.msk [vmem:[#allocation3 + $0xd0] sm:$0xff] %vm944_vm8, %v3410_v61  ;;  %v1813_v10 = vadd.f32 %v1781_v2, %v1746_v34  ;;  %v4574_v24 = vor.u32 %v4573_v3, %v7946_v17  ;;  %v4591_v61 = vshll.u32 %v4345_v18, 16  ;;  %v4570_v58 = vsel %vm7094_vm15, %v4565_v56, %v7946_v17 }
 0x1e1   : > { %v2289_v15 = vld [vmem:[#allocation3 + $0xe8] sm:$0xff]  ;;  %v4584_v3 = vrot.slane %v4582_v60, 4  ;;  %v4770_v0 = vunpack.c.l.b16 %v4570_v58 }
 0x1e2   : > { %v2321_v59 = vadd.f32 %v2289_v15, %v2252_v63  ;;  %1845 = vst.msk [vmem:[#allocation3 + $0xf0] sm:$0xff] %vm944_vm8, %v1813_v10  ;;  %6363 = vmatmul.msk.bf16.gmra.mxu1 %vm944_vm8, %v3700_v62  ;;  %v4575_v45 = vrot.slane %v4574_v24, 4  ;;  %v4595_v62 = vshrl.u32 %v4345_v18, 16  ;;  %v3858_v10 = vld [vmem:[#allocation3] sm:$0xff]  ;;  %v7973_v22 = vrot.slane %v4591_v61, 5 }
 0x1e3   : > { %v2650_v16 = vld [vmem:[#allocation3 + $0xe0] sm:$0xff]  ;;  %v3342_v21 = vpop.f32.mrf.mxu0  ;;  %v3610_v18 = vsel %vm7085_vm14, %v6337_v11, %v3609_v14  ;;  %v7988_v61 = vld [vmem:[#allocation2 + $0x88] sm:$0xf] }
 0x1e4   : > { %v2682_v27 = vadd.f32 %v2650_v16, %v2612_v41  ;;  %2353 = vst.msk [vmem:[#allocation3 + $0xe8] sm:$0xff] %vm944_vm8, %v2321_v59  ;;  %6455 = vmatmul.msk.bf16.gmra.mxu2 %vm944_vm8, %v6593_v12  ;;  %v5198_v41 = vsel %vm7085_vm14, %v5196_v42, %v5197_v19  ;;  %v4580_v47 = vsel %vm7094_vm15, %v4575_v45, %v4579_v57  ;;  %v5274_v12 = vunpack.c.l.b16 %v5195_v39  ;;  %v6594_v16 = vld [vmem:[#allocation2 + $0x78] sm:$0xff]  ;;  %v3859_v45 = vld [vmem:[#allocation3 + $0x8] sm:$0xff] }
 0x1e5   : > { %v3379_v33 = vld [vmem:[#allocation3 + $0xd8] sm:$0xff]  ;;  %v2614_v8 = vpop.f32.mrf.mxu3  ;;  %v5275_v6 = vunpack.c.l.b16 %v5198_v41  ;;  %v4587_v59 = vrot.slane %v4585_v54, 5  ;;  %v4597_v26 = vrot.slane %v4595_v62, 4  ;;  %v5071_v19 = vld [vmem:[#allocation2 + $0x78] sm:$0xe] }
 0x1e6   : > { %2714 = vst.msk [vmem:[#allocation3 + $0xe0] sm:$0xff] %vm944_vm8, %v2682_v27  ;;  %v3411_v28 = vadd.f32 %v3379_v33, %v3339_v48  ;;  %6526 = vmatmul.msk.bf16.gmra.mxu0 %vm944_vm8, %v5298_v13  ;;  %v4346_v13 = vld [vmem:[#allocation2 + $0x8c] sm:$0x1]  ;;  %v4771_v27 = vunpack.c.l.b16 %v4580_v47  ;;  %v3611_v33 = vrot.slane %v3609_v14, 4  ;;  %v6500_v41 = vrot.slane %v5071_v19, 9 }
 0x1e7   : > { %v2255_v46 = vpop.f32.mrf.mxu2  ;;  %v1748_v43 = vpop.f32.mrf.mxu1  ;;  %v5299_v36 = vpack.c.b16 %v5275_v6, %v5274_v12  ;;  %v4588_v24 = vor.u32 %v4587_v59, %v4584_v3  ;;  %v4598_v37 = vor.u32 %v4597_v26, %v7973_v22  ;;  %v4347_v62 = vld [vmem:[#allocation2 + $0x90] sm:$0xf]  ;;  %v3616_v14 = vrot.slane %v7988_v61, 5  ;;  %v3480_v3 = vld [vmem:[#allocation2 + $0x8c] sm:$0x1] }
 0x1e8   : > { %3443 = vst.msk [vmem:[#allocation3 + $0xd8] sm:$0xff] %vm944_vm8, %v3411_v28  ;;  %v1814_v50 = vadd.f32 %v1782_v49, %v1748_v43  ;;  %v4601_v28 = vshll.u32 %v4346_v13, 16  ;;  %v4794_v1 = vpack.c.b16 %v4771_v27, %v4770_v0  ;;  %v4609_v59 = vshll.u32 %v4347_v62, 16  ;;  %v3860_v27 = vld [vmem:[#allocation3 + $0x10] sm:$0xff] }
 0x1e9   : > { %v2290_v53 = vld [vmem:[#allocation3 + $0xf0] sm:$0xff]  ;;  %v4589_v57 = vrot.slane %v4588_v24, 4  ;;  %v8007_v24 = vpop.permute.xlu0 %5662  ;;  %v5673_v19 = vlaneseq }
 0x1ea   : > { %v2322_v48 = vadd.f32 %v2290_v53, %v2255_v46  ;;  %1846 = vst.msk [vmem:[#allocation3 + $0xf8] sm:$0xff] %vm944_vm8, %v1814_v50  ;;  %6483 = vmatmul.msk.bf16.gmra.mxu3 %vm944_vm8, %v4793_v30  ;;  %v5073_v50 = vld [vmem:[#allocation2 + $0x80] sm:$0x1]  ;;  %v4603_v39 = vrot.slane %v4601_v28, 5  ;;  %v3619_v28 = vrot.slane %v3480_v3, 5 }
 0x1eb   : > { %v2651_v40 = vld [vmem:[#allocation3 + $0xe8] sm:$0xff]  ;;  %v3344_v34 = vpop.f32.mrf.mxu0  ;;  %v5204_v60 = vrot.slane %v5073_v50, 5  ;;  %v4594_v58 = vsel %vm7094_vm15, %v4589_v57, %v7973_v22 }
 0x1ec   : > { %v2683_v63 = vadd.f32 %v2651_v40, %v2614_v8  ;;  %2354 = vst.msk [vmem:[#allocation3 + $0xf0] sm:$0xff] %vm944_vm8, %v2322_v48  ;;  %v3612_v8 = vrot.slane %v3477_v25, 5  ;;  %v4599_v48 = vrot.slane %v4598_v37, 4  ;;  %v3618_v37 = vrot.slane %v3616_v14, 4 }
 0x1ed   : > { %v3380_v2 = vld [vmem:[#allocation3 + $0xe0] sm:$0xff]  ;;  %v2617_v32 = vpop.f32.mrf.mxu3 }
 0x1ee   : > { %2715 = vst.msk [vmem:[#allocation3 + $0xe8] sm:$0xff] %vm944_vm8, %v2683_v63  ;;  %v3412_v4 = vadd.f32 %v3380_v2, %v3342_v21  ;;  %v5072_v21 = vld [vmem:[#allocation2 + $0x7c] sm:$0xf]  ;;  %v3613_v53 = vsel %vm7085_vm14, %v3611_v33, %v3612_v8  ;;  %v4604_v47 = vsel %vm7094_vm15, %v4599_v48, %v4603_v39  ;;  %v6338_v33 = vrot.slane %v3478_v5, 9  ;;  %v5075_v8 = vld [vmem:[#allocation2 + $0x88] sm:$0xf] }
 0x1ef   : > { %v2257_v15 = vpop.f32.mrf.mxu2  ;;  %v3778_v29 = vpop.f32.mrf.mxu1  ;;  %v5201_v46 = vrot.slane %v5072_v21, 5  ;;  %v3680_v2 = vunpack.c.l.b16 %v3613_v53  ;;  %v8004_v21 = vunpack.c.l.b16 %v4594_v58 }
 0x1f0   : > { %3444 = vst.msk [vmem:[#allocation3 + $0xe0] sm:$0xff] %vm944_vm8, %v3412_v4  ;;  %v3890_v17 = vadd.f32 %v3858_v10, %v3778_v29  ;;  %v3617_v39 = vsel %vm7085_vm14, %v6338_v33, %v3616_v14  ;;  %v4350_v14 = vld [vmem:[#allocation2 + $0x9c] sm:$0xf] }
 0x1f1   : > { %v2291_v9 = vld [vmem:[#allocation3 + $0xf8] sm:$0xff]  ;;  %v5203_v40 = vrot.slane %v5201_v46, 4  ;;  %v5202_v4 = vsel %vm7085_vm14, %v6500_v41, %v5201_v46  ;;  %v4611_v46 = vrot.slane %v4609_v59, 5  ;;  %v3620_v41 = vsel %vm7085_vm14, %v3618_v37, %v3619_v28 }
 0x1f2   : > { %v2323_v30 = vadd.f32 %v2291_v9, %v2257_v15  ;;  %3922 = vst.msk [vmem:[#allocation3] sm:$0xff] %vm944_vm8, %v3890_v17  ;;  %6364 = vmatmul.msk.bf16.gmra.mxu1 %vm944_vm8, %v3701_v52  ;;  %v4606_v15 = vshrl.u32 %v4347_v62, 16  ;;  %v5276_v13 = vunpack.c.l.b16 %v5202_v4  ;;  %v3682_v5 = vunpack.c.l.b16 %v3620_v41 }
 0x1f3   : > { %v2652_v23 = vld [vmem:[#allocation3 + $0xf0] sm:$0xff]  ;;  %v3347_v42 = vpop.f32.mrf.mxu0  ;;  %v5205_v6 = vsel %vm7085_vm14, %v5203_v40, %v5204_v60  ;;  %v8020_v60 = vand.u32 127, %v5673_v19 }
 0x1f4   : > { %v2684_v38 = vadd.f32 %v2652_v23, %v2617_v32  ;;  %2355 = vst.msk [vmem:[#allocation3 + $0xf8] sm:$0xff] %vm944_vm8, %v2323_v30  ;;  %6456 = vmatmul.msk.bf16.gmra.mxu2 %vm944_vm8, %v6594_v16  ;;  %v4348_v32 = vld [vmem:[#allocation2 + $0x94] sm:$0xf]  ;;  %v4773_v30 = vunpack.c.l.b16 %v4604_v47  ;;  %v5277_v11 = vunpack.c.l.b16 %v5205_v6  ;;  %v3681_v6 = vunpack.c.l.b16 %v3617_v39 }
 0x1f5   : > { %v3381_v43 = vld [vmem:[#allocation3 + $0xe8] sm:$0xff]  ;;  %v2619_v49 = vpop.f32.mrf.mxu3  ;;  %v4615_v22 = vshll.u32 %v4348_v32, 16  ;;  %v4619_v26 = vshrl.u32 %v4348_v32, 16  ;;  %v3861_v47 = vld [vmem:[#allocation3 + $0x18] sm:$0xff] }
 0x1f6   : > { %2716 = vst.msk [vmem:[#allocation3 + $0xf0] sm:$0xff] %vm944_vm8, %v2684_v38  ;;  %v3413_v51 = vadd.f32 %v3381_v43, %v3344_v34  ;;  %6527 = vmatmul.msk.bf16.gmra.mxu0 %vm944_vm8, %v5299_v36  ;;  %v3679_v34 = vunpack.c.l.b16 %v3610_v18  ;;  %v6595_v36 = vld [vmem:[#allocation2 + $0x84] sm:$0xff]  ;;  %v4608_v38 = vrot.slane %v4606_v15, 4  ;;  %v4795_v53 = vpack.c.b16 %v4773_v30, %v8004_v21  ;;  %v4351_v15 = vld [vmem:[#allocation2 + $0xa0] sm:$0xf] }
 0x1f7   : > { %v4141_v55 = vpop.f32.mrf.mxu2  ;;  %v3780_v56 = vpop.f32.mrf.mxu1  ;;  %v8009_v43 = vrot.slane %v4615_v22, 5  ;;  %v4639_v21 = vshll.u32 %v4351_v15, 16  ;;  %v4643_v30 = vshrl.u32 %v4351_v15, 16 }
 0x1f8   : > { %3445 = vst.msk [vmem:[#allocation3 + $0xe8] sm:$0xff] %vm944_vm8, %v3413_v51  ;;  %v3891_v7 = vadd.f32 %v3859_v45, %v3780_v56  ;;  %v3702_v16 = vpack.c.b16 %v3680_v2, %v3679_v34  ;;  %v4349_v51 = vld [vmem:[#allocation2 + $0x98] sm:$0x1]  ;;  %v5074_v56 = vld [vmem:[#allocation2 + $0x84] sm:$0xe] }
 0x1f9   : > { %v4221_v54 = vld [vmem:[#allocation3] sm:$0xff]  ;;  %v5076_v45 = vld [vmem:[#allocation2 + $0x8c] sm:$0x1]  ;;  %v4625_v62 = vshll.u32 %v4349_v51, 16  ;;  %v6501_v34 = vrot.slane %v5074_v56, 9 }
 0x1fa   : > { %v4253_v63 = vadd.f32 %v4221_v54, %v4141_v55  ;;  %3923 = vst.msk [vmem:[#allocation3 + $0x8] sm:$0xff] %vm944_vm8, %v3891_v7  ;;  %6484 = vmatmul.msk.bf16.gmra.mxu3 %vm944_vm8, %v4794_v1  ;;  %v5208_v1 = vrot.slane %v5075_v8, 5  ;;  %v5300_v55 = vpack.c.b16 %v5277_v11, %v5276_v13  ;;  %v4612_v54 = vor.u32 %v4611_v46, %v4608_v38  ;;  %v8037_v13 = vld [vmem:[#allocation2 + $0x94] sm:$0xf]  ;;  %v3481_v51 = vld [vmem:[#allocation2 + $0x90] sm:$0xe] }
 0x1fb   : > { %v2653_v52 = vld [vmem:[#allocation3 + $0xf8] sm:$0xff]  ;;  %v3349_v12 = vpop.f32.mrf.mxu0  ;;  %v5211_v32 = vrot.slane %v5076_v45, 5  ;;  %v4627_v59 = vrot.slane %v4625_v62, 5  ;;  %v5675_v8 = vperm.slane %v8007_v24, %v8020_v60  ;;  %v5684_v62 = vadd.s32 4294967272, %v8020_v60 }
 0x1fc   : > { %v2685_v10 = vadd.f32 %v2653_v52, %v2619_v49  ;;  %4285 = vst.msk [vmem:[#allocation3] sm:$0xff] %vm944_vm8, %v4253_v63  ;;  %v4621_v49 = vrot.slane %v4619_v26, 4  ;;  %v5210_v2 = vrot.slane %v5208_v1, 4  ;;  %v5666_v26 = vpop.permute.xlu0 %5665 }
 0x1fd   : > { %v3382_v29 = vld [vmem:[#allocation3 + $0xf0] sm:$0xff]  ;;  %v4871_v25 = vpop.f32.mrf.mxu3 }
 0x1fe   : > { %2717 = vst.msk [vmem:[#allocation3 + $0xf8] sm:$0xff] %vm944_vm8, %v2685_v10  ;;  %v3414_v17 = vadd.f32 %v3382_v29, %v3347_v42  ;;  %v4622_v61 = vor.u32 %v4621_v49, %v8009_v43  ;;  %v8026_v10 = vpop.permute.xlu1 %5668  ;;  %v3862_v49 = vld [vmem:[#allocation3 + $0x20] sm:$0xff] }
 0x1ff   : > { %v4143_v9 = vpop.f32.mrf.mxu2  ;;  %v3783_v0 = vpop.f32.mrf.mxu1 }
 0x200   : > { %3446 = vst.msk [vmem:[#allocation3 + $0xf0] sm:$0xff] %vm944_vm8, %v3414_v17  ;;  %v3892_v23 = vadd.f32 %v3860_v27, %v3783_v0  ;;  %v4623_v3 = vrot.slane %v4622_v61, 4  ;;  %v5209_v17 = vsel %vm7085_vm14, %v6501_v34, %v5208_v1  ;;  %v4630_v0 = vshrl.u32 %v4350_v14, 16  ;;  %v5078_v34 = vld [vmem:[#allocation2 + $0x94] sm:$0xf] }
 0x201   : > { %v4222_v42 = vld [vmem:[#allocation3 + $0x8] sm:$0xff]  ;;  %v4633_v27 = vshll.u32 %v4350_v14, 16  ;;  %v5278_v24 = vunpack.c.l.b16 %v5209_v17  ;;  %v3623_v1 = vrot.slane %v8037_v13, 5 }
 0x202   : > { %v4254_v50 = vadd.f32 %v4222_v42, %v4143_v9  ;;  %3924 = vst.msk [vmem:[#allocation3 + $0x10] sm:$0xff] %vm944_vm8, %v3892_v23  ;;  %6365 = vmatmul.msk.bf16.gmra.mxu1 %vm944_vm8, %v3702_v16  ;;  %v5212_v16 = vsel %vm7085_vm14, %v5210_v2, %v5211_v32  ;;  %v5680_v23 = vadd.s32 4294967280, %v8020_v60  ;;  %v4628_v19 = vsel %vm7094_vm15, %v4623_v3, %v4627_v59  ;;  %v5077_v3 = vld [vmem:[#allocation2 + $0x90] sm:$0xe] }
 0x203   : > { %v4951_v18 = vld [vmem:[#allocation3] sm:$0xff]  ;;  %v5377_v48 = vpop.f32.mrf.mxu0  ;;  %v4632_v56 = vrot.slane %v4630_v0, 4  ;;  %v4635_v45 = vrot.slane %v4633_v27, 5  ;;  %v5215_v59 = vrot.slane %v5078_v34, 5 }
 0x204   : > { %v4983_v57 = vadd.f32 %v4951_v18, %v4871_v25  ;;  %4286 = vst.msk [vmem:[#allocation3 + $0x8] sm:$0xff] %vm944_vm8, %v4254_v50  ;;  %6457 = vmatmul.msk.bf16.gmra.mxu2 %vm944_vm8, %v6595_v36  ;;  %v4613_v25 = vrot.slane %v4612_v54, 4  ;;  %v3703_v36 = vpack.c.b16 %v3682_v5, %v3681_v6  ;;  %v5279_v50 = vunpack.c.l.b16 %v5212_v16 }
 0x205   : > { %v3383_v7 = vld [vmem:[#allocation3 + $0xf8] sm:$0xff]  ;;  %v4873_v40 = vpop.f32.mrf.mxu3  ;;  %v5681_v41 = vperm.slane %v8026_v10, %v5680_v23  ;;  %v4636_v6 = vor.u32 %v4635_v45, %v4632_v56  ;;  %v4354_v56 = vld [vmem:[#allocation2 + $0xac] sm:$0xf] }
 0x206   : > { %5015 = vst.msk [vmem:[#allocation3] sm:$0xff] %vm944_vm8, %v4983_v57  ;;  %v3415_v63 = vadd.f32 %v3383_v7, %v3349_v12  ;;  %6528 = vmatmul.msk.bf16.gmra.mxu0 %vm944_vm8, %v5300_v55  ;;  %v8029_v12 = vadd.s32 4294967288, %v8020_v60  ;;  %v4618_v42 = vsel %vm7094_vm15, %v4613_v25, %v8009_v43  ;;  %v3483_v55 = vld [vmem:[#allocation2 + $0x98] sm:$0x1]  ;;  %v8051_v57 = vrot.slane %v4639_v21, 5  ;;  %v5672_v32 = vpop.permute.xlu1 %5671 }
 0x207   : > { %v4146_v52 = vpop.f32.mrf.mxu2  ;;  %v3785_v58 = vpop.f32.mrf.mxu1  ;;  %v4645_v43 = vrot.slane %v4643_v30, 4  ;;  %v4774_v7 = vunpack.c.l.b16 %v4618_v42  ;;  %v5301_v10 = vpack.c.b16 %v5279_v50, %v5278_v24  ;;  %v8065_v25 = vld [vmem:[%s8576_s2] ss:$0 sm:$0xff]  ;;  %v5685_v16 = vperm.slane %v5672_v32, %v5684_v62  ;;  %v3486_v62 = vld [vmem:[#allocation2 + $0xa4] sm:$0x1] }
 0x208   : > { %3447 = vst.msk [vmem:[#allocation3 + $0xf8] sm:$0xff] %vm944_vm8, %v3415_v63  ;;  %v3893_v4 = vadd.f32 %v3861_v47, %v3785_v58  ;;  %v5677_v38 = vperm.slane %v5666_v26, %v8029_v12  ;;  %v4775_v63 = vunpack.c.l.b16 %v4628_v19  ;;  %v3625_v58 = vrot.slane %v3623_v1, 4  ;;  %v8079_v50 = vld [vmem:[#allocation2 + $0xa0] sm:$0xf] }
 0x209   : > { %v4223_v29 = vld [vmem:[#allocation3 + $0x10] sm:$0xff]  ;;  %v3626_v47 = vrot.slane %v3483_v55, 5  ;;  %v4646_v5 = vor.u32 %v4645_v43, %v8051_v57  ;;  %v5217_v19 = vrot.slane %v5215_v59, 4 }
 0x20a   : > { %v4255_v22 = vadd.f32 %v4223_v29, %v4146_v52  ;;  %3925 = vst.msk [vmem:[#allocation3 + $0x18] sm:$0xff] %vm944_vm8, %v3893_v4  ;;  %6485 = vmatmul.msk.bf16.gmra.mxu3 %vm944_vm8, %v4795_v53  ;;  %v5679_v61 = vsel %vm5678_vm0, %v5677_v38, %v5675_v8  ;;  %v6339_v52 = vrot.slane %v3481_v51, 9  ;;  %v4796_v13 = vpack.c.b16 %v4775_v63, %v4774_v7  ;;  %v3863_v8 = vld [vmem:[#allocation3 + $0x28] sm:$0xff]  ;;  %v4353_v55 = vld [vmem:[#allocation2 + $0xa8] sm:$0xf] }
 0x20b   : > { %v4952_v9 = vld [vmem:[#allocation3 + $0x8] sm:$0xff]  ;;  %v5379_v33 = vpop.f32.mrf.mxu0  ;;  %v5683_v17 = vsel %vm5682_vm1, %v5681_v41, %v5679_v61  ;;  %v3627_v21 = vsel %vm7085_vm14, %v3625_v58, %v3626_v47  ;;  %v6502_v38 = vrot.slane %v5077_v3, 9  ;;  %v3484_v61 = vld [vmem:[#allocation2 + $0x9c] sm:$0xe]  ;;  %v4657_v32 = vshll.u32 %v4353_v55, 16 }
 0x20c   : > { %v4984_v11 = vadd.f32 %v4952_v9, %v4873_v40  ;;  %4287 = vst.msk [vmem:[#allocation3 + $0x10] sm:$0xff] %vm944_vm8, %v4255_v22  ;;  %v4352_v40 = vld [vmem:[#allocation2 + $0xa4] sm:$0x1]  ;;  %v5079_v9 = vld [vmem:[#allocation2 + $0x98] sm:$0x1]  ;;  %v3624_v27 = vsel %vm7085_vm14, %v6339_v52, %v3623_v1  ;;  %v8077_v24 = vsel %vm5686_vm2, %v5685_v16, %v5683_v17  ;;  %v4663_v52 = vshll.u32 %v4354_v56, 16 }
 0x20d   : > { %v5457_v37 = vld [vmem:[#allocation3] sm:$0xff]  ;;  %v4876_v28 = vpop.f32.mrf.mxu3  ;;  %v4649_v14 = vshll.u32 %v4352_v40, 16  ;;  %v5216_v41 = vsel %vm7085_vm14, %v6502_v38, %v5215_v59  ;;  %v4667_v58 = vshrl.u32 %v4354_v56, 16  ;;  %v6340_v17 = vrot.slane %v3484_v61, 9  ;;  %v8103_v16 = vld [vmem:[#allocation2 + $0xa0] sm:$0xf] }
 0x20e   : > { %5016 = vst.msk [vmem:[#allocation3 + $0x8] sm:$0xff] %vm944_vm8, %v4984_v11  ;;  %v5489_v46 = vadd.f32 %v5457_v37, %v5377_v48  ;;  %v6596_v48 = vld [vmem:[#allocation2 + $0x90] sm:$0xff]  ;;  %v4647_v37 = vrot.slane %v4646_v5, 4  ;;  %v5080_v38 = vld [vmem:[#allocation2 + $0x9c] sm:$0xe] }
 0x20f   : > { %v4148_v18 = vpop.f32.mrf.mxu2  ;;  %v3788_v53 = vpop.f32.mrf.mxu1 }
 0x210   : > { %5521 = vst.msk [vmem:[#allocation3] sm:$0xff] %vm944_vm8, %v5489_v46  ;;  %v3894_v39 = vadd.f32 %v3862_v49, %v3788_v53  ;;  %v5218_v46 = vrot.slane %v5079_v9, 5  ;;  %v3684_v53 = vunpack.c.l.b16 %v3627_v21  ;;  %v4355_v21 = vld [vmem:[#allocation2 + $0xb0] sm:$0x1] }
 0x211   : > { %v4224_v54 = vld [vmem:[#allocation3 + $0x18] sm:$0xff] }
 0x212   : > { %v4256_v2 = vadd.f32 %v4224_v54, %v4148_v18  ;;  %3926 = vst.msk [vmem:[#allocation3 + $0x20] sm:$0xff] %vm944_vm8, %v3894_v39  ;;  %6366 = vmatmul.msk.bf16.gmra.mxu1 %vm944_vm8, %v3703_v36  ;;  %v4637_v36 = vrot.slane %v4636_v6, 4  ;;  %v3683_v18 = vunpack.c.l.b16 %v3624_v27  ;;  %v5219_v54 = vsel %vm7085_vm14, %v5217_v19, %v5218_v46 }
 0x213   : > { %v4953_v4 = vld [vmem:[#allocation3 + $0x10] sm:$0xff]  ;;  %v5382_v29 = vpop.f32.mrf.mxu0  ;;  %v5280_v6 = vunpack.c.l.b16 %v5216_v41  ;;  %v3633_v27 = vrot.slane %v3486_v62, 5  ;;  %v6503_v41 = vrot.slane %v5080_v38, 9 }
 0x214   : > { %v4985_v15 = vadd.f32 %v4953_v4, %v4876_v28  ;;  %4288 = vst.msk [vmem:[#allocation3 + $0x18] sm:$0xff] %vm944_vm8, %v4256_v2  ;;  %6458 = vmatmul.msk.bf16.gmra.mxu2 %vm944_vm8, %v6596_v48  ;;  %v4651_v28 = vrot.slane %v4649_v14, 5  ;;  %v4642_v43 = vsel %vm7094_vm15, %v4637_v36, %v8051_v57  ;;  %v3630_v57 = vrot.slane %v8079_v50, 5  ;;  %v5082_v50 = vld [vmem:[#allocation2 + $0xa4] sm:$0x1] }
 0x215   : > { %v5458_v22 = vld [vmem:[#allocation3 + $0x8] sm:$0xff]  ;;  %v4878_v26 = vpop.f32.mrf.mxu3  ;;  %v4654_v2 = vshrl.u32 %v4353_v55, 16  ;;  %v8099_v59 = vunpack.c.l.b16 %v4642_v43  ;;  %v4669_v36 = vrot.slane %v4667_v58, 4  ;;  %v5225_v61 = vrot.slane %v5082_v50, 5  ;;  %v4356_v58 = vld [vmem:[#allocation2 + $0xb4] sm:$0xf] }
 0x216   : > { %5017 = vst.msk [vmem:[#allocation3 + $0x10] sm:$0xff] %vm944_vm8, %v4985_v15  ;;  %v5490_v0 = vadd.f32 %v5458_v22, %v5379_v33  ;;  %6529 = vmatmul.msk.bf16.gmra.mxu0 %vm944_vm8, %v5301_v10  ;;  %v4652_v39 = vsel %vm7094_vm15, %v4647_v37, %v4651_v28  ;;  %v3704_v10 = vpack.c.b16 %v3684_v53, %v3683_v18  ;;  %v3864_v15 = vld [vmem:[#allocation3 + $0x30] sm:$0xff] }
 0x217   : > { %v4151_v30 = vpop.f32.mrf.mxu2  ;;  %v3790_v11 = vpop.f32.mrf.mxu1  ;;  %v5553_v23 = vld [vmem:[#allocation3] sm:$0xff]  ;;  %v8101_v22 = vunpack.c.l.b16 %v4652_v39  ;;  %v4673_v39 = vshll.u32 %v4355_v21, 16 }
 0x218   : > { %5522 = vst.msk [vmem:[#allocation3 + $0x8] sm:$0xff] %vm944_vm8, %v5490_v0  ;;  %v3895_v33 = vadd.f32 %v3863_v8, %v3790_v11  ;;  %v5589_v42 = vadd.f32 %v8065_v25, %v5553_v23  ;;  %v3632_v0 = vrot.slane %v3630_v57, 4  ;;  %v4656_v11 = vrot.slane %v4654_v2, 4 }
 0x219   : > { %v4225_v49 = vld [vmem:[#allocation3 + $0x20] sm:$0xff]  ;;  %v4659_v8 = vrot.slane %v4657_v32, 5  ;;  %v8107_v23 = vrot.slane %v4663_v52, 5  ;;  %v4797_v19 = vpack.c.b16 %v8101_v22, %v8099_v59  ;;  %v8134_v22 = vld [vmem:[#allocation2 + $0xac] sm:$0xf] }
 0x21a   : > { %v4257_v51 = vadd.f32 %v4225_v49, %v4151_v30  ;;  %3927 = vst.msk [vmem:[#allocation3 + $0x28] sm:$0xff] %vm944_vm8, %v3895_v33  ;;  %6486 = vmatmul.msk.bf16.gmra.mxu3 %vm944_vm8, %v4796_v13  ;;  %v5621_v1 = vmax.f32 %v5589_v42, 0.0  ;;  %v6597_v13 = vld [vmem:[#allocation2 + $0x9c] sm:$0xff]  ;;  %v5222_v33 = vrot.slane %v8103_v16, 5  ;;  %v3631_v49 = vsel %vm7085_vm14, %v6340_v17, %v3630_v57 }
 0x21b   : > { %v4954_v45 = vld [vmem:[#allocation3 + $0x18] sm:$0xff]  ;;  %v8091_v7 = vpop.f32.mrf.mxu0  ;;  %v3634_v53 = vsel %vm7085_vm14, %v3632_v0, %v3633_v27  ;;  %v4670_v43 = vor.u32 %v4669_v36, %v8107_v23  ;;  %v3685_v52 = vunpack.c.l.b16 %v3631_v49  ;;  %v4678_v17 = vshrl.u32 %v4356_v58, 16  ;;  %v4358_v49 = vld [vmem:[#allocation2 + $0xbc] sm:$0x1] }
 0x21c   : > { %v4986_v48 = vadd.f32 %v4954_v45, %v4878_v26  ;;  %4289 = vst.msk [vmem:[#allocation3 + $0x20] sm:$0xff] %vm944_vm8, %v4257_v51  ;;  %v5702_v40 = vmul.f32 %v8077_v24, %v5621_v1  ;;  %v5281_v26 = vunpack.c.l.b16 %v5219_v54  ;;  %v4660_v45 = vor.u32 %v4659_v8, %v4656_v11 }
 0x21d   : > { %v5459_v63 = vld [vmem:[#allocation3 + $0x10] sm:$0xff]  ;;  %v4881_v34 = vpop.f32.mrf.mxu3  ;;  %v5224_v54 = vrot.slane %v5222_v33, 4  ;;  %v4681_v16 = vshll.u32 %v4356_v58, 16 }
 0x21e   : > { %5018 = vst.msk [vmem:[#allocation3 + $0x18] sm:$0xff] %vm944_vm8, %v4986_v48  ;;  %v5491_v47 = vadd.f32 %v5459_v63, %v5382_v29  ;;  %v5734_v4 = vsel %vm944_vm8, %v5702_v40, 0.0  ;;  %v5302_v46 = vpack.c.b16 %v5281_v26, %v5280_v6  ;;  %v3865_v63 = vld [vmem:[#allocation3 + $0x38] sm:$0xff]  ;;  %v4671_v6 = vrot.slane %v4670_v43, 4 }
 0x21f   : > { %v4153_v5 = vpop.f32.mrf.mxu2  ;;  %v3793_v14 = vpop.f32.mrf.mxu1  ;;  %5735 = vadd.xlane.f32.xlu2 %v5734_v4  ;;  %v5554_v3 = vld [vmem:[#allocation3 + $0x8] sm:$0xff]  ;;  %v3686_v4 = vunpack.c.l.b16 %v3634_v53  ;;  %v5226_v59 = vsel %vm7085_vm14, %v5224_v54, %v5225_v61  ;;  %v4680_v53 = vrot.slane %v4678_v17, 4 }
 0x220   : > { %5523 = vst.msk [vmem:[#allocation3 + $0x10] sm:$0xff] %vm944_vm8, %v5491_v47  ;;  %v3896_v29 = vadd.f32 %v3864_v15, %v3793_v14  ;;  %v5590_v9 = vadd.f32 %v8065_v25, %v5554_v3  ;;  %v4357_v47 = vld [vmem:[#allocation2 + $0xb8] sm:$0xf]  ;;  %v5223_v3 = vsel %vm7085_vm14, %v6503_v41, %v5222_v33 }
 0x221   : > { %v4226_v30 = vld [vmem:[#allocation3 + $0x28] sm:$0xff]  ;;  %v3705_v11 = vpack.c.b16 %v3686_v4, %v3685_v52 }
 0x222   : > { %v4258_v37 = vadd.f32 %v4226_v30, %v4153_v5  ;;  %3928 = vst.msk [vmem:[#allocation3 + $0x30] sm:$0xff] %vm944_vm8, %v3896_v29  ;;  %6367 = vmatmul.msk.bf16.gmra.mxu1 %vm944_vm8, %v3704_v10  ;;  %v5622_v28 = vmax.f32 %v5590_v9, 0.0  ;;  %v4661_v10 = vrot.slane %v4660_v45, 4  ;;  %v4675_v5 = vrot.slane %v4673_v39, 5 }
 0x223   : > { %v4955_v42 = vld [vmem:[#allocation3 + $0x20] sm:$0xff]  ;;  %v5387_v1 = vpop.f32.mrf.mxu0  ;;  %v4687_v29 = vshll.u32 %v4357_v47, 16 }
 0x224   : > { %v4987_v51 = vadd.f32 %v4955_v42, %v4881_v34  ;;  %4290 = vst.msk [vmem:[#allocation3 + $0x28] sm:$0xff] %vm944_vm8, %v4258_v37  ;;  %6459 = vmatmul.msk.bf16.gmra.mxu2 %vm944_vm8, %v6597_v13  ;;  %v5703_v18 = vmul.f32 %v8077_v24, %v5622_v28  ;;  %v4691_v13 = vshrl.u32 %v4357_v47, 16  ;;  %v4666_v8 = vsel %vm7094_vm15, %v4661_v10, %v8107_v23  ;;  %v3487_v37 = vld [vmem:[#allocation2 + $0xa8] sm:$0xe] }
 0x225   : > { %v5460_v55 = vld [vmem:[#allocation3 + $0x18] sm:$0xff]  ;;  %v4883_v56 = vpop.f32.mrf.mxu3  ;;  %v4676_v36 = vsel %vm7094_vm15, %v4671_v6, %v4675_v5  ;;  %v3637_v28 = vrot.slane %v8134_v22, 5  ;;  %v5282_v42 = vunpack.c.l.b16 %v5223_v3  ;;  %v4778_v41 = vunpack.c.l.b16 %v4666_v8 }
 0x226   : > { %5019 = vst.msk [vmem:[#allocation3 + $0x20] sm:$0xff] %vm944_vm8, %v4987_v51  ;;  %v5492_v48 = vadd.f32 %v5460_v55, %v8091_v7  ;;  %v5737_v40 = vsel %vm944_vm8, %v5703_v18, 0.0  ;;  %6530 = vmatmul.msk.bf16.gmra.mxu0 %vm944_vm8, %v5302_v46  ;;  %v3489_v46 = vld [vmem:[#allocation2 + $0xb0] sm:$0x1]  ;;  %v3866_v18 = vld [vmem:[#allocation3 + $0x40] sm:$0xff]  ;;  %v4683_v55 = vrot.slane %v4681_v16, 5  ;;  %v4779_v54 = vunpack.c.l.b16 %v4676_v36 }
 0x227   : > { %v4156_v62 = vpop.f32.mrf.mxu2  ;;  %v3795_v57 = vpop.f32.mrf.mxu1  ;;  %5738 = vadd.xlane.f32.xlu2 %v5737_v40  ;;  %v5555_v34 = vld [vmem:[#allocation3 + $0x10] sm:$0xff]  ;;  %v4693_v45 = vrot.slane %v4691_v13, 4  ;;  %v6341_v61 = vrot.slane %v3487_v37, 9 }
 0x228   : > { %5524 = vst.msk [vmem:[#allocation3 + $0x18] sm:$0xff] %vm944_vm8, %v5492_v48  ;;  %v3897_v2 = vadd.f32 %v3865_v63, %v3795_v57  ;;  %v5591_v32 = vadd.f32 %v8065_v25, %v5555_v34  ;;  %v5084_v48 = vld [vmem:[#allocation2 + $0xac] sm:$0xf]  ;;  %v3640_v57 = vrot.slane %v3489_v46, 5  ;;  %v4684_v58 = vor.u32 %v4683_v55, %v4680_v53  ;;  %v4360_v55 = vld [vmem:[#allocation2 + $0xc4] sm:$0xf] }
 0x229   : > { %v4227_v7 = vld [vmem:[#allocation3 + $0x30] sm:$0xff]  ;;  %v5229_v4 = vrot.slane %v5084_v48, 5  ;;  %v3638_v22 = vsel %vm7085_vm14, %v6341_v61, %v3637_v28  ;;  %v3490_v61 = vld [vmem:[#allocation2 + $0xb4] sm:$0xe] }
 0x22a   : > { %v4259_v14 = vadd.f32 %v4227_v7, %v4156_v62  ;;  %3929 = vst.msk [vmem:[#allocation3 + $0x38] sm:$0xff] %vm944_vm8, %v3897_v2  ;;  %6487 = vmatmul.msk.bf16.gmra.mxu3 %vm944_vm8, %v4797_v19  ;;  %v5623_v15 = vmax.f32 %v5591_v32, 0.0  ;;  %v5283_v19 = vunpack.c.l.b16 %v5226_v59  ;;  %v3639_v62 = vrot.slane %v3637_v28, 4  ;;  %v5083_v7 = vld [vmem:[#allocation2 + $0xa8] sm:$0xe] }
 0x22b   : > { %v4956_v26 = vld [vmem:[#allocation3 + $0x28] sm:$0xff]  ;;  %v5389_v0 = vpop.f32.mrf.mxu0  ;;  %v4697_v2 = vshll.u32 %v4358_v49, 16  ;;  %v4798_v59 = vpack.c.b16 %v4779_v54, %v4778_v41  ;;  %v6504_v13 = vrot.slane %v5083_v7, 9  ;;  %v4685_v8 = vrot.slane %v4684_v58, 4 }
 0x22c   : > { %v4988_v9 = vadd.f32 %v4956_v26, %v4883_v56  ;;  %4291 = vst.msk [vmem:[#allocation3 + $0x30] sm:$0xff] %vm944_vm8, %v4259_v14  ;;  %v5704_v27 = vmul.f32 %v8077_v24, %v5623_v15  ;;  %v8146_v56 = vrot.slane %v4687_v29, 5  ;;  %v5303_v52 = vpack.c.b16 %v5283_v19, %v5282_v42  ;;  %v5085_v14 = vld [vmem:[#allocation2 + $0xb0] sm:$0x1]  ;;  %v4359_v42 = vld [vmem:[#allocation2 + $0xc0] sm:$0xf] }
 0x22d   : > { %v5461_v21 = vld [vmem:[#allocation3 + $0x20] sm:$0xff]  ;;  %v4886_v30 = vpop.f32.mrf.mxu3  ;;  %v3641_v26 = vsel %vm7085_vm14, %v3639_v62, %v3640_v57  ;;  %v4699_v29 = vrot.slane %v4697_v2, 5  ;;  %v5231_v37 = vrot.slane %v5229_v4, 4  ;;  %v5232_v28 = vrot.slane %v5085_v14, 5 }
 0x22e   : > { %5020 = vst.msk [vmem:[#allocation3 + $0x28] sm:$0xff] %vm944_vm8, %v4988_v9  ;;  %v5493_v38 = vadd.f32 %v5461_v21, %v5387_v1  ;;  %v5740_v33 = vsel %vm944_vm8, %v5704_v27, 0.0  ;;  %v6598_v1 = vld [vmem:[#allocation2 + $0xa8] sm:$0xff]  ;;  %v4694_v47 = vor.u32 %v4693_v45, %v8146_v56  ;;  %v3687_v49 = vunpack.c.l.b16 %v3638_v22  ;;  %v5087_v22 = vld [vmem:[#allocation2 + $0xb8] sm:$0xf] }
 0x22f   : > { %v4158_v50 = vpop.f32.mrf.mxu2  ;;  %v3798_v51 = vpop.f32.mrf.mxu1  ;;  %5741 = vadd.xlane.f32.xlu0 %v5740_v33  ;;  %v5556_v23 = vld [vmem:[#allocation3 + $0x18] sm:$0xff]  ;;  %v758_v9 = vld [vmem:[#allocation2 + $0xcc] sm:$0x1]  ;;  %v8165_v33 = vld [vmem:[#allocation2 + $0xb8] sm:$0xf]  ;;  %v5230_v53 = vsel %vm7085_vm14, %v6504_v13, %v5229_v4  ;;  %v4690_v44 = vsel %vm7094_vm15, %v4685_v8, %v8146_v56  ;;  %v5233_v54 = vsel %vm7085_vm14, %v5231_v37, %v5232_v28  ;;  %v4702_v62 = vshrl.u32 %v4359_v42, 16 }
 0x230   : > { %5525 = vst.msk [vmem:[#allocation3 + $0x20] sm:$0xff] %vm944_vm8, %v5493_v38  ;;  %v3898_v43 = vadd.f32 %v3866_v18, %v3798_v51  ;;  %v5592_v39 = vadd.f32 %v8065_v25, %v5556_v23  ;;  %v4695_v36 = vrot.slane %v4694_v47, 4  ;;  %v759_v19 = vsel %vm6859_vm7, 0, %v758_v9  ;;  %v3492_v56 = vld [vmem:[#allocation2 + $0xbc] sm:$0x1] }
 0x231   : > { %v4228_v40 = vld [vmem:[#allocation3 + $0x38] sm:$0xff]  ;;  %760 = vst [vmem:[#allocation2 + $0xcc] sm:$0x1] %v759_v19  ;;  %v3688_v23 = vunpack.c.l.b16 %v3641_v26  ;;  %v4711_v2 = vshll.u32 %v4360_v55, 16  ;;  %v5284_v47 = vunpack.c.l.b16 %v5230_v53  ;;  %v8189_v14 = vunpack.c.l.b16 %v4690_v44  ;;  %v4361_v13 = vld [vmem:[#allocation2 + $0xc8] sm:$0x1] }
 0x232   : > { %v4260_v63 = vadd.f32 %v4228_v40, %v4158_v50  ;;  %3930 = vst.msk [vmem:[#allocation3 + $0x40] sm:$0xff] %vm944_vm8, %v3898_v43  ;;  %6368 = vmatmul.msk.bf16.gmra.mxu1 %vm944_vm8, %v3705_v11  ;;  %v5624_v34 = vmax.f32 %v5592_v39, 0.0  ;;  %v813_v50 = vld [vmem:[#allocation2 + $0xd4] sm:$0x1]  ;;  %v4700_v43 = vsel %vm7094_vm15, %v4695_v36, %v4699_v29  ;;  %v3647_v29 = vrot.slane %v3492_v56, 5 }
 0x233   : > { %v4957_v32 = vld [vmem:[#allocation3 + $0x30] sm:$0xff]  ;;  %v5392_v6 = vpop.f32.mrf.mxu0  ;;  %v814_v39 = vsel %vm7036_vm9, 0, %v813_v50  ;;  %v3706_v58 = vpack.c.b16 %v3688_v23, %v3687_v49  ;;  %v5086_v37 = vld [vmem:[#allocation2 + $0xb4] sm:$0xe]  ;;  %v5236_v28 = vrot.slane %v5087_v22, 5  ;;  %vm5695_vm7 = vcmask 1045509  }
 0x234   : > { %v4989_v10 = vadd.f32 %v4957_v32, %v4886_v30  ;;  %4292 = vst.msk [vmem:[#allocation3 + $0x38] sm:$0xff] %vm944_vm8, %v4260_v63  ;;  %6460 = vmatmul.msk.bf16.gmra.mxu2 %vm944_vm8, %v6598_v1  ;;  %v5705_v5 = vmul.f32 %v8077_v24, %v5624_v34  ;;  %v3867_v30 = vld [vmem:[#allocation3 + $0x48] sm:$0xff]  ;;  %v3644_v1 = vrot.slane %v8165_v33, 5  ;;  %v4705_v34 = vshll.u32 %v4359_v42, 16  ;;  %v5088_v19 = vld [vmem:[#allocation2 + $0xbc] sm:$0x1] }
 0x235   : > { %v5462_v15 = vld [vmem:[#allocation3 + $0x28] sm:$0xff]  ;;  %v4888_v3 = vpop.f32.mrf.mxu3  ;;  %v4715_v32 = vshrl.u32 %v4360_v55, 16  ;;  %815 = vst [vmem:[#allocation2 + $0xd4] sm:$0x1] %v814_v39  ;;  %v6505_v44 = vrot.slane %v5086_v37, 9  ;;  %v5238_v39 = vrot.slane %v5236_v28, 4 }
 0x236   : > { %5021 = vst.msk [vmem:[#allocation3 + $0x30] sm:$0xff] %vm944_vm8, %v4989_v10  ;;  %v5494_v17 = vadd.f32 %v5462_v15, %v5389_v0  ;;  %v5743_v16 = vsel %vm944_vm8, %v5705_v5, 0.0  ;;  %6531 = vmatmul.msk.bf16.gmra.mxu0 %vm944_vm8, %v5303_v52  ;;  %v3868_v10 = vld [vmem:[#allocation3 + $0x50] sm:$0xff]  ;;  %v4781_v15 = vunpack.c.l.b16 %v4700_v43  ;;  %vm5699_vm9 = vcmask 1047559  }
 0x237   : > { %v4161_v27 = vpop.f32.mrf.mxu2  ;;  %v3800_v21 = vpop.f32.mrf.mxu1  ;;  %5744 = vadd.xlane.f32.xlu1 %v5743_v16  ;;  %v5557_v11 = vld [vmem:[#allocation3 + $0x20] sm:$0xff]  ;;  %v3646_v16 = vrot.slane %v3644_v1, 4 }
 0x238   : > { %5526 = vst.msk [vmem:[#allocation3 + $0x28] sm:$0xff] %vm944_vm8, %v5494_v17  ;;  %v3899_v38 = vadd.f32 %v3867_v30, %v3800_v21  ;;  %v5593_v0 = vadd.f32 %v8065_v25, %v5557_v11  ;;  %v6599_v17 = vld [vmem:[#allocation2 + $0xb4] sm:$0xff]  ;;  %v4707_v21 = vrot.slane %v4705_v34, 5  ;;  %v8193_v30 = vrot.slane %v4711_v2, 5 }
 0x239   : > { %v4229_v46 = vld [vmem:[#allocation3 + $0x40] sm:$0xff]  ;;  %v4717_v11 = vrot.slane %v4715_v32, 4 }
 0x23a   : > { %v4261_v51 = vadd.f32 %v4229_v46, %v4161_v27  ;;  %3931 = vst.msk [vmem:[#allocation3 + $0x48] sm:$0xff] %vm944_vm8, %v3899_v38  ;;  %6488 = vmatmul.msk.bf16.gmra.mxu3 %vm944_vm8, %v4798_v59  ;;  %v5625_v18 = vmax.f32 %v5593_v0, 0.0  ;;  %v6342_v59 = vrot.slane %v3490_v61, 9  ;;  %v4704_v27 = vrot.slane %v4702_v62, 4  ;;  %v3869_v61 = vld [vmem:[#allocation3 + $0x58] sm:$0xff] }
 0x23b   : > { %v4958_v45 = vld [vmem:[#allocation3 + $0x38] sm:$0xff]  ;;  %v8182_v48 = vpop.f32.mrf.mxu0  ;;  %v4799_v0 = vpack.c.b16 %v4781_v15, %v8189_v14  ;;  %v4718_v55 = vor.u32 %v4717_v11, %v8193_v30  ;;  %v3493_v11 = vld [vmem:[#allocation2 + $0xc0] sm:$0xe] }
 0x23c   : > { %v4990_v41 = vadd.f32 %v4958_v45, %v4888_v3  ;;  %4293 = vst.msk [vmem:[#allocation3 + $0x40] sm:$0xff] %vm944_vm8, %v4261_v51  ;;  %v5706_v40 = vmul.f32 %v8077_v24, %v5625_v18  ;;  %v5285_v3 = vunpack.c.l.b16 %v5233_v54  ;;  %v3645_v42 = vsel %vm7085_vm14, %v6342_v59, %v3644_v1  ;;  %v4363_v59 = vld [vmem:[#allocation2 + $0xd0] sm:$0xf] }
 0x23d   : > { %v5463_v57 = vld [vmem:[#allocation3 + $0x30] sm:$0xff]  ;;  %v4891_v63 = vpop.f32.mrf.mxu3  ;;  %v3648_v51 = vsel %vm7085_vm14, %v3646_v16, %v3647_v29  ;;  %v4708_v53 = vor.u32 %v4707_v21, %v4704_v27  ;;  %v4721_v45 = vshll.u32 %v4361_v13, 16  ;;  %v4719_v32 = vrot.slane %v4718_v55, 4  ;;  %v5090_v55 = vld [vmem:[#allocation2 + $0xc4] sm:$0xf] }
 0x23e   : > { %5022 = vst.msk [vmem:[#allocation3 + $0x38] sm:$0xff] %vm944_vm8, %v4990_v41  ;;  %v5495_v20 = vadd.f32 %v5463_v57, %v5392_v6  ;;  %v5746_v52 = vsel %vm944_vm8, %v5706_v40, 0.0  ;;  %v5304_v33 = vpack.c.b16 %v5285_v3, %v5284_v47  ;;  %v5239_v41 = vrot.slane %v5088_v19, 5  ;;  %v4362_v3 = vld [vmem:[#allocation2 + $0xcc] sm:$0xf] }
 0x23f   : > { %v4163_v7 = vpop.f32.mrf.mxu2  ;;  %v3803_v4 = vpop.f32.mrf.mxu1  ;;  %5747 = vadd.xlane.f32.xlu2 %v5746_v52  ;;  %v5558_v5 = vld [vmem:[#allocation3 + $0x28] sm:$0xff]  ;;  %v3690_v2 = vunpack.c.l.b16 %v3648_v51  ;;  %v5237_v47 = vsel %vm7085_vm14, %v6505_v44, %v5236_v28  ;;  %v3870_v28 = vld [vmem:[#allocation3 + $0x60] sm:$0xff]  ;;  %v4739_v19 = vshrl.u32 %v4363_v59, 16 }
 0x240   : > { %5527 = vst.msk [vmem:[#allocation3 + $0x30] sm:$0xff] %vm944_vm8, %v5495_v20  ;;  %v3900_v26 = vadd.f32 %v3868_v10, %v3803_v4  ;;  %v5594_v6 = vadd.f32 %v8065_v25, %v5558_v5  ;;  %v4723_v20 = vrot.slane %v4721_v45, 5  ;;  %v8218_v4 = vld [vmem:[#allocation2 + $0xc4] sm:$0xf] }
 0x241   : > { %v4230_v9 = vld [vmem:[#allocation3 + $0x48] sm:$0xff]  ;;  %v3651_v29 = vrot.slane %v8218_v4, 5 }
 0x242   : > { %v4262_v8 = vadd.f32 %v4230_v9, %v4163_v7  ;;  %3932 = vst.msk [vmem:[#allocation3 + $0x50] sm:$0xff] %vm944_vm8, %v3900_v26  ;;  %6369 = vmatmul.msk.bf16.gmra.mxu1 %vm944_vm8, %v3706_v58  ;;  %v5626_v36 = vmax.f32 %v5594_v6, 0.0  ;;  %v5240_v7 = vsel %vm7085_vm14, %v5238_v39, %v5239_v41  ;;  %v5286_v6 = vunpack.c.l.b16 %v5237_v47 }
 0x243   : > { %v4959_v38 = vld [vmem:[#allocation3 + $0x40] sm:$0xff]  ;;  %v5397_v49 = vpop.f32.mrf.mxu0  ;;  %v5287_v16 = vunpack.c.l.b16 %v5240_v7  ;;  %v4724_v21 = vsel %vm7094_vm15, %v4719_v32, %v4723_v20 }
 0x244   : > { %v4991_v46 = vadd.f32 %v4959_v38, %v4891_v63  ;;  %4294 = vst.msk [vmem:[#allocation3 + $0x48] sm:$0xff] %vm944_vm8, %v4262_v8  ;;  %6461 = vmatmul.msk.bf16.gmra.mxu2 %vm944_vm8, %v6599_v17  ;;  %v5707_v50 = vmul.f32 %v8077_v24, %v5626_v36  ;;  %v3689_v63 = vunpack.c.l.b16 %v3645_v42  ;;  %v3495_v8 = vld [vmem:[#allocation2 + $0xc8] sm:$0x1]  ;;  %v4735_v42 = vshll.u32 %v4363_v59, 16 }
 0x245   : > { %v5464_v18 = vld [vmem:[#allocation3 + $0x38] sm:$0xff]  ;;  %v4893_v23 = vpop.f32.mrf.mxu3 }
 0x246   : > { %5023 = vst.msk [vmem:[#allocation3 + $0x40] sm:$0xff] %vm944_vm8, %v4991_v46  ;;  %v5496_v43 = vadd.f32 %v5464_v18, %v8182_v48  ;;  %v5749_v1 = vsel %vm944_vm8, %v5707_v50, 0.0  ;;  %6532 = vmatmul.msk.bf16.gmra.mxu0 %vm944_vm8, %v5304_v33  ;;  %v4709_v48 = vrot.slane %v4708_v53, 4  ;;  %v3707_v17 = vpack.c.b16 %v3690_v2, %v3689_v63  ;;  %v4364_v63 = vld [vmem:[#allocation2 + $0xd4] sm:$0x1] }
 0x247   : > { %v4166_v40 = vpop.f32.mrf.mxu2  ;;  %v3805_v54 = vpop.f32.mrf.mxu1  ;;  %5750 = vadd.xlane.f32.xlu2 %v5749_v1  ;;  %v5559_v56 = vld [vmem:[#allocation3 + $0x30] sm:$0xff]  ;;  %v4729_v33 = vshll.u32 %v4362_v3, 16  ;;  %v4783_v18 = vunpack.c.l.b16 %v4724_v21  ;;  %v6343_v53 = vrot.slane %v3493_v11, 9  ;;  %v3654_v1 = vrot.slane %v3495_v8, 5 }
 0x248   : > { %5528 = vst.msk [vmem:[#allocation3 + $0x38] sm:$0xff] %vm944_vm8, %v5496_v43  ;;  %v3901_v62 = vadd.f32 %v3869_v61, %v3805_v54  ;;  %v5595_v57 = vadd.f32 %v8065_v25, %v5559_v56  ;;  %v4714_v27 = vsel %vm7094_vm15, %v4709_v48, %v8193_v30  ;;  %v3653_v43 = vrot.slane %v3651_v29, 4 }
 0x249   : > { %v4231_v34 = vld [vmem:[#allocation3 + $0x50] sm:$0xff]  ;;  %v4782_v51 = vunpack.c.l.b16 %v4714_v27  ;;  %v8234_v54 = vrot.slane %v4735_v42, 5  ;;  %v4741_v61 = vrot.slane %v4739_v19, 4  ;;  %v5243_v2 = vrot.slane %v5090_v55, 5 }
 0x24a   : > { %v4263_v52 = vadd.f32 %v4231_v34, %v4166_v40  ;;  %3933 = vst.msk [vmem:[#allocation3 + $0x58] sm:$0xff] %vm944_vm8, %v3901_v62  ;;  %6489 = vmatmul.msk.bf16.gmra.mxu3 %vm944_vm8, %v4799_v0  ;;  %v5627_v58 = vmax.f32 %v5595_v57, 0.0  ;;  %v4726_v0 = vshrl.u32 %v4362_v3, 16  ;;  %v4731_v40 = vrot.slane %v4729_v33, 5  ;;  %v5089_v34 = vld [vmem:[#allocation2 + $0xc0] sm:$0xe] }
 0x24b   : > { %v4960_v10 = vld [vmem:[#allocation3 + $0x48] sm:$0xff]  ;;  %v5399_v14 = vpop.f32.mrf.mxu0  ;;  %v4800_v20 = vpack.c.b16 %v4783_v18, %v4782_v51  ;;  %v3652_v7 = vsel %vm7085_vm14, %v6343_v53, %v3651_v29  ;;  %v3655_v4 = vsel %vm7085_vm14, %v3653_v43, %v3654_v1  ;;  %v3872_v53 = vld [vmem:[#allocation3 + $0x70] sm:$0xff] }
 0x24c   : > { %v4992_v5 = vadd.f32 %v4960_v10, %v4893_v23  ;;  %4295 = vst.msk [vmem:[#allocation3 + $0x50] sm:$0xff] %vm944_vm8, %v4263_v52  ;;  %v5708_v15 = vmul.f32 %v8077_v24, %v5627_v58  ;;  %v5305_v23 = vpack.c.b16 %v5287_v16, %v5286_v6  ;;  %v4728_v41 = vrot.slane %v4726_v0, 4  ;;  %v5091_v52 = vld [vmem:[#allocation2 + $0xc8] sm:$0x1] }
 0x24d   : > { %v5465_v22 = vld [vmem:[#allocation3 + $0x40] sm:$0xff]  ;;  %v4896_v26 = vpop.f32.mrf.mxu3  ;;  %v5245_v16 = vrot.slane %v5243_v2, 4  ;;  %v5246_v29 = vrot.slane %v5091_v52, 5  ;;  %v3691_v21 = vunpack.c.l.b16 %v3652_v7  ;;  %v3692_v11 = vunpack.c.l.b16 %v3655_v4  ;;  %v5094_v7 = vld [vmem:[#allocation2 + $0xd4] sm:$0x1] }
 0x24e   : > { %5024 = vst.msk [vmem:[#allocation3 + $0x48] sm:$0xff] %vm944_vm8, %v4992_v5  ;;  %v5497_v13 = vadd.f32 %v5465_v22, %v5397_v49  ;;  %v5752_v9 = vsel %vm944_vm8, %v5708_v15, 0.0  ;;  %v6600_v49 = vld [vmem:[#allocation2 + $0xc0] sm:$0xff]  ;;  %v4732_v59 = vor.u32 %v4731_v40, %v4728_v41  ;;  %v4742_v22 = vor.u32 %v4741_v61, %v8234_v54  ;;  %v6601_v41 = vld [vmem:[#allocation2 + $0xcc] sm:$0xff] }
 0x24f   : > { %v4168_v36 = vpop.f32.mrf.mxu2  ;;  %v3808_v37 = vpop.f32.mrf.mxu1  ;;  %5753 = vadd.xlane.f32.xlu2 %v5752_v9  ;;  %v5560_v38 = vld [vmem:[#allocation3 + $0x38] sm:$0xff]  ;;  %v3871_v15 = vld [vmem:[#allocation3 + $0x68] sm:$0xff]  ;;  %v5247_v19 = vsel %vm7085_vm14, %v5245_v16, %v5246_v29  ;;  %v3708_v51 = vpack.c.b16 %v3692_v11, %v3691_v21  ;;  %v5253_v16 = vrot.slane %v5094_v7, 5 }
 0x250   : > { %5529 = vst.msk [vmem:[#allocation3 + $0x40] sm:$0xff] %vm944_vm8, %v5497_v13  ;;  %v3902_v46 = vadd.f32 %v3870_v28, %v3808_v37  ;;  %v5596_v30 = vadd.f32 %v8065_v25, %v5560_v38  ;;  %v4743_v37 = vrot.slane %v4742_v22, 4  ;;  %v5289_v1 = vunpack.c.l.b16 %v5247_v19 }
 0x251   : > { %v4232_v50 = vld [vmem:[#allocation3 + $0x58] sm:$0xff] }
 0x252   : > { %v4264_v45 = vadd.f32 %v4232_v50, %v4168_v36  ;;  %3934 = vst.msk [vmem:[#allocation3 + $0x60] sm:$0xff] %vm944_vm8, %v3902_v46  ;;  %6370 = vmatmul.msk.bf16.gmra.mxu1 %vm944_vm8, %v3707_v17  ;;  %v5628_v44 = vmax.f32 %v5596_v30, 0.0  ;;  %v4733_v36 = vrot.slane %v4732_v59, 4  ;;  %v3873_v59 = vld [vmem:[#allocation3 + $0x78] sm:$0xff] }
 0x253   : > { %v4961_v39 = vld [vmem:[#allocation3 + $0x50] sm:$0xff]  ;;  %v5402_v62 = vpop.f32.mrf.mxu0 }
 0x254   : > { %v4993_v56 = vadd.f32 %v4961_v39, %v4896_v26  ;;  %4296 = vst.msk [vmem:[#allocation3 + $0x58] sm:$0xff] %vm944_vm8, %v4264_v45  ;;  %6462 = vmatmul.msk.bf16.gmra.mxu2 %vm944_vm8, %v6600_v49  ;;  %v5709_v57 = vmul.f32 %v8077_v24, %v5628_v44  ;;  %v4745_v26 = vshll.u32 %v4364_v63, 16  ;;  %v4738_v45 = vsel %vm7094_vm15, %v4733_v36, %v8234_v54 }
 0x255   : > { %v5466_v48 = vld [vmem:[#allocation3 + $0x48] sm:$0xff]  ;;  %v4898_v32 = vpop.f32.mrf.mxu3  ;;  %v4784_v54 = vunpack.c.l.b16 %v4738_v45 }
 0x256   : > { %5025 = vst.msk [vmem:[#allocation3 + $0x50] sm:$0xff] %vm944_vm8, %v4993_v56  ;;  %v5498_v58 = vadd.f32 %v5466_v48, %v5399_v14  ;;  %v5755_v47 = vsel %vm944_vm8, %v5709_v57, 0.0  ;;  %6533 = vmatmul.msk.bf16.gmra.mxu0 %vm944_vm8, %v5305_v23  ;;  %v6506_v14 = vrot.slane %v5089_v34, 9  ;;  %v4747_v28 = vrot.slane %v4745_v26, 5  ;;  %v5093_v56 = vld [vmem:[#allocation2 + $0xd0] sm:$0xf] }
 0x257   : > { %v4171_v10 = vpop.f32.mrf.mxu2  ;;  %v3810_v5 = vpop.f32.mrf.mxu1  ;;  %5756 = vadd.xlane.f32.xlu2 %v5755_v47  ;;  %v5561_v3 = vld [vmem:[#allocation3 + $0x40] sm:$0xff]  ;;  %v5250_v52 = vrot.slane %v5093_v56, 5 }
 0x258   : > { %5530 = vst.msk [vmem:[#allocation3 + $0x48] sm:$0xff] %vm944_vm8, %v5498_v58  ;;  %v3903_v17 = vadd.f32 %v3871_v15, %v3810_v5  ;;  %v5597_v6 = vadd.f32 %v8065_v25, %v5561_v3  ;;  %v5244_v42 = vsel %vm7085_vm14, %v6506_v14, %v5243_v2  ;;  %v4748_v44 = vsel %vm7094_vm15, %v4743_v37, %v4747_v28 }
 0x259   : > { %v4233_v13 = vld [vmem:[#allocation3 + $0x60] sm:$0xff]  ;;  %v5288_v43 = vunpack.c.l.b16 %v5244_v42  ;;  %v4785_v63 = vunpack.c.l.b16 %v4748_v44 }
 0x25a   : > { %v4265_v9 = vadd.f32 %v4233_v13, %v4171_v10  ;;  %3935 = vst.msk [vmem:[#allocation3 + $0x68] sm:$0xff] %vm944_vm8, %v3903_v17  ;;  %6490 = vmatmul.msk.bf16.gmra.mxu3 %vm944_vm8, %v4800_v20  ;;  %v5629_v27 = vmax.f32 %v5597_v6, 0.0  ;;  %v5092_v20 = vld [vmem:[#allocation2 + $0xcc] sm:$0xe]  ;;  %v5252_v6 = vrot.slane %v5250_v52, 4 }
 0x25b   : > { %v4962_v8 = vld [vmem:[#allocation3 + $0x58] sm:$0xff]  ;;  %v5404_v0 = vpop.f32.mrf.mxu0  ;;  %v5306_v34 = vpack.c.b16 %v5289_v1, %v5288_v43  ;;  %v4801_v5 = vpack.c.b16 %v4785_v63, %v4784_v54  ;;  %v6507_v26 = vrot.slane %v5092_v20, 9  ;;  %v8298_v63 = vld [vmem:[%s8576_s2] ss:$0 sm:$0xff] }
 0x25c   : > { %v4994_v38 = vadd.f32 %v4962_v8, %v4898_v32  ;;  %4297 = vst.msk [vmem:[#allocation3 + $0x60] sm:$0xff] %vm944_vm8, %v4265_v9  ;;  %v5710_v33 = vmul.f32 %v8077_v24, %v5629_v27  ;;  %v5254_v37 = vsel %vm7085_vm14, %v5252_v6, %v5253_v16 }
 0x25d   : > { %v5467_v46 = vld [vmem:[#allocation3 + $0x50] sm:$0xff]  ;;  %v4901_v49 = vpop.f32.mrf.mxu3  ;;  %v5251_v36 = vsel %vm7085_vm14, %v6507_v26, %v5250_v52 }
 0x25e   : > { %5026 = vst.msk [vmem:[#allocation3 + $0x58] sm:$0xff] %vm944_vm8, %v4994_v38  ;;  %v5499_v30 = vadd.f32 %v5467_v46, %v5402_v62  ;;  %v5758_v50 = vsel %vm944_vm8, %v5710_v33, 0.0  ;;  %v3874_v46 = vld [vmem:[#allocation3 + $0x80] sm:$0xff] }
 0x25f   : > { %v4173_v18 = vpop.f32.mrf.mxu2  ;;  %v3813_v23 = vpop.f32.mrf.mxu1  ;;  %5759 = vadd.xlane.f32.xlu2 %v5758_v50  ;;  %v5562_v55 = vld [vmem:[#allocation3 + $0x48] sm:$0xff]  ;;  %v5291_v50 = vunpack.c.l.b16 %v5254_v37 }
 0x260   : > { %5531 = vst.msk [vmem:[#allocation3 + $0x50] sm:$0xff] %vm944_vm8, %v5499_v30  ;;  %v3904_v39 = vadd.f32 %v3872_v53, %v3813_v23  ;;  %v5598_v40 = vadd.f32 %v8065_v25, %v5562_v55  ;;  %v5290_v30 = vunpack.c.l.b16 %v5251_v36 }
 0x261   : > { %v4234_v61 = vld [vmem:[#allocation3 + $0x68] sm:$0xff] }
 0x262   : > { %v4266_v62 = vadd.f32 %v4234_v61, %v4173_v18  ;;  %3936 = vst.msk [vmem:[#allocation3 + $0x70] sm:$0xff] %vm944_vm8, %v3904_v39  ;;  %6371 = vmatmul.msk.bf16.gmra.mxu1 %vm944_vm8, %v3708_v51  ;;  %v5630_v57 = vmax.f32 %v5598_v40, 0.0  ;;  %v5307_v45 = vpack.c.b16 %v5291_v50, %v5290_v30 }
 0x263   : > { %v4963_v35 = vld [vmem:[#allocation3 + $0x60] sm:$0xff]  ;;  %v5407_v48 = vpop.f32.mrf.mxu0 }
 0x264   : > { %v4995_v2 = vadd.f32 %v4963_v35, %v4901_v49  ;;  %4298 = vst.msk [vmem:[#allocation3 + $0x68] sm:$0xff] %vm944_vm8, %v4266_v62  ;;  %6463 = vmatmul.msk.bf16.gmra.mxu2 %vm944_vm8, %v6601_v41  ;;  %v5711_v32 = vmul.f32 %v8077_v24, %v5630_v57  ;;  %v3875_v62 = vld [vmem:[#allocation3 + $0x88] sm:$0xff] }
 0x265   : > { %v5468_v58 = vld [vmem:[#allocation3 + $0x58] sm:$0xff]  ;;  %v4903_v47 = vpop.f32.mrf.mxu3 }
 0x266   : > { %5027 = vst.msk [vmem:[#allocation3 + $0x60] sm:$0xff] %vm944_vm8, %v4995_v2  ;;  %v5500_v4 = vadd.f32 %v5468_v58, %v5404_v0  ;;  %v5761_v10 = vsel %vm944_vm8, %v5711_v32, 0.0  ;;  %6534 = vmatmul.msk.bf16.gmra.mxu0 %vm944_vm8, %v5306_v34 }
 0x267   : > { %v4176_v15 = vpop.f32.mrf.mxu2  ;;  %v3815_v3 = vpop.f32.mrf.mxu1  ;;  %5762 = vadd.xlane.f32.xlu2 %v5761_v10  ;;  %v5563_v22 = vld [vmem:[#allocation3 + $0x50] sm:$0xff] }
 0x268   : > { %5532 = vst.msk [vmem:[#allocation3 + $0x58] sm:$0xff] %vm944_vm8, %v5500_v4  ;;  %v3905_v14 = vadd.f32 %v3873_v59, %v3815_v3  ;;  %v5599_v17 = vadd.f32 %v8065_v25, %v5563_v22  ;;  %v3876_v3 = vld [vmem:[#allocation3 + $0x90] sm:$0xff] }
 0x269   : > { %v4235_v29 = vld [vmem:[#allocation3 + $0x70] sm:$0xff] }
 0x26a   : > { %v4267_v13 = vadd.f32 %v4235_v29, %v4176_v15  ;;  %3937 = vst.msk [vmem:[#allocation3 + $0x78] sm:$0xff] %vm944_vm8, %v3905_v14  ;;  %6491 = vmatmul.msk.bf16.gmra.mxu3 %vm944_vm8, %v4801_v5  ;;  %v5631_v9 = vmax.f32 %v5599_v17, 0.0 }
 0x26b   : > { %v4964_v27 = vld [vmem:[#allocation3 + $0x68] sm:$0xff]  ;;  %v5409_v11 = vpop.f32.mrf.mxu0 }
 0x26c   : > { %v4996_v21 = vadd.f32 %v4964_v27, %v4903_v47  ;;  %4299 = vst.msk [vmem:[#allocation3 + $0x70] sm:$0xff] %vm944_vm8, %v4267_v13  ;;  %v5712_v8 = vmul.f32 %v8077_v24, %v5631_v9 }
 0x26d   : > { %v5469_v28 = vld [vmem:[#allocation3 + $0x60] sm:$0xff]  ;;  %v4906_v38 = vpop.f32.mrf.mxu3 }
 0x26e   : > { %5028 = vst.msk [vmem:[#allocation3 + $0x68] sm:$0xff] %vm944_vm8, %v4996_v21  ;;  %v5501_v0 = vadd.f32 %v5469_v28, %v5407_v48  ;;  %v5764_v33 = vsel %vm944_vm8, %v5712_v8, 0.0  ;;  %v3877_v28 = vld [vmem:[#allocation3 + $0x98] sm:$0xff] }
 0x26f   : > { %v4178_v42 = vpop.f32.mrf.mxu2  ;;  %v3818_v19 = vpop.f32.mrf.mxu1  ;;  %5765 = vadd.xlane.f32.xlu0 %v5764_v33  ;;  %v5564_v49 = vld [vmem:[#allocation3 + $0x58] sm:$0xff] }
 0x270   : > { %5533 = vst.msk [vmem:[#allocation3 + $0x60] sm:$0xff] %vm944_vm8, %v5501_v0  ;;  %v3906_v51 = vadd.f32 %v3874_v46, %v3818_v19  ;;  %v5600_v31 = vadd.f32 %v8065_v25, %v5564_v49 }
 0x271   : > { %v4236_v18 = vld [vmem:[#allocation3 + $0x78] sm:$0xff] }
 0x272   : > { %v4268_v23 = vadd.f32 %v4236_v18, %v4178_v42  ;;  %3938 = vst.msk [vmem:[#allocation3 + $0x80] sm:$0xff] %vm944_vm8, %v3906_v51  ;;  %v5632_v53 = vmax.f32 %v5600_v31, 0.0 }
 0x273   : > { %v4965_v55 = vld [vmem:[#allocation3 + $0x70] sm:$0xff]  ;;  %v5412_v43 = vpop.f32.mrf.mxu0 }
 0x274   : > { %v4997_v44 = vadd.f32 %v4965_v55, %v4906_v38  ;;  %4300 = vst.msk [vmem:[#allocation3 + $0x78] sm:$0xff] %vm944_vm8, %v4268_v23  ;;  %v5713_v1 = vmul.f32 %v8077_v24, %v5632_v53 }
 0x275   : > { %v5470_v39 = vld [vmem:[#allocation3 + $0x68] sm:$0xff]  ;;  %v4908_v41 = vpop.f32.mrf.mxu3 }
 0x276   : > { %5029 = vst.msk [vmem:[#allocation3 + $0x70] sm:$0xff] %vm944_vm8, %v4997_v44  ;;  %v5502_v40 = vadd.f32 %v5470_v39, %v5409_v11  ;;  %v5767_v25 = vsel %vm944_vm8, %v5713_v1, 0.0  ;;  %6535 = vmatmul.msk.bf16.gmra.mxu0 %vm944_vm8, %v5307_v45  ;;  %v3878_v44 = vld [vmem:[#allocation3 + $0xa0] sm:$0xff] }
 0x277   : > { %v4181_v61 = vpop.f32.mrf.mxu2  ;;  %v3820_v56 = vpop.f32.mrf.mxu1  ;;  %5768 = vadd.xlane.f32.xlu1 %v5767_v25  ;;  %v5565_v57 = vld [vmem:[#allocation3 + $0x60] sm:$0xff] }
 0x278   : > { %5534 = vst.msk [vmem:[#allocation3 + $0x68] sm:$0xff] %vm944_vm8, %v5502_v40  ;;  %v3907_v54 = vadd.f32 %v3875_v62, %v3820_v56  ;;  %v5601_v35 = vadd.f32 %v8298_v63, %v5565_v57 }
 0x279   : > { %v4237_v34 = vld [vmem:[#allocation3 + $0x80] sm:$0xff] }
 0x27a   : > { %v4269_v2 = vadd.f32 %v4237_v34, %v4181_v61  ;;  %3939 = vst.msk [vmem:[#allocation3 + $0x88] sm:$0xff] %vm944_vm8, %v3907_v54  ;;  %v5633_v48 = vmax.f32 %v5601_v35, 0.0  ;;  %v8324_v54 = vstv %s5830_s9 }
 0x27b   : > { %v4966_v32 = vld [vmem:[#allocation3 + $0x78] sm:$0xff]  ;;  %v5414_v52 = vpop.f32.mrf.mxu0 }
 0x27c   : > { %v4998_v20 = vadd.f32 %v4966_v32, %v4908_v41  ;;  %4301 = vst.msk [vmem:[#allocation3 + $0x80] sm:$0xff] %vm944_vm8, %v4269_v2  ;;  %v5714_v58 = vmul.f32 %v8077_v24, %v5633_v48  ;;  %v3879_v2 = vld [vmem:[#allocation3 + $0xa8] sm:$0xff] }
 0x27d   : > { %v5471_v47 = vld [vmem:[#allocation3 + $0x70] sm:$0xff]  ;;  %v4911_v7 = vpop.f32.mrf.mxu3 }
 0x27e   : > { %5030 = vst.msk [vmem:[#allocation3 + $0x78] sm:$0xff] %vm944_vm8, %v4998_v20  ;;  %v5503_v4 = vadd.f32 %v5471_v47, %v5412_v43  ;;  %v5770_v10 = vsel %vm944_vm8, %v5714_v58, 0.0 }
 0x27f   : > { %v4183_v5 = vpop.f32.mrf.mxu2  ;;  %v3823_v15 = vpop.f32.mrf.mxu1  ;;  %5771 = vadd.xlane.f32.xlu2 %v5770_v10  ;;  %v5566_v59 = vld [vmem:[#allocation3 + $0x68] sm:$0xff] }
 0x280   : > { %5535 = vst.msk [vmem:[#allocation3 + $0x70] sm:$0xff] %vm944_vm8, %v5503_v4  ;;  %v3908_v22 = vadd.f32 %v3876_v3, %v3823_v15  ;;  %v5602_v26 = vadd.f32 %v8298_v63, %v5566_v59 }
 0x281   : > { %v4238_v14 = vld [vmem:[#allocation3 + $0x88] sm:$0xff] }
 0x282   : > { %v4270_v17 = vadd.f32 %v4238_v14, %v4183_v5  ;;  %3940 = vst.msk [vmem:[#allocation3 + $0x90] sm:$0xff] %vm944_vm8, %v3908_v22  ;;  %v5634_v6 = vmax.f32 %v5602_v26, 0.0 }
 0x283   : > { %v4967_v16 = vld [vmem:[#allocation3 + $0x80] sm:$0xff]  ;;  %v5417_v13 = vpop.f32.mrf.mxu0 }
 0x284   : > { %v4999_v29 = vadd.f32 %v4967_v16, %v4911_v7  ;;  %4302 = vst.msk [vmem:[#allocation3 + $0x88] sm:$0xff] %vm944_vm8, %v4270_v17  ;;  %v5715_v9 = vmul.f32 %v8077_v24, %v5634_v6 }
 0x285   : > { %v5472_v27 = vld [vmem:[#allocation3 + $0x78] sm:$0xff]  ;;  %v4913_v21 = vpop.f32.mrf.mxu3 }
 0x286   : > { %5031 = vst.msk [vmem:[#allocation3 + $0x80] sm:$0xff] %vm944_vm8, %v4999_v29  ;;  %v5504_v11 = vadd.f32 %v5472_v27, %v5414_v52  ;;  %v5773_v8 = vsel %vm944_vm8, %v5715_v9, 0.0  ;;  %v3880_v27 = vld [vmem:[#allocation3 + $0xb0] sm:$0xff] }
 0x287   : > { %v4186_v36 = vpop.f32.mrf.mxu2  ;;  %v3825_v37 = vpop.f32.mrf.mxu1  ;;  %5774 = vadd.xlane.f32.xlu0 %v5773_v8  ;;  %v5567_v38 = vld [vmem:[#allocation3 + $0x70] sm:$0xff] }
 0x288   : > { %5536 = vst.msk [vmem:[#allocation3 + $0x78] sm:$0xff] %vm944_vm8, %v5504_v11  ;;  %v3909_v0 = vadd.f32 %v3877_v28, %v3825_v37  ;;  %v5603_v33 = vadd.f32 %v8298_v63, %v5567_v38 }
 0x289   : > { %v4239_v42 = vld [vmem:[#allocation3 + $0x90] sm:$0xff] }
 0x28a   : > { %v4271_v19 = vadd.f32 %v4239_v42, %v4186_v36  ;;  %3941 = vst.msk [vmem:[#allocation3 + $0x98] sm:$0xff] %vm944_vm8, %v3909_v0  ;;  %v5635_v46 = vmax.f32 %v5603_v33, 0.0 }
 0x28b   : > { %v4968_v49 = vld [vmem:[#allocation3 + $0x88] sm:$0xff]  ;;  %v5419_v50 = vpop.f32.mrf.mxu0 }
 0x28c   : > { %v5000_v30 = vadd.f32 %v4968_v49, %v4913_v21  ;;  %4303 = vst.msk [vmem:[#allocation3 + $0x90] sm:$0xff] %vm944_vm8, %v4271_v19  ;;  %v5716_v51 = vmul.f32 %v8077_v24, %v5635_v46 }
 0x28d   : > { %v5473_v31 = vld [vmem:[#allocation3 + $0x80] sm:$0xff]  ;;  %v4916_v18 = vpop.f32.mrf.mxu3 }
 0x28e   : > { %5032 = vst.msk [vmem:[#allocation3 + $0x88] sm:$0xff] %vm944_vm8, %v5000_v30  ;;  %v5505_v23 = vadd.f32 %v5473_v31, %v5417_v13  ;;  %v5776_v53 = vsel %vm944_vm8, %v5716_v51, 0.0  ;;  %v3881_v31 = vld [vmem:[#allocation3 + $0xb8] sm:$0xff] }
 0x28f   : > { %v4188_v55 = vpop.f32.mrf.mxu2  ;;  %v3828_v45 = vpop.f32.mrf.mxu1  ;;  %5777 = vadd.xlane.f32.xlu1 %v5776_v53 }
 0x290   : > { %5537 = vst.msk [vmem:[#allocation3 + $0x80] sm:$0xff] %vm944_vm8, %v5505_v23  ;;  %v3910_v43 = vadd.f32 %v3878_v44, %v3828_v45 }
 0x291   : > { %v4240_v1 = vld [vmem:[#allocation3 + $0x98] sm:$0xff] }
 0x292   : > { %v4272_v39 = vadd.f32 %v4240_v1, %v4188_v55  ;;  %3942 = vst.msk [vmem:[#allocation3 + $0xa0] sm:$0xff] %vm944_vm8, %v3910_v43  ;;  %v5736_v41 = vpop.xlane.xlu2 %5735 }
 0x293   : > { %v4969_v40 = vld [vmem:[#allocation3 + $0x90] sm:$0xff]  ;;  %v5422_v61 = vpop.f32.mrf.mxu0  ;;  %v5832_v52 = vadd.f32 %v8324_v54, %v5736_v41 }
 0x294   : > { %v5001_v25 = vadd.f32 %v4969_v40, %v4916_v18  ;;  %4304 = vst.msk [vmem:[#allocation3 + $0x98] sm:$0xff] %vm944_vm8, %v4272_v39 }
 0x295   : > { %v5474_v56 = vld [vmem:[#allocation3 + $0x88] sm:$0xff]  ;;  %v4918_v62 = vpop.f32.mrf.mxu3  ;;  %v5896_v22 = vperm.slane %v5832_v52, %v8020_v60 }
 0x296   : > { %5033 = vst.msk [vmem:[#allocation3 + $0x90] sm:$0xff] %vm944_vm8, %v5001_v25  ;;  %v5506_v57 = vadd.f32 %v5474_v56, %v5419_v50 }
 0x297   : > { %v4191_v35 = vpop.f32.mrf.mxu2  ;;  %v3830_v34 = vpop.f32.mrf.mxu1  ;;  %v5569_v48 = vld [vmem:[#allocation3 + $0x80] sm:$0xff] }
 0x298   : > { %5538 = vst.msk [vmem:[#allocation3 + $0x88] sm:$0xff] %vm944_vm8, %v5506_v57  ;;  %v3911_v32 = vadd.f32 %v3879_v2, %v3830_v34  ;;  %v5605_v20 = vadd.f32 %v8298_v63, %v5569_v48 }
 0x299   : > { %v4241_v58 = vld [vmem:[#allocation3 + $0xa0] sm:$0xff] }
 0x29a   : > { %v4273_v47 = vadd.f32 %v4241_v58, %v4191_v35  ;;  %3943 = vst.msk [vmem:[#allocation3 + $0xa8] sm:$0xff] %vm944_vm8, %v3911_v32  ;;  %v5739_v7 = vpop.xlane.xlu2 %5738  ;;  %v5637_v4 = vmax.f32 %v5605_v20, 0.0  ;;  %v3882_v35 = vld [vmem:[#allocation3 + $0xc0] sm:$0xff] }
 0x29b   : > { %v4970_v10 = vld [vmem:[#allocation3 + $0x98] sm:$0xff]  ;;  %v5833_v5 = vadd.f32 %v8324_v54, %v5739_v7  ;;  %v5424_v3 = vpop.f32.mrf.mxu0 }
 0x29c   : > { %v5002_v15 = vadd.f32 %v4970_v10, %v4918_v62  ;;  %4305 = vst.msk [vmem:[#allocation3 + $0xa0] sm:$0xff] %vm944_vm8, %v4273_v47  ;;  %v5718_v59 = vmul.f32 %v8077_v24, %v5637_v4 }
 0x29d   : > { %v5475_v26 = vld [vmem:[#allocation3 + $0x90] sm:$0xff]  ;;  %v5897_v14 = vperm.slane %v5833_v5, %v8029_v12  ;;  %v4921_v17 = vpop.f32.mrf.mxu3 }
 0x29e   : > { %5034 = vst.msk [vmem:[#allocation3 + $0x98] sm:$0xff] %vm944_vm8, %v5002_v15  ;;  %v5507_v6 = vadd.f32 %v5475_v26, %v5422_v61  ;;  %v5782_v16 = vsel %vm944_vm8, %v5718_v59, 0.0 }
 0x29f   : > { %v8338_v29 = vsel %vm5678_vm0, %v5897_v14, %v5896_v22  ;;  %v4193_v13 = vpop.f32.mrf.mxu2  ;;  %v3833_v9 = vpop.f32.mrf.mxu1  ;;  %5783 = vadd.xlane.f32.xlu2 %v5782_v16  ;;  %v5570_v21 = vld [vmem:[#allocation3 + $0x88] sm:$0xff] }
 0x2a0   : > { %5539 = vst.msk [vmem:[#allocation3 + $0x90] sm:$0xff] %vm944_vm8, %v5507_v6  ;;  %v3912_v11 = vadd.f32 %v3880_v27, %v3833_v9  ;;  %v5606_v8 = vadd.f32 %v8298_v63, %v5570_v21 }
 0x2a1   : > { %v4242_v36 = vld [vmem:[#allocation3 + $0xa8] sm:$0xff] }
 0x2a2   : > { %v4274_v37 = vadd.f32 %v4242_v36, %v4193_v13  ;;  %3944 = vst.msk [vmem:[#allocation3 + $0xb0] sm:$0xff] %vm944_vm8, %v3912_v11  ;;  %v5638_v28 = vmax.f32 %v5606_v8, 0.0  ;;  %v5742_v7 = vpop.xlane.xlu0 %5741  ;;  %v3883_v13 = vld [vmem:[#allocation3 + $0xc8] sm:$0xff] }
 0x2a3   : > { %v4971_v38 = vld [vmem:[#allocation3 + $0xa0] sm:$0xff]  ;;  %v5427_v33 = vpop.f32.mrf.mxu0  ;;  %v5834_v26 = vadd.f32 %v8324_v54, %v5742_v7 }
 0x2a4   : > { %v5003_v0 = vadd.f32 %v4971_v38, %v4921_v17  ;;  %4306 = vst.msk [vmem:[#allocation3 + $0xa8] sm:$0xff] %vm944_vm8, %v4274_v37  ;;  %v5719_v42 = vmul.f32 %v8077_v24, %v5638_v28 }
 0x2a5   : > { %v5476_v19 = vld [vmem:[#allocation3 + $0x98] sm:$0xff]  ;;  %v4923_v46 = vpop.f32.mrf.mxu3  ;;  %v5899_v37 = vperm.slane %v5834_v26, %v8020_v60 }
 0x2a6   : > { %5035 = vst.msk [vmem:[#allocation3 + $0xa0] sm:$0xff] %vm944_vm8, %v5003_v0  ;;  %v5508_v49 = vadd.f32 %v5476_v19, %v5424_v3  ;;  %v5785_v30 = vsel %vm944_vm8, %v5719_v42, 0.0 }
 0x2a7   : > { %v4196_v50 = vpop.f32.mrf.mxu2  ;;  %v3835_v51 = vpop.f32.mrf.mxu1  ;;  %5786 = vadd.xlane.f32.xlu0 %v5785_v30  ;;  %v5571_v18 = vld [vmem:[#allocation3 + $0x90] sm:$0xff] }
 0x2a8   : > { %5540 = vst.msk [vmem:[#allocation3 + $0x98] sm:$0xff] %vm944_vm8, %v5508_v49  ;;  %v3913_v23 = vadd.f32 %v3881_v31, %v3835_v51  ;;  %v5607_v53 = vadd.f32 %v8298_v63, %v5571_v18 }
 0x2a9   : > { %v4243_v55 = vld [vmem:[#allocation3 + $0xb0] sm:$0xff] }
 0x2aa   : > { %v4275_v45 = vadd.f32 %v4243_v55, %v4196_v50  ;;  %3945 = vst.msk [vmem:[#allocation3 + $0xb8] sm:$0xff] %vm944_vm8, %v3913_v23  ;;  %v5639_v44 = vmax.f32 %v5607_v53, 0.0  ;;  %v5745_v32 = vpop.xlane.xlu1 %5744 }
 0x2ab   : > { %v4972_v43 = vld [vmem:[#allocation3 + $0xa8] sm:$0xff]  ;;  %v5429_v39 = vpop.f32.mrf.mxu0  ;;  %v5835_v10 = vadd.f32 %v8324_v54, %v5745_v32 }
 0x2ac   : > { %v5004_v1 = vadd.f32 %v4972_v43, %v4923_v46  ;;  %4307 = vst.msk [vmem:[#allocation3 + $0xb0] sm:$0xff] %vm944_vm8, %v4275_v45  ;;  %v5720_v41 = vmul.f32 %v8077_v24, %v5639_v44 }
 0x2ad   : > { %v5477_v40 = vld [vmem:[#allocation3 + $0xa0] sm:$0xff]  ;;  %v4926_v25 = vpop.f32.mrf.mxu3  ;;  %v5900_v27 = vperm.slane %v5835_v10, %v8029_v12 }
 0x2ae   : > { %5036 = vst.msk [vmem:[#allocation3 + $0xa8] sm:$0xff] %vm944_vm8, %v5004_v1  ;;  %v5509_v61 = vadd.f32 %v5477_v40, %v5427_v33  ;;  %v5788_v56 = vsel %vm944_vm8, %v5720_v41, 0.0  ;;  %v3884_v1 = vld [vmem:[#allocation3 + $0xd0] sm:$0xff] }
 0x2af   : > { %v4198_v62 = vpop.f32.mrf.mxu2  ;;  %v3838_v57 = vpop.f32.mrf.mxu1  ;;  %5789 = vadd.xlane.f32.xlu1 %v5788_v56  ;;  %v5572_v34 = vld [vmem:[#allocation3 + $0x98] sm:$0xff]  ;;  %v5901_v19 = vsel %vm5678_vm0, %v5900_v27, %v5899_v37 }
 0x2b0   : > { %5541 = vst.msk [vmem:[#allocation3 + $0xa0] sm:$0xff] %vm944_vm8, %v5509_v61  ;;  %v3914_v2 = vadd.f32 %v3882_v35, %v3838_v57  ;;  %v5608_v48 = vadd.f32 %v8298_v63, %v5572_v34  ;;  %v5944_v55 = vsel %vm5688_vm3, %v5901_v19, %v8338_v29 }
 0x2b1   : > { %v4244_v20 = vld [vmem:[#allocation3 + $0xb8] sm:$0xff] }
 0x2b2   : > { %v4276_v52 = vadd.f32 %v4244_v20, %v4198_v62  ;;  %3946 = vst.msk [vmem:[#allocation3 + $0xc0] sm:$0xff] %vm944_vm8, %v3914_v2  ;;  %v5748_v58 = vpop.xlane.xlu2 %5747  ;;  %v5640_v47 = vmax.f32 %v5608_v48, 0.0 }
 0x2b3   : > { %v4973_v4 = vld [vmem:[#allocation3 + $0xb0] sm:$0xff]  ;;  %v5432_v15 = vpop.f32.mrf.mxu0  ;;  %v5836_v8 = vadd.f32 %v8324_v54, %v5748_v58 }
 0x2b4   : > { %v5005_v5 = vadd.f32 %v4973_v4, %v4926_v25  ;;  %4308 = vst.msk [vmem:[#allocation3 + $0xb8] sm:$0xff] %vm944_vm8, %v4276_v52  ;;  %v5721_v3 = vmul.f32 %v8077_v24, %v5640_v47  ;;  %v3885_v47 = vld [vmem:[#allocation3 + $0xd8] sm:$0xff] }
 0x2b5   : > { %v5478_v59 = vld [vmem:[#allocation3 + $0xa8] sm:$0xff]  ;;  %v4928_v22 = vpop.f32.mrf.mxu3  ;;  %v5902_v50 = vperm.slane %v5836_v8, %v8020_v60 }
 0x2b6   : > { %5037 = vst.msk [vmem:[#allocation3 + $0xb0] sm:$0xff] %vm944_vm8, %v5005_v5  ;;  %v5510_v14 = vadd.f32 %v5478_v59, %v5429_v39  ;;  %v5791_v17 = vsel %vm944_vm8, %v5721_v3, 0.0 }
 0x2b7   : > { %v4201_v6 = vpop.f32.mrf.mxu2  ;;  %v3840_v16 = vpop.f32.mrf.mxu1  ;;  %5792 = vadd.xlane.f32.xlu2 %v5791_v17  ;;  %v5573_v9 = vld [vmem:[#allocation3 + $0xa0] sm:$0xff] }
 0x2b8   : > { %5542 = vst.msk [vmem:[#allocation3 + $0xa8] sm:$0xff] %vm944_vm8, %v5510_v14  ;;  %v3915_v21 = vadd.f32 %v3883_v13, %v3840_v16  ;;  %v5609_v11 = vadd.f32 %v8298_v63, %v5573_v9 }
 0x2b9   : > { %v4245_v36 = vld [vmem:[#allocation3 + $0xc0] sm:$0xff] }
 0x2ba   : > { %v4277_v28 = vadd.f32 %v4245_v36, %v4201_v6  ;;  %3947 = vst.msk [vmem:[#allocation3 + $0xc8] sm:$0xff] %vm944_vm8, %v3915_v21  ;;  %v5751_v38 = vpop.xlane.xlu2 %5750  ;;  %v5641_v0 = vmax.f32 %v5609_v11, 0.0  ;;  %v3886_v21 = vld [vmem:[#allocation3 + $0xe0] sm:$0xff] }
 0x2bb   : > { %v4974_v33 = vld [vmem:[#allocation3 + $0xb8] sm:$0xff]  ;;  %v5837_v42 = vadd.f32 %v8324_v54, %v5751_v38  ;;  %v5434_v49 = vpop.f32.mrf.mxu0 }
 0x2bc   : > { %v5006_v46 = vadd.f32 %v4974_v33, %v4928_v22  ;;  %4309 = vst.msk [vmem:[#allocation3 + $0xc0] sm:$0xff] %vm944_vm8, %v4277_v28  ;;  %v5722_v30 = vmul.f32 %v8077_v24, %v5641_v0 }
 0x2bd   : > { %v5479_v51 = vld [vmem:[#allocation3 + $0xb0] sm:$0xff]  ;;  %v5903_v31 = vperm.slane %v5837_v42, %v8029_v12  ;;  %v4931_v18 = vpop.f32.mrf.mxu3 }
 0x2be   : > { %5038 = vst.msk [vmem:[#allocation3 + $0xb8] sm:$0xff] %vm944_vm8, %v5006_v46  ;;  %v5511_v23 = vadd.f32 %v5479_v51, %v5432_v15  ;;  %v5794_v53 = vsel %vm944_vm8, %v5722_v30, 0.0 }
 0x2bf   : > { %v5904_v45 = vsel %vm5678_vm0, %v5903_v31, %v5902_v50  ;;  %v4203_v44 = vpop.f32.mrf.mxu2  ;;  %v3843_v43 = vpop.f32.mrf.mxu1  ;;  %5795 = vadd.xlane.f32.xlu0 %v5794_v53  ;;  %v5574_v39 = vld [vmem:[#allocation3 + $0xa8] sm:$0xff] }
 0x2c0   : > { %5543 = vst.msk [vmem:[#allocation3 + $0xb0] sm:$0xff] %vm944_vm8, %v5511_v23  ;;  %v8382_v41 = vsel %vm5689_vm4, %v5904_v45, %v5944_v55  ;;  %v3916_v40 = vadd.f32 %v3884_v1, %v3843_v43  ;;  %v5610_v25 = vadd.f32 %v8298_v63, %v5574_v39 }
 0x2c1   : > { %v4246_v61 = vld [vmem:[#allocation3 + $0xc8] sm:$0xff] }
 0x2c2   : > { %v4278_v56 = vadd.f32 %v4246_v61, %v4203_v44  ;;  %3948 = vst.msk [vmem:[#allocation3 + $0xd0] sm:$0xff] %vm944_vm8, %v3916_v40  ;;  %v5642_v29 = vmax.f32 %v5610_v25, 0.0 }
 0x2c3   : > { %v4975_v62 = vld [vmem:[#allocation3 + $0xc0] sm:$0xff]  ;;  %v5437_v35 = vpop.f32.mrf.mxu0 }
 0x2c4   : > { %v5007_v57 = vadd.f32 %v4975_v62, %v4931_v18  ;;  %4310 = vst.msk [vmem:[#allocation3 + $0xc8] sm:$0xff] %vm944_vm8, %v4278_v56  ;;  %v5723_v34 = vmul.f32 %v8077_v24, %v5642_v29  ;;  %v3887_v18 = vld [vmem:[#allocation3 + $0xe8] sm:$0xff] }
 0x2c5   : > { %v5480_v2 = vld [vmem:[#allocation3 + $0xb8] sm:$0xff]  ;;  %v4933_v48 = vpop.f32.mrf.mxu3 }
 0x2c6   : > { %5039 = vst.msk [vmem:[#allocation3 + $0xc0] sm:$0xff] %vm944_vm8, %v5007_v57  ;;  %v5512_v32 = vadd.f32 %v5480_v2, %v5434_v49  ;;  %v5797_v20 = vsel %vm944_vm8, %v5723_v34, 0.0  ;;  %v3888_v34 = vld [vmem:[#allocation3 + $0xf0] sm:$0xff] }
 0x2c7   : > { %v4206_v52 = vpop.f32.mrf.mxu2  ;;  %v3845_v58 = vpop.f32.mrf.mxu1  ;;  %5798 = vadd.xlane.f32.xlu1 %v5797_v20  ;;  %v5575_v7 = vld [vmem:[#allocation3 + $0xb0] sm:$0xff] }
 0x2c8   : > { %5544 = vst.msk [vmem:[#allocation3 + $0xb8] sm:$0xff] %vm944_vm8, %v5512_v32  ;;  %v3917_v4 = vadd.f32 %v3885_v47, %v3845_v58  ;;  %v5611_v10 = vadd.f32 %v8298_v63, %v5575_v7 }
 0x2c9   : > { %v4247_v5 = vld [vmem:[#allocation3 + $0xd0] sm:$0xff] }
 0x2ca   : > { %v4279_v15 = vadd.f32 %v4247_v5, %v4206_v52  ;;  %3949 = vst.msk [vmem:[#allocation3 + $0xd8] sm:$0xff] %vm944_vm8, %v3917_v4  ;;  %v5643_v3 = vmax.f32 %v5611_v10, 0.0 }
 0x2cb   : > { %v4976_v59 = vld [vmem:[#allocation3 + $0xc8] sm:$0xff]  ;;  %v5439_v26 = vpop.f32.mrf.mxu0 }
 0x2cc   : > { %v5008_v22 = vadd.f32 %v4976_v59, %v4933_v48  ;;  %4311 = vst.msk [vmem:[#allocation3 + $0xd0] sm:$0xff] %vm944_vm8, %v4279_v15  ;;  %v5724_v14 = vmul.f32 %v8077_v24, %v5643_v3 }
 0x2cd   : > { %v5481_v17 = vld [vmem:[#allocation3 + $0xc0] sm:$0xff]  ;;  %v4936_v6 = vpop.f32.mrf.mxu3 }
 0x2ce   : > { %5040 = vst.msk [vmem:[#allocation3 + $0xc8] sm:$0xff] %vm944_vm8, %v5008_v22  ;;  %v5513_v16 = vadd.f32 %v5481_v17, %v5437_v35  ;;  %v5800_v13 = vsel %vm944_vm8, %v5724_v14, 0.0  ;;  %v3889_v14 = vld [vmem:[#allocation3 + $0xf8] sm:$0xff] }
 0x2cf   : > { %v4208_v9 = vpop.f32.mrf.mxu2  ;;  %v3848_v27 = vpop.f32.mrf.mxu1  ;;  %5801 = vadd.xlane.f32.xlu2 %v5800_v13  ;;  %v5576_v11 = vld [vmem:[#allocation3 + $0xb8] sm:$0xff] }
 0x2d0   : > { %5545 = vst.msk [vmem:[#allocation3 + $0xc0] sm:$0xff] %vm944_vm8, %v5513_v16  ;;  %v3918_v8 = vadd.f32 %v3886_v21, %v3848_v27  ;;  %v5612_v36 = vadd.f32 %v8298_v63, %v5576_v11 }
 0x2d1   : > { %v4248_v37 = vld [vmem:[#allocation3 + $0xd8] sm:$0xff] }
 0x2d2   : > { %v4280_v28 = vadd.f32 %v4248_v37, %v4208_v9  ;;  %3950 = vst.msk [vmem:[#allocation3 + $0xe0] sm:$0xff] %vm944_vm8, %v3918_v8  ;;  %v5644_v38 = vmax.f32 %v5612_v36, 0.0 }
 0x2d3   : > { %v4977_v0 = vld [vmem:[#allocation3 + $0xd0] sm:$0xff]  ;;  %v5442_v42 = vpop.f32.mrf.mxu0 }
 0x2d4   : > { %v5009_v33 = vadd.f32 %v4977_v0, %v4936_v6  ;;  %4312 = vst.msk [vmem:[#allocation3 + $0xd8] sm:$0xff] %vm944_vm8, %v4280_v28  ;;  %v5725_v19 = vmul.f32 %v8077_v24, %v5644_v38  ;;  %v5568_v0 = vld [vmem:[#allocation3 + $0x78] sm:$0xff] }
 0x2d5   : > { %v5482_v46 = vld [vmem:[#allocation3 + $0xc8] sm:$0xff]  ;;  %v4938_v49 = vpop.f32.mrf.mxu3 }
 0x2d6   : > { %5041 = vst.msk [vmem:[#allocation3 + $0xd0] sm:$0xff] %vm944_vm8, %v5009_v33  ;;  %v5514_v30 = vadd.f32 %v5482_v46, %v5439_v26  ;;  %v5803_v50 = vsel %vm944_vm8, %v5725_v19, 0.0 }
 0x2d7   : > { %v4211_v51 = vpop.f32.mrf.mxu2  ;;  %v3850_v31 = vpop.f32.mrf.mxu1  ;;  %5804 = vadd.xlane.f32.xlu0 %v5803_v50  ;;  %v5577_v23 = vld [vmem:[#allocation3 + $0xc0] sm:$0xff] }
 0x2d8   : > { %5546 = vst.msk [vmem:[#allocation3 + $0xc8] sm:$0xff] %vm944_vm8, %v5514_v30  ;;  %v3919_v53 = vadd.f32 %v3887_v18, %v3850_v31  ;;  %v5613_v55 = vadd.f32 %v8298_v63, %v5577_v23 }
 0x2d9   : > { %v4249_v45 = vld [vmem:[#allocation3 + $0xe0] sm:$0xff] }
 0x2da   : > { %v4281_v44 = vadd.f32 %v4249_v45, %v4211_v51  ;;  %3951 = vst.msk [vmem:[#allocation3 + $0xe8] sm:$0xff] %vm944_vm8, %v3919_v53  ;;  %v5645_v43 = vmax.f32 %v5613_v55, 0.0  ;;  %v5604_v51 = vadd.f32 %v8298_v63, %v5568_v0 }
 0x2db   : > { %v4978_v1 = vld [vmem:[#allocation3 + $0xd8] sm:$0xff]  ;;  %v5444_v40 = vpop.f32.mrf.mxu0 }
 0x2dc   : > { %v5010_v39 = vadd.f32 %v4978_v1, %v4938_v49  ;;  %4313 = vst.msk [vmem:[#allocation3 + $0xe0] sm:$0xff] %vm944_vm8, %v4281_v44  ;;  %v5726_v25 = vmul.f32 %v8077_v24, %v5645_v43  ;;  %v5636_v44 = vmax.f32 %v5604_v51, 0.0 }
 0x2dd   : > { %v5483_v61 = vld [vmem:[#allocation3 + $0xd0] sm:$0xff]  ;;  %v4941_v56 = vpop.f32.mrf.mxu3 }
 0x2de   : > { %5042 = vst.msk [vmem:[#allocation3 + $0xd8] sm:$0xff] %vm944_vm8, %v5010_v39  ;;  %v5515_v29 = vadd.f32 %v5483_v61, %v5442_v42  ;;  %v5806_v62 = vsel %vm944_vm8, %v5726_v25, 0.0  ;;  %v5717_v39 = vmul.f32 %v8077_v24, %v5636_v44 }
 0x2df   : > { %v4213_v57 = vpop.f32.mrf.mxu2  ;;  %v3853_v35 = vpop.f32.mrf.mxu1  ;;  %5807 = vadd.xlane.f32.xlu1 %v5806_v62  ;;  %v5578_v2 = vld [vmem:[#allocation3 + $0xc8] sm:$0xff] }
 0x2e0   : > { %5547 = vst.msk [vmem:[#allocation3 + $0xd0] sm:$0xff] %vm944_vm8, %v5515_v29  ;;  %v3920_v48 = vadd.f32 %v3888_v34, %v3853_v35  ;;  %v5614_v32 = vadd.f32 %v8298_v63, %v5578_v2  ;;  %v5779_v34 = vsel %vm944_vm8, %v5717_v39, 0.0 }
 0x2e1   : > { %v4250_v20 = vld [vmem:[#allocation3 + $0xe8] sm:$0xff] }
 0x2e2   : > { %v4282_v52 = vadd.f32 %v4250_v20, %v4213_v57  ;;  %3952 = vst.msk [vmem:[#allocation3 + $0xf0] sm:$0xff] %vm944_vm8, %v3920_v48  ;;  %v5646_v58 = vmax.f32 %v5614_v32, 0.0 }
 0x2e3   : > { %v4979_v47 = vld [vmem:[#allocation3 + $0xe0] sm:$0xff]  ;;  %v5447_v3 = vpop.f32.mrf.mxu0 }
 0x2e4   : > { %v5011_v7 = vadd.f32 %v4979_v47, %v4941_v56  ;;  %4314 = vst.msk [vmem:[#allocation3 + $0xe8] sm:$0xff] %vm944_vm8, %v4282_v52  ;;  %v5727_v4 = vmul.f32 %v8077_v24, %v5646_v58 }
 0x2e5   : > { %v5484_v10 = vld [vmem:[#allocation3 + $0xd8] sm:$0xff]  ;;  %v4943_v15 = vpop.f32.mrf.mxu3 }
 0x2e6   : > { %5043 = vst.msk [vmem:[#allocation3 + $0xe0] sm:$0xff] %vm944_vm8, %v5011_v7  ;;  %v5516_v5 = vadd.f32 %v5484_v10, %v5444_v40  ;;  %v5809_v59 = vsel %vm944_vm8, %v5727_v4, 0.0 }
 0x2e7   : > { %v4216_v22 = vpop.f32.mrf.mxu2  ;;  %v3855_v26 = vpop.f32.mrf.mxu1  ;;  %5810 = vadd.xlane.f32.xlu2 %v5809_v59  ;;  %v5579_v17 = vld [vmem:[#allocation3 + $0xd0] sm:$0xff] }
 0x2e8   : > { %5548 = vst.msk [vmem:[#allocation3 + $0xd8] sm:$0xff] %vm944_vm8, %v5516_v5  ;;  %v3921_v6 = vadd.f32 %v3889_v14, %v3855_v26  ;;  %v5615_v16 = vadd.f32 %v8298_v63, %v5579_v17 }
 0x2e9   : > { %v4251_v13 = vld [vmem:[#allocation3 + $0xf0] sm:$0xff] }
 0x2ea   : > { %v4283_v9 = vadd.f32 %v4251_v13, %v4216_v22  ;;  %3953 = vst.msk [vmem:[#allocation3 + $0xf8] sm:$0xff] %vm944_vm8, %v3921_v6  ;;  %v5647_v27 = vmax.f32 %v5615_v16, 0.0  ;;  %v5754_v16 = vpop.xlane.xlu2 %5753 }
 0x2eb   : > { %v4980_v21 = vld [vmem:[#allocation3 + $0xe8] sm:$0xff]  ;;  %v5449_v33 = vpop.f32.mrf.mxu0 }
 0x2ec   : > { %v5012_v11 = vadd.f32 %v4980_v21, %v4943_v15  ;;  %4315 = vst.msk [vmem:[#allocation3 + $0xf0] sm:$0xff] %vm944_vm8, %v4283_v9  ;;  %v5728_v8 = vmul.f32 %v8077_v24, %v5647_v27  ;;  %v5769_v9 = vpop.xlane.xlu1 %5768 }
 0x2ed   : > { %v5485_v36 = vld [vmem:[#allocation3 + $0xe0] sm:$0xff]  ;;  %v4946_v19 = vpop.f32.mrf.mxu3 }
 0x2ee   : > { %5044 = vst.msk [vmem:[#allocation3 + $0xe8] sm:$0xff] %vm944_vm8, %v5012_v11  ;;  %v5517_v37 = vadd.f32 %v5485_v36, %v5447_v3  ;;  %v5812_v28 = vsel %vm944_vm8, %v5728_v8, 0.0  ;;  %v5766_v8 = vpop.xlane.xlu0 %5765 }
 0x2ef   : > { %5813 = vadd.xlane.f32.xlu0 %v5812_v28  ;;  %v5580_v38 = vld [vmem:[#allocation3 + $0xd8] sm:$0xff]  ;;  %v4218_v46 = vpop.f32.mrf.mxu2 }
 0x2f0   : > { %5549 = vst.msk [vmem:[#allocation3 + $0xe0] sm:$0xff] %vm944_vm8, %v5517_v37  ;;  %v5616_v42 = vadd.f32 %v8298_v63, %v5580_v38 }
 0x2f1   : > { %v4252_v49 = vld [vmem:[#allocation3 + $0xf8] sm:$0xff] }
 0x2f2   : > { %v4284_v30 = vadd.f32 %v4252_v49, %v4218_v46  ;;  %v5648_v50 = vmax.f32 %v5616_v42, 0.0  ;;  %v5757_v13 = vpop.xlane.xlu2 %5756 }
 0x2f3   : > { %v4981_v31 = vld [vmem:[#allocation3 + $0xf0] sm:$0xff]  ;;  %v5452_v56 = vpop.f32.mrf.mxu0 }
 0x2f4   : > { %v5013_v18 = vadd.f32 %v4981_v31, %v4946_v19  ;;  %4316 = vst.msk [vmem:[#allocation3 + $0xf8] sm:$0xff] %vm944_vm8, %v4284_v30  ;;  %v5729_v23 = vmul.f32 %v8077_v24, %v5648_v50  ;;  %v5838_v30 = vadd.f32 %v8324_v54, %v5754_v16  ;;  %v5843_v50 = vadd.f32 %v8324_v54, %v5769_v9 }
 0x2f5   : > { %v5486_v53 = vld [vmem:[#allocation3 + $0xe8] sm:$0xff]  ;;  %v4948_v25 = vpop.f32.mrf.mxu3 }
 0x2f6   : > { %5045 = vst.msk [vmem:[#allocation3 + $0xf0] sm:$0xff] %vm944_vm8, %v5013_v18  ;;  %v5518_v55 = vadd.f32 %v5486_v53, %v5449_v33  ;;  %v5815_v45 = vsel %vm944_vm8, %v5729_v23, 0.0  ;;  %v5842_v23 = vadd.f32 %v8324_v54, %v5766_v8  ;;  %v5905_v44 = vperm.slane %v5838_v30, %v8020_v60 }
 0x2f7   : > { %5816 = vadd.xlane.f32.xlu1 %v5815_v45  ;;  %v5581_v43 = vld [vmem:[#allocation3 + $0xe0] sm:$0xff] }
 0x2f8   : > { %5550 = vst.msk [vmem:[#allocation3 + $0xe8] sm:$0xff] %vm944_vm8, %v5518_v55  ;;  %v5617_v1 = vadd.f32 %v8298_v63, %v5581_v43  ;;  %v5912_v43 = vperm.slane %v5843_v50, %v8029_v12 }
 0x2fa   : > { %v5649_v40 = vmax.f32 %v5617_v1, 0.0  ;;  %v5760_v27 = vpop.xlane.xlu2 %5759  ;;  %v5775_v28 = vpop.xlane.xlu0 %5774 }
 0x2fb   : > { %v4982_v61 = vld [vmem:[#allocation3 + $0xf8] sm:$0xff]  ;;  %v5454_v58 = vpop.f32.mrf.mxu0  ;;  %v5840_v51 = vadd.f32 %v8324_v54, %v5760_v27  ;;  %v5845_v31 = vadd.f32 %v8324_v54, %v5775_v28 }
 0x2fc   : > { %v5014_v29 = vadd.f32 %v4982_v61, %v4948_v25  ;;  %v5730_v62 = vmul.f32 %v8077_v24, %v5649_v40  ;;  %v5911_v25 = vperm.slane %v5842_v23, %v8020_v60 }
 0x2fd   : > { %v5487_v57 = vld [vmem:[#allocation3 + $0xf0] sm:$0xff]  ;;  %v5908_v1 = vperm.slane %v5840_v51, %v8020_v60  ;;  %v5915_v39 = vperm.slane %v5845_v31, %v8029_v12 }
 0x2fe   : > { %5046 = vst.msk [vmem:[#allocation3 + $0xf8] sm:$0xff] %vm944_vm8, %v5014_v29  ;;  %v5519_v35 = vadd.f32 %v5487_v57, %v5452_v56  ;;  %v5818_v2 = vsel %vm944_vm8, %v5730_v62, 0.0 }
 0x2ff   : > { %5780 = vadd.xlane.f32.xlu1 %v5779_v34  ;;  %5819 = vadd.xlane.f32.xlu2 %v5818_v2  ;;  %v5582_v48 = vld [vmem:[#allocation3 + $0xe8] sm:$0xff] }
 0x300   : > { %5551 = vst.msk [vmem:[#allocation3 + $0xf0] sm:$0xff] %vm944_vm8, %v5519_v35  ;;  %v5618_v32 = vadd.f32 %v8298_v63, %v5582_v48  ;;  %v5913_v35 = vsel %vm5678_vm0, %v5912_v43, %v5911_v25 }
 0x302   : > { %v5650_v20 = vmax.f32 %v5618_v32, 0.0  ;;  %v5778_v21 = vpop.xlane.xlu1 %5777  ;;  %v5763_v11 = vpop.xlane.xlu2 %5762 }
 0x303   : > { %v5841_v46 = vadd.f32 %v8324_v54, %v5763_v11  ;;  %v5846_v61 = vadd.f32 %v8324_v54, %v5778_v21 }
 0x304   : > { %v5731_v52 = vmul.f32 %v8077_v24, %v5650_v20 }
 0x305   : > { %v5488_v47 = vld [vmem:[#allocation3 + $0xf8] sm:$0xff]  ;;  %v5909_v53 = vperm.slane %v5841_v46, %v8029_v12  ;;  %v5917_v20 = vperm.slane %v5846_v61, %v8020_v60 }
 0x306   : > { %v5520_v7 = vadd.f32 %v5488_v47, %v5454_v58  ;;  %v5821_v4 = vsel %vm944_vm8, %v5731_v52, 0.0 }
 0x307   : > { %5822 = vadd.xlane.f32.xlu0 %v5821_v4  ;;  %v5583_v10 = vld [vmem:[#allocation3 + $0xf0] sm:$0xff]  ;;  %v5910_v29 = vsel %vm5678_vm0, %v5909_v53, %v5908_v1 }
 0x308   : > { %5552 = vst.msk [vmem:[#allocation3 + $0xf8] sm:$0xff] %vm944_vm8, %v5520_v7  ;;  %v5619_v5 = vadd.f32 %v8298_v63, %v5583_v10 }
 0x30a   : > { %v5651_v15 = vmax.f32 %v5619_v5, 0.0  ;;  %v5772_v37 = vpop.xlane.xlu2 %5771 }
 0x30b   : > { %v5844_v55 = vadd.f32 %v8324_v54, %v5772_v37 }
 0x30c   : > { %v5732_v3 = vmul.f32 %v8077_v24, %v5651_v15 }
 0x30d   : > { %v5914_v62 = vperm.slane %v5844_v55, %v8020_v60 }
 0x30e   : > { %v5824_v59 = vsel %vm944_vm8, %v5732_v3, 0.0 }
 0x30f   : > { %5825 = vadd.xlane.f32.xlu2 %v5824_v59  ;;  %v5584_v22 = vld [vmem:[#allocation3 + $0xf8] sm:$0xff]  ;;  %v5916_v48 = vsel %vm5678_vm0, %v5915_v39, %v5914_v62 }
 0x310   : > { %v5620_v26 = vadd.f32 %v8298_v63, %v5584_v22 }
 0x312   : > { %v5652_v14 = vmax.f32 %v5620_v26, 0.0  ;;  %v5784_v0 = vpop.xlane.xlu2 %5783 }
 0x313   : > { %v5848_v16 = vadd.f32 %v8324_v54, %v5784_v0 }
 0x314   : > { %v5733_v17 = vmul.f32 %v8077_v24, %v5652_v14  ;;  %v5839_v24 = vadd.f32 %v8324_v54, %v5757_v13 }
 0x316   : > { %v5827_v6 = vsel %vm944_vm8, %v5733_v17, 0.0  ;;  %v5906_v18 = vperm.slane %v5839_v24, %v8029_v12  ;;  %vm5697_vm8 = vcmask 1046534  }
 0x317   : > { %5828 = vadd.xlane.f32.xlu0 %v5827_v6 }
 0x318   : > { %v5907_v40 = vsel %vm5678_vm0, %v5906_v18, %v5905_v44 }
 0x319   : > { %v5946_v2 = vsel %vm5691_vm5, %v5907_v40, %v8382_v41 }
 0x31a   : > { %v5787_v33 = vpop.xlane.xlu0 %5786  ;;  %v5947_v32 = vsel %vm5693_vm6, %v5910_v29, %v5946_v2 }
 0x31b   : > { %v5948_v58 = vsel %vm5695_vm7, %v5913_v35, %v5947_v32  ;;  %v5849_v59 = vadd.f32 %v8324_v54, %v5787_v33 }
 0x31c   : > { %v5949_v7 = vsel %vm5697_vm8, %v5916_v48, %v5948_v58 }
 0x322   : > { %v5790_v36 = vpop.xlane.xlu1 %5789 }
 0x323   : > { %v5850_v22 = vadd.f32 %v8324_v54, %v5790_v36  ;;  %v5921_v36 = vperm.slane %v5849_v59, %v8029_v12 }
 0x325   : > { %v5923_v37 = vperm.slane %v5850_v22, %v8020_v60 }
 0x32a   : > { %v5793_v42 = vpop.xlane.xlu2 %5792 }
 0x32b   : > { %v5851_v15 = vadd.f32 %v8324_v54, %v5793_v42 }
 0x32d   : > { %v5924_v13 = vperm.slane %v5851_v15, %v8029_v12 }
 0x332   : > { %v5796_v19 = vpop.xlane.xlu0 %5795 }
 0x333   : > { %v5852_v17 = vadd.f32 %v8324_v54, %v5796_v19  ;;  %v5925_v19 = vsel %vm5678_vm0, %v5924_v13, %v5923_v37 }
 0x335   : > { %v5926_v0 = vperm.slane %v5852_v17, %v8020_v60 }
 0x33a   : > { %v5799_v38 = vpop.xlane.xlu1 %5798 }
 0x33b   : > { %v5853_v3 = vadd.f32 %v8324_v54, %v5799_v38 }
 0x33d   : > { %v5927_v21 = vperm.slane %v5853_v3, %v8029_v12 }
 0x33f   : > { %v5928_v30 = vsel %vm5678_vm0, %v5927_v21, %v5926_v0 }
 0x342   : > { %v5802_v45 = vpop.xlane.xlu2 %5801 }
 0x343   : > { %v5854_v9 = vadd.f32 %v8324_v54, %v5802_v45 }
 0x345   : > { %v5929_v46 = vperm.slane %v5854_v9, %v8020_v60 }
 0x34a   : > { %v5805_v56 = vpop.xlane.xlu0 %5804 }
 0x34b   : > { %v5855_v26 = vadd.f32 %v8324_v54, %v5805_v56 }
 0x34d   : > { %v5930_v28 = vperm.slane %v5855_v26, %v8029_v12 }
 0x34f   : > { %v5931_v18 = vsel %vm5678_vm0, %v5930_v28, %v5929_v46 }
 0x352   : > { %v8450_v63 = vpop.xlane.xlu1 %5807 }
 0x353   : > { %v5856_v11 = vadd.f32 %v8324_v54, %v8450_v63  ;;  %v5920_v63 = vperm.slane %v5848_v16, %v8020_v60 }
 0x355   : > { %v5932_v50 = vperm.slane %v5856_v11, %v8020_v60  ;;  %v5922_v31 = vsel %vm5678_vm0, %v5921_v36, %v5920_v63 }
 0x356   : > { %v5951_v55 = vsel %vm5688_vm3, %v5925_v19, %v5922_v31 }
 0x357   : > { %v5952_v1 = vsel %vm5689_vm4, %v5928_v30, %v5951_v55 }
 0x358   : > { %v5953_v25 = vsel %vm5691_vm5, %v5931_v18, %v5952_v1 }
 0x35a   : > { %v5811_v47 = vpop.xlane.xlu2 %5810 }
 0x35b   : > { %v5857_v6 = vadd.f32 %v8324_v54, %v5811_v47 }
 0x35d   : > { %v5933_v33 = vperm.slane %v5857_v6, %v8029_v12 }
 0x35f   : > { %v5934_v45 = vsel %vm5678_vm0, %v5933_v33, %v5932_v50 }
 0x360   : > { %v5954_v56 = vsel %vm5693_vm6, %v5934_v45, %v5953_v25 }
 0x362   : > { %v5814_v10 = vpop.xlane.xlu0 %5813 }
 0x363   : > { %v5858_v38 = vadd.f32 %v8324_v54, %v5814_v10 }
 0x365   : > { %v5935_v23 = vperm.slane %v5858_v38, %v8020_v60 }
 0x36a   : > { %v5817_v49 = vpop.xlane.xlu1 %5816 }
 0x36b   : > { %v5859_v27 = vadd.f32 %v8324_v54, %v5817_v49 }
 0x36d   : > { %v5936_v49 = vperm.slane %v5859_v27, %v8029_v12 }
 0x36f   : > { %v5937_v39 = vsel %vm5678_vm0, %v5936_v49, %v5935_v23 }
 0x372   : > { %v5781_v57 = vpop.xlane.xlu1 %5780  ;;  %v5820_v5 = vpop.xlane.xlu2 %5819 }
 0x373   : > { %v5847_v34 = vadd.f32 %v8324_v54, %v5781_v57  ;;  %v5860_v42 = vadd.f32 %v8324_v54, %v5820_v5  ;;  %v5955_v57 = vsel %vm5695_vm7, %v5937_v39, %v5954_v56 }
 0x375   : > { %v5918_v52 = vperm.slane %v5847_v34, %v8029_v12  ;;  %v5938_v44 = vperm.slane %v5860_v42, %v8020_v60 }
 0x377   : > { %v5919_v4 = vsel %vm5678_vm0, %v5918_v52, %v5917_v20 }
 0x378   : > { %v5950_v41 = vsel %vm5699_vm9, %v5919_v4, %v5949_v7 }
 0x379   : > { %5961 = vst.msk [vmem:[%s8486_s12] sm:$0xff] %vm5960_vm10, %v5950_v41 }
 0x37a   : > { %v5823_v14 = vpop.xlane.xlu0 %5822 }
 0x37b   : > { %v5861_v8 = vadd.f32 %v8324_v54, %v5823_v14 }
 0x37d   : > { %v5939_v51 = vperm.slane %v5861_v8, %v8029_v12 }
 0x37f   : > { %v5940_v61 = vsel %vm5678_vm0, %v5939_v51, %v5938_v44 }
 0x380   : > { %v5956_v35 = vsel %vm5697_vm8, %v5940_v61, %v5955_v57 }
 0x382   : > { %v5826_v24 = vpop.xlane.xlu2 %5825 }
 0x383   : > { %v5862_v53 = vadd.f32 %v8324_v54, %v5826_v24 }
 0x385   : > { %v5941_v29 = vperm.slane %v5862_v53, %v8020_v60 }
 0x38a   : > { %v5829_v43 = vpop.xlane.xlu0 %5828 }
 0x38b   : > { %v5863_v40 = vadd.f32 %v8324_v54, %v5829_v43 }
 0x38d   : > { %v5942_v62 = vperm.slane %v5863_v40, %v8029_v12 }
 0x38f   : > { %v5943_v54 = vsel %vm5678_vm0, %v5942_v62, %v5941_v29 }
 0x390   : > { %v5957_v34 = vsel %vm5699_vm9, %v5943_v54, %v5956_v35 }
 0x391   : > { %5962 = vst.msk [vmem:[%s8486_s12 + $0x8] sm:$0xff] %vm5960_vm10, %v5957_v34 }
 0x392   : > { %6688 = shalt.err (!%p6685_p3)
}
 0x393   : > { %s6726_s9 = smov 128   ;;  %s6727_s10 = smov 8  }
 0x394   : > { %6615 = dma.vmem_to_hbm [thread:$0]  (%p6799_p5), %s5977_s15, 256, %s5979_s16, %s5964_s17, %s6726_s9, %s6726_s9, %s6727_s10  }
 0x395 PF: > { %p6621_p4 = scmp.ge.s32.totalorder %s6723_s23, 2  ;;  %s5993_s11 = sand.u32 1, %s6711_s20  }
 0x396   : > { %s5994_s12 = scalar_lea.sflag [#allocation6], %s5993_s11 }
 0x397   : > { %p6618_p7 = pnand %p6621_p4, %p6803_p6 }
 0x399   : > { %p6619_p8 = pneg %p6618_p7 }
 0x39b   : > { %6706 = dma.done.wait (%p6619_p8), %s5994_s12, 256  }
 0x39c   : > { %6708 = vsyncadd (%p6619_p8), %s5994_s12, 4294967040  ;;  %p16_p9 = scmp.ge.s32.totalorder %s6786_s25, 4   ;;  %s8594_s20 = smov %s6715_s21 }
 0x39d   : > { %s8595_s21 = smov %s6719_s22  ;;  %s8596_s22 = smov %s6797_s28 }
 0x39e   : > { %s8597_s23 = smov %s6786_s25  ;;  %18 = sbr.rel (!%p16_p9) target bundleno = 5 (0x5), region = 86 }
 0x3a3   :  { %6000 = vsyncpa [#allocation6], 1 }
 0x3a4   :  { %6002 = vsyncpa [#allocation6 + $0x1], 1 }

</bundles_post_ra>
